<compile_context>
chip_gen: v5e
topology: v5e:2x2
jax: 0.10.0
libtpu: 0.0.40
codegen_flags: <defaults>
</compile_context>

<pallas_src>
import jax
import jax.numpy as jnp
from jax.experimental import pallas as pl
from jax.experimental.pallas import tpu as pltpu

EPS = 1e-5
LANES = 128


def _round_up(x, m):
    return (x + m - 1) // m * m


def unet_block_kernel(x_ref, w1_ref, g1_ref, bt1_ref, w2_ref, g2_ref, bt2_ref,
                      o_ref, xp_s):
    """Fused UNetBlock forward.

    x_ref   : (B, H, W, Cp)      channel-padded NHWC input, f32
    w*_ref  : (9*Cp, Cp)         im2col conv weights (taps row-major, cin minor)
    g*,bt*  : (1, Cp)            BN gamma / beta (zero in padded channels)
    o_ref   : (B, H, W, Cp)      output (padded channels come out as 0)
    xp_s    : (B, H+2, W+2, Cp)  VMEM scratch: zero-halo input of current stage
    """
    B, H, W, Cp = x_ref.shape
    n = B * H * W
    inv_n = 1.0 / float(n)

    def conv_bn_relu(w_ref, g_ref, bt_ref):
        # im2col: 9 shifted views of the haloed scratch, concatenated along
        # the lane-aligned channel axis -> one MXU matmul with K = 9*Cp.
        patches = jnp.concatenate(
            [xp_s[:, dy:dy + H, dx:dx + W, :]
             for dy in range(3) for dx in range(3)],
            axis=-1,
        ).reshape(n, 9 * Cp)
        acc = jnp.dot(patches, w_ref[...], preferred_element_type=jnp.float32)

        # BatchNorm2d, training-mode batch stats (biased variance), folded
        # into a single per-channel scale/shift.  Conv bias is omitted: it is
        # exactly removed by the mean subtraction below.
        s1 = jnp.sum(acc, axis=0, keepdims=True)
        s2 = jnp.sum(acc * acc, axis=0, keepdims=True)
        mean = s1 * inv_n
        var = jnp.maximum(s2 * inv_n - mean * mean, 0.0)
        scale = g_ref[...] * jax.lax.rsqrt(var + EPS)
        shift = bt_ref[...] - mean * scale

        # Single fused elementwise pass: FMA + ReLU.
        return jnp.maximum(acc * scale + shift, 0.0).reshape(B, H, W, Cp)

    # Zero the haloed scratch once; the halo stays zero for both stages.
    xp_s[...] = jnp.zeros_like(xp_s)

    # Stage 1.
    xp_s[:, 1:H + 1, 1:W + 1, :] = x_ref[...]
    h = conv_bn_relu(w1_ref, g1_ref, bt1_ref)

    # Stage 2 (intermediate activation never leaves VMEM).
    xp_s[:, 1:H + 1, 1:W + 1, :] = h
    o_ref[...] = conv_bn_relu(w2_ref, g2_ref, bt2_ref)


def unet_block(x_nchw, params):
    """Forward of UNetBlock.  Input/output are NCHW, like the PyTorch module."""
    B, Cin, H, W = x_nchw.shape
    Cout = params["w1"].shape[-1]
    Cp = _round_up(max(Cin, Cout, 1), LANES)   # lane-dense channel count

    # NCHW -> NHWC + channel pad (boundary layout plumbing only).
    x = jnp.transpose(x_nchw, (0, 2, 3, 1))
    x = jnp.pad(x, ((0, 0), (0, 0), (0, 0), (0, Cp - Cin)))

    def pad_w(w):  # (3,3,cin,cout) HWIO -> (9*Cp, Cp) im2col layout
        cin, cout = w.shape[2], w.shape[3]
        wp = jnp.pad(w, ((0, 0), (0, 0), (0, Cp - cin), (0, Cp - cout)))
        return wp.reshape(9 * Cp, Cp)

    def pad_c(v):  # (cout,) -> (1, Cp), zeros in padded channels
        return jnp.pad(v, (0, Cp - v.shape[0])).reshape(1, Cp)

    w1, w2 = pad_w(params["w1"]), pad_w(params["w2"])
    g1, bt1 = pad_c(params["g1"]), pad_c(params["bt1"])
    g2, bt2 = pad_c(params["g2"]), pad_c(params["bt2"])
    # NOTE: conv biases b1/b2 are not passed to the kernel — they are a
    # numerical no-op under training-mode BatchNorm (mean subtraction).

    vmem = lambda: pl.BlockSpec(memory_space=pltpu.MemorySpace.VMEM)
    out = pl.pallas_call(
        unet_block_kernel,
        out_shape=jax.ShapeDtypeStruct((B, H, W, Cp), jnp.float32),
        in_specs=[vmem() for _ in range(7)],
        out_specs=vmem(),
        scratch_shapes=[pltpu.VMEM((B, H + 2, W + 2, Cp), jnp.float32)],
        compiler_params=pltpu.CompilerParams(
            # explicit, generation-safe scoped-VMEM budget (usage here ~6 MiB)
            vmem_limit_bytes=32 * 1024 * 1024),
    )(x, w1, g1, bt1, w2, g2, bt2)

    out = out[..., :Cout]                       # drop channel padding
    return jnp.transpose(out, (0, 3, 1, 2))     # NHWC -> NCHW


# ---------------------------------------------------------------------------
# Pure-JAX reference (keeps the conv bias) used only for a sanity check.
# ---------------------------------------------------------------------------
def _ref_stage(x_nhwc, w, b, gamma, beta):
    y = jax.lax.conv_general_dilated(
        x_nhwc, w, window_strides=(1, 1), padding="SAME",
        dimension_numbers=("NHWC", "HWIO", "NHWC")) + b
    mean = jnp.mean(y, axis=(0, 1, 2), keepdims=True)
    var = jnp.mean((y - mean) ** 2, axis=(0, 1, 2), keepdims=True)
    yn = (y - mean) * jax.lax.rsqrt(var + EPS)
    return jnp.maximum(yn * gamma + beta, 0.0)


def unet_block_ref(x_nchw, params):
    x = jnp.transpose(x_nchw, (0, 2, 3, 1))
    h = _ref_stage(x, params["w1"], params["b1"], params["g1"], params["bt1"])
    h = _ref_stage(h, params["w2"], params["b2"], params["g2"], params["bt2"])
    return jnp.transpose(h, (0, 3, 1, 2))


if __name__ == "__main__":
    key = jax.random.PRNGKey(0)
    B, in_ch, out_ch, H, W = 2, 4, 8, 16, 16
    ks = jax.random.split(key, 5)

    # Deterministic parameter init (mirrors PyTorch Conv2d kaiming-uniform bounds).
    x = jax.random.normal(ks[0], (B, in_ch, H, W), jnp.float32)  # NCHW like PyTorch
    bound1 = 1.0 / (in_ch * 9) ** 0.5
    bound2 = 1.0 / (out_ch * 9) ** 0.5
    params = {
        "w1": jax.random.uniform(ks[1], (3, 3, in_ch, out_ch), jnp.float32,
                                 -bound1, bound1),
        "b1": jax.random.uniform(ks[2], (out_ch,), jnp.float32, -bound1, bound1),
        "g1": jnp.ones((out_ch,), jnp.float32),
        "bt1": jnp.zeros((out_ch,), jnp.float32),
        "w2": jax.random.uniform(ks[3], (3, 3, out_ch, out_ch), jnp.float32,
                                 -bound2, bound2),
        "b2": jax.random.uniform(ks[4], (out_ch,), jnp.float32, -bound2, bound2),
        "g2": jnp.ones((out_ch,), jnp.float32),
        "bt2": jnp.zeros((out_ch,), jnp.float32),
    }

    fwd = jax.jit(unet_block)
    out = jax.block_until_ready(fwd(x, params))
    assert out.shape == (B, out_ch, H, W), out.shape

    ref = jax.block_until_ready(unet_block_ref(x, params))
    assert jnp.allclose(out, ref, atol=1e-2, rtol=1e-2), (
        float(jnp.max(jnp.abs(out - ref))))

    print("KERNEL_OK")
</pallas_src>

<mosaic_0001>
module attributes {stable_mosaic.version = 11 : i64} {
  func.func @unet_block_kernel(%arg0: memref<2x16x16x128xf32, #tpu.memory_space<vmem>>, %arg1: memref<1152x128xf32, #tpu.memory_space<vmem>>, %arg2: memref<1x128xf32, #tpu.memory_space<vmem>>, %arg3: memref<1x128xf32, #tpu.memory_space<vmem>>, %arg4: memref<1152x128xf32, #tpu.memory_space<vmem>>, %arg5: memref<1x128xf32, #tpu.memory_space<vmem>>, %arg6: memref<1x128xf32, #tpu.memory_space<vmem>>, %arg7: memref<2x16x16x128xf32, #tpu.memory_space<vmem>>, %arg8: memref<2x18x18x128xf32, #tpu.memory_space<vmem>>) attributes {dimension_semantics = [], scalar_prefetch = 0 : i64, scratch_operands = 1 : i64, tpu.core_type = #tpu.core_type<tc>} {
    %cst = arith.constant 0.000000e+00 : f32
    %0 = vector.broadcast %cst : f32 to vector<2x18x18x128xf32>
    %c0 = arith.constant 0 : index
    %c0_0 = arith.constant 0 : index
    %c0_1 = arith.constant 0 : index
    %c0_2 = arith.constant 0 : index
    %1 = vector.load %arg8[%c0, %c0_0, %c0_1, %c0_2] : memref<2x18x18x128xf32, #tpu.memory_space<vmem>>, vector<2x18x18x128xf32>
    tpu.vector_store %arg8[%c0, %c0_0, %c0_1, %c0_2], %0 {strides = array<i32>} : memref<2x18x18x128xf32, #tpu.memory_space<vmem>>, vector<2x18x18x128xf32>,
    %c0_3 = arith.constant 0 : index
    %c0_4 = arith.constant 0 : index
    %c0_5 = arith.constant 0 : index
    %c0_6 = arith.constant 0 : index
    %2 = vector.load %arg0[%c0_3, %c0_4, %c0_5, %c0_6] : memref<2x16x16x128xf32, #tpu.memory_space<vmem>>, vector<2x16x16x128xf32>
    %c0_7 = arith.constant 0 : index
    %c1 = arith.constant 1 : index
    %c1_8 = arith.constant 1 : index
    %c0_9 = arith.constant 0 : index
    %3 = vector.load %arg8[%c0_7, %c1, %c1_8, %c0_9] : memref<2x18x18x128xf32, #tpu.memory_space<vmem>>, vector<2x16x16x128xf32>
    tpu.vector_store %arg8[%c0_7, %c1, %c1_8, %c0_9], %2 {strides = array<i32>} : memref<2x18x18x128xf32, #tpu.memory_space<vmem>>, vector<2x16x16x128xf32>,
    %c0_10 = arith.constant 0 : index
    %c0_11 = arith.constant 0 : index
    %c0_12 = arith.constant 0 : index
    %c0_13 = arith.constant 0 : index
    %4 = vector.load %arg8[%c0_10, %c0_11, %c0_12, %c0_13] : memref<2x18x18x128xf32, #tpu.memory_space<vmem>>, vector<2x16x16x128xf32>
    %c0_14 = arith.constant 0 : index
    %c0_15 = arith.constant 0 : index
    %c1_16 = arith.constant 1 : index
    %c0_17 = arith.constant 0 : index
    %5 = vector.load %arg8[%c0_14, %c0_15, %c1_16, %c0_17] : memref<2x18x18x128xf32, #tpu.memory_space<vmem>>, vector<2x16x16x128xf32>
    %c0_18 = arith.constant 0 : index
    %c0_19 = arith.constant 0 : index
    %c2 = arith.constant 2 : index
    %c0_20 = arith.constant 0 : index
    %6 = vector.load %arg8[%c0_18, %c0_19, %c2, %c0_20] : memref<2x18x18x128xf32, #tpu.memory_space<vmem>>, vector<2x16x16x128xf32>
    %c0_21 = arith.constant 0 : index
    %c1_22 = arith.constant 1 : index
    %c0_23 = arith.constant 0 : index
    %c0_24 = arith.constant 0 : index
    %7 = vector.load %arg8[%c0_21, %c1_22, %c0_23, %c0_24] : memref<2x18x18x128xf32, #tpu.memory_space<vmem>>, vector<2x16x16x128xf32>
    %c0_25 = arith.constant 0 : index
    %c1_26 = arith.constant 1 : index
    %c1_27 = arith.constant 1 : index
    %c0_28 = arith.constant 0 : index
    %8 = vector.load %arg8[%c0_25, %c1_26, %c1_27, %c0_28] : memref<2x18x18x128xf32, #tpu.memory_space<vmem>>, vector<2x16x16x128xf32>
    %c0_29 = arith.constant 0 : index
    %c1_30 = arith.constant 1 : index
    %c2_31 = arith.constant 2 : index
    %c0_32 = arith.constant 0 : index
    %9 = vector.load %arg8[%c0_29, %c1_30, %c2_31, %c0_32] : memref<2x18x18x128xf32, #tpu.memory_space<vmem>>, vector<2x16x16x128xf32>
    %c0_33 = arith.constant 0 : index
    %c2_34 = arith.constant 2 : index
    %c0_35 = arith.constant 0 : index
    %c0_36 = arith.constant 0 : index
    %10 = vector.load %arg8[%c0_33, %c2_34, %c0_35, %c0_36] : memref<2x18x18x128xf32, #tpu.memory_space<vmem>>, vector<2x16x16x128xf32>
    %c0_37 = arith.constant 0 : index
    %c2_38 = arith.constant 2 : index
    %c1_39 = arith.constant 1 : index
    %c0_40 = arith.constant 0 : index
    %11 = vector.load %arg8[%c0_37, %c2_38, %c1_39, %c0_40] : memref<2x18x18x128xf32, #tpu.memory_space<vmem>>, vector<2x16x16x128xf32>
    %c0_41 = arith.constant 0 : index
    %c2_42 = arith.constant 2 : index
    %c2_43 = arith.constant 2 : index
    %c0_44 = arith.constant 0 : index
    %12 = vector.load %arg8[%c0_41, %c2_42, %c2_43, %c0_44] : memref<2x18x18x128xf32, #tpu.memory_space<vmem>>, vector<2x16x16x128xf32>
    %13 = tpu.concatenate %4, %5, %6, %7, %8, %9, %10, %11, %12 in 3 : vector<2x16x16x128xf32>, vector<2x16x16x128xf32>, vector<2x16x16x128xf32>, vector<2x16x16x128xf32>, vector<2x16x16x128xf32>, vector<2x16x16x128xf32>, vector<2x16x16x128xf32>, vector<2x16x16x128xf32>, vector<2x16x16x128xf32> -> vector<2x16x16x1152xf32>
    %14 = vector.shape_cast %13 : vector<2x16x16x1152xf32> to vector<512x1152xf32>
    %c0_45 = arith.constant 0 : index
    %c0_46 = arith.constant 0 : index
    %15 = vector.load %arg1[%c0_45, %c0_46] : memref<1152x128xf32, #tpu.memory_space<vmem>>, vector<1152x128xf32>
    %cst_47 = arith.constant dense<0.000000e+00> : vector<512x128xf32>
    %16 = tpu.matmul %14, %15, %cst_47 {dimension_numbers = #tpu.dot_dimension_numbers<[1], [0], [0], [1], [0, 0, 1, 1], [], []>} : vector<512x1152xf32>, vector<1152x128xf32>, vector<512x128xf32> -> vector<512x128xf32>
    %cst_48 = arith.constant dense<0.000000e+00> : vector<128xf32>
    %17 = vector.multi_reduction <add>, %16, %cst_48 [0] : vector<512x128xf32> to vector<128xf32>
    %18 = vector.shape_cast %17 : vector<128xf32> to vector<1x128xf32>
    %19 = arith.mulf %16, %16 : vector<512x128xf32>
    %cst_49 = arith.constant dense<0.000000e+00> : vector<128xf32>
    %20 = vector.multi_reduction <add>, %19, %cst_49 [0] : vector<512x128xf32> to vector<128xf32>
    %21 = vector.shape_cast %20 : vector<128xf32> to vector<1x128xf32>
    %cst_50 = arith.constant 0.001953125 : f32
    %22 = vector.broadcast %cst_50 : f32 to vector<1x128xf32>
    %23 = arith.mulf %18, %22 : vector<1x128xf32>
    %cst_51 = arith.constant 0.001953125 : f32
    %24 = vector.broadcast %cst_51 : f32 to vector<1x128xf32>
    %25 = arith.mulf %21, %24 : vector<1x128xf32>
    %26 = arith.mulf %23, %23 : vector<1x128xf32>
    %27 = arith.subf %25, %26 : vector<1x128xf32>
    %cst_52 = arith.constant 0.000000e+00 : f32
    %28 = vector.broadcast %cst_52 : f32 to vector<1x128xf32>
    %29 = arith.maximumf %27, %28 : vector<1x128xf32>
    %c0_53 = arith.constant 0 : index
    %c0_54 = arith.constant 0 : index
    %30 = vector.load %arg2[%c0_53, %c0_54] : memref<1x128xf32, #tpu.memory_space<vmem>>, vector<1x128xf32>
    %cst_55 = arith.constant 9.99999974E-6 : f32
    %31 = vector.broadcast %cst_55 : f32 to vector<1x128xf32>
    %32 = arith.addf %29, %31 : vector<1x128xf32>
    %33 = math.rsqrt %32 : vector<1x128xf32>
    %34 = arith.mulf %30, %33 : vector<1x128xf32>
    %c0_56 = arith.constant 0 : index
    %c0_57 = arith.constant 0 : index
    %35 = vector.load %arg3[%c0_56, %c0_57] : memref<1x128xf32, #tpu.memory_space<vmem>>, vector<1x128xf32>
    %36 = arith.mulf %23, %34 : vector<1x128xf32>
    %37 = arith.subf %35, %36 : vector<1x128xf32>
    %38 = vector.broadcast %34 : vector<1x128xf32> to vector<512x128xf32>
    %39 = arith.mulf %16, %38 : vector<512x128xf32>
    %40 = vector.broadcast %37 : vector<1x128xf32> to vector<512x128xf32>
    %41 = arith.addf %39, %40 : vector<512x128xf32>
    %cst_58 = arith.constant 0.000000e+00 : f32
    %42 = vector.broadcast %cst_58 : f32 to vector<512x128xf32>
    %43 = arith.maximumf %41, %42 : vector<512x128xf32>
    %44 = vector.shape_cast %43 : vector<512x128xf32> to vector<2x16x16x128xf32>
    %c0_59 = arith.constant 0 : index
    %c1_60 = arith.constant 1 : index
    %c1_61 = arith.constant 1 : index
    %c0_62 = arith.constant 0 : index
    %45 = vector.load %arg8[%c0_59, %c1_60, %c1_61, %c0_62] : memref<2x18x18x128xf32, #tpu.memory_space<vmem>>, vector<2x16x16x128xf32>
    tpu.vector_store %arg8[%c0_59, %c1_60, %c1_61, %c0_62], %44 {strides = array<i32>} : memref<2x18x18x128xf32, #tpu.memory_space<vmem>>, vector<2x16x16x128xf32>,
    %c0_63 = arith.constant 0 : index
    %c0_64 = arith.constant 0 : index
    %c0_65 = arith.constant 0 : index
    %c0_66 = arith.constant 0 : index
    %46 = vector.load %arg8[%c0_63, %c0_64, %c0_65, %c0_66] : memref<2x18x18x128xf32, #tpu.memory_space<vmem>>, vector<2x16x16x128xf32>
    %c0_67 = arith.constant 0 : index
    %c0_68 = arith.constant 0 : index
    %c1_69 = arith.constant 1 : index
    %c0_70 = arith.constant 0 : index
    %47 = vector.load %arg8[%c0_67, %c0_68, %c1_69, %c0_70] : memref<2x18x18x128xf32, #tpu.memory_space<vmem>>, vector<2x16x16x128xf32>
    %c0_71 = arith.constant 0 : index
    %c0_72 = arith.constant 0 : index
    %c2_73 = arith.constant 2 : index
    %c0_74 = arith.constant 0 : index
    %48 = vector.load %arg8[%c0_71, %c0_72, %c2_73, %c0_74] : memref<2x18x18x128xf32, #tpu.memory_space<vmem>>, vector<2x16x16x128xf32>
    %c0_75 = arith.constant 0 : index
    %c1_76 = arith.constant 1 : index
    %c0_77 = arith.constant 0 : index
    %c0_78 = arith.constant 0 : index
    %49 = vector.load %arg8[%c0_75, %c1_76, %c0_77, %c0_78] : memref<2x18x18x128xf32, #tpu.memory_space<vmem>>, vector<2x16x16x128xf32>
    %c0_79 = arith.constant 0 : index
    %c1_80 = arith.constant 1 : index
    %c1_81 = arith.constant 1 : index
    %c0_82 = arith.constant 0 : index
    %50 = vector.load %arg8[%c0_79, %c1_80, %c1_81, %c0_82] : memref<2x18x18x128xf32, #tpu.memory_space<vmem>>, vector<2x16x16x128xf32>
    %c0_83 = arith.constant 0 : index
    %c1_84 = arith.constant 1 : index
    %c2_85 = arith.constant 2 : index
    %c0_86 = arith.constant 0 : index
    %51 = vector.load %arg8[%c0_83, %c1_84, %c2_85, %c0_86] : memref<2x18x18x128xf32, #tpu.memory_space<vmem>>, vector<2x16x16x128xf32>
    %c0_87 = arith.constant 0 : index
    %c2_88 = arith.constant 2 : index
    %c0_89 = arith.constant 0 : index
    %c0_90 = arith.constant 0 : index
    %52 = vector.load %arg8[%c0_87, %c2_88, %c0_89, %c0_90] : memref<2x18x18x128xf32, #tpu.memory_space<vmem>>, vector<2x16x16x128xf32>
    %c0_91 = arith.constant 0 : index
    %c2_92 = arith.constant 2 : index
    %c1_93 = arith.constant 1 : index
    %c0_94 = arith.constant 0 : index
    %53 = vector.load %arg8[%c0_91, %c2_92, %c1_93, %c0_94] : memref<2x18x18x128xf32, #tpu.memory_space<vmem>>, vector<2x16x16x128xf32>
    %c0_95 = arith.constant 0 : index
    %c2_96 = arith.constant 2 : index
    %c2_97 = arith.constant 2 : index
    %c0_98 = arith.constant 0 : index
    %54 = vector.load %arg8[%c0_95, %c2_96, %c2_97, %c0_98] : memref<2x18x18x128xf32, #tpu.memory_space<vmem>>, vector<2x16x16x128xf32>
    %55 = tpu.concatenate %46, %47, %48, %49, %50, %51, %52, %53, %54 in 3 : vector<2x16x16x128xf32>, vector<2x16x16x128xf32>, vector<2x16x16x128xf32>, vector<2x16x16x128xf32>, vector<2x16x16x128xf32>, vector<2x16x16x128xf32>, vector<2x16x16x128xf32>, vector<2x16x16x128xf32>, vector<2x16x16x128xf32> -> vector<2x16x16x1152xf32>
    %56 = vector.shape_cast %55 : vector<2x16x16x1152xf32> to vector<512x1152xf32>
    %c0_99 = arith.constant 0 : index
    %c0_100 = arith.constant 0 : index
    %57 = vector.load %arg4[%c0_99, %c0_100] : memref<1152x128xf32, #tpu.memory_space<vmem>>, vector<1152x128xf32>
    %cst_101 = arith.constant dense<0.000000e+00> : vector<512x128xf32>
    %58 = tpu.matmul %56, %57, %cst_101 {dimension_numbers = #tpu.dot_dimension_numbers<[1], [0], [0], [1], [0, 0, 1, 1], [], []>} : vector<512x1152xf32>, vector<1152x128xf32>, vector<512x128xf32> -> vector<512x128xf32>
    %cst_102 = arith.constant dense<0.000000e+00> : vector<128xf32>
    %59 = vector.multi_reduction <add>, %58, %cst_102 [0] : vector<512x128xf32> to vector<128xf32>
    %60 = vector.shape_cast %59 : vector<128xf32> to vector<1x128xf32>
    %61 = arith.mulf %58, %58 : vector<512x128xf32>
    %cst_103 = arith.constant dense<0.000000e+00> : vector<128xf32>
    %62 = vector.multi_reduction <add>, %61, %cst_103 [0] : vector<512x128xf32> to vector<128xf32>
    %63 = vector.shape_cast %62 : vector<128xf32> to vector<1x128xf32>
    %cst_104 = arith.constant 0.001953125 : f32
    %64 = vector.broadcast %cst_104 : f32 to vector<1x128xf32>
    %65 = arith.mulf %60, %64 : vector<1x128xf32>
    %cst_105 = arith.constant 0.001953125 : f32
    %66 = vector.broadcast %cst_105 : f32 to vector<1x128xf32>
    %67 = arith.mulf %63, %66 : vector<1x128xf32>
    %68 = arith.mulf %65, %65 : vector<1x128xf32>
    %69 = arith.subf %67, %68 : vector<1x128xf32>
    %cst_106 = arith.constant 0.000000e+00 : f32
    %70 = vector.broadcast %cst_106 : f32 to vector<1x128xf32>
    %71 = arith.maximumf %69, %70 : vector<1x128xf32>
    %c0_107 = arith.constant 0 : index
    %c0_108 = arith.constant 0 : index
    %72 = vector.load %arg5[%c0_107, %c0_108] : memref<1x128xf32, #tpu.memory_space<vmem>>, vector<1x128xf32>
    %cst_109 = arith.constant 9.99999974E-6 : f32
    %73 = vector.broadcast %cst_109 : f32 to vector<1x128xf32>
    %74 = arith.addf %71, %73 : vector<1x128xf32>
    %75 = math.rsqrt %74 : vector<1x128xf32>
    %76 = arith.mulf %72, %75 : vector<1x128xf32>
    %c0_110 = arith.constant 0 : index
    %c0_111 = arith.constant 0 : index
    %77 = vector.load %arg6[%c0_110, %c0_111] : memref<1x128xf32, #tpu.memory_space<vmem>>, vector<1x128xf32>
    %78 = arith.mulf %65, %76 : vector<1x128xf32>
    %79 = arith.subf %77, %78 : vector<1x128xf32>
    %80 = vector.broadcast %76 : vector<1x128xf32> to vector<512x128xf32>
    %81 = arith.mulf %58, %80 : vector<512x128xf32>
    %82 = vector.broadcast %79 : vector<1x128xf32> to vector<512x128xf32>
    %83 = arith.addf %81, %82 : vector<512x128xf32>
    %cst_112 = arith.constant 0.000000e+00 : f32
    %84 = vector.broadcast %cst_112 : f32 to vector<512x128xf32>
    %85 = arith.maximumf %83, %84 : vector<512x128xf32>
    %86 = vector.shape_cast %85 : vector<512x128xf32> to vector<2x16x16x128xf32>
    %c0_113 = arith.constant 0 : index
    %c0_114 = arith.constant 0 : index
    %c0_115 = arith.constant 0 : index
    %c0_116 = arith.constant 0 : index
    %87 = vector.load %arg7[%c0_113, %c0_114, %c0_115, %c0_116] : memref<2x16x16x128xf32, #tpu.memory_space<vmem>>, vector<2x16x16x128xf32>
    tpu.vector_store %arg7[%c0_113, %c0_114, %c0_115, %c0_116], %86 {strides = array<i32>} : memref<2x16x16x128xf32, #tpu.memory_space<vmem>>, vector<2x16x16x128xf32>,
    return
  }
}

</mosaic_0001>

<bundles_post_ra>
// kernel: unet_block.1
= control target key start
LH: loop header
LB: loop body
LE: loop exit
PB: predicated region body
PF: predicated region fallthrough
CT: control target
= control target key end

     0   :  { %v6482_v3 = vmov 0.0   ;;  %s11330_s1 = inlined_call_operand.vmem [shape: f32[1152,128], index: 1, kind: input, shape index: {}]   ;;  %s11331_s0 = inlined_call_operand.vmem [shape: f32[2,16,16,128], index: 0, kind: input, shape index: {}]   ;;  %s11332_s4 = inlined_call_operand.vmem [shape: f32[1152,128], index: 4, kind: input, shape index: {}]   ;;  %s11333_s2 = inlined_call_operand.vmem [shape: f32[1,128], index: 2, kind: input, shape index: {}]   ;;  %s11334_s3 = inlined_call_operand.vmem [shape: f32[1,128], index: 3, kind: input, shape index: {}]   ;;  %s11335_s5 = inlined_call_operand.vmem [shape: f32[1,128], index: 5, kind: input, shape index: {}]   ;;  %s11336_s6 = inlined_call_operand.vmem [shape: f32[1,128], index: 6, kind: input, shape index: {}]   ;;  %s11337_s7 = inlined_call_operand.vmem [shape: f32[2,16,16,128], index: 7, kind: output, shape index: {}]  }
   0x1   :  { %v855_v0 = vld [vmem:[%s11330_s1 + $0x78] sm:$0xff]  ;;  %v854_v2 = vld [vmem:[%s11330_s1 + $0x70] sm:$0xff]  ;;  %80 = vst [vmem:[#allocation2 + $0x1b0] sm:$0xff] %v6482_v3  ;;  %v853_v5 = vld [vmem:[%s11330_s1 + $0x68] sm:$0xff] }
   0x2   :  { %v871_v1 = vld [vmem:[%s11330_s1 + $0xf8] sm:$0xff]  ;;  %6440 = vmatpush.msra.mxu2 %v855_v0  ;;  %v870_v4 = vld [vmem:[%s11330_s1 + $0xf0] sm:$0xff]  ;;  %26 = vst [vmem:[#allocation2] sm:$0xff] %v6482_v3  ;;  %v869_v6 = vld [vmem:[%s11330_s1 + $0xe8] sm:$0xff]  ;;  %984 = vmatpush.msra.mxu0 %v855_v0 }
   0x3   :  { %6456 = vmatpush.msra.mxu3 %v871_v1  ;;  %1193 = vmatpush.msra.mxu1 %v871_v1  ;;  %27 = vst [vmem:[#allocation2 + $0x8] sm:$0xff] %v6482_v3  ;;  %v852_v7 = vld [vmem:[%s11330_s1 + $0x60] sm:$0xff]  ;;  %v851_v9 = vld [vmem:[%s11330_s1 + $0x58] sm:$0xff]  ;;  %v850_v11 = vld [vmem:[%s11330_s1 + $0x50] sm:$0xff] }
   0x4   :  { %6441 = vmatpush.msra.mxu2 %v854_v2  ;;  %28 = vst [vmem:[#allocation2 + $0x10] sm:$0x3] %v6482_v3  ;;  %v868_v8 = vld [vmem:[%s11330_s1 + $0xe0] sm:$0xff]  ;;  %985 = vmatpush.msra.mxu0 %v854_v2  ;;  %v867_v10 = vld [vmem:[%s11330_s1 + $0xd8] sm:$0xff]  ;;  %v866_v12 = vld [vmem:[%s11330_s1 + $0xd0] sm:$0xff] }
   0x5   :  { %6457 = vmatpush.msra.mxu3 %v870_v4  ;;  %1194 = vmatpush.msra.mxu1 %v870_v4  ;;  %29 = vst [vmem:[#allocation2 + $0x18] sm:$0xff] %v6482_v3  ;;  %v849_v13 = vld [vmem:[%s11330_s1 + $0x48] sm:$0xff]  ;;  %v848_v15 = vld [vmem:[%s11330_s1 + $0x40] sm:$0xff]  ;;  %v847_v17 = vld [vmem:[%s11330_s1 + $0x38] sm:$0xff] }
   0x6   :  { %6442 = vmatpush.msra.mxu2 %v853_v5  ;;  %30 = vst [vmem:[#allocation2 + $0x20] sm:$0xff] %v6482_v3  ;;  %986 = vmatpush.msra.mxu0 %v853_v5  ;;  %v865_v14 = vld [vmem:[%s11330_s1 + $0xc8] sm:$0xff]  ;;  %v864_v16 = vld [vmem:[%s11330_s1 + $0xc0] sm:$0xff]  ;;  %v863_v18 = vld [vmem:[%s11330_s1 + $0xb8] sm:$0xff] }
   0x7   :  { %6458 = vmatpush.msra.mxu3 %v869_v6  ;;  %1195 = vmatpush.msra.mxu1 %v869_v6  ;;  %31 = vst [vmem:[#allocation2 + $0x28] sm:$0x3] %v6482_v3  ;;  %v846_v19 = vld [vmem:[%s11330_s1 + $0x30] sm:$0xff]  ;;  %v845_v21 = vld [vmem:[%s11330_s1 + $0x28] sm:$0xff]  ;;  %v844_v23 = vld [vmem:[%s11330_s1 + $0x20] sm:$0xff] }
   0x8   :  { %6443 = vmatpush.msra.mxu2 %v852_v7  ;;  %32 = vst [vmem:[#allocation2 + $0x30] sm:$0xff] %v6482_v3  ;;  %987 = vmatpush.msra.mxu0 %v852_v7  ;;  %v862_v20 = vld [vmem:[%s11330_s1 + $0xb0] sm:$0xff]  ;;  %v861_v22 = vld [vmem:[%s11330_s1 + $0xa8] sm:$0xff]  ;;  %v860_v24 = vld [vmem:[%s11330_s1 + $0xa0] sm:$0xff] }
   0x9   :  { %6459 = vmatpush.msra.mxu3 %v868_v8  ;;  %1196 = vmatpush.msra.mxu1 %v868_v8  ;;  %33 = vst [vmem:[#allocation2 + $0x38] sm:$0xff] %v6482_v3  ;;  %v843_v25 = vld [vmem:[%s11330_s1 + $0x18] sm:$0xff]  ;;  %v842_v27 = vld [vmem:[%s11330_s1 + $0x10] sm:$0xff]  ;;  %v841_v29 = vld [vmem:[%s11330_s1 + $0x8] sm:$0xff] }
   0xa   :  { %6444 = vmatpush.msra.mxu2 %v851_v9  ;;  %34 = vst [vmem:[#allocation2 + $0x40] sm:$0x3] %v6482_v3  ;;  %988 = vmatpush.msra.mxu0 %v851_v9  ;;  %v859_v26 = vld [vmem:[%s11330_s1 + $0x98] sm:$0xff]  ;;  %v858_v28 = vld [vmem:[%s11330_s1 + $0x90] sm:$0xff]  ;;  %v857_v30 = vld [vmem:[%s11330_s1 + $0x88] sm:$0xff] }
   0xb   :  { %6460 = vmatpush.msra.mxu3 %v867_v10  ;;  %1197 = vmatpush.msra.mxu1 %v867_v10  ;;  %35 = vst [vmem:[#allocation2 + $0x48] sm:$0xff] %v6482_v3  ;;  %v840_v31 = vld [vmem:[%s11330_s1] sm:$0xff]  ;;  %v887_v36 = vld [vmem:[%s11330_s1 + $0x178] sm:$0xff]  ;;  %v886_v40 = vld [vmem:[%s11330_s1 + $0x170] sm:$0xff] }
   0xc   :  { %6445 = vmatpush.msra.mxu2 %v850_v11  ;;  %36 = vst [vmem:[#allocation2 + $0x50] sm:$0xff] %v6482_v3  ;;  %989 = vmatpush.msra.mxu0 %v850_v11  ;;  %v856_v32 = vld [vmem:[%s11330_s1 + $0x80] sm:$0xff]  ;;  %v903_v37 = vld [vmem:[%s11330_s1 + $0x1f8] sm:$0xff]  ;;  %v328_v41 = vld [vmem:[#allocation2 + $0x9] sm:$0xff] }
   0xd   :  { %6461 = vmatpush.msra.mxu3 %v866_v12  ;;  %1198 = vmatpush.msra.mxu1 %v866_v12  ;;  %37 = vst [vmem:[#allocation2 + $0x58] sm:$0x3] %v6482_v3  ;;  %v327_v33 = vld [vmem:[#allocation2 + $0x1] sm:$0xff]  ;;  %v919_v38 = vld [vmem:[%s11330_s1 + $0x278] sm:$0xff]  ;;  %v902_v42 = vld [vmem:[%s11330_s1 + $0x1f0] sm:$0xff] }
   0xe   :  { %6446 = vmatpush.msra.mxu2 %v849_v13  ;;  %38 = vst [vmem:[#allocation2 + $0x60] sm:$0xff] %v6482_v3  ;;  %990 = vmatpush.msra.mxu0 %v849_v13  ;;  %v166_v39 = vld [vmem:[%s11331_s0 + $0x100] sm:$0xff]  ;;  %v167_v43 = vld [vmem:[%s11331_s0 + $0x108] sm:$0xff]  ;;  %v918_v45 = vld [vmem:[%s11330_s1 + $0x270] sm:$0xff] }
   0xf   :  { %6462 = vmatpush.msra.mxu3 %v865_v14  ;;  %1199 = vmatpush.msra.mxu1 %v865_v14  ;;  %39 = vst [vmem:[#allocation2 + $0x68] sm:$0xff] %v6482_v3  ;;  %v134_v44 = vld [vmem:[%s11331_s0] sm:$0xff]  ;;  %v168_v46 = vld [vmem:[%s11331_s0 + $0x110] sm:$0xff]  ;;  %v885_v47 = vld [vmem:[%s11330_s1 + $0x168] sm:$0xff] }
  0x10   :  { %6447 = vmatpush.msra.mxu2 %v848_v15  ;;  %40 = vst [vmem:[#allocation2 + $0x70] sm:$0x3] %v6482_v3  ;;  %991 = vmatpush.msra.mxu0 %v848_v15  ;;  %v135_v48 = vld [vmem:[%s11331_s0 + $0x8] sm:$0xff]  ;;  %v169_v50 = vld [vmem:[%s11331_s0 + $0x118] sm:$0xff]  ;;  %v136_v51 = vld [vmem:[%s11331_s0 + $0x10] sm:$0xff] }
  0x11   :  { %6463 = vmatpush.msra.mxu3 %v864_v16  ;;  %1200 = vmatpush.msra.mxu1 %v864_v16  ;;  %41 = vst [vmem:[#allocation2 + $0x78] sm:$0xff] %v6482_v3  ;;  %v901_v49 = vld [vmem:[%s11330_s1 + $0x1e8] sm:$0xff]  ;;  %v170_v53 = vld [vmem:[%s11331_s0 + $0x120] sm:$0xff]  ;;  %v137_v54 = vld [vmem:[%s11331_s0 + $0x18] sm:$0xff] }
  0x12   :  { %6448 = vmatpush.msra.mxu2 %v847_v17  ;;  %42 = vst [vmem:[#allocation2 + $0x80] sm:$0xff] %v6482_v3  ;;  %992 = vmatpush.msra.mxu0 %v847_v17  ;;  %v917_v52 = vld [vmem:[%s11330_s1 + $0x268] sm:$0xff]  ;;  %v884_v57 = vld [vmem:[%s11330_s1 + $0x160] sm:$0xff]  ;;  %v172_v63 = vld [vmem:[%s11331_s0 + $0x130] sm:$0xff] }
  0x13   :  { %6464 = vmatpush.msra.mxu3 %v863_v18  ;;  %1201 = vmatpush.msra.mxu1 %v863_v18  ;;  %43 = vst [vmem:[#allocation2 + $0x88] sm:$0x3] %v6482_v3  ;;  %v171_v56 = vld [vmem:[%s11331_s0 + $0x128] sm:$0xff]  ;;  %v900_v58 = vld [vmem:[%s11330_s1 + $0x1e0] sm:$0xff]  ;;  %v173_v4 = vld [vmem:[%s11331_s0 + $0x138] sm:$0xff] }
  0x14   :  { %6449 = vmatpush.msra.mxu2 %v846_v19  ;;  %44 = vst [vmem:[#allocation2 + $0x90] sm:$0xff] %v6482_v3  ;;  %993 = vmatpush.msra.mxu0 %v846_v19  ;;  %v138_v60 = vld [vmem:[%s11331_s0 + $0x20] sm:$0xff]  ;;  %v139_v1 = vld [vmem:[%s11331_s0 + $0x28] sm:$0xff]  ;;  %v883_v5 = vld [vmem:[%s11330_s1 + $0x158] sm:$0xff] }
  0x15   :  { %6465 = vmatpush.msra.mxu3 %v862_v20  ;;  %1202 = vmatpush.msra.mxu1 %v862_v20  ;;  %45 = vst [vmem:[#allocation2 + $0x98] sm:$0xff] %v6482_v3  ;;  %v916_v0 = vld [vmem:[%s11330_s1 + $0x260] sm:$0xff]  ;;  %v899_v6 = vld [vmem:[%s11330_s1 + $0x1d8] sm:$0xff]  ;;  %v140_v7 = vld [vmem:[%s11331_s0 + $0x30] sm:$0xff] }
  0x16   :  { %6450 = vmatpush.msra.mxu2 %v845_v21  ;;  %46 = vst [vmem:[#allocation2 + $0xa0] sm:$0x3] %v6482_v3  ;;  %994 = vmatpush.msra.mxu0 %v845_v21  ;;  %v174_v10 = vld [vmem:[%s11331_s0 + $0x140] sm:$0xff]  ;;  %v915_v11 = vld [vmem:[%s11330_s1 + $0x258] sm:$0xff]  ;;  %v175_v15 = vld [vmem:[%s11331_s0 + $0x148] sm:$0xff] }
  0x17   :  { %6466 = vmatpush.msra.mxu3 %v861_v22  ;;  %1203 = vmatpush.msra.mxu1 %v861_v22  ;;  %47 = vst [vmem:[#allocation2 + $0xa8] sm:$0xff] %v6482_v3  ;;  %v141_v12 = vld [vmem:[%s11331_s0 + $0x38] sm:$0xff]  ;;  %v882_v16 = vld [vmem:[%s11330_s1 + $0x150] sm:$0xff]  ;;  %v142_v18 = vld [vmem:[%s11331_s0 + $0x40] sm:$0xff] }
  0x18   :  { %6451 = vmatpush.msra.mxu2 %v844_v23  ;;  %48 = vst [vmem:[#allocation2 + $0xb0] sm:$0xff] %v6482_v3  ;;  %995 = vmatpush.msra.mxu0 %v844_v23  ;;  %v898_v17 = vld [vmem:[%s11330_s1 + $0x1d0] sm:$0xff]  ;;  %v143_v23 = vld [vmem:[%s11331_s0 + $0x48] sm:$0xff] }
  0x19   :  { %6467 = vmatpush.msra.mxu3 %v860_v24  ;;  %49 = vst [vmem:[#allocation2 + $0xb8] sm:$0x3] %v6482_v3  ;;  %1204 = vmatpush.msra.mxu1 %v860_v24  ;;  %v176_v21 = vld [vmem:[%s11331_s0 + $0x150] sm:$0xff] }
  0x1a   :  { %6452 = vmatpush.msra.mxu2 %v843_v25  ;;  %50 = vst [vmem:[#allocation2 + $0xc0] sm:$0xff] %v6482_v3  ;;  %996 = vmatpush.msra.mxu0 %v843_v25  ;;  %v914_v22 = vld [vmem:[%s11330_s1 + $0x250] sm:$0xff] }
  0x1b   :  { %6468 = vmatpush.msra.mxu3 %v859_v26  ;;  %51 = vst [vmem:[#allocation2 + $0xc8] sm:$0xff] %v6482_v3  ;;  %1205 = vmatpush.msra.mxu1 %v859_v26  ;;  %v177_v26 = vld [vmem:[%s11331_s0 + $0x158] sm:$0xff] }
  0x1c   :  { %6453 = vmatpush.msra.mxu2 %v842_v27  ;;  %52 = vst [vmem:[#allocation2 + $0xd0] sm:$0x3] %v6482_v3  ;;  %997 = vmatpush.msra.mxu0 %v842_v27  ;;  %v881_v27 = vld [vmem:[%s11330_s1 + $0x148] sm:$0xff] }
  0x1d   :  { %6469 = vmatpush.msra.mxu3 %v858_v28  ;;  %53 = vst [vmem:[#allocation2 + $0xd8] sm:$0xff] %v6482_v3  ;;  %1206 = vmatpush.msra.mxu1 %v858_v28  ;;  %v897_v28 = vld [vmem:[%s11330_s1 + $0x1c8] sm:$0xff] }
  0x1e   :  { %6454 = vmatpush.msra.mxu2 %v841_v29  ;;  %54 = vst [vmem:[#allocation2 + $0xe0] sm:$0xff] %v6482_v3  ;;  %998 = vmatpush.msra.mxu0 %v841_v29  ;;  %v144_v29 = vld [vmem:[%s11331_s0 + $0x50] sm:$0xff] }
  0x1f   :  { %6470 = vmatpush.msra.mxu3 %v857_v30  ;;  %55 = vst [vmem:[#allocation2 + $0xe8] sm:$0x3] %v6482_v3  ;;  %1207 = vmatpush.msra.mxu1 %v857_v30 }
  0x20   :  { %6455 = vmatpush.msra.mxu2 %v840_v31  ;;  %56 = vst [vmem:[#allocation2 + $0xf0] sm:$0xff] %v6482_v3  ;;  %999 = vmatpush.msra.mxu0 %v840_v31 }
  0x21   :  { %6471 = vmatpush.msra.mxu3 %v856_v32  ;;  %1096 = vmatmul.f32.vlgmr.msra.gmra.mxu2 %v6482_v3  ;;  %57 = vst [vmem:[#allocation2 + $0xf8] sm:$0xff] %v6482_v3 }
  0x22   :  { %58 = vst [vmem:[#allocation2 + $0x100] sm:$0x3] %v6482_v3  ;;  %1208 = vmatpush.msra.mxu1 %v856_v32  ;;  %1000 = vmatmul.f32.vlgmr.msra.gmra.mxu0 %v6482_v3  ;;  %v178_v32 = vld [vmem:[%s11331_s0 + $0x160] sm:$0xff] }
  0x23   :  { %59 = vst [vmem:[#allocation2 + $0x108] sm:$0xff] %v6482_v3  ;;  %1209 = vmatmul.f32.vlgmr.msra.gmra.mxu1 %v327_v33  ;;  %1402 = vmatpush.msrb.mxu2 %v887_v36  ;;  %v913_v33 = vld [vmem:[%s11330_s1 + $0x248] sm:$0xff] }
  0x24   :  { %60 = vst [vmem:[#allocation2 + $0x110] sm:$0xff] %v6482_v3  ;;  %1611 = vmatpush.msrb.mxu3 %v903_v37  ;;  %1820 = vmatpush.msrb.mxu0 %v919_v38  ;;  %v179_v37 = vld [vmem:[%s11331_s0 + $0x168] sm:$0xff]  ;;  %v880_v38 = vld [vmem:[%s11330_s1 + $0x140] sm:$0xff] }
  0x25   :  { %61 = vst [vmem:[#allocation2 + $0x118] sm:$0x3] %v6482_v3  ;;  %1403 = vmatpush.msrb.mxu2 %v886_v40  ;;  %v146_v40 = vld [vmem:[%s11331_s0 + $0x60] sm:$0xff] }
  0x26   :  { %62 = vst [vmem:[#allocation2 + $0x120] sm:$0xff] %v6482_v3  ;;  %1612 = vmatpush.msrb.mxu3 %v902_v42  ;;  %1821 = vmatpush.msrb.mxu0 %v918_v45  ;;  %v147_v45 = vld [vmem:[%s11331_s0 + $0x68] sm:$0xff] }
  0x27   :  { %63 = vst [vmem:[#allocation2 + $0x128] sm:$0xff] %v6482_v3  ;;  %1404 = vmatpush.msrb.mxu2 %v885_v47 }
  0x28   :  { %64 = vst [vmem:[#allocation2 + $0x130] sm:$0x3] %v6482_v3  ;;  %1613 = vmatpush.msrb.mxu3 %v901_v49  ;;  %1822 = vmatpush.msrb.mxu0 %v917_v52  ;;  %v879_v49 = vld [vmem:[%s11330_s1 + $0x138] sm:$0xff]  ;;  %v148_v52 = vld [vmem:[%s11331_s0 + $0x70] sm:$0xff] }
  0x29   :  { %65 = vst [vmem:[#allocation2 + $0x138] sm:$0xff] %v6482_v3  ;;  %1099 = vmatmul.f32.gmra.mxu2 %v6482_v3 }
  0x2a   :  { %66 = vst [vmem:[#allocation2 + $0x140] sm:$0xff] %v6482_v3  ;;  %1003 = vmatmul.f32.gmra.mxu0 %v6482_v3  ;;  %1405 = vmatpush.msrb.mxu2 %v884_v57  ;;  %v911_v57 = vld [vmem:[%s11330_s1 + $0x238] sm:$0xff] }
  0x2b   :  { %67 = vst [vmem:[#allocation2 + $0x148] sm:$0x3] %v6482_v3  ;;  %1212 = vmatmul.f32.gmra.mxu1 %v328_v41  ;;  %1614 = vmatpush.msrb.mxu3 %v900_v58 }
  0x2c   :  { %68 = vst [vmem:[#allocation2 + $0x150] sm:$0xff] %v6482_v3  ;;  %1823 = vmatpush.msrb.mxu0 %v916_v0  ;;  %1406 = vmatpush.msrb.mxu2 %v883_v5  ;;  %v878_v0 = vld [vmem:[%s11330_s1 + $0x130] sm:$0xff] }
  0x2d   :  { %69 = vst [vmem:[#allocation2 + $0x158] sm:$0xff] %v6482_v3  ;;  %1615 = vmatpush.msrb.mxu3 %v899_v6 }
  0x2e   :  { %70 = vst [vmem:[#allocation2 + $0x160] sm:$0x3] %v6482_v3  ;;  %1824 = vmatpush.msrb.mxu0 %v915_v11  ;;  %1407 = vmatpush.msrb.mxu2 %v882_v16  ;;  %v185_v16 = vld [vmem:[%s11331_s0 + $0x198] sm:$0xff] }
  0x2f   :  { %71 = vst [vmem:[#allocation2 + $0x168] sm:$0xff] %v6482_v3  ;;  %1616 = vmatpush.msrb.mxu3 %v898_v17  ;;  %v877_v17 = vld [vmem:[%s11330_s1 + $0x128] sm:$0xff] }
  0x30   :  { %72 = vst [vmem:[#allocation2 + $0x170] sm:$0xff] %v6482_v3  ;;  %1825 = vmatpush.msrb.mxu0 %v914_v22  ;;  %1408 = vmatpush.msrb.mxu2 %v881_v27 }
  0x31   :  { %73 = vst [vmem:[#allocation2 + $0x178] sm:$0x3] %v6482_v3  ;;  %1617 = vmatpush.msrb.mxu3 %v897_v28  ;;  %v153_v28 = vld [vmem:[%s11331_s0 + $0x98] sm:$0xff] }
  0x32   :  { %74 = vst [vmem:[#allocation2 + $0x180] sm:$0xff] %v6482_v3  ;;  %1826 = vmatpush.msrb.mxu0 %v913_v33  ;;  %1409 = vmatpush.msrb.mxu2 %v880_v38 }
  0x33   :  { %75 = vst [vmem:[#allocation2 + $0x188] sm:$0xff] %v6482_v3  ;;  %1215 = vmatmul.f32.gmra.mxu1 %v134_v44 }
  0x34   :  { %76 = vst [vmem:[#allocation2 + $0x190] sm:$0x3] %v6482_v3  ;;  %1410 = vmatpush.msrb.mxu2 %v879_v49 }
  0x35   :  { %77 = vst [vmem:[#allocation2 + $0x198] sm:$0xff] %v6482_v3 }
  0x36   :  { %78 = vst [vmem:[#allocation2 + $0x1a0] sm:$0xff] %v6482_v3  ;;  %1411 = vmatpush.msrb.mxu2 %v878_v0 }
  0x37   :  { %79 = vst [vmem:[#allocation2 + $0x1a8] sm:$0x3] %v6482_v3 }
  0x38   :  { %81 = vst [vmem:[#allocation2 + $0x1b8] sm:$0xff] %v6482_v3  ;;  %1412 = vmatpush.msrb.mxu2 %v877_v17 }
  0x39   :  { %82 = vst [vmem:[#allocation2 + $0x1c0] sm:$0x3] %v6482_v3 }
  0x3a   :  { %83 = vst [vmem:[#allocation2 + $0x1c8] sm:$0xff] %v6482_v3 }
  0x3b   :  { %84 = vst [vmem:[#allocation2 + $0x1d0] sm:$0xff] %v6482_v3  ;;  %1218 = vmatmul.f32.gmra.mxu1 %v135_v48 }
  0x3c   :  { %85 = vst [vmem:[#allocation2 + $0x1d8] sm:$0x3] %v6482_v3 }
  0x3d   :  { %86 = vst [vmem:[#allocation2 + $0x1e0] sm:$0xff] %v6482_v3 }
  0x3e   :  { %87 = vst [vmem:[#allocation2 + $0x1e8] sm:$0xff] %v6482_v3 }
  0x3f   :  { %88 = vst [vmem:[#allocation2 + $0x1f0] sm:$0x3] %v6482_v3  ;;  %v359_v34 = vld [vmem:[#allocation2 + $0x1b1] sm:$0xff] }
  0x40   :  { %89 = vst [vmem:[#allocation2 + $0x1f8] sm:$0xff] %v6482_v3  ;;  %1305 = vmatmul.f32.vlgmr.msra.gmra.mxu3 %v359_v34  ;;  %v360_v35 = vld [vmem:[#allocation2 + $0x1b9] sm:$0xff] }
  0x41   :  { %90 = vst [vmem:[#allocation2 + $0x200] sm:$0xff] %v6482_v3  ;;  %v145_v34 = vld [vmem:[%s11331_s0 + $0x58] sm:$0xff] }
  0x42   :  { %91 = vst [vmem:[#allocation2 + $0x208] sm:$0x3] %v6482_v3 }
  0x43   :  { %92 = vst [vmem:[#allocation2 + $0x210] sm:$0xff] %v6482_v3  ;;  %1221 = vmatmul.f32.gmra.mxu1 %v136_v51 }
  0x44   :  { %93 = vst [vmem:[#allocation2 + $0x218] sm:$0xff] %v6482_v3 }
  0x45   :  { %94 = vst [vmem:[#allocation2 + $0x220] sm:$0x3] %v6482_v3 }
  0x46   :  { %95 = vst [vmem:[#allocation2 + $0x228] sm:$0xff] %v6482_v3 }
  0x47   :  { %96 = vst [vmem:[#allocation2 + $0x230] sm:$0xff] %v6482_v3 }
  0x48   :  { %97 = vst [vmem:[#allocation2 + $0x238] sm:$0x3] %v6482_v3  ;;  %1308 = vmatmul.f32.gmra.mxu3 %v360_v35 }
  0x49   :  { %98 = vst [vmem:[#allocation2 + $0x240] sm:$0xff] %v6482_v3 }
  0x4a   :  { %99 = vst [vmem:[#allocation2 + $0x248] sm:$0xff] %v6482_v3 }
  0x4b   :  { %100 = vst [vmem:[#allocation2 + $0x250] sm:$0x3] %v6482_v3  ;;  %1224 = vmatmul.f32.gmra.mxu1 %v137_v54 }
  0x4c   :  { %101 = vst [vmem:[#allocation2 + $0x258] sm:$0xff] %v6482_v3 }
  0x4d   :  { %102 = vst [vmem:[#allocation2 + $0x260] sm:$0xff] %v6482_v3 }
  0x4e   :  { %103 = vst [vmem:[#allocation2 + $0x268] sm:$0x3] %v6482_v3 }
  0x4f   :  { %104 = vst [vmem:[#allocation2 + $0x270] sm:$0xff] %v6482_v3 }
  0x50   :  { %105 = vst [vmem:[#allocation2 + $0x278] sm:$0xff] %v6482_v3  ;;  %1311 = vmatmul.f32.gmra.mxu3 %v166_v39 }
  0x51   :  { %106 = vst [vmem:[#allocation2 + $0x280] sm:$0x3] %v6482_v3 }
  0x52   :  { %107 = vst [vmem:[#allocation2 + $0x288] sm:$0xff] %v6482_v3 }
  0x53   :  { %108 = vst [vmem:[#allocation2 + $0x290] sm:$0xff] %v6482_v3  ;;  %1227 = vmatmul.f32.gmra.mxu1 %v138_v60 }
  0x54   :  { %109 = vst [vmem:[#allocation2 + $0x298] sm:$0x3] %v6482_v3 }
  0x55   :  { %110 = vst [vmem:[#allocation2 + $0x2a0] sm:$0xff] %v6482_v3 }
  0x56   :  { %111 = vst [vmem:[#allocation2 + $0x2a8] sm:$0xff] %v6482_v3 }
  0x57   :  { %112 = vst [vmem:[#allocation2 + $0x2b0] sm:$0x3] %v6482_v3 }
  0x58   :  { %113 = vst [vmem:[#allocation2 + $0x2b8] sm:$0xff] %v6482_v3  ;;  %1314 = vmatmul.f32.gmra.mxu3 %v167_v43 }
  0x59   :  { %114 = vst [vmem:[#allocation2 + $0x2c0] sm:$0xff] %v6482_v3 }
  0x5a   :  { %115 = vst [vmem:[#allocation2 + $0x2c8] sm:$0x3] %v6482_v3 }
  0x5b   :  { %116 = vst [vmem:[#allocation2 + $0x2d0] sm:$0xff] %v6482_v3  ;;  %1230 = vmatmul.f32.gmra.mxu1 %v139_v1 }
  0x5c   :  { %117 = vst [vmem:[#allocation2 + $0x2d8] sm:$0xff] %v6482_v3 }
  0x5d   :  { %118 = vst [vmem:[#allocation2 + $0x2e0] sm:$0x3] %v6482_v3 }
  0x5e   :  { %119 = vst [vmem:[#allocation2 + $0x2e8] sm:$0xff] %v6482_v3 }
  0x5f   :  { %120 = vst [vmem:[#allocation2 + $0x2f0] sm:$0xff] %v6482_v3 }
  0x60   :  { %121 = vst [vmem:[#allocation2 + $0x2f8] sm:$0x3] %v6482_v3  ;;  %1317 = vmatmul.f32.gmra.mxu3 %v168_v46 }
  0x61   :  { %122 = vst [vmem:[#allocation2 + $0x300] sm:$0xff] %v6482_v3 }
  0x62   :  { %123 = vst [vmem:[#allocation2 + $0x308] sm:$0xff] %v6482_v3 }
  0x63   :  { %124 = vst [vmem:[#allocation2 + $0x310] sm:$0x3] %v6482_v3  ;;  %1233 = vmatmul.f32.gmra.mxu1 %v140_v7 }
  0x64   :  { %125 = vst [vmem:[#allocation2 + $0x318] sm:$0xff] %v6482_v3 }
  0x65   :  { %126 = vst [vmem:[#allocation2 + $0x320] sm:$0xff] %v6482_v3 }
  0x66   :  { %127 = vst [vmem:[#allocation2 + $0x328] sm:$0x3] %v6482_v3 }
  0x67   :  { %128 = vst [vmem:[#allocation2 + $0x330] sm:$0xff] %v6482_v3 }
  0x68   :  { %129 = vst [vmem:[#allocation2 + $0x338] sm:$0xff] %v6482_v3  ;;  %1320 = vmatmul.f32.gmra.mxu3 %v169_v50 }
  0x69   :  { %130 = vst [vmem:[#allocation2 + $0x340] sm:$0x3] %v6482_v3 }
  0x6a   :  { %131 = vst [vmem:[#allocation2 + $0x348] sm:$0xff] %v6482_v3 }
  0x6b   :  { %132 = vst [vmem:[#allocation2 + $0x350] sm:$0xff] %v6482_v3  ;;  %1236 = vmatmul.f32.gmra.mxu1 %v141_v12 }
  0x6c   :  { %133 = vst [vmem:[#allocation2 + $0x358] sm:$0x3] %v6482_v3 }
  0x6d   :  { %231 = vst [vmem:[#allocation2 + $0x1c9] sm:$0xff] %v166_v39  ;;  %v896_v39 = vld [vmem:[%s11330_s1 + $0x1c0] sm:$0xff] }
  0x6e   :  { %232 = vst [vmem:[#allocation2 + $0x1d1] sm:$0xff] %v167_v43  ;;  %1618 = vmatpush.msrb.mxu3 %v896_v39  ;;  %v180_v43 = vld [vmem:[%s11331_s0 + $0x170] sm:$0xff] }
  0x6f   :  { %199 = vst [vmem:[#allocation2 + $0x19] sm:$0xff] %v134_v44  ;;  %v912_v44 = vld [vmem:[%s11330_s1 + $0x240] sm:$0xff] }
  0x70   :  { %233 = vst [vmem:[#allocation2 + $0x1e1] sm:$0xff] %v168_v46  ;;  %1323 = vmatmul.f32.gmra.mxu3 %v170_v53  ;;  %1827 = vmatpush.msrb.mxu0 %v912_v44 }
  0x71   :  { %200 = vst [vmem:[#allocation2 + $0x21] sm:$0xff] %v135_v48  ;;  %v181_v48 = vld [vmem:[%s11331_s0 + $0x178] sm:$0xff] }
  0x72   :  { %234 = vst [vmem:[#allocation2 + $0x1e9] sm:$0xff] %v169_v50  ;;  %v895_v50 = vld [vmem:[%s11330_s1 + $0x1b8] sm:$0xff]  ;;  %1828 = vmatpush.msrb.mxu0 %v911_v57 }
  0x73   :  { %201 = vst [vmem:[#allocation2 + $0x31] sm:$0xff] %v136_v51  ;;  %1239 = vmatmul.f32.gmra.mxu1 %v142_v18  ;;  %1619 = vmatpush.msrb.mxu3 %v895_v50  ;;  %v189_v57 = vld [vmem:[%s11331_s0 + $0x1b8] sm:$0xff] }
  0x74   :  { %v297_v55 = vld [vmem:[#allocation2 + $0x1c8] sm:$0xff]  ;;  %235 = vst [vmem:[#allocation2 + $0x1f9] sm:$0xff] %v170_v53 }
  0x75   :  { %1102 = vmatmul.f32.gmra.mxu2 %v297_v55  ;;  %202 = vst [vmem:[#allocation2 + $0x39] sm:$0xff] %v137_v54  ;;  %v298_v61 = vld [vmem:[#allocation2 + $0x1d0] sm:$0xff] }
  0x76   :  { %v265_v59 = vld [vmem:[#allocation2 + $0x18] sm:$0xff]  ;;  %236 = vst [vmem:[#allocation2 + $0x201] sm:$0xff] %v171_v56 }
  0x77   :  { %1006 = vmatmul.f32.gmra.mxu0 %v265_v59  ;;  %203 = vst [vmem:[#allocation2 + $0x49] sm:$0xff] %v138_v60  ;;  %v299_v2 = vld [vmem:[#allocation2 + $0x1e0] sm:$0xff]  ;;  %v149_v59 = vld [vmem:[%s11331_s0 + $0x78] sm:$0xff] }
  0x78   :  { %1326 = vmatmul.f32.gmra.mxu3 %v171_v56  ;;  %v266_v62 = vld [vmem:[#allocation2 + $0x20] sm:$0xff]  ;;  %237 = vst [vmem:[#allocation2 + $0x211] sm:$0xff] %v172_v63 }
  0x79   :  { %204 = vst [vmem:[#allocation2 + $0x51] sm:$0xff] %v139_v1  ;;  %v300_v8 = vld [vmem:[#allocation2 + $0x1e8] sm:$0xff]  ;;  %v182_v56 = vld [vmem:[%s11331_s0 + $0x180] sm:$0xff]  ;;  %v894_v1 = vld [vmem:[%s11330_s1 + $0x1b0] sm:$0xff] }
  0x7a   :  { %v267_v3 = vld [vmem:[#allocation2 + $0x30] sm:$0xff]  ;;  %238 = vst [vmem:[#allocation2 + $0x219] sm:$0xff] %v173_v4  ;;  %1620 = vmatpush.msrb.mxu3 %v894_v1 }
  0x7b   :  { %205 = vst [vmem:[#allocation2 + $0x61] sm:$0xff] %v140_v7  ;;  %v301_v13 = vld [vmem:[#allocation2 + $0x1f8] sm:$0xff]  ;;  %1242 = vmatmul.f32.gmra.mxu1 %v143_v23  ;;  %v184_v7 = vld [vmem:[%s11331_s0 + $0x190] sm:$0xff] }
  0x7c   :  { %v268_v9 = vld [vmem:[#allocation2 + $0x38] sm:$0xff]  ;;  %239 = vst [vmem:[#allocation2 + $0x229] sm:$0xff] %v174_v10 }
  0x7d   :  { %1105 = vmatmul.f32.gmra.mxu2 %v298_v61  ;;  %206 = vst [vmem:[#allocation2 + $0x69] sm:$0xff] %v141_v12  ;;  %v302_v19 = vld [vmem:[#allocation2 + $0x200] sm:$0xff] }
  0x7e   :  { %v269_v14 = vld [vmem:[#allocation2 + $0x48] sm:$0xff]  ;;  %240 = vst [vmem:[#allocation2 + $0x231] sm:$0xff] %v175_v15 }
  0x7f   :  { %1009 = vmatmul.f32.gmra.mxu0 %v266_v62  ;;  %207 = vst [vmem:[#allocation2 + $0x79] sm:$0xff] %v142_v18  ;;  %v303_v24 = vld [vmem:[#allocation2 + $0x210] sm:$0xff]  ;;  %v893_v18 = vld [vmem:[%s11330_s1 + $0x1a8] sm:$0xff] }
  0x80   :  { %1329 = vmatmul.f32.gmra.mxu3 %v172_v63  ;;  %v270_v20 = vld [vmem:[#allocation2 + $0x50] sm:$0xff]  ;;  %241 = vst [vmem:[#allocation2 + $0x241] sm:$0xff] %v176_v21  ;;  %v183_v63 = vld [vmem:[%s11331_s0 + $0x188] sm:$0xff] }
  0x81   :  { %208 = vst [vmem:[#allocation2 + $0x81] sm:$0xff] %v143_v23  ;;  %v304_v30 = vld [vmem:[#allocation2 + $0x218] sm:$0xff]  ;;  %1621 = vmatpush.msrb.mxu3 %v893_v18 }
  0x82   :  { %v271_v25 = vld [vmem:[#allocation2 + $0x60] sm:$0xff]  ;;  %242 = vst [vmem:[#allocation2 + $0x249] sm:$0xff] %v177_v26 }
  0x83   :  { %209 = vst [vmem:[#allocation2 + $0x91] sm:$0xff] %v144_v29  ;;  %1245 = vmatmul.f32.gmra.mxu1 %v144_v29  ;;  %v305_v35 = vld [vmem:[#allocation2 + $0x228] sm:$0xff] }
  0x84   :  { %v272_v31 = vld [vmem:[#allocation2 + $0x68] sm:$0xff]  ;;  %243 = vst [vmem:[#allocation2 + $0x259] sm:$0xff] %v178_v32 }
  0x85   :  { %1108 = vmatmul.f32.gmra.mxu2 %v299_v2  ;;  %210 = vst [vmem:[#allocation2 + $0x99] sm:$0xff] %v145_v34  ;;  %v306_v41 = vld [vmem:[#allocation2 + $0x230] sm:$0xff]  ;;  %v150_v2 = vld [vmem:[%s11331_s0 + $0x80] sm:$0xff] }
  0x86   :  { %v273_v36 = vld [vmem:[#allocation2 + $0x78] sm:$0xff]  ;;  %244 = vst [vmem:[#allocation2 + $0x261] sm:$0xff] %v179_v37 }
  0x87   :  { %1012 = vmatmul.f32.gmra.mxu0 %v267_v3  ;;  %211 = vst [vmem:[#allocation2 + $0xa9] sm:$0xff] %v146_v40  ;;  %v307_v46 = vld [vmem:[#allocation2 + $0x240] sm:$0xff] }
  0x88   :  { %1332 = vmatmul.f32.gmra.mxu3 %v173_v4  ;;  %v274_v42 = vld [vmem:[#allocation2 + $0x80] sm:$0xff]  ;;  %245 = vst [vmem:[#allocation2 + $0x271] sm:$0xff] %v180_v43 }
  0x89   :  { %212 = vst [vmem:[#allocation2 + $0xb1] sm:$0xff] %v147_v45  ;;  %v308_v54 = vld [vmem:[#allocation2 + $0x248] sm:$0xff] }
  0x8a   :  { %v275_v47 = vld [vmem:[#allocation2 + $0x90] sm:$0xff]  ;;  %246 = vst [vmem:[#allocation2 + $0x279] sm:$0xff] %v181_v48 }
  0x8b   :  { %1248 = vmatmul.f32.gmra.mxu1 %v145_v34  ;;  %213 = vst [vmem:[#allocation2 + $0xc1] sm:$0xff] %v148_v52  ;;  %v309_v60 = vld [vmem:[#allocation2 + $0x258] sm:$0xff]  ;;  %v187_v34 = vld [vmem:[%s11331_s0 + $0x1a8] sm:$0xff] }
  0x8c   :  { %v276_v55 = vld [vmem:[#allocation2 + $0x98] sm:$0xff]  ;;  %247 = vst [vmem:[#allocation2 + $0x289] sm:$0xff] %v182_v56 }
  0x8d   :  { %1111 = vmatmul.f32.gmra.mxu2 %v300_v8  ;;  %214 = vst [vmem:[#allocation2 + $0xc9] sm:$0xff] %v149_v59  ;;  %v310_v4 = vld [vmem:[#allocation2 + $0x260] sm:$0xff]  ;;  %v910_v8 = vld [vmem:[%s11330_s1 + $0x230] sm:$0xff] }
  0x8e   :  { %v277_v62 = vld [vmem:[#allocation2 + $0xa8] sm:$0xff]  ;;  %248 = vst [vmem:[#allocation2 + $0x291] sm:$0xff] %v183_v63  ;;  %1829 = vmatpush.msrb.mxu0 %v910_v8  ;;  %v907_v8 = vld [vmem:[%s11330_s1 + $0x218] sm:$0xff] }
  0x8f   :  { %1015 = vmatmul.f32.gmra.mxu0 %v268_v9  ;;  %215 = vst [vmem:[#allocation2 + $0xd9] sm:$0xff] %v150_v2  ;;  %v151_v9 = vld [vmem:[%s11331_s0 + $0x88] sm:$0xff]  ;;  %v311_v12 = vld [vmem:[#allocation2 + $0x270] sm:$0xff] }
  0x90   :  { %1335 = vmatmul.f32.gmra.mxu3 %v174_v10  ;;  %v278_v6 = vld [vmem:[#allocation2 + $0xb0] sm:$0xff]  ;;  %249 = vst [vmem:[#allocation2 + $0x2a1] sm:$0xff] %v184_v7 }
  0x91   :  { %216 = vst [vmem:[#allocation2 + $0xe1] sm:$0xff] %v151_v9 }
  0x92   :  { %250 = vst [vmem:[#allocation2 + $0x2a9] sm:$0xff] %v185_v16 }
  0x93   :  { %1251 = vmatmul.f32.gmra.mxu1 %v146_v40  ;;  %218 = vst [vmem:[#allocation2 + $0xf9] sm:$0xff] %v153_v28 }
  0x94   :  { %252 = vst [vmem:[#allocation2 + $0x2c1] sm:$0xff] %v187_v34 }
  0x95   :  { %1114 = vmatmul.f32.gmra.mxu2 %v301_v13  ;;  %254 = vst [vmem:[#allocation2 + $0x2d9] sm:$0xff] %v189_v57 }
  0x96   :  { %v281_v33 = vld [vmem:[#allocation2 + $0xd8] sm:$0xff] }
  0x97   :  { %1018 = vmatmul.f32.gmra.mxu0 %v269_v14 }
  0x98   :  { %1338 = vmatmul.f32.gmra.mxu3 %v175_v15  ;;  %v279_v15 = vld [vmem:[#allocation2 + $0xc0] sm:$0xff] }
  0x99   :  { %v282_v44 = vld [vmem:[#allocation2 + $0xe0] sm:$0xff] }
  0x9b   :  { %1254 = vmatmul.f32.gmra.mxu1 %v147_v45  ;;  %v188_v45 = vld [vmem:[%s11331_s0 + $0x1b0] sm:$0xff] }
  0x9c   :  { %253 = vst [vmem:[#allocation2 + $0x2d1] sm:$0xff] %v188_v45 }
  0x9d   :  { %1117 = vmatmul.f32.gmra.mxu2 %v302_v19  ;;  %v152_v19 = vld [vmem:[%s11331_s0 + $0x90] sm:$0xff] }
  0x9e   :  { %217 = vst [vmem:[#allocation2 + $0xf1] sm:$0xff] %v152_v19 }
  0x9f   :  { %1021 = vmatmul.f32.gmra.mxu0 %v270_v20  ;;  %v6944_v10 = vpop.f32.mrf.mxu0 }
  0xa0   :  { %1341 = vmatmul.f32.gmra.mxu3 %v176_v21  ;;  %v6904_v53 = vpop.f32.mrf.mxu1  ;;  %v312_v21 = vld [vmem:[#allocation2 + $0x278] sm:$0xff] }
  0xa3   :  { %1257 = vmatmul.f32.gmra.mxu1 %v148_v52  ;;  %v315_v52 = vld [vmem:[#allocation2 + $0x2a0] sm:$0xff] }
  0xa4   :  { %v6950_v14 = vpop.f32.mrf.mxu2 }
  0xa5   :  { %1120 = vmatmul.f32.gmra.mxu2 %v303_v24  ;;  %11460 = vst [vmem:[#allocation5_spill] sm:$0xff] %v6950_v14  ;;  %v280_v24 = vld [vmem:[#allocation2 + $0xc8] sm:$0xff] }
  0xa7   :  { %1024 = vmatmul.f32.gmra.mxu0 %v271_v25  ;;  %v6966_v22 = vpop.f32.mrf.mxu0  ;;  %v186_v25 = vld [vmem:[%s11331_s0 + $0x1a0] sm:$0xff] }
  0xa8   :  { %1344 = vmatmul.f32.gmra.mxu3 %v177_v26  ;;  %v6917_v61 = vpop.f32.mrf.mxu1  ;;  %v909_v26 = vld [vmem:[%s11330_s1 + $0x228] sm:$0xff]  ;;  %251 = vst [vmem:[#allocation2 + $0x2b9] sm:$0xff] %v186_v25 }
  0xa9   :  { %1830 = vmatpush.msrb.mxu0 %v909_v26 }
  0xab   :  { %1260 = vmatmul.f32.gmra.mxu1 %v149_v59  ;;  %v875_v59 = vld [vmem:[%s11330_s1 + $0x118] sm:$0xff] }
  0xac   :  { %v6976_v27 = vpop.f32.mrf.mxu2 }
  0xad   :  { %1123 = vmatmul.f32.gmra.mxu2 %v304_v30  ;;  %11461 = vst [vmem:[#allocation6_spill] sm:$0xff] %v6976_v27  ;;  %v313_v30 = vld [vmem:[#allocation2 + $0x288] sm:$0xff] }
  0xaf   :  { %1027 = vmatmul.f32.gmra.mxu0 %v272_v31 }
  0xb0   :  { %1347 = vmatmul.f32.gmra.mxu3 %v178_v32  ;;  %v6933_v5 = vpop.f32.mrf.mxu1 }
  0xb3   :  { %1263 = vmatmul.f32.gmra.mxu1 %v150_v2  ;;  %v316_v2 = vld [vmem:[#allocation2 + $0x2a8] sm:$0xff] }
  0xb5   :  { %1126 = vmatmul.f32.gmra.mxu2 %v305_v35  ;;  %v876_v35 = vld [vmem:[%s11330_s1 + $0x120] sm:$0xff] }
  0xb6   :  { %1413 = vmatpush.msrb.mxu2 %v876_v35 }
  0xb7   :  { %1030 = vmatmul.f32.gmra.mxu0 %v273_v36  ;;  %v892_v36 = vld [vmem:[%s11330_s1 + $0x1a0] sm:$0xff] }
  0xb8   :  { %1350 = vmatmul.f32.gmra.mxu3 %v179_v37  ;;  %v6948_v13 = vpop.f32.mrf.mxu1  ;;  %v154_v37 = vld [vmem:[%s11331_s0 + $0xa0] sm:$0xff]  ;;  %1414 = vmatpush.msrb.mxu2 %v875_v59 }
  0xb9   :  { %1622 = vmatpush.msrb.mxu3 %v892_v36  ;;  %219 = vst [vmem:[#allocation2 + $0x109] sm:$0xff] %v154_v37  ;;  %v192_v36 = vld [vmem:[%s11331_s0 + $0x1d0] sm:$0xff] }
  0xba   :  { %257 = vst [vmem:[#allocation2 + $0x301] sm:$0xff] %v192_v36 }
  0xbb   :  { %1266 = vmatmul.f32.gmra.mxu1 %v151_v9  ;;  %v157_v9 = vld [vmem:[%s11331_s0 + $0xb8] sm:$0xff] }
  0xbc   :  { %222 = vst [vmem:[#allocation2 + $0x129] sm:$0xff] %v157_v9 }
  0xbd   :  { %1129 = vmatmul.f32.gmra.mxu2 %v306_v41  ;;  %v314_v41 = vld [vmem:[#allocation2 + $0x290] sm:$0xff] }
  0xbf   :  { %1033 = vmatmul.f32.gmra.mxu0 %v274_v42 }
  0xc0   :  { %1353 = vmatmul.f32.gmra.mxu3 %v180_v43  ;;  %v6968_v23 = vpop.f32.mrf.mxu1 }
  0xc3   :  { %v6899_v51 = vpop.f32.mrf.mxu3  ;;  %1269 = vmatmul.f32.gmra.mxu1 %v152_v19  ;;  %v285_v19 = vld [vmem:[#allocation2 + $0x108] sm:$0xff] }
  0xc4   :  { %11458 = vst [vmem:[#allocation3_spill] sm:$0xff] %v6899_v51 }
  0xc5   :  { %1132 = vmatmul.f32.gmra.mxu2 %v307_v46  ;;  %v908_v46 = vld [vmem:[%s11330_s1 + $0x220] sm:$0xff] }
  0xc6   :  { %1831 = vmatpush.msrb.mxu0 %v908_v46 }
  0xc7   :  { %1036 = vmatmul.f32.gmra.mxu0 %v275_v47  ;;  %v155_v47 = vld [vmem:[%s11331_s0 + $0xa8] sm:$0xff] }
  0xc8   :  { %1356 = vmatmul.f32.gmra.mxu3 %v181_v48  ;;  %v6983_v31 = vpop.f32.mrf.mxu1  ;;  %220 = vst [vmem:[#allocation2 + $0x111] sm:$0xff] %v155_v47  ;;  %1832 = vmatpush.msrb.mxu0 %v907_v8  ;;  %v194_v8 = vld [vmem:[%s11331_s0 + $0x1e0] sm:$0xff] }
  0xc9   :  { %259 = vst [vmem:[#allocation2 + $0x319] sm:$0xff] %v194_v8 }
  0xcb   :  { %v6912_v58 = vpop.f32.mrf.mxu3  ;;  %1272 = vmatmul.f32.gmra.mxu1 %v153_v28 }
  0xcc   :  { %11459 = vst [vmem:[#allocation4_spill] sm:$0xff] %v6912_v58  ;;  %v521_v58 = vld [vmem:[#allocation2 + $0x31] sm:$0xff] }
  0xcd   :  { %1135 = vmatmul.f32.gmra.mxu2 %v308_v54 }
  0xcf   :  { %1039 = vmatmul.f32.gmra.mxu0 %v276_v55  ;;  %v286_v35 = vld [vmem:[#allocation2 + $0x110] sm:$0xff] }
  0xd0   :  { %1359 = vmatmul.f32.gmra.mxu3 %v182_v56  ;;  %v7004_v42 = vpop.f32.mrf.mxu1  ;;  %v283_v56 = vld [vmem:[#allocation2 + $0xf0] sm:$0xff] }
  0xd3   :  { %v6931_v3 = vpop.f32.mrf.mxu3  ;;  %1275 = vmatmul.f32.gmra.mxu1 %v154_v37  ;;  %v906_v37 = vld [vmem:[%s11330_s1 + $0x210] sm:$0xff] }
  0xd4   :  { %1833 = vmatpush.msrb.mxu0 %v906_v37  ;;  %v888_v37 = vld [vmem:[%s11330_s1 + $0x180] sm:$0xff] }
  0xd5   :  { %1138 = vmatmul.f32.gmra.mxu2 %v309_v60  ;;  %v891_v60 = vld [vmem:[%s11330_s1 + $0x198] sm:$0xff] }
  0xd6   :  { %1623 = vmatpush.msrb.mxu3 %v891_v60 }
  0xd7   :  { %1042 = vmatmul.f32.gmra.mxu0 %v277_v62  ;;  %v156_v62 = vld [vmem:[%s11331_s0 + $0xb0] sm:$0xff] }
  0xd8   :  { %1362 = vmatmul.f32.gmra.mxu3 %v183_v63  ;;  %v7022_v54 = vpop.f32.mrf.mxu1  ;;  %221 = vst [vmem:[#allocation2 + $0x121] sm:$0xff] %v156_v62 }
  0xdb   :  { %v6946_v11 = vpop.f32.mrf.mxu3  ;;  %1278 = vmatmul.f32.gmra.mxu1 %v155_v47 }
  0xdd   :  { %1141 = vmatmul.f32.gmra.mxu2 %v310_v4 }
  0xdf   :  { %1045 = vmatmul.f32.gmra.mxu0 %v278_v6  ;;  %v284_v6 = vld [vmem:[#allocation2 + $0xf8] sm:$0xff] }
  0xe0   :  { %1365 = vmatmul.f32.gmra.mxu3 %v184_v7  ;;  %v190_v7 = vld [vmem:[%s11331_s0 + $0x1c0] sm:$0xff] }
  0xe1   :  { %255 = vst [vmem:[#allocation2 + $0x2e9] sm:$0xff] %v190_v7 }
  0xe3   :  { %v6964_v20 = vpop.f32.mrf.mxu3  ;;  %1281 = vmatmul.f32.gmra.mxu1 %v156_v62 }
  0xe5   :  { %1144 = vmatmul.f32.gmra.mxu2 %v311_v12 }
  0xe7   :  { %1048 = vmatmul.f32.gmra.mxu0 %v279_v15 }
  0xe8   :  { %1368 = vmatmul.f32.gmra.mxu3 %v185_v16  ;;  %v317_v16 = vld [vmem:[#allocation2 + $0x2b8] sm:$0xff] }
  0xeb   :  { %v6981_v29 = vpop.f32.mrf.mxu3  ;;  %1284 = vmatmul.f32.gmra.mxu1 %v157_v9  ;;  %v905_v9 = vld [vmem:[%s11330_s1 + $0x208] sm:$0xff] }
  0xec   :  { %1834 = vmatpush.msrb.mxu0 %v905_v9  ;;  %v163_v9 = vld [vmem:[%s11331_s0 + $0xe8] sm:$0xff] }
  0xed   :  { %1147 = vmatmul.f32.gmra.mxu2 %v312_v21  ;;  %v874_v21 = vld [vmem:[%s11330_s1 + $0x110] sm:$0xff]  ;;  %228 = vst [vmem:[#allocation2 + $0x171] sm:$0xff] %v163_v9 }
  0xee   :  { %1415 = vmatpush.msrb.mxu2 %v874_v21  ;;  %v934_v21 = vld [vmem:[%s11330_s1 + $0x2f0] sm:$0xff] }
  0xef   :  { %1051 = vmatmul.f32.gmra.mxu0 %v280_v24  ;;  %v890_v24 = vld [vmem:[%s11330_s1 + $0x190] sm:$0xff] }
  0xf0   :  { %1371 = vmatmul.f32.gmra.mxu3 %v186_v25  ;;  %v158_v25 = vld [vmem:[%s11331_s0 + $0xc0] sm:$0xff] }
  0xf1   :  { %1624 = vmatpush.msrb.mxu3 %v890_v24  ;;  %223 = vst [vmem:[#allocation2 + $0x139] sm:$0xff] %v158_v25  ;;  %v321_v24 = vld [vmem:[#allocation2 + $0x2e8] sm:$0xff] }
  0xf3   :  { %v6999_v39 = vpop.f32.mrf.mxu3  ;;  %1287 = vmatmul.f32.gmra.mxu1 %v158_v25 }
  0xf4   :  { %v6985_v32 = vpop.f32.mrf.mxu0 }
  0xf5   :  { %1150 = vmatmul.f32.gmra.mxu2 %v313_v30  ;;  %v318_v30 = vld [vmem:[#allocation2 + $0x2c0] sm:$0xff] }
  0xf7   :  { %1054 = vmatmul.f32.gmra.mxu0 %v281_v33 }
  0xf8   :  { %v1103_v38 = vpop.f32.mrf.mxu2  ;;  %1374 = vmatmul.f32.gmra.mxu3 %v187_v34 }
  0xf9   :  { %v7002_v40 = vadd.f32 %v6931_v3, %v1103_v38  ;;  %v7043_v3 = vpop.f32.mrf.mxu1  ;;  %v159_v38 = vld [vmem:[%s11331_s0 + $0xc8] sm:$0xff] }
  0xfa   :  { %224 = vst [vmem:[#allocation2 + $0x141] sm:$0xff] %v159_v38 }
  0xfb   :  { %11462 = vst [vmem:[#allocation7_spill] sm:$0xff] %v7002_v40  ;;  %v7017_v49 = vpop.f32.mrf.mxu3  ;;  %1290 = vmatmul.f32.gmra.mxu1 %v159_v38  ;;  %v162_v38 = vld [vmem:[%s11331_s0 + $0xe0] sm:$0xff] }
  0xfc   :  { %v7006_v43 = vpop.f32.mrf.mxu0  ;;  %227 = vst [vmem:[#allocation2 + $0x169] sm:$0xff] %v162_v38 }
  0xfd   :  { %1153 = vmatmul.f32.gmra.mxu2 %v314_v41 }
  0xff   :  { %1057 = vmatmul.f32.gmra.mxu0 %v282_v44 }
 0x100   :  { %v1106_v48 = vpop.f32.mrf.mxu2  ;;  %1377 = vmatmul.f32.gmra.mxu3 %v188_v45  ;;  %v319_v45 = vld [vmem:[#allocation2 + $0x2d0] sm:$0xff] }
 0x101   :  { %v7020_v50 = vadd.f32 %v6946_v11, %v1106_v48  ;;  %v7061_v17 = vpop.f32.mrf.mxu1  ;;  %v287_v48 = vld [vmem:[#allocation2 + $0x120] sm:$0xff] }
 0x103   :  { %11463 = vst [vmem:[#allocation8_spill] sm:$0xff] %v7020_v50  ;;  %v7038_v0 = vpop.f32.mrf.mxu3  ;;  %v460_v50 = vld [vmem:[#allocation2 + $0x50] sm:$0xff] }
 0x104   :  { %v7024_v55 = vpop.f32.mrf.mxu0 }
 0x105   :  { %1156 = vmatmul.f32.gmra.mxu2 %v315_v52  ;;  %v193_v52 = vld [vmem:[%s11331_s0 + $0x1d8] sm:$0xff] }
 0x106   :  { %258 = vst [vmem:[#allocation2 + $0x309] sm:$0xff] %v193_v52 }
 0x107   :  { %1060 = vmatmul.f32.gmra.mxu0 %v283_v56  ;;  %v873_v56 = vld [vmem:[%s11330_s1 + $0x108] sm:$0xff] }
 0x108   :  { %v1109_v63 = vpop.f32.mrf.mxu2  ;;  %1380 = vmatmul.f32.gmra.mxu3 %v189_v57  ;;  %1416 = vmatpush.msrb.mxu2 %v873_v56  ;;  %v160_v57 = vld [vmem:[%s11331_s0 + $0xd0] sm:$0xff]  ;;  %v931_v56 = vld [vmem:[%s11330_s1 + $0x2d8] sm:$0xff] }
 0x109   :  { %v7041_v1 = vadd.f32 %v6964_v20, %v1109_v63  ;;  %v191_v20 = vld [vmem:[%s11331_s0 + $0x1c8] sm:$0xff]  ;;  %v7082_v33 = vpop.f32.mrf.mxu1  ;;  %225 = vst [vmem:[#allocation2 + $0x151] sm:$0xff] %v160_v57  ;;  %v320_v63 = vld [vmem:[#allocation2 + $0x2d8] sm:$0xff]  ;;  %1293 = vmatmul.f32.gmra.mxu1 %v160_v57 }
 0x10a   :  { %256 = vst [vmem:[#allocation2 + $0x2f1] sm:$0xff] %v191_v20 }
 0x10b   :  { %11464 = vst [vmem:[#allocation9_spill] sm:$0xff] %v7041_v1  ;;  %v7056_v12 = vpop.f32.mrf.mxu3 }
 0x10c   :  { %v7045_v4 = vpop.f32.mrf.mxu0 }
 0x10d   :  { %1159 = vmatmul.f32.gmra.mxu2 %v316_v2 }
 0x10f   :  { %1063 = vmatmul.f32.gmra.mxu0 %v284_v6 }
 0x110   :  { %v1112_v11 = vpop.f32.mrf.mxu2  ;;  %1383 = vmatmul.f32.gmra.mxu3 %v190_v7  ;;  %v288_v7 = vld [vmem:[#allocation2 + $0x128] sm:$0xff] }
 0x111   :  { %v7059_v15 = vadd.f32 %v6981_v29, %v1112_v11  ;;  %v7100_v46 = vpop.f32.mrf.mxu1  ;;  %v322_v57 = vld [vmem:[#allocation2 + $0x2f0] sm:$0xff] }
 0x113   :  { %11465 = vst [vmem:[#allocation10_spill] sm:$0xff] %v7059_v15  ;;  %v7077_v28 = vpop.f32.mrf.mxu3 }
 0x114   :  { %v7063_v18 = vpop.f32.mrf.mxu0 }
 0x115   :  { %1162 = vmatmul.f32.gmra.mxu2 %v317_v16 }
 0x117   :  { %1066 = vmatmul.f32.gmra.mxu0 %v285_v19 }
 0x118   :  { %v1115_v26 = vpop.f32.mrf.mxu2  ;;  %1386 = vmatmul.f32.gmra.mxu3 %v191_v20  ;;  %v935_v20 = vld [vmem:[%s11330_s1 + $0x2f8] sm:$0xff] }
 0x119   :  { %v7080_v29 = vadd.f32 %v6999_v39, %v1115_v26  ;;  %v7121_v2 = vpop.f32.mrf.mxu1  ;;  %2029 = vmatpush.msrb.mxu1 %v935_v20 }
 0x11b   :  { %11466 = vst [vmem:[#allocation11_spill] sm:$0xff] %v7080_v29  ;;  %v7095_v41 = vpop.f32.mrf.mxu3  ;;  %2030 = vmatpush.msrb.mxu1 %v934_v21 }
 0x11c   :  { %v7084_v34 = vpop.f32.mrf.mxu0 }
 0x11d   :  { %1165 = vmatmul.f32.gmra.mxu2 %v318_v30  ;;  %v289_v30 = vld [vmem:[#allocation2 + $0x138] sm:$0xff] }
 0x11f   :  { %1069 = vmatmul.f32.gmra.mxu0 %v286_v35  ;;  %v872_v35 = vld [vmem:[%s11330_s1 + $0x100] sm:$0xff] }
 0x120   :  { %v1118_v39 = vpop.f32.mrf.mxu2  ;;  %1389 = vmatmul.f32.gmra.mxu3 %v192_v36  ;;  %v933_v36 = vld [vmem:[%s11330_s1 + $0x2e8] sm:$0xff]  ;;  %1417 = vmatpush.msrb.mxu2 %v872_v35 }
 0x121   :  { %v7098_v44 = vadd.f32 %v7017_v49, %v1118_v39  ;;  %v889_v49 = vld [vmem:[%s11330_s1 + $0x188] sm:$0xff]  ;;  %v7145_v25 = vpop.f32.mrf.mxu1  ;;  %2031 = vmatpush.msrb.mxu1 %v933_v36  ;;  %v932_v39 = vld [vmem:[%s11330_s1 + $0x2e0] sm:$0xff] }
 0x122   :  { %1625 = vmatpush.msrb.mxu3 %v889_v49  ;;  %v930_v49 = vld [vmem:[%s11330_s1 + $0x2d0] sm:$0xff] }
 0x123   :  { %11467 = vst [vmem:[#allocation12_spill] sm:$0xff] %v7098_v44  ;;  %v7116_v60 = vpop.f32.mrf.mxu3  ;;  %2032 = vmatpush.msrb.mxu1 %v932_v39  ;;  %v455_v39 = vld [vmem:[#allocation2 + $0x18] sm:$0xff]  ;;  %v459_v44 = vld [vmem:[#allocation2 + $0x48] sm:$0xff] }
 0x124   :  { %v7102_v47 = vpop.f32.mrf.mxu0  ;;  %1626 = vmatpush.msrb.mxu3 %v888_v37  ;;  %v291_v37 = vld [vmem:[#allocation2 + $0x150] sm:$0xff] }
 0x125   :  { %1168 = vmatmul.f32.gmra.mxu2 %v319_v45  ;;  %2033 = vmatpush.msrb.mxu1 %v931_v56  ;;  %v924_v56 = vld [vmem:[%s11330_s1 + $0x2a0] sm:$0xff] }
 0x127   :  { %1072 = vmatmul.f32.gmra.mxu0 %v287_v48  ;;  %2034 = vmatpush.msrb.mxu1 %v930_v49 }
 0x128   :  { %v1121_v59 = vpop.f32.mrf.mxu2  ;;  %1392 = vmatmul.f32.gmra.mxu3 %v193_v52 }
 0x129   :  { %v7119_v62 = vadd.f32 %v7038_v0, %v1121_v59  ;;  %v161_v0 = vld [vmem:[%s11331_s0 + $0xd8] sm:$0xff]  ;;  %v7178_v59 = vpop.f32.mrf.mxu1 }
 0x12a   :  { %226 = vst [vmem:[#allocation2 + $0x159] sm:$0xff] %v161_v0  ;;  %1296 = vmatmul.f32.gmra.mxu1 %v161_v0  ;;  %v928_v0 = vld [vmem:[%s11330_s1 + $0x2c0] sm:$0xff] }
 0x12b   :  { %11468 = vst [vmem:[#allocation13_spill] sm:$0xff] %v7119_v62  ;;  %v7134_v16 = vpop.f32.mrf.mxu3  ;;  %v519_v62 = vld [vmem:[#allocation2 + $0x19] sm:$0xff] }
 0x12c   :  { %v7123_v6 = vpop.f32.mrf.mxu0 }
 0x12d   :  { %1171 = vmatmul.f32.gmra.mxu2 %v320_v63 }
 0x12f   :  { %1075 = vmatmul.f32.gmra.mxu0 %v288_v7  ;;  %v290_v7 = vld [vmem:[#allocation2 + $0x140] sm:$0xff] }
 0x130   :  { %v1124_v11 = vpop.f32.mrf.mxu2  ;;  %1395 = vmatmul.f32.gmra.mxu3 %v194_v8  ;;  %v904_v8 = vld [vmem:[%s11330_s1 + $0x200] sm:$0xff] }
 0x131   :  { %v7137_v19 = vadd.f32 %v7056_v12, %v1124_v11  ;;  %v195_v12 = vld [vmem:[%s11331_s0 + $0x1e8] sm:$0xff]  ;;  %1835 = vmatpush.msrb.mxu0 %v904_v8  ;;  %v7205_v35 = vpop.f32.mrf.mxu1  ;;  %v922_v8 = vld [vmem:[%s11330_s1 + $0x290] sm:$0xff] }
 0x132   :  { %260 = vst [vmem:[#allocation2 + $0x321] sm:$0xff] %v195_v12  ;;  %1299 = vmatmul.f32.gmra.mxu1 %v162_v38  ;;  %v925_v38 = vld [vmem:[%s11330_s1 + $0x2a8] sm:$0xff] }
 0x133   :  { %11469 = vst [vmem:[#allocation14_spill] sm:$0xff] %v7137_v19  ;;  %v7167_v48 = vpop.f32.mrf.mxu3 }
 0x134   :  { %v7147_v26 = vpop.f32.mrf.mxu0 }
 0x135   :  { %1174 = vmatmul.f32.gmra.mxu2 %v321_v24  ;;  %v927_v24 = vld [vmem:[%s11330_s1 + $0x2b8] sm:$0xff] }
 0x137   :  { %1078 = vmatmul.f32.gmra.mxu0 %v289_v30  ;;  %v926_v30 = vld [vmem:[%s11330_s1 + $0x2b0] sm:$0xff] }
 0x138   :  { %v1127_v45 = vpop.f32.mrf.mxu2  ;;  %1398 = vmatmul.f32.gmra.mxu3 %v195_v12  ;;  %v323_v12 = vld [vmem:[#allocation2 + $0x300] sm:$0xff] }
 0x139   :  { %v7170_v52 = vadd.f32 %v7077_v28, %v1127_v45  ;;  %v929_v28 = vld [vmem:[%s11330_s1 + $0x2c8] sm:$0xff]  ;;  %v967_v45 = vld [vmem:[%s11330_s1 + $0x3f8] sm:$0xff] }
 0x13a   :  { %2035 = vmatpush.msrb.mxu1 %v929_v28  ;;  %2447 = vmatpush.msra.mxu3 %v967_v45  ;;  %v923_v28 = vld [vmem:[%s11330_s1 + $0x298] sm:$0xff] }
 0x13b   :  { %11470 = vst [vmem:[#allocation15_spill] sm:$0xff] %v7170_v52  ;;  %v7194_v20 = vpop.f32.mrf.mxu3  ;;  %1302 = vmatmul.f32.gmra.mxu1 %v163_v9  ;;  %v324_v9 = vld [vmem:[#allocation2 + $0x308] sm:$0xff]  ;;  %v585_v52 = vld [vmem:[#allocation2 + $0x32] sm:$0xff] }
 0x13c   :  { %v7180_v63 = vpop.f32.mrf.mxu0  ;;  %2036 = vmatpush.msrb.mxu1 %v928_v0  ;;  %v7232_v0 = vpop.f32.mrf.mxu1 }
 0x13d   :  { %1177 = vmatmul.f32.gmra.mxu2 %v322_v57 }
 0x13e   :  { %2037 = vmatpush.msrb.mxu1 %v927_v24  ;;  %v7236_v24 = vld [vmem:[#allocation2 + $0x158] sm:$0xff] }
 0x13f   :  { %1081 = vmatmul.f32.gmra.mxu0 %v290_v7 }
 0x140   :  { %v1130_v11 = vpop.f32.mrf.mxu2  ;;  %2038 = vmatpush.msrb.mxu1 %v926_v30  ;;  %1627 = vmatmul.f32.vlgmr.msrb.gmra.mxu3 %v455_v39  ;;  %v456_v30 = vld [vmem:[#allocation2 + $0x20] sm:$0xff] }
 0x141   :  { %v7197_v21 = vadd.f32 %v7095_v41, %v1130_v11  ;;  %v951_v41 = vld [vmem:[%s11330_s1 + $0x378] sm:$0xff] }
 0x142   :  { %2238 = vmatpush.msra.mxu2 %v951_v41  ;;  %2039 = vmatpush.msrb.mxu1 %v925_v38  ;;  %v7248_v39 = vld [vmem:[#allocation2 + $0x1a] sm:$0xff] }
 0x143   :  { %11471 = vst [vmem:[#allocation16_spill] sm:$0xff] %v7197_v21  ;;  %v7221_v57 = vpop.f32.mrf.mxu3 }
 0x144   :  { %v7207_v36 = vpop.f32.mrf.mxu0  ;;  %2040 = vmatpush.msrb.mxu1 %v924_v56  ;;  %v325_v56 = vld [vmem:[#allocation2 + $0x318] sm:$0xff] }
 0x145   :  { %1180 = vmatmul.f32.gmra.mxu2 %v323_v12  ;;  %v983_v12 = vld [vmem:[%s11330_s1 + $0x478] sm:$0xff] }
 0x146   :  { %2041 = vmatpush.msrb.mxu1 %v923_v28  ;;  %2656 = vmatpush.msra.mxu0 %v983_v12  ;;  %v584_v12 = vld [vmem:[#allocation2 + $0x22] sm:$0xff] }
 0x147   :  { %1084 = vmatmul.f32.gmra.mxu0 %v291_v37  ;;  %v920_v37 = vld [vmem:[%s11330_s1 + $0x280] sm:$0xff] }
 0x148   :  { %v1133_v49 = vpop.f32.mrf.mxu2  ;;  %2042 = vmatpush.msrb.mxu1 %v922_v8  ;;  %1630 = vmatmul.f32.gmra.mxu3 %v456_v30  ;;  %v7258_v8 = vld [vmem:[#allocation2 + $0x168] sm:$0xff] }
 0x149   :  { %v7224_v7 = vadd.f32 %v7116_v60, %v1133_v49  ;;  %v921_v60 = vld [vmem:[%s11330_s1 + $0x288] sm:$0xff]  ;;  %v7254_v49 = vpop.f32.mrf.mxu1 }
 0x14a   :  { %2043 = vmatpush.msrb.mxu1 %v921_v60 }
 0x14b   :  { %11472 = vst [vmem:[#allocation17_spill] sm:$0xff] %v7224_v7  ;;  %v1357_v38 = vpop.f32.mrf.mxu3  ;;  %v7268_v7 = vld [vmem:[#allocation2 + $0x170] sm:$0xff] }
 0x14c   :  { %v7234_v11 = vpop.f32.mrf.mxu0  ;;  %2044 = vmatpush.msrb.mxu1 %v920_v37  ;;  %v326_v37 = vld [vmem:[#allocation2 + $0x320] sm:$0xff] }
 0x14d   :  { %1183 = vmatmul.f32.gmra.mxu2 %v324_v9  ;;  %2045 = vmatmul.f32.vlgmr.msrb.gmra.mxu1 %v7248_v39  ;;  %v457_v9 = vld [vmem:[#allocation2 + $0x30] sm:$0xff] }
 0x14f   :  { %1087 = vmatmul.f32.gmra.mxu0 %v7236_v24 }
 0x150   :  { %v1136_v41 = vpop.f32.mrf.mxu2  ;;  %1633 = vmatmul.f32.gmra.mxu3 %v457_v9 }
 0x151   :  { %v7251_v45 = vadd.f32 %v7134_v16, %v1136_v41  ;;  %v7264_v41 = vpop.f32.mrf.mxu1 }
 0x152   :  { %11475 = vst [vmem:[#allocation20_spill] sm:$0xff] %v7264_v41  ;;  %v1214_v41 = vadd.f32 %v6917_v61, %v6966_v22  ;;  %v537_v22 = vld [vmem:[#allocation2 + $0xf1] sm:$0xff] }
 0x153   :  { %11473 = vst [vmem:[#allocation18_spill] sm:$0xff] %v7251_v45  ;;  %v1360_v30 = vpop.f32.mrf.mxu3 }
 0x154   :  { %v7256_v28 = vpop.f32.mrf.mxu0 }
 0x155   :  { %1186 = vmatmul.f32.gmra.mxu2 %v325_v56  ;;  %2048 = vmatmul.f32.gmra.mxu1 %v584_v12  ;;  %v458_v56 = vld [vmem:[#allocation2 + $0x38] sm:$0xff] }
 0x157   :  { %1090 = vmatmul.f32.gmra.mxu0 %v7258_v8 }
 0x158   :  { %v1139_v60 = vpop.f32.mrf.mxu2  ;;  %1636 = vmatmul.f32.gmra.mxu3 %v458_v56  ;;  %v966_v56 = vld [vmem:[%s11330_s1 + $0x3f0] sm:$0xff] }
 0x159   :  { %v7262_v16 = vadd.f32 %v7167_v48, %v1139_v60  ;;  %v391_v48 = vld [vmem:[#allocation2 + $0x2] sm:$0xff]  ;;  %v7274_v60 = vpop.f32.mrf.mxu1  ;;  %2448 = vmatpush.msra.mxu3 %v966_v56 }
 0x15a   :  { %11477 = vst [vmem:[#allocation22_spill] sm:$0xff] %v7274_v60 }
 0x15b   :  { %11474 = vst [vmem:[#allocation19_spill] sm:$0xff] %v7262_v16  ;;  %v1363_v9 = vpop.f32.mrf.mxu3 }
 0x15c   :  { %v7266_v45 = vpop.f32.mrf.mxu0 }
 0x15d   :  { %1189 = vmatmul.f32.gmra.mxu2 %v326_v37  ;;  %2051 = vmatmul.f32.gmra.mxu1 %v585_v52  ;;  %v950_v37 = vld [vmem:[%s11330_s1 + $0x370] sm:$0xff] }
 0x15e   :  { %2239 = vmatpush.msra.mxu2 %v950_v37  ;;  %v520_v37 = vld [vmem:[#allocation2 + $0x21] sm:$0xff] }
 0x15f   :  { %1093 = vmatmul.f32.gmra.mxu0 %v7268_v7 }
 0x160   :  { %v1142_v21 = vpop.f32.mrf.mxu2  ;;  %1639 = vmatmul.f32.gmra.mxu3 %v459_v44 }
 0x161   :  { %v7272_v19 = vadd.f32 %v7194_v20, %v1142_v21  ;;  %v7287_v15 = vpop.f32.mrf.mxu1 }
 0x162   :  { %11479 = vst [vmem:[#allocation24_spill] sm:$0xff] %v7287_v15  ;;  %v981_v15 = vld [vmem:[%s11330_s1 + $0x468] sm:$0xff] }
 0x163   :  { %11476 = vst [vmem:[#allocation21_spill] sm:$0xff] %v7272_v19  ;;  %v1366_v21 = vpop.f32.mrf.mxu3  ;;  %v586_v19 = vld [vmem:[#allocation2 + $0x3a] sm:$0xff] }
 0x164   :  { %v7276_v16 = vpop.f32.mrf.mxu0 }
 0x165   :  { %1418 = vmatmul.f32.vlgmr.msrb.gmra.mxu2 %v391_v48  ;;  %v392_v48 = vld [vmem:[#allocation2 + $0xa] sm:$0xff]  ;;  %2054 = vmatmul.f32.gmra.mxu1 %v586_v19 }
 0x167   :  { %1836 = vmatmul.f32.vlgmr.msrb.gmra.mxu0 %v519_v62  ;;  %v982_v62 = vld [vmem:[%s11330_s1 + $0x470] sm:$0xff] }
 0x168   :  { %v1145_v20 = vpop.f32.mrf.mxu2  ;;  %2657 = vmatpush.msra.mxu0 %v982_v62  ;;  %1642 = vmatmul.f32.gmra.mxu3 %v460_v50 }
 0x169   :  { %v7285_v29 = vadd.f32 %v7221_v57, %v1145_v20  ;;  %v587_v57 = vld [vmem:[#allocation2 + $0x4a] sm:$0xff] }
 0x16a   :  { %2658 = vmatpush.msra.mxu0 %v981_v15  ;;  %v592_v15 = vld [vmem:[#allocation2 + $0x82] sm:$0xff] }
 0x16b   :  { %11478 = vst [vmem:[#allocation23_spill] sm:$0xff] %v7285_v29  ;;  %v1369_v56 = vpop.f32.mrf.mxu3  ;;  %v7296_v29 = vpop.f32.mrf.mxu1 }
 0x16c   :  { %v7289_v1 = vpop.f32.mrf.mxu0  ;;  %11481 = vst [vmem:[#allocation26_spill] sm:$0xff] %v7296_v29  ;;  %v589_v29 = vld [vmem:[#allocation2 + $0x62] sm:$0xff] }
 0x16d   :  { %1421 = vmatmul.f32.gmra.mxu2 %v392_v48  ;;  %2057 = vmatmul.f32.gmra.mxu1 %v587_v57  ;;  %v461_v48 = vld [vmem:[#allocation2 + $0x60] sm:$0xff] }
 0x16f   :  { %1839 = vmatmul.f32.gmra.mxu0 %v520_v37  ;;  %v588_v37 = vld [vmem:[#allocation2 + $0x52] sm:$0xff] }
 0x170   :  { %v1148_v44 = vpop.f32.mrf.mxu2  ;;  %1645 = vmatmul.f32.gmra.mxu3 %v461_v48 }
 0x171   :  { %v7294_v20 = vadd.f32 %v1357_v38, %v1148_v44  ;;  %v522_v44 = vld [vmem:[#allocation2 + $0x39] sm:$0xff] }
 0x173   :  { %11480 = vst [vmem:[#allocation25_spill] sm:$0xff] %v7294_v20  ;;  %v1372_v62 = vpop.f32.mrf.mxu3  ;;  %v7303_v50 = vpop.f32.mrf.mxu1  ;;  %v462_v20 = vld [vmem:[#allocation2 + $0x68] sm:$0xff] }
 0x174   :  { %v7298_v40 = vpop.f32.mrf.mxu0  ;;  %11484 = vst [vmem:[#allocation29_spill] sm:$0xff] %v7303_v50  ;;  %v524_v50 = vld [vmem:[#allocation2 + $0x51] sm:$0xff] }
 0x175   :  { %11482 = vst [vmem:[#allocation27_spill] sm:$0xff] %v7298_v40  ;;  %1424 = vmatmul.f32.gmra.mxu2 %v7248_v39  ;;  %2060 = vmatmul.f32.gmra.mxu1 %v588_v37 }
 0x177   :  { %1842 = vmatmul.f32.gmra.mxu0 %v521_v58 }
 0x178   :  { %v1151_v27 = vpop.f32.mrf.mxu2  ;;  %1648 = vmatmul.f32.gmra.mxu3 %v462_v20  ;;  %v965_v20 = vld [vmem:[%s11330_s1 + $0x3e8] sm:$0xff] }
 0x179   :  { %v7301_v51 = vadd.f32 %v1360_v30, %v1151_v27  ;;  %v523_v30 = vld [vmem:[#allocation2 + $0x49] sm:$0xff]  ;;  %2449 = vmatpush.msra.mxu3 %v965_v20  ;;  %v591_v20 = vld [vmem:[#allocation2 + $0x7a] sm:$0xff] }
 0x17b   :  { %11483 = vst [vmem:[#allocation28_spill] sm:$0xff] %v7301_v51  ;;  %v1375_v39 = vpop.f32.mrf.mxu3  ;;  %v7309_v48 = vpop.f32.mrf.mxu1  ;;  %v949_v51 = vld [vmem:[%s11330_s1 + $0x368] sm:$0xff] }
 0x17c   :  { %v7305_v38 = vpop.f32.mrf.mxu0  ;;  %11487 = vst [vmem:[#allocation32_spill] sm:$0xff] %v7309_v48  ;;  %2240 = vmatpush.msra.mxu2 %v949_v51  ;;  %v464_v51 = vld [vmem:[#allocation2 + $0x80] sm:$0xff] }
 0x17d   :  { %11485 = vst [vmem:[#allocation30_spill] sm:$0xff] %v7305_v38  ;;  %1427 = vmatmul.f32.gmra.mxu2 %v584_v12  ;;  %2063 = vmatmul.f32.gmra.mxu1 %v589_v29  ;;  %v463_v12 = vld [vmem:[#allocation2 + $0x78] sm:$0xff] }
 0x17f   :  { %1845 = vmatmul.f32.gmra.mxu0 %v522_v44  ;;  %v590_v44 = vld [vmem:[#allocation2 + $0x6a] sm:$0xff] }
 0x180   :  { %v1154_v14 = vpop.f32.mrf.mxu2  ;;  %1651 = vmatmul.f32.gmra.mxu3 %v463_v12 }
 0x181   :  { %v7307_v58 = vadd.f32 %v1363_v9, %v1154_v14 }
 0x183   :  { %11486 = vst [vmem:[#allocation31_spill] sm:$0xff] %v7307_v58  ;;  %v1378_v9 = vpop.f32.mrf.mxu3 }
 0x184   :  { %v7311_v27 = vpop.f32.mrf.mxu0 }
 0x185   :  { %11488 = vst [vmem:[#allocation33_spill] sm:$0xff] %v7311_v27  ;;  %1430 = vmatmul.f32.gmra.mxu2 %v585_v52  ;;  %2066 = vmatmul.f32.gmra.mxu1 %v590_v44  ;;  %v7321_v52 = vpop.f32.mrf.mxu1 }
 0x186   :  { %11490 = vst [vmem:[#allocation35_spill] sm:$0xff] %v7321_v52  ;;  %v525_v52 = vld [vmem:[#allocation2 + $0x61] sm:$0xff] }
 0x187   :  { %1848 = vmatmul.f32.gmra.mxu0 %v523_v30 }
 0x188   :  { %v1157_v14 = vpop.f32.mrf.mxu2  ;;  %1654 = vmatmul.f32.gmra.mxu3 %v464_v51 }
 0x189   :  { %v7319_v58 = vadd.f32 %v1366_v21, %v1157_v14 }
 0x18b   :  { %11489 = vst [vmem:[#allocation34_spill] sm:$0xff] %v7319_v58  ;;  %v1381_v12 = vpop.f32.mrf.mxu3 }
 0x18c   :  { %v7323_v48 = vpop.f32.mrf.mxu0 }
 0x18d   :  { %11491 = vst [vmem:[#allocation36_spill] sm:$0xff] %v7323_v48  ;;  %1433 = vmatmul.f32.gmra.mxu2 %v586_v19  ;;  %2069 = vmatmul.f32.gmra.mxu1 %v591_v20  ;;  %v7330_v14 = vpop.f32.mrf.mxu1  ;;  %v465_v19 = vld [vmem:[#allocation2 + $0x90] sm:$0xff] }
 0x18e   :  { %11493 = vst [vmem:[#allocation38_spill] sm:$0xff] %v7330_v14 }
 0x18f   :  { %1851 = vmatmul.f32.gmra.mxu0 %v524_v50 }
 0x190   :  { %v1160_v30 = vpop.f32.mrf.mxu2  ;;  %1657 = vmatmul.f32.gmra.mxu3 %v465_v19 }
 0x191   :  { %v7328_v21 = vadd.f32 %v1369_v56, %v1160_v30  ;;  %v526_v30 = vld [vmem:[#allocation2 + $0x69] sm:$0xff] }
 0x193   :  { %11492 = vst [vmem:[#allocation37_spill] sm:$0xff] %v7328_v21  ;;  %v1384_v27 = vpop.f32.mrf.mxu3  ;;  %v466_v21 = vld [vmem:[#allocation2 + $0x98] sm:$0xff] }
 0x194   :  { %v7332_v58 = vpop.f32.mrf.mxu0 }
 0x195   :  { %11494 = vst [vmem:[#allocation39_spill] sm:$0xff] %v7332_v58  ;;  %1436 = vmatmul.f32.gmra.mxu2 %v587_v57  ;;  %2072 = vmatmul.f32.gmra.mxu1 %v592_v15  ;;  %v7336_v51 = vpop.f32.mrf.mxu1  ;;  %v593_v58 = vld [vmem:[#allocation2 + $0x92] sm:$0xff] }
 0x196   :  { %11496 = vst [vmem:[#allocation41_spill] sm:$0xff] %v7336_v51  ;;  %v528_v51 = vld [vmem:[#allocation2 + $0x81] sm:$0xff] }
 0x197   :  { %1854 = vmatmul.f32.gmra.mxu0 %v525_v52 }
 0x198   :  { %v1163_v48 = vpop.f32.mrf.mxu2  ;;  %1660 = vmatmul.f32.gmra.mxu3 %v466_v21  ;;  %v964_v21 = vld [vmem:[%s11330_s1 + $0x3e0] sm:$0xff] }
 0x199   :  { %v7334_v50 = vadd.f32 %v1372_v62, %v1163_v48  ;;  %v527_v48 = vld [vmem:[#allocation2 + $0x79] sm:$0xff]  ;;  %2450 = vmatpush.msra.mxu3 %v964_v21  ;;  %v595_v21 = vld [vmem:[#allocation2 + $0xaa] sm:$0xff] }
 0x19b   :  { %11495 = vst [vmem:[#allocation40_spill] sm:$0xff] %v7334_v50  ;;  %v1387_v57 = vpop.f32.mrf.mxu3  ;;  %v948_v50 = vld [vmem:[%s11330_s1 + $0x360] sm:$0xff] }
 0x19c   :  { %v7338_v56 = vpop.f32.mrf.mxu0  ;;  %2241 = vmatpush.msra.mxu2 %v948_v50  ;;  %v468_v50 = vld [vmem:[#allocation2 + $0xb0] sm:$0xff] }
 0x19d   :  { %11497 = vst [vmem:[#allocation42_spill] sm:$0xff] %v7338_v56  ;;  %1439 = vmatmul.f32.gmra.mxu2 %v588_v37  ;;  %2075 = vmatmul.f32.gmra.mxu1 %v593_v58  ;;  %v7342_v19 = vpop.f32.mrf.mxu1  ;;  %v467_v37 = vld [vmem:[#allocation2 + $0xa8] sm:$0xff]  ;;  %v596_v56 = vld [vmem:[#allocation2 + $0xb2] sm:$0xff] }
 0x19e   :  { %11499 = vst [vmem:[#allocation44_spill] sm:$0xff] %v7342_v19 }
 0x19f   :  { %1857 = vmatmul.f32.gmra.mxu0 %v526_v30  ;;  %v594_v30 = vld [vmem:[#allocation2 + $0x9a] sm:$0xff] }
 0x1a0   :  { %v1166_v14 = vpop.f32.mrf.mxu2  ;;  %1663 = vmatmul.f32.gmra.mxu3 %v467_v37 }
 0x1a1   :  { %v7340_v52 = vadd.f32 %v1375_v39, %v1166_v14 }
 0x1a3   :  { %11498 = vst [vmem:[#allocation43_spill] sm:$0xff] %v7340_v52  ;;  %v1390_v14 = vpop.f32.mrf.mxu3 }
 0x1a4   :  { %v7344_v62 = vpop.f32.mrf.mxu0 }
 0x1a5   :  { %11500 = vst [vmem:[#allocation45_spill] sm:$0xff] %v7344_v62  ;;  %1442 = vmatmul.f32.gmra.mxu2 %v589_v29  ;;  %2078 = vmatmul.f32.gmra.mxu1 %v594_v30  ;;  %v7354_v29 = vpop.f32.mrf.mxu1  ;;  %v980_v62 = vld [vmem:[%s11330_s1 + $0x460] sm:$0xff] }
 0x1a6   :  { %11502 = vst [vmem:[#allocation47_spill] sm:$0xff] %v7354_v29  ;;  %2659 = vmatpush.msra.mxu0 %v980_v62 }
 0x1a7   :  { %1860 = vmatmul.f32.gmra.mxu0 %v527_v48 }
 0x1a8   :  { %v1169_v39 = vpop.f32.mrf.mxu2  ;;  %1666 = vmatmul.f32.gmra.mxu3 %v468_v50 }
 0x1a9   :  { %v7352_v52 = vadd.f32 %v1378_v9, %v1169_v39 }
 0x1ab   :  { %11501 = vst [vmem:[#allocation46_spill] sm:$0xff] %v7352_v52  ;;  %v1393_v37 = vpop.f32.mrf.mxu3  ;;  %v529_v52 = vld [vmem:[#allocation2 + $0x91] sm:$0xff] }
 0x1ac   :  { %v7356_v19 = vpop.f32.mrf.mxu0 }
 0x1ad   :  { %11503 = vst [vmem:[#allocation48_spill] sm:$0xff] %v7356_v19  ;;  %1445 = vmatmul.f32.gmra.mxu2 %v590_v44  ;;  %2081 = vmatmul.f32.gmra.mxu1 %v595_v21  ;;  %v7365_v29 = vpop.f32.mrf.mxu1  ;;  %v469_v44 = vld [vmem:[#allocation2 + $0xc0] sm:$0xff] }
 0x1ae   :  { %11506 = vst [vmem:[#allocation51_spill] sm:$0xff] %v7365_v29 }
 0x1af   :  { %1863 = vmatmul.f32.gmra.mxu0 %v528_v51 }
 0x1b0   :  { %v1172_v48 = vpop.f32.mrf.mxu2  ;;  %1669 = vmatmul.f32.gmra.mxu3 %v469_v44 }
 0x1b1   :  { %v7361_v9 = vadd.f32 %v1381_v12, %v1172_v48  ;;  %v530_v12 = vld [vmem:[#allocation2 + $0x99] sm:$0xff] }
 0x1b3   :  { %11504 = vst [vmem:[#allocation49_spill] sm:$0xff] %v7361_v9  ;;  %v1396_v51 = vpop.f32.mrf.mxu3  ;;  %v470_v9 = vld [vmem:[#allocation2 + $0xc8] sm:$0xff] }
 0x1b4   :  { %v7363_v39 = vpop.f32.mrf.mxu0 }
 0x1b5   :  { %11505 = vst [vmem:[#allocation50_spill] sm:$0xff] %v7363_v39  ;;  %1448 = vmatmul.f32.gmra.mxu2 %v591_v20  ;;  %2084 = vmatmul.f32.gmra.mxu1 %v596_v56  ;;  %v7371_v48 = vpop.f32.mrf.mxu1  ;;  %v597_v20 = vld [vmem:[#allocation2 + $0xc2] sm:$0xff] }
 0x1b6   :  { %11509 = vst [vmem:[#allocation54_spill] sm:$0xff] %v7371_v48  ;;  %v472_v48 = vld [vmem:[#allocation2 + $0xe0] sm:$0xff] }
 0x1b7   :  { %1866 = vmatmul.f32.gmra.mxu0 %v529_v52 }
 0x1b8   :  { %v1175_v19 = vpop.f32.mrf.mxu2  ;;  %1672 = vmatmul.f32.gmra.mxu3 %v470_v9 }
 0x1b9   :  { %v7367_v62 = vadd.f32 %v1384_v27, %v1175_v19  ;;  %v531_v27 = vld [vmem:[#allocation2 + $0xa9] sm:$0xff]  ;;  %v947_v19 = vld [vmem:[%s11330_s1 + $0x358] sm:$0xff] }
 0x1ba   :  { %2242 = vmatpush.msra.mxu2 %v947_v19  ;;  %v532_v19 = vld [vmem:[#allocation2 + $0xb1] sm:$0xff] }
 0x1bb   :  { %11507 = vst [vmem:[#allocation52_spill] sm:$0xff] %v7367_v62  ;;  %v1399_v52 = vpop.f32.mrf.mxu3 }
 0x1bc   :  { %v7369_v50 = vpop.f32.mrf.mxu0 }
 0x1bd   :  { %11508 = vst [vmem:[#allocation53_spill] sm:$0xff] %v7369_v50  ;;  %1451 = vmatmul.f32.gmra.mxu2 %v592_v15  ;;  %2087 = vmatmul.f32.gmra.mxu1 %v597_v20  ;;  %v471_v15 = vld [vmem:[#allocation2 + $0xd8] sm:$0xff]  ;;  %v7383_v9 = vpop.f32.mrf.mxu1  ;;  %v7402_v50 = vld [vmem:[#allocation2 + $0xe2] sm:$0xff] }
 0x1be   :  { %11512 = vst [vmem:[#allocation57_spill] sm:$0xff] %v7383_v9 }
 0x1bf   :  { %1869 = vmatmul.f32.gmra.mxu0 %v530_v12  ;;  %v963_v12 = vld [vmem:[%s11330_s1 + $0x3d8] sm:$0xff] }
 0x1c0   :  { %v1178_v39 = vpop.f32.mrf.mxu2  ;;  %2451 = vmatpush.msra.mxu3 %v963_v12 }
 0x1c1   :  { %v7373_v29 = vadd.f32 %v1387_v57, %v1178_v39  ;;  %1675 = vmatmul.f32.gmra.mxu3 %v471_v15  ;;  %v7385_v39 = vld [vmem:[#allocation2 + $0xca] sm:$0xff]  ;;  %v7395_v15 = vld [vmem:[#allocation2 + $0xda] sm:$0xff] }
 0x1c3   :  { %11510 = vst [vmem:[#allocation55_spill] sm:$0xff] %v7373_v29 }
 0x1c4   :  { %v7375_v44 = vpop.f32.mrf.mxu0 }
 0x1c5   :  { %11511 = vst [vmem:[#allocation56_spill] sm:$0xff] %v7375_v44  ;;  %1454 = vmatmul.f32.gmra.mxu2 %v593_v58  ;;  %2090 = vmatmul.f32.gmra.mxu1 %v7385_v39  ;;  %v1628_v58 = vpop.f32.mrf.mxu3 }
 0x1c7   :  { %1872 = vmatmul.f32.gmra.mxu0 %v531_v27  ;;  %v979_v27 = vld [vmem:[%s11330_s1 + $0x458] sm:$0xff] }
 0x1c8   :  { %v1181_v57 = vpop.f32.mrf.mxu2  ;;  %2660 = vmatpush.msra.mxu0 %v979_v27 }
 0x1c9   :  { %v7387_v29 = vadd.f32 %v1390_v14, %v1181_v57  ;;  %1678 = vmatmul.f32.gmra.mxu3 %v472_v48 }
 0x1ca   :  { %v2046_v44 = vpop.f32.mrf.mxu1 }
 0x1cb   :  { %11513 = vst [vmem:[#allocation58_spill] sm:$0xff] %v7387_v29 }
 0x1cc   :  { %v7390_v62 = vpop.f32.mrf.mxu0 }
 0x1cd   :  { %11514 = vst [vmem:[#allocation59_spill] sm:$0xff] %v7390_v62  ;;  %1457 = vmatmul.f32.gmra.mxu2 %v594_v30  ;;  %2093 = vmatmul.f32.gmra.mxu1 %v7395_v15  ;;  %v1631_v57 = vpop.f32.mrf.mxu3  ;;  %v533_v30 = vld [vmem:[#allocation2 + $0xc1] sm:$0xff] }
 0x1cf   :  { %1875 = vmatmul.f32.gmra.mxu0 %v532_v19  ;;  %v473_v19 = vld [vmem:[#allocation2 + $0xf0] sm:$0xff] }
 0x1d0   :  { %v1184_v12 = vpop.f32.mrf.mxu2 }
 0x1d1   :  { %v7397_v14 = vadd.f32 %v1393_v37, %v1184_v12  ;;  %1681 = vmatmul.f32.gmra.mxu3 %v473_v19  ;;  %v534_v12 = vld [vmem:[#allocation2 + $0xc9] sm:$0xff] }
 0x1d2   :  { %v2049_v9 = vpop.f32.mrf.mxu1 }
 0x1d3   :  { %11515 = vst [vmem:[#allocation60_spill] sm:$0xff] %v7397_v14  ;;  %v474_v14 = vld [vmem:[#allocation2 + $0xf8] sm:$0xff] }
 0x1d4   :  { %v7400_v29 = vpop.f32.mrf.mxu0 }
 0x1d5   :  { %11516 = vst [vmem:[#allocation61_spill] sm:$0xff] %v7400_v29  ;;  %1460 = vmatmul.f32.gmra.mxu2 %v595_v21  ;;  %2096 = vmatmul.f32.gmra.mxu1 %v7402_v50  ;;  %v7407_v37 = vpop.f32.mrf.mxu3  ;;  %v7413_v29 = vld [vmem:[#allocation2 + $0xf2] sm:$0xff] }
 0x1d7   :  { %1878 = vmatmul.f32.gmra.mxu0 %v533_v30 }
 0x1d8   :  { %v1187_v62 = vpop.f32.mrf.mxu2 }
 0x1d9   :  { %v7404_v48 = vadd.f32 %v1396_v51, %v1187_v62  ;;  %1684 = vmatmul.f32.gmra.mxu3 %v474_v14  ;;  %v1211_v14 = vadd.f32 %v6904_v53, %v6944_v10  ;;  %v536_v53 = vld [vmem:[#allocation2 + $0xe1] sm:$0xff] }
 0x1da   :  { %v7411_v21 = vpop.f32.mrf.mxu1 }
 0x1db   :  { %11517 = vst [vmem:[#allocation62_spill] sm:$0xff] %v7404_v48  ;;  %v535_v48 = vld [vmem:[#allocation2 + $0xd9] sm:$0xff] }
 0x1dc   :  { %v7409_v27 = vpop.f32.mrf.mxu0 }
 0x1dd   :  { %11518 = vst [vmem:[#allocation63_spill] sm:$0xff] %v7409_v27  ;;  %1463 = vmatmul.f32.gmra.mxu2 %v596_v56  ;;  %2099 = vmatmul.f32.gmra.mxu1 %v7413_v29  ;;  %v7418_v62 = vpop.f32.mrf.mxu3  ;;  %v946_v56 = vld [vmem:[%s11330_s1 + $0x350] sm:$0xff] }
 0x1de   :  { %2243 = vmatpush.msra.mxu2 %v946_v56 }
 0x1df   :  { %1881 = vmatmul.f32.gmra.mxu0 %v534_v12  ;;  %v475_v12 = vld [vmem:[#allocation2 + $0x108] sm:$0xff] }
 0x1e0   :  { %v1190_v30 = vpop.f32.mrf.mxu2 }
 0x1e1   :  { %v7415_v19 = vadd.f32 %v1399_v52, %v1190_v30  ;;  %v962_v52 = vld [vmem:[%s11330_s1 + $0x3d0] sm:$0xff]  ;;  %1687 = vmatmul.f32.gmra.mxu3 %v475_v12 }
 0x1e2   :  { %v7425_v27 = vpop.f32.mrf.mxu1  ;;  %2452 = vmatpush.msra.mxu3 %v962_v52  ;;  %v7445_v52 = vld [vmem:[#allocation2 + $0x10a] sm:$0xff] }
 0x1e3   :  { %11519 = vst [vmem:[#allocation64_spill] sm:$0xff] %v7415_v19  ;;  %v7430_v19 = vld [vmem:[#allocation2 + $0xfa] sm:$0xff] }
 0x1e4   :  { %v1837_v51 = vpop.f32.mrf.mxu0 }
 0x1e5   :  { %1466 = vmatmul.f32.gmra.mxu2 %v597_v20  ;;  %2102 = vmatmul.f32.gmra.mxu1 %v7430_v19  ;;  %v7433_v60 = vpop.f32.mrf.mxu3 }
 0x1e7   :  { %1884 = vmatmul.f32.gmra.mxu0 %v535_v48  ;;  %v476_v48 = vld [vmem:[#allocation2 + $0x110] sm:$0xff] }
 0x1e8   :  { %v1419_v30 = vpop.f32.mrf.mxu2 }
 0x1e9   :  { %v1420_v20 = vadd.f32 %v1419_v30, %v1211_v14  ;;  %1690 = vmatmul.f32.gmra.mxu3 %v476_v48  ;;  %v7457_v48 = vld [vmem:[#allocation2 + $0x112] sm:$0xff] }
 0x1ea   :  { %v7440_v12 = vpop.f32.mrf.mxu1 }
 0x1eb   :  { %v1629_v56 = vadd.f32 %v1628_v58, %v1420_v20  ;;  %v978_v58 = vld [vmem:[%s11330_s1 + $0x450] sm:$0xff]  ;;  %v477_v20 = vld [vmem:[#allocation2 + $0x120] sm:$0xff] }
 0x1ec   :  { %v1840_v38 = vpop.f32.mrf.mxu0  ;;  %2661 = vmatpush.msra.mxu0 %v978_v58 }
 0x1ed   :  { %v1838_v10 = vadd.f32 %v1837_v51, %v1629_v56  ;;  %1469 = vmatmul.f32.gmra.mxu2 %v7385_v39  ;;  %2105 = vmatmul.f32.gmra.mxu1 %v7445_v52  ;;  %v7448_v30 = vpop.f32.mrf.mxu3  ;;  %v1217_v56 = vadd.f32 %v6933_v5, %v6985_v32  ;;  %v478_v5 = vld [vmem:[#allocation2 + $0x128] sm:$0xff]  ;;  %v1220_v32 = vadd.f32 %v6948_v13, %v7006_v43 }
 0x1ee   :  { %v945_v43 = vld [vmem:[%s11330_s1 + $0x348] sm:$0xff] }
 0x1ef   :  { %v7438_v40 = vadd.f32 %v2046_v44, %v1838_v10  ;;  %1887 = vmatmul.f32.gmra.mxu0 %v536_v53  ;;  %2244 = vmatpush.msra.mxu2 %v945_v43 }
 0x1f0   :  { %v1422_v14 = vpop.f32.mrf.mxu2 }
 0x1f1   :  { %v1423_v51 = vadd.f32 %v1422_v14, %v1214_v41  ;;  %1693 = vmatmul.f32.gmra.mxu3 %v477_v20  ;;  %v538_v14 = vld [vmem:[#allocation2 + $0xf9] sm:$0xff] }
 0x1f2   :  { %v7455_v10 = vpop.f32.mrf.mxu1 }
 0x1f3   :  { %v1632_v39 = vadd.f32 %v1631_v57, %v1423_v51 }
 0x1f4   :  { %v1843_v61 = vpop.f32.mrf.mxu0 }
 0x1f5   :  { %v1841_v44 = vadd.f32 %v1840_v38, %v1632_v39  ;;  %1472 = vmatmul.f32.gmra.mxu2 %v7395_v15  ;;  %2108 = vmatmul.f32.gmra.mxu1 %v7457_v48  ;;  %v7461_v58 = vpop.f32.mrf.mxu3 }
 0x1f7   :  { %v7453_v53 = vadd.f32 %v2049_v9, %v1841_v44  ;;  %1890 = vmatmul.f32.gmra.mxu0 %v537_v22 }
 0x1f8   :  { %v1425_v41 = vpop.f32.mrf.mxu2 }
 0x1f9   :  { %v1426_v57 = vadd.f32 %v1425_v41, %v1217_v56  ;;  %1696 = vmatmul.f32.gmra.mxu3 %v478_v5  ;;  %v539_v56 = vld [vmem:[#allocation2 + $0x109] sm:$0xff]  ;;  %v1223_v41 = vadd.f32 %v6968_v23, %v7024_v55 }
 0x1fa   :  { %v7469_v39 = vpop.f32.mrf.mxu1 }
 0x1fb   :  { %v1635_v38 = vadd.f32 %v7407_v37, %v1426_v57  ;;  %v7471_v37 = vld [vmem:[#allocation2 + $0x122] sm:$0xff] }
 0x1fc   :  { %v1846_v15 = vpop.f32.mrf.mxu0 }
 0x1fd   :  { %v1844_v51 = vadd.f32 %v1843_v61, %v1635_v38  ;;  %1475 = vmatmul.f32.gmra.mxu2 %v7402_v50  ;;  %2111 = vmatmul.f32.gmra.mxu1 %v7471_v37  ;;  %v7475_v50 = vpop.f32.mrf.mxu3  ;;  %v961_v38 = vld [vmem:[%s11330_s1 + $0x3c8] sm:$0xff] }
 0x1fe   :  { %2453 = vmatpush.msra.mxu3 %v961_v38 }
 0x1ff   :  { %v7467_v9 = vadd.f32 %v7411_v21, %v1844_v51  ;;  %1893 = vmatmul.f32.gmra.mxu0 %v538_v14  ;;  %v479_v21 = vld [vmem:[#allocation2 + $0x138] sm:$0xff] }
 0x200   :  { %v1428_v22 = vpop.f32.mrf.mxu2  ;;  %v540_v51 = vld [vmem:[#allocation2 + $0x111] sm:$0xff] }
 0x201   :  { %v1429_v44 = vadd.f32 %v1428_v22, %v1220_v32  ;;  %1699 = vmatmul.f32.gmra.mxu3 %v479_v21  ;;  %v480_v32 = vld [vmem:[#allocation2 + $0x140] sm:$0xff]  ;;  %v1226_v22 = vadd.f32 %v6983_v31, %v7045_v4  ;;  %v481_v21 = vld [vmem:[#allocation2 + $0x150] sm:$0xff] }
 0x203   :  { %v1638_v61 = vadd.f32 %v7418_v62, %v1429_v44  ;;  %v7486_v62 = vpop.f32.mrf.mxu1 }
 0x204   :  { %v1849_v20 = vpop.f32.mrf.mxu0 }
 0x205   :  { %v1847_v13 = vadd.f32 %v1846_v15, %v1638_v61  ;;  %1478 = vmatmul.f32.gmra.mxu2 %v7413_v29  ;;  %v7491_v15 = vld [vmem:[#allocation2 + $0x12a] sm:$0xff]  ;;  %v7495_v55 = vpop.f32.mrf.mxu3 }
 0x206   :  { %2114 = vmatmul.f32.gmra.mxu1 %v7491_v15 }
 0x207   :  { %v7484_v57 = vadd.f32 %v7425_v27, %v1847_v13  ;;  %1896 = vmatmul.f32.gmra.mxu0 %v539_v56  ;;  %v541_v13 = vld [vmem:[#allocation2 + $0x121] sm:$0xff] }
 0x208   :  { %v1431_v29 = vpop.f32.mrf.mxu2 }
 0x209   :  { %v1432_v14 = vadd.f32 %v1431_v29, %v1223_v41  ;;  %1702 = vmatmul.f32.gmra.mxu3 %v480_v32  ;;  %v1229_v41 = vadd.f32 %v7004_v42, %v7063_v18  ;;  %v1232_v18 = vadd.f32 %v7022_v54, %v7084_v34  ;;  %v543_v54 = vld [vmem:[#allocation2 + $0x139] sm:$0xff] }
 0x20b   :  { %v1641_v23 = vadd.f32 %v7433_v60, %v1432_v14  ;;  %v7503_v61 = vpop.f32.mrf.mxu1  ;;  %v977_v60 = vld [vmem:[%s11330_s1 + $0x448] sm:$0xff] }
 0x20c   :  { %v1852_v27 = vpop.f32.mrf.mxu0  ;;  %2662 = vmatpush.msra.mxu0 %v977_v60 }
 0x20d   :  { %v1850_v5 = vadd.f32 %v1849_v20, %v1641_v23  ;;  %1481 = vmatmul.f32.gmra.mxu2 %v7430_v19  ;;  %v7508_v20 = vld [vmem:[#allocation2 + $0x13a] sm:$0xff]  ;;  %v7512_v4 = vpop.f32.mrf.mxu3 }
 0x20e   :  { %2117 = vmatmul.f32.gmra.mxu1 %v7508_v20 }
 0x20f   :  { %v7501_v44 = vadd.f32 %v7440_v12, %v1850_v5  ;;  %1899 = vmatmul.f32.gmra.mxu0 %v540_v51  ;;  %v542_v5 = vld [vmem:[#allocation2 + $0x129] sm:$0xff] }
 0x210   :  { %v1434_v56 = vpop.f32.mrf.mxu2 }
 0x211   :  { %v1435_v19 = vadd.f32 %v1434_v56, %v1226_v22  ;;  %1705 = vmatmul.f32.gmra.mxu3 %v481_v21  ;;  %v544_v21 = vld [vmem:[#allocation2 + $0x141] sm:$0xff] }
 0x213   :  { %v1644_v31 = vadd.f32 %v7448_v30, %v1435_v19  ;;  %v7520_v29 = vpop.f32.mrf.mxu1  ;;  %v7522_v30 = vld [vmem:[#allocation2 + $0x142] sm:$0xff] }
 0x214   :  { %v1855_v12 = vpop.f32.mrf.mxu0 }
 0x215   :  { %v1853_v43 = vadd.f32 %v1852_v27, %v1644_v31  ;;  %1484 = vmatmul.f32.gmra.mxu2 %v7445_v52  ;;  %v7526_v52 = vpop.f32.mrf.mxu3 }
 0x216   :  { %2120 = vmatmul.f32.gmra.mxu1 %v7522_v30 }
 0x217   :  { %v7518_v38 = vadd.f32 %v7455_v10, %v1853_v43  ;;  %1902 = vmatmul.f32.gmra.mxu0 %v541_v13 }
 0x218   :  { %v1437_v14 = vpop.f32.mrf.mxu2 }
 0x219   :  { %v1438_v23 = vadd.f32 %v1437_v14, %v1229_v41  ;;  %1708 = vmatmul.f32.gmra.mxu3 %v7236_v24  ;;  %v1235_v24 = vadd.f32 %v7043_v3, %v7102_v47  ;;  %v7568_v14 = vld [vmem:[%s11331_s0 + $0xf0] sm:$0xff] }
 0x21a   :  { %229 = vst [vmem:[#allocation2 + $0x181] sm:$0xff] %v7568_v14 }
 0x21b   :  { %v1647_v27 = vadd.f32 %v7461_v58, %v1438_v23  ;;  %v7534_v32 = vpop.f32.mrf.mxu1  ;;  %v7537_v58 = vld [vmem:[#allocation2 + $0x152] sm:$0xff] }
 0x21c   :  { %v1858_v51 = vpop.f32.mrf.mxu0 }
 0x21d   :  { %v1856_v42 = vadd.f32 %v1855_v12, %v1647_v27  ;;  %1487 = vmatmul.f32.gmra.mxu2 %v7457_v48  ;;  %v7541_v48 = vpop.f32.mrf.mxu3  ;;  %v960_v12 = vld [vmem:[%s11330_s1 + $0x3c0] sm:$0xff] }
 0x21e   :  { %2123 = vmatmul.f32.gmra.mxu1 %v7537_v58  ;;  %2454 = vmatpush.msra.mxu3 %v960_v12  ;;  %v976_v27 = vld [vmem:[%s11330_s1 + $0x440] sm:$0xff]  ;;  %v1244_v12 = vadd.f32 %v7100_v46, %v7180_v63  ;;  %v943_v46 = vld [vmem:[%s11330_s1 + $0x338] sm:$0xff]  ;;  %v487_v63 = vld [vmem:[#allocation2 + $0x1c8] sm:$0xff] }
 0x21f   :  { %v7532_v10 = vadd.f32 %v7469_v39, %v1856_v42  ;;  %1905 = vmatmul.f32.gmra.mxu0 %v542_v5  ;;  %v944_v39 = vld [vmem:[%s11330_s1 + $0x340] sm:$0xff]  ;;  %v545_v42 = vld [vmem:[#allocation2 + $0x151] sm:$0xff] }
 0x220   :  { %v1440_v22 = vpop.f32.mrf.mxu2  ;;  %2245 = vmatpush.msra.mxu2 %v944_v39  ;;  %2663 = vmatpush.msra.mxu0 %v976_v27 }
 0x221   :  { %v1441_v60 = vadd.f32 %v1440_v22, %v1232_v18  ;;  %1711 = vmatmul.f32.gmra.mxu3 %v7258_v8  ;;  %v1238_v8 = vadd.f32 %v7061_v17, %v7123_v6  ;;  %v485_v22 = vld [vmem:[#allocation2 + $0x180] sm:$0xff] }
 0x222   :  { %2246 = vmatpush.msra.mxu2 %v943_v46 }
 0x223   :  { %v1650_v56 = vadd.f32 %v7475_v50, %v1441_v60  ;;  %v7552_v50 = vpop.f32.mrf.mxu1  ;;  %v1241_v60 = vadd.f32 %v7082_v33, %v7147_v26  ;;  %v546_v26 = vld [vmem:[#allocation2 + $0x159] sm:$0xff] }
 0x224   :  { %v1861_v19 = vpop.f32.mrf.mxu0 }
 0x225   :  { %v1859_v34 = vadd.f32 %v1858_v51, %v1650_v56  ;;  %1490 = vmatmul.f32.gmra.mxu2 %v7471_v37  ;;  %v7558_v37 = vld [vmem:[#allocation2 + $0x15a] sm:$0xff]  ;;  %v7562_v47 = vpop.f32.mrf.mxu3  ;;  %v7582_v51 = vld [vmem:[#allocation2 + $0x16a] sm:$0xff] }
 0x226   :  { %2126 = vmatmul.f32.gmra.mxu1 %v7558_v37 }
 0x227   :  { %v7550_v31 = vadd.f32 %v7486_v62, %v1859_v34  ;;  %1908 = vmatmul.f32.gmra.mxu0 %v543_v54 }
 0x228   :  { %v1443_v13 = vpop.f32.mrf.mxu2 }
 0x229   :  { %v1444_v43 = vadd.f32 %v1443_v13, %v1235_v24  ;;  %1714 = vmatmul.f32.gmra.mxu3 %v7268_v7  ;;  %v7592_v7 = vld [vmem:[%s11331_s0 + $0xf8] sm:$0xff] }
 0x22a   :  { %230 = vst [vmem:[#allocation2 + $0x189] sm:$0xff] %v7592_v7 }
 0x22b   :  { %v1653_v3 = vadd.f32 %v7495_v55, %v1444_v43  ;;  %v7575_v55 = vpop.f32.mrf.mxu1 }
 0x22c   :  { %v1864_v62 = vpop.f32.mrf.mxu0 }
 0x22d   :  { %v1862_v41 = vadd.f32 %v1861_v19, %v1653_v3  ;;  %1493 = vmatmul.f32.gmra.mxu2 %v7491_v15  ;;  %v7586_v6 = vpop.f32.mrf.mxu3 }
 0x22e   :  { %2129 = vmatmul.f32.gmra.mxu1 %v7582_v51 }
 0x22f   :  { %v7573_v23 = vadd.f32 %v7503_v61, %v1862_v41  ;;  %1911 = vmatmul.f32.gmra.mxu0 %v544_v21 }
 0x230   :  { %v1446_v15 = vpop.f32.mrf.mxu2 }
 0x231   :  { %v1447_v5 = vadd.f32 %v1446_v15, %v1238_v8  ;;  %1717 = vmatmul.f32.gmra.mxu3 %v485_v22  ;;  %v486_v24 = vld [vmem:[#allocation2 + $0x188] sm:$0xff]  ;;  %v1250_v22 = vadd.f32 %v7145_v25, %v7234_v11 }
 0x232   :  { %v547_v8 = vld [vmem:[#allocation2 + $0x169] sm:$0xff] }
 0x233   :  { %v1656_v17 = vadd.f32 %v7512_v4, %v1447_v5  ;;  %v7599_v4 = vpop.f32.mrf.mxu1  ;;  %v959_v5 = vld [vmem:[%s11330_s1 + $0x3b8] sm:$0xff] }
 0x234   :  { %v1867_v61 = vpop.f32.mrf.mxu0  ;;  %2455 = vmatpush.msra.mxu3 %v959_v5  ;;  %v491_v5 = vld [vmem:[#allocation2 + $0x1f8] sm:$0xff] }
 0x235   :  { %v1865_v18 = vadd.f32 %v1864_v62, %v1656_v17  ;;  %1496 = vmatmul.f32.gmra.mxu2 %v7508_v20  ;;  %v7602_v20 = vld [vmem:[#allocation2 + $0x172] sm:$0xff]  ;;  %v7606_v39 = vpop.f32.mrf.mxu3  ;;  %v614_v17 = vld [vmem:[#allocation2 + $0x18a] sm:$0xff] }
 0x236   :  { %2132 = vmatmul.f32.gmra.mxu1 %v7602_v20 }
 0x237   :  { %v7597_v56 = vadd.f32 %v7520_v29, %v1865_v18  ;;  %1914 = vmatmul.f32.gmra.mxu0 %v545_v42 }
 0x238   :  { %v1449_v19 = vpop.f32.mrf.mxu2 }
 0x239   :  { %v1450_v54 = vadd.f32 %v1449_v19, %v1241_v60  ;;  %1720 = vmatmul.f32.gmra.mxu3 %v486_v24  ;;  %v6477_v19 = vld [vmem:[#allocation2 + $0x171] sm:$0xff]  ;;  %v1253_v24 = vadd.f32 %v7178_v59, %v7256_v28  ;;  %v490_v28 = vld [vmem:[#allocation2 + $0x1e8] sm:$0xff] }
 0x23b   :  { %v1659_v34 = vadd.f32 %v7526_v52, %v1450_v54  ;;  %v7614_v43 = vpop.f32.mrf.mxu1  ;;  %v613_v52 = vld [vmem:[#allocation2 + $0x182] sm:$0xff] }
 0x23c   :  { %v1870_v33 = vpop.f32.mrf.mxu0 }
 0x23d   :  { %v1868_v29 = vadd.f32 %v1867_v61, %v1659_v34  ;;  %1499 = vmatmul.f32.gmra.mxu2 %v7522_v30  ;;  %v7617_v41 = vpop.f32.mrf.mxu3 }
 0x23e   :  { %2135 = vmatmul.f32.gmra.mxu1 %v613_v52 }
 0x23f   :  { %v7612_v13 = vadd.f32 %v7534_v32, %v1868_v29  ;;  %1917 = vmatmul.f32.gmra.mxu0 %v546_v26  ;;  %v1247_v32 = vadd.f32 %v7121_v2, %v7207_v36  ;;  %v489_v29 = vld [vmem:[#allocation2 + $0x1e0] sm:$0xff] }
 0x240   :  { %v1452_v3 = vpop.f32.mrf.mxu2 }
 0x241   :  { %v1453_v62 = vadd.f32 %v1452_v3, %v1244_v12  ;;  %1723 = vmatmul.f32.gmra.mxu3 %v487_v63  ;;  %v423_v63 = vld [vmem:[#allocation2 + $0x1b2] sm:$0xff] }
 0x243   :  { %v1662_v21 = vadd.f32 %v7541_v48, %v1453_v62  ;;  %v7628_v48 = vpop.f32.mrf.mxu1 }
 0x244   :  { %v1873_v30 = vpop.f32.mrf.mxu0 }
 0x245   :  { %v1871_v27 = vadd.f32 %v1870_v33, %v1662_v21  ;;  %1502 = vmatmul.f32.gmra.mxu2 %v7537_v58  ;;  %v7634_v18 = vpop.f32.mrf.mxu3  ;;  %v7647_v33 = vld [vmem:[#allocation2 + $0x1ca] sm:$0xff] }
 0x246   :  { %2138 = vmatmul.f32.gmra.mxu1 %v614_v17 }
 0x247   :  { %v7626_v15 = vadd.f32 %v7552_v50, %v1871_v27  ;;  %1920 = vmatmul.f32.gmra.mxu0 %v547_v8  ;;  %v488_v50 = vld [vmem:[#allocation2 + $0x1d0] sm:$0xff] }
 0x248   :  { %v1455_v58 = vpop.f32.mrf.mxu2 }
 0x249   :  { %v1456_v61 = vadd.f32 %v1455_v58, %v1247_v32  ;;  %1726 = vmatmul.f32.gmra.mxu3 %v488_v50  ;;  %v1259_v58 = vadd.f32 %v7232_v0, %v7276_v16  ;;  %v424_v50 = vld [vmem:[#allocation2 + $0x1ba] sm:$0xff] }
 0x24b   :  { %v1665_v42 = vadd.f32 %v7562_v47, %v1456_v61  ;;  %v7642_v54 = vpop.f32.mrf.mxu1  ;;  %v975_v47 = vld [vmem:[%s11330_s1 + $0x438] sm:$0xff]  ;;  %v958_v61 = vld [vmem:[%s11330_s1 + $0x3b0] sm:$0xff] }
 0x24c   :  { %v1876_v2 = vpop.f32.mrf.mxu0  ;;  %2664 = vmatpush.msra.mxu0 %v975_v47  ;;  %2456 = vmatpush.msra.mxu3 %v958_v61  ;;  %v492_v47 = vld [vmem:[#allocation2 + $0x200] sm:$0xff] }
 0x24d   :  { %v1874_v36 = vadd.f32 %v1873_v30, %v1665_v42  ;;  %1505 = vmatmul.f32.gmra.mxu2 %v7558_v37  ;;  %v7651_v11 = vpop.f32.mrf.mxu3 }
 0x24e   :  { %2141 = vmatmul.f32.gmra.mxu1 %v7647_v33 }
 0x24f   :  { %v7640_v60 = vadd.f32 %v7575_v55, %v1874_v36  ;;  %1923 = vmatmul.f32.gmra.mxu0 %v6477_v19 }
 0x250   :  { %v1458_v34 = vpop.f32.mrf.mxu2 }
 0x251   :  { %v1459_v37 = vadd.f32 %v1458_v34, %v1250_v22  ;;  %1729 = vmatmul.f32.gmra.mxu3 %v489_v29  ;;  %v552_v22 = vld [vmem:[#allocation2 + $0x1d1] sm:$0xff]  ;;  %v1262_v34 = vadd.f32 %v7254_v49, %v7289_v1 }
 0x253   :  { %v1668_v25 = vadd.f32 %v7586_v6, %v1459_v37  ;;  %v7660_v3 = vpop.f32.mrf.mxu1  ;;  %v7662_v6 = vld [vmem:[#allocation2 + $0x1d2] sm:$0xff] }
 0x254   :  { %v1879_v55 = vpop.f32.mrf.mxu0 }
 0x255   :  { %v1877_v26 = vadd.f32 %v1876_v2, %v1668_v25  ;;  %1508 = vmatmul.f32.gmra.mxu2 %v7582_v51  ;;  %v7666_v21 = vpop.f32.mrf.mxu3  ;;  %v7696_v2 = vld [vmem:[#allocation2 + $0x1ea] sm:$0xff] }
 0x256   :  { %2144 = vmatmul.f32.gmra.mxu1 %v7662_v6 }
 0x257   :  { %v7657_v12 = vadd.f32 %v7599_v4, %v1877_v26  ;;  %1926 = vmatmul.f32.gmra.mxu0 %v7568_v14  ;;  %v1256_v14 = vadd.f32 %v7205_v35, %v7266_v45  ;;  %v551_v45 = vld [vmem:[#allocation2 + $0x1c9] sm:$0xff]  ;;  %v7712_v26 = vld [vmem:[#allocation2 + $0x1fa] sm:$0xff] }
 0x258   :  { %v1461_v52 = vpop.f32.mrf.mxu2 }
 0x259   :  { %v1462_v62 = vadd.f32 %v1461_v52, %v1253_v24  ;;  %1732 = vmatmul.f32.gmra.mxu3 %v490_v28  ;;  %v553_v24 = vld [vmem:[#allocation2 + $0x1e1] sm:$0xff] }
 0x25b   :  { %v1671_v51 = vadd.f32 %v7606_v39, %v1462_v62  ;;  %v7675_v8 = vpop.f32.mrf.mxu1  ;;  %v7677_v39 = vld [vmem:[#allocation2 + $0x1e2] sm:$0xff]  ;;  %v493_v62 = vld [vmem:[#allocation2 + $0x210] sm:$0xff] }
 0x25c   :  { %v1882_v30 = vpop.f32.mrf.mxu0 }
 0x25d   :  { %v1880_v59 = vadd.f32 %v1879_v55, %v1671_v51  ;;  %1511 = vmatmul.f32.gmra.mxu2 %v7602_v20  ;;  %v7681_v32 = vpop.f32.mrf.mxu3  ;;  %v11520_v51 = vld [vmem:[#allocation27_spill] sm:$0xff] }
 0x25e   :  { %2147 = vmatmul.f32.gmra.mxu1 %v7677_v39 }
 0x25f   :  { %v7672_v4 = vadd.f32 %v7614_v43, %v1880_v59  ;;  %1929 = vmatmul.f32.gmra.mxu0 %v7592_v7  ;;  %v942_v7 = vld [vmem:[%s11330_s1 + $0x330] sm:$0xff] }
 0x260   :  { %v1464_v27 = vpop.f32.mrf.mxu2  ;;  %2247 = vmatpush.msra.mxu2 %v942_v7  ;;  %v11523_v7 = vld [vmem:[#allocation22_spill] sm:$0xff] }
 0x261   :  { %v1465_v46 = vadd.f32 %v1464_v27, %v1256_v14  ;;  %1735 = vmatmul.f32.gmra.mxu3 %v491_v5 }
 0x263   :  { %v1674_v20 = vadd.f32 %v7617_v41, %v1465_v46  ;;  %v7691_v41 = vpop.f32.mrf.mxu1 }
 0x264   :  { %v1885_v35 = vpop.f32.mrf.mxu0 }
 0x265   :  { %v1883_v43 = vadd.f32 %v1882_v30, %v1674_v20  ;;  %1514 = vmatmul.f32.gmra.mxu2 %v423_v63  ;;  %v7700_v16 = vpop.f32.mrf.mxu3  ;;  %v11521_v30 = vld [vmem:[#allocation20_spill] sm:$0xff] }
 0x266   :  { %2150 = vmatmul.f32.gmra.mxu1 %v7696_v2  ;;  %v1265_v59 = vadd.f32 %v11521_v30, %v11520_v51  ;;  %v496_v30 = vld [vmem:[#allocation2 + $0x230] sm:$0xff] }
 0x267   :  { %v7689_v17 = vadd.f32 %v7628_v48, %v1883_v43  ;;  %1932 = vmatmul.f32.gmra.mxu0 %v551_v45  ;;  %v11522_v43 = vld [vmem:[#allocation30_spill] sm:$0xff] }
 0x268   :  { %v1467_v42 = vpop.f32.mrf.mxu2  ;;  %v1268_v5 = vadd.f32 %v11523_v7, %v11522_v43  ;;  %v557_v7 = vld [vmem:[#allocation2 + $0x211] sm:$0xff] }
 0x269   :  { %v1468_v36 = vadd.f32 %v1467_v42, %v1259_v58  ;;  %1738 = vmatmul.f32.gmra.mxu3 %v492_v47  ;;  %v11524_v47 = vld [vmem:[#allocation33_spill] sm:$0xff] }
 0x26b   :  { %v1677_v0 = vadd.f32 %v7634_v18, %v1468_v36  ;;  %v7707_v25 = vpop.f32.mrf.mxu1  ;;  %v974_v18 = vld [vmem:[%s11330_s1 + $0x430] sm:$0xff] }
 0x26c   :  { %v1888_v48 = vpop.f32.mrf.mxu0  ;;  %2665 = vmatpush.msra.mxu0 %v974_v18 }
 0x26d   :  { %v1886_v19 = vadd.f32 %v1885_v35, %v1677_v0  ;;  %1517 = vmatmul.f32.gmra.mxu2 %v424_v50  ;;  %v7716_v49 = vpop.f32.mrf.mxu3  ;;  %v554_v35 = vld [vmem:[#allocation2 + $0x1e9] sm:$0xff] }
 0x26e   :  { %2153 = vmatmul.f32.gmra.mxu1 %v7712_v26 }
 0x26f   :  { %v7705_v37 = vadd.f32 %v7642_v54, %v1886_v19  ;;  %1935 = vmatmul.f32.gmra.mxu0 %v552_v22  ;;  %v495_v19 = vld [vmem:[#allocation2 + $0x228] sm:$0xff] }
 0x270   :  { %v1470_v55 = vpop.f32.mrf.mxu2 }
 0x271   :  { %v1471_v29 = vadd.f32 %v1470_v55, %v1262_v34  ;;  %1741 = vmatmul.f32.gmra.mxu3 %v493_v62  ;;  %v11525_v34 = vld [vmem:[#allocation24_spill] sm:$0xff] }
 0x272   :  { %v1271_v18 = vadd.f32 %v11525_v34, %v11524_v47  ;;  %v556_v62 = vld [vmem:[#allocation2 + $0x201] sm:$0xff] }
 0x273   :  { %v1680_v1 = vadd.f32 %v7651_v11, %v1471_v29  ;;  %v7724_v14 = vpop.f32.mrf.mxu1  ;;  %v7726_v11 = vld [vmem:[#allocation2 + $0x202] sm:$0xff] }
 0x274   :  { %v1891_v54 = vpop.f32.mrf.mxu0  ;;  %v957_v29 = vld [vmem:[%s11330_s1 + $0x3a8] sm:$0xff] }
 0x275   :  { %v1889_v52 = vadd.f32 %v1888_v48, %v1680_v1  ;;  %1520 = vmatmul.f32.gmra.mxu2 %v7647_v33  ;;  %v7730_v33 = vpop.f32.mrf.mxu3  ;;  %v555_v48 = vld [vmem:[#allocation2 + $0x1f9] sm:$0xff]  ;;  %2457 = vmatpush.msra.mxu3 %v957_v29 }
 0x276   :  { %2156 = vmatmul.f32.gmra.mxu1 %v7726_v11  ;;  %v7760_v1 = vld [vmem:[#allocation2 + $0x21a] sm:$0xff] }
 0x277   :  { %v7722_v28 = vadd.f32 %v7660_v3, %v1889_v52  ;;  %1938 = vmatmul.f32.gmra.mxu0 %v553_v24  ;;  %v494_v3 = vld [vmem:[#allocation2 + $0x218] sm:$0xff] }
 0x278   :  { %v1473_v27 = vpop.f32.mrf.mxu2 }
 0x279   :  { %v1474_v46 = vadd.f32 %v1473_v27, %v1265_v59  ;;  %1744 = vmatmul.f32.gmra.mxu3 %v494_v3  ;;  %v11526_v59 = vld [vmem:[#allocation36_spill] sm:$0xff]  ;;  %v11527_v27 = vld [vmem:[#allocation26_spill] sm:$0xff] }
 0x27b   :  { %v1683_v63 = vadd.f32 %v7666_v21, %v1474_v46  ;;  %v7738_v61 = vpop.f32.mrf.mxu1  ;;  %v7740_v21 = vld [vmem:[#allocation2 + $0x212] sm:$0xff]  ;;  %v1274_v46 = vadd.f32 %v11527_v27, %v11526_v59 }
 0x27c   :  { %v1894_v20 = vpop.f32.mrf.mxu0 }
 0x27d   :  { %v1892_v45 = vadd.f32 %v1891_v54, %v1683_v63  ;;  %1523 = vmatmul.f32.gmra.mxu2 %v7662_v6  ;;  %v7744_v6 = vpop.f32.mrf.mxu3 }
 0x27e   :  { %2159 = vmatmul.f32.gmra.mxu1 %v7740_v21 }
 0x27f   :  { %v7736_v58 = vadd.f32 %v7675_v8, %v1892_v45  ;;  %1941 = vmatmul.f32.gmra.mxu0 %v554_v35  ;;  %v941_v8 = vld [vmem:[%s11330_s1 + $0x328] sm:$0xff] }
 0x280   :  { %v1476_v42 = vpop.f32.mrf.mxu2  ;;  %2248 = vmatpush.msra.mxu2 %v941_v8  ;;  %v7777_v45 = vld [vmem:[#allocation2 + $0x22a] sm:$0xff] }
 0x281   :  { %v1477_v36 = vadd.f32 %v1476_v42, %v1268_v5  ;;  %1747 = vmatmul.f32.gmra.mxu3 %v495_v19  ;;  %v497_v42 = vld [vmem:[#allocation2 + $0x240] sm:$0xff] }
 0x283   :  { %v1686_v50 = vadd.f32 %v7681_v32, %v1477_v36  ;;  %v7755_v32 = vpop.f32.mrf.mxu1  ;;  %v11528_v36 = vld [vmem:[#allocation39_spill] sm:$0xff] }
 0x284   :  { %v1897_v0 = vpop.f32.mrf.mxu0 }
 0x285   :  { %v1895_v22 = vadd.f32 %v1894_v20, %v1686_v50  ;;  %1526 = vmatmul.f32.gmra.mxu2 %v7677_v39  ;;  %v7764_v52 = vpop.f32.mrf.mxu3  ;;  %v11529_v50 = vld [vmem:[#allocation29_spill] sm:$0xff] }
 0x286   :  { %2162 = vmatmul.f32.gmra.mxu1 %v7760_v1 }
 0x287   :  { %v7753_v55 = vadd.f32 %v7691_v41, %v1895_v22  ;;  %1944 = vmatmul.f32.gmra.mxu0 %v555_v48 }
 0x288   :  { %v1479_v39 = vpop.f32.mrf.mxu2 }
 0x289   :  { %v1480_v54 = vadd.f32 %v1479_v39, %v1271_v18  ;;  %1750 = vmatmul.f32.gmra.mxu3 %v496_v30  ;;  %v558_v18 = vld [vmem:[#allocation2 + $0x219] sm:$0xff] }
 0x28a   :  { %v11530_v39 = vld [vmem:[#allocation42_spill] sm:$0xff] }
 0x28b   :  { %v1689_v24 = vadd.f32 %v7700_v16, %v1480_v54  ;;  %v7772_v20 = vpop.f32.mrf.mxu1  ;;  %v973_v16 = vld [vmem:[%s11330_s1 + $0x428] sm:$0xff] }
 0x28c   :  { %v1900_v41 = vpop.f32.mrf.mxu0  ;;  %2666 = vmatpush.msra.mxu0 %v973_v16  ;;  %v11531_v54 = vld [vmem:[#allocation32_spill] sm:$0xff] }
 0x28d   :  { %v1898_v51 = vadd.f32 %v1897_v0, %v1689_v24  ;;  %1529 = vmatmul.f32.gmra.mxu2 %v7696_v2  ;;  %v7781_v43 = vpop.f32.mrf.mxu3  ;;  %v1277_v0 = vadd.f32 %v11529_v50, %v11528_v36  ;;  %v1280_v24 = vadd.f32 %v11531_v54, %v11530_v39  ;;  %v7838_v54 = vld [vmem:[#allocation2 + $0x25a] sm:$0xff] }
 0x28e   :  { %2165 = vmatmul.f32.gmra.mxu1 %v7777_v45 }
 0x28f   :  { %v7770_v63 = vadd.f32 %v7707_v25, %v1898_v51  ;;  %1947 = vmatmul.f32.gmra.mxu0 %v556_v62  ;;  %v7803_v51 = vld [vmem:[#allocation2 + $0x242] sm:$0xff] }
 0x290   :  { %v1482_v35 = vpop.f32.mrf.mxu2 }
 0x291   :  { %v1483_v2 = vadd.f32 %v1482_v35, %v1274_v46  ;;  %1753 = vmatmul.f32.gmra.mxu3 %v497_v42  ;;  %v559_v46 = vld [vmem:[#allocation2 + $0x229] sm:$0xff]  ;;  %v499_v35 = vld [vmem:[#allocation2 + $0x258] sm:$0xff] }
 0x293   :  { %v1692_v3 = vadd.f32 %v7716_v49, %v1483_v2  ;;  %v7789_v8 = vpop.f32.mrf.mxu1  ;;  %v7791_v49 = vld [vmem:[#allocation2 + $0x232] sm:$0xff] }
 0x294   :  { %v1903_v25 = vpop.f32.mrf.mxu0  ;;  %v11532_v2 = vld [vmem:[#allocation45_spill] sm:$0xff] }
 0x295   :  { %v1901_v5 = vadd.f32 %v1900_v41, %v1692_v3  ;;  %1532 = vmatmul.f32.gmra.mxu2 %v7712_v26  ;;  %v7795_v26 = vpop.f32.mrf.mxu3  ;;  %v11533_v3 = vld [vmem:[#allocation35_spill] sm:$0xff] }
 0x296   :  { %2168 = vmatmul.f32.gmra.mxu1 %v7791_v49 }
 0x297   :  { %v7787_v48 = vadd.f32 %v7724_v14, %v1901_v5  ;;  %1950 = vmatmul.f32.gmra.mxu0 %v557_v7  ;;  %v498_v14 = vld [vmem:[#allocation2 + $0x248] sm:$0xff] }
 0x298   :  { %v1485_v22 = vpop.f32.mrf.mxu2 }
 0x299   :  { %v1486_v19 = vadd.f32 %v1485_v22, %v1277_v0  ;;  %1756 = vmatmul.f32.gmra.mxu3 %v498_v14 }
 0x29b   :  { %v1695_v47 = vadd.f32 %v7730_v33, %v1486_v19  ;;  %v7805_v30 = vpop.f32.mrf.mxu1 }
 0x29c   :  { %v1906_v34 = vpop.f32.mrf.mxu0 }
 0x29d   :  { %v1904_v29 = vadd.f32 %v1903_v25, %v1695_v47  ;;  %1535 = vmatmul.f32.gmra.mxu2 %v7726_v11  ;;  %v7809_v11 = vpop.f32.mrf.mxu3  ;;  %v1283_v25 = vadd.f32 %v11533_v3, %v11532_v2  ;;  %v500_v47 = vld [vmem:[#allocation2 + $0x260] sm:$0xff] }
 0x29e   :  { %2171 = vmatmul.f32.gmra.mxu1 %v7803_v51 }
 0x29f   :  { %v7801_v41 = vadd.f32 %v7738_v61, %v1904_v29  ;;  %1953 = vmatmul.f32.gmra.mxu0 %v558_v18  ;;  %v940_v61 = vld [vmem:[%s11330_s1 + $0x320] sm:$0xff]  ;;  %v11535_v18 = vld [vmem:[#allocation38_spill] sm:$0xff] }
 0x2a0   :  { %v1488_v62 = vpop.f32.mrf.mxu2  ;;  %2249 = vmatpush.msra.mxu2 %v940_v61  ;;  %v11537_v61 = vld [vmem:[#allocation41_spill] sm:$0xff] }
 0x2a1   :  { %v1489_v33 = vadd.f32 %v1488_v62, %v1280_v24  ;;  %1759 = vmatmul.f32.gmra.mxu3 %v499_v35 }
 0x2a3   :  { %v1698_v59 = vadd.f32 %v7744_v6, %v1489_v33  ;;  %v956_v6 = vld [vmem:[%s11330_s1 + $0x3a0] sm:$0xff]  ;;  %v2127_v22 = vpop.f32.mrf.mxu1 }
 0x2a4   :  { %v1909_v27 = vpop.f32.mrf.mxu0  ;;  %2458 = vmatpush.msra.mxu3 %v956_v6 }
 0x2a5   :  { %v1907_v16 = vadd.f32 %v1906_v34, %v1698_v59  ;;  %1538 = vmatmul.f32.gmra.mxu2 %v7740_v21  ;;  %v7823_v21 = vld [vmem:[#allocation2 + $0x24a] sm:$0xff]  ;;  %v7827_v50 = vpop.f32.mrf.mxu3 }
 0x2a6   :  { %2174 = vmatmul.f32.gmra.mxu1 %v7823_v21  ;;  %v11534_v34 = vld [vmem:[#allocation48_spill] sm:$0xff] }
 0x2a7   :  { %v7818_v7 = vadd.f32 %v7755_v32, %v1907_v16  ;;  %1956 = vmatmul.f32.gmra.mxu0 %v559_v46  ;;  %v560_v32 = vld [vmem:[#allocation2 + $0x231] sm:$0xff]  ;;  %v1286_v29 = vadd.f32 %v11535_v18, %v11534_v34 }
 0x2a8   :  { %v1491_v5 = vpop.f32.mrf.mxu2  ;;  %v501_v46 = vld [vmem:[#allocation2 + $0x270] sm:$0xff]  ;;  %v11536_v16 = vld [vmem:[#allocation50_spill] sm:$0xff] }
 0x2a9   :  { %v1492_v42 = vadd.f32 %v1491_v5, %v1283_v25  ;;  %1762 = vmatmul.f32.gmra.mxu3 %v500_v47  ;;  %v1289_v35 = vadd.f32 %v11537_v61, %v11536_v16  ;;  %v7850_v25 = vld [vmem:[#allocation2 + $0x262] sm:$0xff] }
 0x2ab   :  { %v1701_v36 = vadd.f32 %v7764_v52, %v1492_v42  ;;  %v972_v52 = vld [vmem:[%s11330_s1 + $0x420] sm:$0xff]  ;;  %v562_v42 = vld [vmem:[#allocation2 + $0x249] sm:$0xff] }
 0x2ac   :  { %v1912_v0 = vpop.f32.mrf.mxu0  ;;  %2667 = vmatpush.msra.mxu0 %v972_v52 }
 0x2ad   :  { %v1910_v19 = vadd.f32 %v1909_v27, %v1701_v36  ;;  %1541 = vmatmul.f32.gmra.mxu2 %v7760_v1  ;;  %v7842_v62 = vpop.f32.mrf.mxu3  ;;  %v2130_v27 = vpop.f32.mrf.mxu1 }
 0x2ae   :  { %2177 = vmatmul.f32.gmra.mxu1 %v7838_v54 }
 0x2af   :  { %v7833_v14 = vadd.f32 %v7772_v20, %v1910_v19  ;;  %1959 = vmatmul.f32.gmra.mxu0 %v560_v32  ;;  %v561_v20 = vld [vmem:[#allocation2 + $0x241] sm:$0xff] }
 0x2b0   :  { %v1494_v39 = vpop.f32.mrf.mxu2  ;;  %v11539_v32 = vld [vmem:[#allocation44_spill] sm:$0xff] }
 0x2b1   :  { %v1495_v24 = vadd.f32 %v1494_v39, %v1286_v29  ;;  %1765 = vmatmul.f32.gmra.mxu3 %v501_v46  ;;  %v7862_v29 = vld [vmem:[#allocation2 + $0x272] sm:$0xff] }
 0x2b3   :  { %v1704_v1 = vadd.f32 %v7781_v43, %v1495_v24  ;;  %v563_v24 = vld [vmem:[#allocation2 + $0x259] sm:$0xff] }
 0x2b4   :  { %v1915_v33 = vpop.f32.mrf.mxu0 }
 0x2b5   :  { %v1913_v59 = vadd.f32 %v1912_v0, %v1704_v1  ;;  %1544 = vmatmul.f32.gmra.mxu2 %v7777_v45  ;;  %v7854_v5 = vpop.f32.mrf.mxu3  ;;  %v502_v0 = vld [vmem:[#allocation2 + $0x278] sm:$0xff]  ;;  %v2133_v18 = vpop.f32.mrf.mxu1 }
 0x2b6   :  { %2180 = vmatmul.f32.gmra.mxu1 %v7850_v25 }
 0x2b7   :  { %v7848_v2 = vadd.f32 %v7789_v8, %v1913_v59  ;;  %1962 = vmatmul.f32.gmra.mxu0 %v561_v20  ;;  %v11538_v8 = vld [vmem:[#allocation53_spill] sm:$0xff]  ;;  %v11540_v20 = vld [vmem:[#allocation56_spill] sm:$0xff]  ;;  %v11541_v59 = vld [vmem:[#allocation47_spill] sm:$0xff] }
 0x2b8   :  { %v1497_v3 = vpop.f32.mrf.mxu2  ;;  %v1292_v19 = vadd.f32 %v11539_v32, %v11538_v8  ;;  %v1295_v46 = vadd.f32 %v11541_v59, %v11540_v20  ;;  %v11543_v8 = vld [vmem:[#allocation51_spill] sm:$0xff]  ;;  %v11544_v20 = vld [vmem:[#allocation61_spill] sm:$0xff]  ;;  %v11545_v59 = vld [vmem:[#allocation54_spill] sm:$0xff] }
 0x2b9   :  { %v1498_v43 = vadd.f32 %v1497_v3, %v1289_v35  ;;  %1768 = vmatmul.f32.gmra.mxu3 %v502_v0  ;;  %v7879_v35 = vld [vmem:[#allocation2 + $0x27a] sm:$0xff] }
 0x2ba   :  { %v11542_v0 = vld [vmem:[#allocation59_spill] sm:$0xff] }
 0x2bb   :  { %v1707_v6 = vadd.f32 %v7795_v26, %v1498_v43  ;;  %v1298_v32 = vadd.f32 %v11543_v8, %v11542_v0  ;;  %v11546_v0 = vld [vmem:[#allocation63_spill] sm:$0xff]  ;;  %v11547_v8 = vld [vmem:[#allocation57_spill] sm:$0xff] }
 0x2bc   :  { %v1918_v45 = vpop.f32.mrf.mxu0 }
 0x2bd   :  { %v1916_v36 = vadd.f32 %v1915_v33, %v1707_v6  ;;  %1547 = vmatmul.f32.gmra.mxu2 %v7791_v49  ;;  %v7866_v39 = vpop.f32.mrf.mxu3  ;;  %v503_v33 = vld [vmem:[#allocation2 + $0x288] sm:$0xff]  ;;  %v2136_v3 = vpop.f32.mrf.mxu1 }
 0x2be   :  { %2183 = vmatmul.f32.gmra.mxu1 %v7862_v29 }
 0x2bf   :  { %v7860_v47 = vadd.f32 %v7805_v30, %v1916_v36  ;;  %1965 = vmatmul.f32.gmra.mxu0 %v562_v42  ;;  %v939_v30 = vld [vmem:[%s11330_s1 + $0x318] sm:$0xff]  ;;  %v504_v36 = vld [vmem:[#allocation2 + $0x290] sm:$0xff] }
 0x2c0   :  { %v1500_v34 = vpop.f32.mrf.mxu2  ;;  %2250 = vmatpush.msra.mxu2 %v939_v30 }
 0x2c1   :  { %v1501_v26 = vadd.f32 %v1500_v34, %v1292_v19  ;;  %1771 = vmatmul.f32.gmra.mxu3 %v503_v33  ;;  %v971_v34 = vld [vmem:[%s11330_s1 + $0x418] sm:$0xff]  ;;  %v505_v33 = vld [vmem:[#allocation2 + $0x2a0] sm:$0xff] }
 0x2c2   :  { %2668 = vmatpush.msra.mxu0 %v971_v34 }
 0x2c3   :  { %v1710_v52 = vadd.f32 %v7809_v11, %v1501_v26  ;;  %v955_v11 = vld [vmem:[%s11330_s1 + $0x398] sm:$0xff] }
 0x2c4   :  { %v1921_v49 = vpop.f32.mrf.mxu0  ;;  %2459 = vmatpush.msra.mxu3 %v955_v11 }
 0x2c5   :  { %v1919_v1 = vadd.f32 %v1918_v45, %v1710_v52  ;;  %1550 = vmatmul.f32.gmra.mxu2 %v7803_v51  ;;  %v7883_v6 = vpop.f32.mrf.mxu3  ;;  %v564_v45 = vld [vmem:[#allocation2 + $0x261] sm:$0xff] }
 0x2c6   :  { %2186 = vmatmul.f32.gmra.mxu1 %v7879_v35 }
 0x2c7   :  { %v7874_v16 = vadd.f32 %v2127_v22, %v1919_v1  ;;  %1968 = vmatmul.f32.gmra.mxu0 %v563_v24  ;;  %v2139_v1 = vpop.f32.mrf.mxu1 }
 0x2c8   :  { %v1503_v61 = vpop.f32.mrf.mxu2 }
 0x2c9   :  { %v1504_v51 = vadd.f32 %v1503_v61, %v1295_v46  ;;  %1774 = vmatmul.f32.gmra.mxu3 %v504_v36  ;;  %v1301_v46 = vadd.f32 %v11545_v59, %v11544_v20  ;;  %v11548_v20 = vld [vmem:[#allocation5_spill] sm:$0xff]  ;;  %v11549_v59 = vld [vmem:[#allocation3_spill] sm:$0xff] }
 0x2cb   :  { %v1713_v43 = vadd.f32 %v7827_v50, %v1504_v51  ;;  %v7893_v50 = vld [vmem:[#allocation2 + $0x28a] sm:$0xff]  ;;  %v7904_v51 = vld [vmem:[#allocation2 + $0x292] sm:$0xff] }
 0x2cc   :  { %v1924_v22 = vpop.f32.mrf.mxu0 }
 0x2cd   :  { %v1922_v42 = vadd.f32 %v1921_v49, %v1713_v43  ;;  %1553 = vmatmul.f32.gmra.mxu2 %v7823_v21  ;;  %v7897_v49 = vpop.f32.mrf.mxu3 }
 0x2ce   :  { %2189 = vmatmul.f32.gmra.mxu1 %v7893_v50 }
 0x2cf   :  { %v7888_v19 = vadd.f32 %v2130_v27, %v1922_v42  ;;  %1971 = vmatmul.f32.gmra.mxu0 %v564_v45  ;;  %v565_v27 = vld [vmem:[#allocation2 + $0x271] sm:$0xff]  ;;  %v2142_v36 = vpop.f32.mrf.mxu1 }
 0x2d0   :  { %v1506_v26 = vpop.f32.mrf.mxu2 }
 0x2d1   :  { %v1507_v52 = vadd.f32 %v1506_v26, %v1298_v32  ;;  %1777 = vmatmul.f32.gmra.mxu3 %v505_v33  ;;  %v1304_v32 = vadd.f32 %v11547_v8, %v11546_v0  ;;  %v507_v33 = vld [vmem:[#allocation2 + $0x2b8] sm:$0xff]  ;;  %v508_v8 = vld [vmem:[#allocation2 + $0x2c0] sm:$0xff] }
 0x2d3   :  { %v1716_v21 = vadd.f32 %v7842_v62, %v1507_v52  ;;  %v7915_v52 = vld [vmem:[#allocation2 + $0x2a2] sm:$0xff] }
 0x2d4   :  { %v1927_v24 = vpop.f32.mrf.mxu0 }
 0x2d5   :  { %v1925_v30 = vadd.f32 %v1924_v22, %v1716_v21  ;;  %1556 = vmatmul.f32.gmra.mxu2 %v7838_v54  ;;  %v7908_v45 = vpop.f32.mrf.mxu3  ;;  %v566_v54 = vld [vmem:[#allocation2 + $0x279] sm:$0xff] }
 0x2d6   :  { %2192 = vmatmul.f32.gmra.mxu1 %v7904_v51 }
 0x2d7   :  { %v7902_v11 = vadd.f32 %v2133_v18, %v1925_v30  ;;  %1974 = vmatmul.f32.gmra.mxu0 %v565_v27  ;;  %v506_v18 = vld [vmem:[#allocation2 + $0x2a8] sm:$0xff] }
 0x2d8   :  { %v1509_v61 = vpop.f32.mrf.mxu2  ;;  %v567_v27 = vld [vmem:[#allocation2 + $0x289] sm:$0xff] }
 0x2d9   :  { %v1510_v62 = vadd.f32 %v1509_v61, %v1301_v46  ;;  %1780 = vmatmul.f32.gmra.mxu3 %v506_v18  ;;  %v1307_v46 = vadd.f32 %v11549_v59, %v11548_v20  ;;  %v568_v18 = vld [vmem:[#allocation2 + $0x291] sm:$0xff]  ;;  %v569_v20 = vld [vmem:[#allocation2 + $0x2a1] sm:$0xff] }
 0x2db   :  { %v1719_v43 = vadd.f32 %v7854_v5, %v1510_v62 }
 0x2dc   :  { %v1930_v22 = vpop.f32.mrf.mxu0 }
 0x2dd   :  { %v1928_v42 = vadd.f32 %v1927_v24, %v1719_v43  ;;  %1559 = vmatmul.f32.gmra.mxu2 %v7850_v25  ;;  %v7919_v24 = vpop.f32.mrf.mxu3  ;;  %v2145_v43 = vpop.f32.mrf.mxu1 }
 0x2de   :  { %2195 = vmatmul.f32.gmra.mxu1 %v7915_v52 }
 0x2df   :  { %v7913_v34 = vadd.f32 %v2136_v3, %v1928_v42  ;;  %1977 = vmatmul.f32.gmra.mxu0 %v566_v54  ;;  %v938_v3 = vld [vmem:[%s11330_s1 + $0x310] sm:$0xff] }
 0x2e0   :  { %v1512_v26 = vpop.f32.mrf.mxu2  ;;  %2251 = vmatpush.msra.mxu2 %v938_v3 }
 0x2e1   :  { %v1513_v5 = vadd.f32 %v1512_v26, %v1304_v32  ;;  %1783 = vmatmul.f32.gmra.mxu3 %v507_v33  ;;  %v11550_v32 = vld [vmem:[#allocation6_spill] sm:$0xff]  ;;  %v11551_v26 = vld [vmem:[#allocation4_spill] sm:$0xff] }
 0x2e3   :  { %v1722_v21 = vadd.f32 %v7866_v39, %v1513_v5  ;;  %v954_v39 = vld [vmem:[%s11330_s1 + $0x390] sm:$0xff]  ;;  %v1310_v5 = vadd.f32 %v11551_v26, %v11550_v32 }
 0x2e4   :  { %v1933_v25 = vpop.f32.mrf.mxu0  ;;  %2460 = vmatpush.msra.mxu3 %v954_v39  ;;  %v570_v32 = vld [vmem:[#allocation2 + $0x2a9] sm:$0xff] }
 0x2e5   :  { %v1931_v30 = vadd.f32 %v1930_v22, %v1722_v21  ;;  %1562 = vmatmul.f32.gmra.mxu2 %v7862_v29  ;;  %v7932_v29 = vld [vmem:[#allocation2 + $0x2aa] sm:$0xff]  ;;  %v7936_v42 = vpop.f32.mrf.mxu3 }
 0x2e6   :  { %2198 = vmatmul.f32.gmra.mxu1 %v7932_v29 }
 0x2e7   :  { %v7927_v61 = vadd.f32 %v2139_v1, %v1931_v30  ;;  %1980 = vmatmul.f32.gmra.mxu0 %v567_v27  ;;  %v970_v27 = vld [vmem:[%s11330_s1 + $0x410] sm:$0xff] }
 0x2e8   :  { %v1515_v62 = vpop.f32.mrf.mxu2  ;;  %2669 = vmatpush.msra.mxu0 %v970_v27  ;;  %v7965_v27 = vld [vmem:[#allocation2 + $0x2d2] sm:$0xff] }
 0x2e9   :  { %v1516_v22 = vadd.f32 %v1515_v62, %v1307_v46  ;;  %1786 = vmatmul.f32.gmra.mxu3 %v508_v8  ;;  %v509_v46 = vld [vmem:[#allocation2 + $0x2d0] sm:$0xff] }
 0x2eb   :  { %v1725_v54 = vadd.f32 %v7883_v6, %v1516_v22  ;;  %v7946_v6 = vld [vmem:[#allocation2 + $0x2ba] sm:$0xff]  ;;  %v7955_v22 = vld [vmem:[#allocation2 + $0x2c2] sm:$0xff] }
 0x2ec   :  { %v1936_v1 = vpop.f32.mrf.mxu0 }
 0x2ed   :  { %v1934_v0 = vadd.f32 %v1933_v25, %v1725_v54  ;;  %1565 = vmatmul.f32.gmra.mxu2 %v7879_v35  ;;  %v2148_v25 = vpop.f32.mrf.mxu1  ;;  %v7950_v33 = vpop.f32.mrf.mxu3  ;;  %v11552_v54 = vld [vmem:[#allocation7_spill] sm:$0xff] }
 0x2ee   :  { %2201 = vmatmul.f32.gmra.mxu1 %v7946_v6 }
 0x2ef   :  { %v7941_v21 = vadd.f32 %v2142_v36, %v1934_v0  ;;  %1983 = vmatmul.f32.gmra.mxu0 %v568_v18 }
 0x2f0   :  { %v1518_v30 = vpop.f32.mrf.mxu2 }
 0x2f1   :  { %v1519_v3 = vadd.f32 %v1518_v30, %v1310_v5  ;;  %1789 = vmatmul.f32.gmra.mxu3 %v509_v46  ;;  %v11553_v30 = vld [vmem:[#allocation8_spill] sm:$0xff] }
 0x2f2   :  { %v511_v46 = vld [vmem:[#allocation2 + $0x2e8] sm:$0xff] }
 0x2f3   :  { %v1728_v35 = vadd.f32 %v7897_v49, %v1519_v3 }
 0x2f4   :  { %v1939_v36 = vpop.f32.mrf.mxu0 }
 0x2f5   :  { %v1937_v59 = vadd.f32 %v1936_v1, %v1728_v35  ;;  %1568 = vmatmul.f32.gmra.mxu2 %v7893_v50  ;;  %v7960_v0 = vpop.f32.mrf.mxu3  ;;  %v2151_v1 = vpop.f32.mrf.mxu1 }
 0x2f6   :  { %2204 = vmatmul.f32.gmra.mxu1 %v7955_v22 }
 0x2f7   :  { %v7953_v39 = vadd.f32 %v2145_v43, %v1937_v59  ;;  %1986 = vmatmul.f32.gmra.mxu0 %v569_v20  ;;  %v510_v43 = vld [vmem:[#allocation2 + $0x2d8] sm:$0xff] }
 0x2f8   :  { %v1521_v62 = vpop.f32.mrf.mxu2 }
 0x2f9   :  { %v1522_v18 = vadd.f32 %v1521_v62, %v11552_v54  ;;  %1792 = vmatmul.f32.gmra.mxu3 %v510_v43 }
 0x2fb   :  { %v1731_v49 = vadd.f32 %v7908_v45, %v1522_v18  ;;  %v7981_v18 = vld [vmem:[#allocation2 + $0x2da] sm:$0xff] }
 0x2fc   :  { %v1942_v8 = vpop.f32.mrf.mxu0 }
 0x2fd   :  { %v1940_v50 = vadd.f32 %v1939_v36, %v1731_v49  ;;  %1571 = vmatmul.f32.gmra.mxu2 %v7904_v51  ;;  %v7970_v35 = vpop.f32.mrf.mxu3  ;;  %v571_v36 = vld [vmem:[#allocation2 + $0x2b9] sm:$0xff]  ;;  %v937_v51 = vld [vmem:[%s11330_s1 + $0x308] sm:$0xff]  ;;  %v11554_v49 = vld [vmem:[#allocation9_spill] sm:$0xff] }
 0x2fe   :  { %2207 = vmatmul.f32.gmra.mxu1 %v7965_v27  ;;  %2252 = vmatpush.msra.mxu2 %v937_v51 }
 0x2ff   :  { %v7963_v26 = vadd.f32 %v2148_v25, %v1940_v50  ;;  %1989 = vmatmul.f32.gmra.mxu0 %v570_v32  ;;  %v2154_v25 = vpop.f32.mrf.mxu1  ;;  %v572_v50 = vld [vmem:[#allocation2 + $0x2c1] sm:$0xff] }
 0x300   :  { %v1524_v5 = vpop.f32.mrf.mxu2 }
 0x301   :  { %v1525_v3 = vadd.f32 %v1524_v5, %v11553_v30  ;;  %1795 = vmatmul.f32.gmra.mxu3 %v511_v46  ;;  %v512_v5 = vld [vmem:[#allocation2 + $0x2f0] sm:$0xff] }
 0x302   :  { %v573_v46 = vld [vmem:[#allocation2 + $0x2d1] sm:$0xff] }
 0x303   :  { %v1734_v45 = vadd.f32 %v7919_v24, %v1525_v3  ;;  %v953_v24 = vld [vmem:[%s11330_s1 + $0x388] sm:$0xff] }
 0x304   :  { %v1945_v20 = vpop.f32.mrf.mxu0  ;;  %2461 = vmatpush.msra.mxu3 %v953_v24  ;;  %v969_v3 = vld [vmem:[%s11330_s1 + $0x408] sm:$0xff] }
 0x305   :  { %v1943_v59 = vadd.f32 %v1942_v8, %v1734_v45  ;;  %1574 = vmatmul.f32.gmra.mxu2 %v7915_v52  ;;  %v7986_v32 = vpop.f32.mrf.mxu3  ;;  %2670 = vmatpush.msra.mxu0 %v969_v3 }
 0x306   :  { %2210 = vmatmul.f32.gmra.mxu1 %v7981_v18 }
 0x307   :  { %v7976_v62 = vadd.f32 %v2151_v1, %v1943_v59  ;;  %1992 = vmatmul.f32.gmra.mxu0 %v571_v36  ;;  %v2157_v36 = vpop.f32.mrf.mxu1  ;;  %v11555_v59 = vld [vmem:[#allocation10_spill] sm:$0xff] }
 0x308   :  { %v1527_v54 = vpop.f32.mrf.mxu2 }
 0x309   :  { %v1528_v52 = vadd.f32 %v1527_v54, %v11554_v49  ;;  %1798 = vmatmul.f32.gmra.mxu3 %v512_v5  ;;  %v513_v54 = vld [vmem:[#allocation2 + $0x300] sm:$0xff] }
 0x30b   :  { %v1737_v8 = vadd.f32 %v7936_v42, %v1528_v52  ;;  %v7994_v42 = vld [vmem:[#allocation2 + $0x2ea] sm:$0xff] }
 0x30c   :  { %v1948_v1 = vpop.f32.mrf.mxu0 }
 0x30d   :  { %v1946_v43 = vadd.f32 %v1945_v20, %v1737_v8  ;;  %1577 = vmatmul.f32.gmra.mxu2 %v7932_v29  ;;  %v7999_v20 = vpop.f32.mrf.mxu3  ;;  %v8004_v8 = vld [vmem:[#allocation2 + $0x2f2] sm:$0xff] }
 0x30e   :  { %2213 = vmatmul.f32.gmra.mxu1 %v7994_v42 }
 0x30f   :  { %v7989_v30 = vadd.f32 %v2154_v25, %v1946_v43  ;;  %1995 = vmatmul.f32.gmra.mxu0 %v572_v50  ;;  %v11557_v50 = vld [vmem:[#allocation11_spill] sm:$0xff]  ;;  %v2160_v5 = vpop.f32.mrf.mxu1 }
 0x310   :  { %v1530_v45 = vpop.f32.mrf.mxu2 }
 0x311   :  { %v1531_v51 = vadd.f32 %v1530_v45, %v11555_v59  ;;  %1801 = vmatmul.f32.gmra.mxu3 %v513_v54  ;;  %v574_v45 = vld [vmem:[#allocation2 + $0x2d9] sm:$0xff] }
 0x313   :  { %v1740_v29 = vadd.f32 %v7950_v33, %v1531_v51 }
 0x314   :  { %v1951_v25 = vpop.f32.mrf.mxu0 }
 0x315   :  { %v1949_v24 = vadd.f32 %v1948_v1, %v1740_v29  ;;  %1580 = vmatmul.f32.gmra.mxu2 %v7946_v6  ;;  %v8009_v3 = vpop.f32.mrf.mxu3  ;;  %v8014_v29 = vld [vmem:[#allocation2 + $0x302] sm:$0xff] }
 0x316   :  { %2216 = vmatmul.f32.gmra.mxu1 %v8004_v8 }
 0x317   :  { %v8002_v49 = vadd.f32 %v2157_v36, %v1949_v24  ;;  %1998 = vmatmul.f32.gmra.mxu0 %v573_v46  ;;  %v514_v36 = vld [vmem:[#allocation2 + $0x308] sm:$0xff] }
 0x318   :  { %v1533_v52 = vpop.f32.mrf.mxu2  ;;  %v11559_v46 = vld [vmem:[#allocation12_spill] sm:$0xff] }
 0x319   :  { %11556 = vst [vmem:[#allocation27_spill] sm:$0xff] %v8002_v49  ;;  %v1534_v43 = vadd.f32 %v1533_v52, %v11557_v50  ;;  %1804 = vmatmul.f32.gmra.mxu3 %v514_v36  ;;  %v2163_v52 = vpop.f32.mrf.mxu1  ;;  %v575_v50 = vld [vmem:[#allocation2 + $0x2e9] sm:$0xff] }
 0x31b   :  { %v1743_v33 = vadd.f32 %v7960_v0, %v1534_v43  ;;  %v936_v43 = vld [vmem:[%s11330_s1 + $0x300] sm:$0xff] }
 0x31c   :  { %v1954_v1 = vpop.f32.mrf.mxu0  ;;  %2253 = vmatpush.msra.mxu2 %v936_v43  ;;  %v11563_v43 = vld [vmem:[#allocation14_spill] sm:$0xff] }
 0x31d   :  { %v1952_v6 = vadd.f32 %v1951_v25, %v1743_v33  ;;  %1583 = vmatmul.f32.gmra.mxu2 %v7955_v22  ;;  %v8019_v54 = vpop.f32.mrf.mxu3 }
 0x31e   :  { %2219 = vmatmul.f32.gmra.mxu1 %v8014_v29 }
 0x31f   :  { %v8012_v59 = vadd.f32 %v2160_v5, %v1952_v6  ;;  %2001 = vmatmul.f32.gmra.mxu0 %v574_v45  ;;  %v515_v5 = vld [vmem:[#allocation2 + $0x318] sm:$0xff]  ;;  %v8030_v6 = vld [vmem:[#allocation2 + $0x30a] sm:$0xff] }
 0x320   :  { %v1536_v51 = vpop.f32.mrf.mxu2 }
 0x321   :  { %11558 = vst [vmem:[#allocation20_spill] sm:$0xff] %v8012_v59  ;;  %v1537_v24 = vadd.f32 %v1536_v51, %v11559_v46  ;;  %1807 = vmatmul.f32.gmra.mxu3 %v515_v5 }
 0x323   :  { %v1746_v0 = vadd.f32 %v7970_v35, %v1537_v24  ;;  %v952_v35 = vld [vmem:[%s11330_s1 + $0x380] sm:$0xff]  ;;  %v576_v24 = vld [vmem:[#allocation2 + $0x2f1] sm:$0xff] }
 0x324   :  { %v1957_v25 = vpop.f32.mrf.mxu0  ;;  %2462 = vmatpush.msra.mxu3 %v952_v35 }
 0x325   :  { %v1955_v22 = vadd.f32 %v1954_v1, %v1746_v0  ;;  %1586 = vmatmul.f32.gmra.mxu2 %v7965_v27  ;;  %v11561_v1 = vld [vmem:[#allocation13_spill] sm:$0xff]  ;;  %v1760_v51 = vpop.f32.mrf.mxu3 }
 0x326   :  { %2222 = vmatmul.f32.gmra.mxu1 %v8030_v6 }
 0x327   :  { %v8025_v33 = vadd.f32 %v2163_v52, %v1955_v22  ;;  %2004 = vmatmul.f32.gmra.mxu0 %v575_v50  ;;  %v516_v52 = vld [vmem:[#allocation2 + $0x320] sm:$0xff]  ;;  %v8041_v50 = vld [vmem:[%s11331_s0 + $0x1f0] sm:$0xff] }
 0x328   :  { %v1539_v45 = vpop.f32.mrf.mxu2  ;;  %v968_v22 = vld [vmem:[%s11330_s1 + $0x400] sm:$0xff]  ;;  %261 = vst [vmem:[#allocation2 + $0x331] sm:$0xff] %v8041_v50 }
 0x329   :  { %11560 = vst [vmem:[#allocation30_spill] sm:$0xff] %v8025_v33  ;;  %v1540_v36 = vadd.f32 %v1539_v45, %v11561_v1  ;;  %1810 = vmatmul.f32.gmra.mxu3 %v516_v52  ;;  %2671 = vmatpush.msra.mxu0 %v968_v22  ;;  %v577_v1 = vld [vmem:[#allocation2 + $0x301] sm:$0xff] }
 0x32a   :  { %v644_v22 = vld [vmem:[#allocation2 + $0x322] sm:$0xff] }
 0x32b   :  { %v1749_v27 = vadd.f32 %v7986_v32, %v1540_v36  ;;  %v11567_v33 = vld [vmem:[#allocation16_spill] sm:$0xff] }
 0x32c   :  { %v1960_v46 = vpop.f32.mrf.mxu0 }
 0x32d   :  { %v8035_v0 = vadd.f32 %v1957_v25, %v1749_v27  ;;  %1589 = vmatmul.f32.gmra.mxu2 %v7981_v18  ;;  %v643_v25 = vld [vmem:[#allocation2 + $0x31a] sm:$0xff]  ;;  %v1763_v35 = vpop.f32.mrf.mxu3 }
 0x32e   :  { %2225 = vmatmul.f32.gmra.mxu1 %v643_v25 }
 0x32f   :  { %11562 = vst [vmem:[#allocation22_spill] sm:$0xff] %v8035_v0  ;;  %2007 = vmatmul.f32.gmra.mxu0 %v576_v24  ;;  %v517_v27 = vld [vmem:[#allocation2 + $0x330] sm:$0xff]  ;;  %v197_v24 = vld [vmem:[%s11331_s0 + $0x1f8] sm:$0xff] }
 0x330   :  { %v1542_v32 = vpop.f32.mrf.mxu2  ;;  %262 = vst [vmem:[#allocation2 + $0x339] sm:$0xff] %v197_v24 }
 0x331   :  { %v1543_v5 = vadd.f32 %v1542_v32, %v11563_v43  ;;  %1813 = vmatmul.f32.gmra.mxu3 %v517_v27  ;;  %v11565_v32 = vld [vmem:[#allocation15_spill] sm:$0xff] }
 0x333   :  { %v1752_v18 = vadd.f32 %v7999_v20, %v1543_v5 }
 0x334   :  { %v1963_v45 = vpop.f32.mrf.mxu0 }
 0x335   :  { %v8049_v36 = vadd.f32 %v1960_v46, %v1752_v18  ;;  %1592 = vmatmul.f32.gmra.mxu2 %v7994_v42  ;;  %v1766_v5 = vpop.f32.mrf.mxu3  ;;  %v578_v18 = vld [vmem:[#allocation2 + $0x309] sm:$0xff] }
 0x336   :  { %2228 = vmatmul.f32.gmra.mxu1 %v644_v22 }
 0x337   :  { %11564 = vst [vmem:[#allocation33_spill] sm:$0xff] %v8049_v36  ;;  %2010 = vmatmul.f32.gmra.mxu0 %v577_v1  ;;  %v518_v42 = vld [vmem:[#allocation2 + $0x338] sm:$0xff] }
 0x338   :  { %v1545_v52 = vpop.f32.mrf.mxu2  ;;  %v645_v1 = vld [vmem:[#allocation2 + $0x332] sm:$0xff] }
 0x339   :  { %v1546_v43 = vadd.f32 %v1545_v52, %v11565_v32  ;;  %1816 = vmatmul.f32.gmra.mxu3 %v518_v42 }
 0x33b   :  { %v1755_v20 = vadd.f32 %v8009_v3, %v1546_v43  ;;  %v579_v3 = vld [vmem:[#allocation2 + $0x319] sm:$0xff] }
 0x33c   :  { %v1966_v46 = vpop.f32.mrf.mxu0 }
 0x33d   :  { %v8057_v36 = vadd.f32 %v1963_v45, %v1755_v20  ;;  %1595 = vmatmul.f32.gmra.mxu2 %v8004_v8  ;;  %v1769_v32 = vpop.f32.mrf.mxu3  ;;  %v712_v45 = vld [vmem:[#allocation2 + $0x31] sm:$0xff]  ;;  %v646_v20 = vld [vmem:[#allocation2 + $0x33a] sm:$0xff] }
 0x33e   :  { %2231 = vmatmul.f32.gmra.mxu1 %v645_v1  ;;  %v580_v1 = vld [vmem:[#allocation2 + $0x321] sm:$0xff] }
 0x33f   :  { %11566 = vst [vmem:[#allocation24_spill] sm:$0xff] %v8057_v36  ;;  %2013 = vmatmul.f32.gmra.mxu0 %v578_v18  ;;  %v11569_v18 = vld [vmem:[#allocation17_spill] sm:$0xff] }
 0x340   :  { %v1548_v0 = vpop.f32.mrf.mxu2 }
 0x341   :  { %v1549_v27 = vadd.f32 %v1548_v0, %v11567_v33  ;;  %2463 = vmatmul.f32.vlgmr.msra.gmra.mxu3 %v712_v45 }
 0x343   :  { %v1758_v52 = vadd.f32 %v8019_v54, %v1549_v27 }
 0x344   :  { %v1969_v59 = vpop.f32.mrf.mxu0 }
 0x345   :  { %v8062_v43 = vadd.f32 %v1966_v46, %v1758_v52  ;;  %1598 = vmatmul.f32.gmra.mxu2 %v8014_v29  ;;  %v1772_v33 = vpop.f32.mrf.mxu3  ;;  %v713_v46 = vld [vmem:[#allocation2 + $0x39] sm:$0xff] }
 0x346   :  { %2234 = vmatmul.f32.gmra.mxu1 %v646_v20  ;;  %v11571_v29 = vld [vmem:[#allocation18_spill] sm:$0xff] }
 0x347   :  { %11568 = vst [vmem:[#allocation36_spill] sm:$0xff] %v8062_v43  ;;  %2016 = vmatmul.f32.gmra.mxu0 %v579_v3 }
 0x348   :  { %v1551_v8 = vpop.f32.mrf.mxu2 }
 0x349   :  { %v1552_v42 = vadd.f32 %v1551_v8, %v11569_v18  ;;  %2466 = vmatmul.f32.gmra.mxu3 %v713_v46 }
 0x34b   :  { %v1761_v36 = vadd.f32 %v1760_v51, %v1552_v42  ;;  %v714_v51 = vld [vmem:[#allocation2 + $0x49] sm:$0xff] }
 0x34c   :  { %v1972_v0 = vpop.f32.mrf.mxu0 }
 0x34d   :  { %v8066_v54 = vadd.f32 %v1969_v59, %v1761_v36  ;;  %1601 = vmatmul.f32.gmra.mxu2 %v8030_v6  ;;  %v1775_v45 = vpop.f32.mrf.mxu3  ;;  %v11573_v59 = vld [vmem:[#allocation19_spill] sm:$0xff] }
 0x34f   :  { %11570 = vst [vmem:[#allocation26_spill] sm:$0xff] %v8066_v54  ;;  %2019 = vmatmul.f32.gmra.mxu0 %v580_v1  ;;  %v715_v1 = vld [vmem:[#allocation2 + $0x51] sm:$0xff] }
 0x350   :  { %v1554_v27 = vpop.f32.mrf.mxu2 }
 0x351   :  { %v1555_v52 = vadd.f32 %v1554_v27, %v11571_v29  ;;  %2469 = vmatmul.f32.gmra.mxu3 %v714_v51 }
 0x353   :  { %v1764_v3 = vadd.f32 %v1763_v35, %v1555_v52  ;;  %v776_v52 = vld [vmem:[#allocation2 + $0x32] sm:$0xff] }
 0x354   :  { %v1975_v43 = vpop.f32.mrf.mxu0 }
 0x355   :  { %v8070_v49 = vadd.f32 %v1972_v0, %v1764_v3  ;;  %1604 = vmatmul.f32.gmra.mxu2 %v643_v25  ;;  %v1778_v20 = vpop.f32.mrf.mxu3  ;;  %v11575_v0 = vld [vmem:[#allocation21_spill] sm:$0xff] }
 0x356   :  { %v648_v25 = vld [vmem:[#allocation2 + $0x30] sm:$0xff] }
 0x357   :  { %11572 = vst [vmem:[#allocation39_spill] sm:$0xff] %v8070_v49  ;;  %2022 = vmatmul.f32.gmra.mxu0 %v8041_v50 }
 0x358   :  { %v1557_v8 = vpop.f32.mrf.mxu2 }
 0x359   :  { %v1558_v36 = vadd.f32 %v1557_v8, %v11573_v59  ;;  %2472 = vmatmul.f32.gmra.mxu3 %v715_v1  ;;  %v649_v8 = vld [vmem:[#allocation2 + $0x38] sm:$0xff] }
 0x35b   :  { %v1767_v6 = vadd.f32 %v1766_v5, %v1558_v36  ;;  %v716_v5 = vld [vmem:[#allocation2 + $0x61] sm:$0xff] }
 0x35c   :  { %v1978_v18 = vpop.f32.mrf.mxu0 }
 0x35d   :  { %v8074_v42 = vadd.f32 %v1975_v43, %v1767_v6  ;;  %1607 = vmatmul.f32.gmra.mxu2 %v644_v22  ;;  %v1781_v29 = vpop.f32.mrf.mxu3  ;;  %v11577_v43 = vld [vmem:[#allocation23_spill] sm:$0xff] }
 0x35e   :  { %v777_v6 = vld [vmem:[#allocation2 + $0x3a] sm:$0xff] }
 0x35f   :  { %11574 = vst [vmem:[#allocation29_spill] sm:$0xff] %v8074_v42  ;;  %2025 = vmatmul.f32.gmra.mxu0 %v197_v24  ;;  %v831_v42 = vld [vmem:[#allocation2 + $0x2f2] sm:$0xff] }
 0x360   :  { %v1560_v35 = vpop.f32.mrf.mxu2 }
 0x361   :  { %v1561_v46 = vadd.f32 %v1560_v35, %v11575_v0  ;;  %2475 = vmatmul.f32.gmra.mxu3 %v716_v5  ;;  %v778_v5 = vld [vmem:[#allocation2 + $0x4a] sm:$0xff] }
 0x363   :  { %v1770_v27 = vadd.f32 %v1769_v32, %v1561_v46  ;;  %v717_v32 = vld [vmem:[#allocation2 + $0x69] sm:$0xff] }
 0x364   :  { %v1981_v50 = vpop.f32.mrf.mxu0  ;;  %v650_v46 = vld [vmem:[#allocation2 + $0x48] sm:$0xff] }
 0x365   :  { %v8077_v3 = vadd.f32 %v1978_v18, %v1770_v27  ;;  %2254 = vmatmul.f32.vlgmr.msra.gmra.mxu2 %v648_v25  ;;  %v1784_v59 = vpop.f32.mrf.mxu3  ;;  %v11579_v18 = vld [vmem:[#allocation25_spill] sm:$0xff] }
 0x367   :  { %11576 = vst [vmem:[#allocation42_spill] sm:$0xff] %v8077_v3  ;;  %2672 = vmatmul.f32.vlgmr.msra.gmra.mxu0 %v776_v52 }
 0x368   :  { %v1563_v51 = vpop.f32.mrf.mxu2 }
 0x369   :  { %v1564_v22 = vadd.f32 %v1563_v51, %v11577_v43  ;;  %2478 = vmatmul.f32.gmra.mxu3 %v717_v32 }
 0x36b   :  { %v1773_v24 = vadd.f32 %v1772_v33, %v1564_v22  ;;  %v718_v33 = vld [vmem:[#allocation2 + $0x79] sm:$0xff] }
 0x36c   :  { %v1984_v36 = vpop.f32.mrf.mxu0 }
 0x36d   :  { %v8080_v1 = vadd.f32 %v1981_v50, %v1773_v24  ;;  %2257 = vmatmul.f32.gmra.mxu2 %v649_v8  ;;  %v1787_v27 = vpop.f32.mrf.mxu3  ;;  %v11581_v50 = vld [vmem:[#allocation28_spill] sm:$0xff]  ;;  %v651_v8 = vld [vmem:[#allocation2 + $0x50] sm:$0xff] }
 0x36f   :  { %11578 = vst [vmem:[#allocation32_spill] sm:$0xff] %v8080_v1  ;;  %2675 = vmatmul.f32.gmra.mxu0 %v777_v6  ;;  %v779_v1 = vld [vmem:[#allocation2 + $0x52] sm:$0xff] }
 0x370   :  { %v1566_v35 = vpop.f32.mrf.mxu2 }
 0x371   :  { %v1567_v0 = vadd.f32 %v1566_v35, %v11579_v18  ;;  %2481 = vmatmul.f32.gmra.mxu3 %v718_v33 }
 0x373   :  { %v1776_v25 = vadd.f32 %v1775_v45, %v1567_v0  ;;  %v719_v45 = vld [vmem:[#allocation2 + $0x81] sm:$0xff] }
 0x374   :  { %v1987_v52 = vpop.f32.mrf.mxu0 }
 0x375   :  { %v8083_v51 = vadd.f32 %v1984_v36, %v1776_v25  ;;  %2260 = vmatmul.f32.gmra.mxu2 %v650_v46  ;;  %v1790_v6 = vpop.f32.mrf.mxu3  ;;  %v11583_v36 = vld [vmem:[#allocation31_spill] sm:$0xff] }
 0x376   :  { %v652_v46 = vld [vmem:[#allocation2 + $0x60] sm:$0xff] }
 0x377   :  { %11580 = vst [vmem:[#allocation45_spill] sm:$0xff] %v8083_v51  ;;  %2678 = vmatmul.f32.gmra.mxu0 %v778_v5  ;;  %v780_v51 = vld [vmem:[#allocation2 + $0x62] sm:$0xff] }
 0x378   :  { %v1569_v43 = vpop.f32.mrf.mxu2 }
 0x379   :  { %v1570_v22 = vadd.f32 %v1569_v43, %v11581_v50  ;;  %2484 = vmatmul.f32.gmra.mxu3 %v719_v45 }
 0x37b   :  { %v1779_v24 = vadd.f32 %v1778_v20, %v1570_v22  ;;  %v720_v20 = vld [vmem:[#allocation2 + $0x91] sm:$0xff] }
 0x37c   :  { %v1990_v32 = vpop.f32.mrf.mxu0 }
 0x37d   :  { %v8086_v35 = vadd.f32 %v1987_v52, %v1779_v24  ;;  %2263 = vmatmul.f32.gmra.mxu2 %v651_v8  ;;  %v1793_v5 = vpop.f32.mrf.mxu3  ;;  %v11585_v52 = vld [vmem:[#allocation34_spill] sm:$0xff]  ;;  %v653_v8 = vld [vmem:[#allocation2 + $0x68] sm:$0xff] }
 0x37f   :  { %11582 = vst [vmem:[#allocation35_spill] sm:$0xff] %v8086_v35  ;;  %2681 = vmatmul.f32.gmra.mxu0 %v779_v1  ;;  %v781_v35 = vld [vmem:[#allocation2 + $0x6a] sm:$0xff] }
 0x380   :  { %v1572_v18 = vpop.f32.mrf.mxu2 }
 0x381   :  { %v1573_v0 = vadd.f32 %v1572_v18, %v11583_v36  ;;  %2487 = vmatmul.f32.gmra.mxu3 %v720_v20 }
 0x383   :  { %v1782_v25 = vadd.f32 %v1781_v29, %v1573_v0  ;;  %v721_v29 = vld [vmem:[#allocation2 + $0x99] sm:$0xff] }
 0x384   :  { %v1993_v33 = vpop.f32.mrf.mxu0 }
 0x385   :  { %v8089_v43 = vadd.f32 %v1990_v32, %v1782_v25  ;;  %2266 = vmatmul.f32.gmra.mxu2 %v652_v46  ;;  %v1796_v24 = vpop.f32.mrf.mxu3  ;;  %v11587_v32 = vld [vmem:[#allocation37_spill] sm:$0xff]  ;;  %v654_v46 = vld [vmem:[#allocation2 + $0x78] sm:$0xff] }
 0x387   :  { %11584 = vst [vmem:[#allocation48_spill] sm:$0xff] %v8089_v43  ;;  %2684 = vmatmul.f32.gmra.mxu0 %v780_v51  ;;  %v782_v43 = vld [vmem:[#allocation2 + $0x7a] sm:$0xff] }
 0x388   :  { %v1575_v50 = vpop.f32.mrf.mxu2 }
 0x389   :  { %v1576_v22 = vadd.f32 %v1575_v50, %v11585_v52  ;;  %2490 = vmatmul.f32.gmra.mxu3 %v721_v29 }
 0x38b   :  { %v1785_v1 = vadd.f32 %v1784_v59, %v1576_v22  ;;  %v722_v59 = vld [vmem:[#allocation2 + $0xa9] sm:$0xff] }
 0x38c   :  { %v1996_v45 = vpop.f32.mrf.mxu0 }
 0x38d   :  { %v8092_v18 = vadd.f32 %v1993_v33, %v1785_v1  ;;  %2269 = vmatmul.f32.gmra.mxu2 %v653_v8  ;;  %v1799_v25 = vpop.f32.mrf.mxu3  ;;  %v11589_v33 = vld [vmem:[#allocation40_spill] sm:$0xff]  ;;  %v655_v8 = vld [vmem:[#allocation2 + $0x80] sm:$0xff] }
 0x38f   :  { %11586 = vst [vmem:[#allocation38_spill] sm:$0xff] %v8092_v18  ;;  %2687 = vmatmul.f32.gmra.mxu0 %v781_v35  ;;  %v783_v18 = vld [vmem:[#allocation2 + $0x82] sm:$0xff] }
 0x390   :  { %v1578_v36 = vpop.f32.mrf.mxu2 }
 0x391   :  { %v1579_v0 = vadd.f32 %v1578_v36, %v11587_v32  ;;  %2493 = vmatmul.f32.gmra.mxu3 %v722_v59 }
 0x393   :  { %v1788_v51 = vadd.f32 %v1787_v27, %v1579_v0  ;;  %v723_v27 = vld [vmem:[#allocation2 + $0xb1] sm:$0xff] }
 0x394   :  { %v1999_v20 = vpop.f32.mrf.mxu0 }
 0x395   :  { %v8095_v50 = vadd.f32 %v1996_v45, %v1788_v51  ;;  %2272 = vmatmul.f32.gmra.mxu2 %v654_v46  ;;  %v1802_v1 = vpop.f32.mrf.mxu3  ;;  %v11591_v45 = vld [vmem:[#allocation43_spill] sm:$0xff]  ;;  %v656_v46 = vld [vmem:[#allocation2 + $0x90] sm:$0xff] }
 0x397   :  { %11588 = vst [vmem:[#allocation50_spill] sm:$0xff] %v8095_v50  ;;  %2690 = vmatmul.f32.gmra.mxu0 %v782_v43  ;;  %v784_v50 = vld [vmem:[#allocation2 + $0x92] sm:$0xff] }
 0x398   :  { %v1581_v52 = vpop.f32.mrf.mxu2 }
 0x399   :  { %v1582_v22 = vadd.f32 %v1581_v52, %v11589_v33  ;;  %2496 = vmatmul.f32.gmra.mxu3 %v723_v27 }
 0x39b   :  { %v1791_v35 = vadd.f32 %v1790_v6, %v1582_v22  ;;  %v724_v6 = vld [vmem:[#allocation2 + $0xc1] sm:$0xff] }
 0x39c   :  { %v2002_v29 = vpop.f32.mrf.mxu0 }
 0x39d   :  { %v8098_v36 = vadd.f32 %v1999_v20, %v1791_v35  ;;  %2275 = vmatmul.f32.gmra.mxu2 %v655_v8  ;;  %v1805_v51 = vpop.f32.mrf.mxu3  ;;  %v11593_v20 = vld [vmem:[#allocation46_spill] sm:$0xff] }
 0x39e   :  { %v657_v8 = vld [vmem:[#allocation2 + $0x98] sm:$0xff] }
 0x39f   :  { %11590 = vst [vmem:[#allocation41_spill] sm:$0xff] %v8098_v36  ;;  %2693 = vmatmul.f32.gmra.mxu0 %v783_v18  ;;  %v785_v36 = vld [vmem:[#allocation2 + $0x9a] sm:$0xff] }
 0x3a0   :  { %v1584_v32 = vpop.f32.mrf.mxu2 }
 0x3a1   :  { %v1585_v0 = vadd.f32 %v1584_v32, %v11591_v45  ;;  %2499 = vmatmul.f32.gmra.mxu3 %v724_v6 }
 0x3a3   :  { %v1794_v43 = vadd.f32 %v1793_v5, %v1585_v0  ;;  %v725_v5 = vld [vmem:[#allocation2 + $0xc9] sm:$0xff] }
 0x3a4   :  { %v2005_v59 = vpop.f32.mrf.mxu0 }
 0x3a5   :  { %v8101_v52 = vadd.f32 %v2002_v29, %v1794_v43  ;;  %2278 = vmatmul.f32.gmra.mxu2 %v656_v46  ;;  %v1808_v35 = vpop.f32.mrf.mxu3  ;;  %v11595_v29 = vld [vmem:[#allocation49_spill] sm:$0xff]  ;;  %v658_v46 = vld [vmem:[#allocation2 + $0xa8] sm:$0xff] }
 0x3a7   :  { %11592 = vst [vmem:[#allocation53_spill] sm:$0xff] %v8101_v52  ;;  %2696 = vmatmul.f32.gmra.mxu0 %v784_v50  ;;  %v786_v52 = vld [vmem:[#allocation2 + $0xaa] sm:$0xff] }
 0x3a8   :  { %v1587_v33 = vpop.f32.mrf.mxu2 }
 0x3a9   :  { %v1588_v22 = vadd.f32 %v1587_v33, %v11593_v20  ;;  %2502 = vmatmul.f32.gmra.mxu3 %v725_v5 }
 0x3ab   :  { %v1797_v18 = vadd.f32 %v1796_v24, %v1588_v22  ;;  %v726_v24 = vld [vmem:[#allocation2 + $0xd9] sm:$0xff] }
 0x3ac   :  { %v2008_v27 = vpop.f32.mrf.mxu0 }
 0x3ad   :  { %v8104_v32 = vadd.f32 %v2005_v59, %v1797_v18  ;;  %2281 = vmatmul.f32.gmra.mxu2 %v657_v8  ;;  %v1811_v43 = vpop.f32.mrf.mxu3  ;;  %v11597_v59 = vld [vmem:[#allocation52_spill] sm:$0xff]  ;;  %v659_v8 = vld [vmem:[#allocation2 + $0xb0] sm:$0xff] }
 0x3af   :  { %11594 = vst [vmem:[#allocation44_spill] sm:$0xff] %v8104_v32  ;;  %2699 = vmatmul.f32.gmra.mxu0 %v785_v36  ;;  %v787_v32 = vld [vmem:[#allocation2 + $0xb2] sm:$0xff] }
 0x3b0   :  { %v1590_v45 = vpop.f32.mrf.mxu2 }
 0x3b1   :  { %v1591_v0 = vadd.f32 %v1590_v45, %v11595_v29  ;;  %2505 = vmatmul.f32.gmra.mxu3 %v726_v24 }
 0x3b3   :  { %v1800_v50 = vadd.f32 %v1799_v25, %v1591_v0  ;;  %v727_v25 = vld [vmem:[#allocation2 + $0xe1] sm:$0xff] }
 0x3b4   :  { %v2011_v6 = vpop.f32.mrf.mxu0 }
 0x3b5   :  { %v8107_v33 = vadd.f32 %v2008_v27, %v1800_v50  ;;  %2284 = vmatmul.f32.gmra.mxu2 %v658_v46  ;;  %v1814_v18 = vpop.f32.mrf.mxu3  ;;  %v11599_v27 = vld [vmem:[#allocation55_spill] sm:$0xff] }
 0x3b6   :  { %v660_v46 = vld [vmem:[#allocation2 + $0xc0] sm:$0xff] }
 0x3b7   :  { %11596 = vst [vmem:[#allocation56_spill] sm:$0xff] %v8107_v33  ;;  %2702 = vmatmul.f32.gmra.mxu0 %v786_v52  ;;  %v788_v33 = vld [vmem:[#allocation2 + $0xc2] sm:$0xff] }
 0x3b8   :  { %v1593_v20 = vpop.f32.mrf.mxu2 }
 0x3b9   :  { %v1594_v22 = vadd.f32 %v1593_v20, %v11597_v59  ;;  %2508 = vmatmul.f32.gmra.mxu3 %v727_v25 }
 0x3bb   :  { %v1803_v36 = vadd.f32 %v1802_v1, %v1594_v22  ;;  %v728_v1 = vld [vmem:[#allocation2 + $0xf1] sm:$0xff] }
 0x3bc   :  { %v2014_v5 = vpop.f32.mrf.mxu0 }
 0x3bd   :  { %v8110_v45 = vadd.f32 %v2011_v6, %v1803_v36  ;;  %2287 = vmatmul.f32.gmra.mxu2 %v659_v8  ;;  %v1817_v50 = vpop.f32.mrf.mxu3  ;;  %v11601_v6 = vld [vmem:[#allocation58_spill] sm:$0xff]  ;;  %v661_v8 = vld [vmem:[#allocation2 + $0xc8] sm:$0xff] }
 0x3bf   :  { %11598 = vst [vmem:[#allocation47_spill] sm:$0xff] %v8110_v45  ;;  %2705 = vmatmul.f32.gmra.mxu0 %v787_v32  ;;  %v789_v45 = vld [vmem:[#allocation2 + $0xca] sm:$0xff] }
 0x3c0   :  { %v1596_v29 = vpop.f32.mrf.mxu2 }
 0x3c1   :  { %v1597_v0 = vadd.f32 %v1596_v29, %v11599_v27  ;;  %2511 = vmatmul.f32.gmra.mxu3 %v728_v1 }
 0x3c3   :  { %v1806_v52 = vadd.f32 %v1805_v51, %v1597_v0  ;;  %v729_v51 = vld [vmem:[#allocation2 + $0xf9] sm:$0xff] }
 0x3c4   :  { %v2017_v24 = vpop.f32.mrf.mxu0 }
 0x3c5   :  { %v8113_v20 = vadd.f32 %v2014_v5, %v1806_v52  ;;  %2290 = vmatmul.f32.gmra.mxu2 %v660_v46  ;;  %v2464_v36 = vpop.f32.mrf.mxu3  ;;  %v11603_v5 = vld [vmem:[#allocation60_spill] sm:$0xff]  ;;  %v662_v46 = vld [vmem:[#allocation2 + $0xd8] sm:$0xff] }
 0x3c7   :  { %11600 = vst [vmem:[#allocation59_spill] sm:$0xff] %v8113_v20  ;;  %2708 = vmatmul.f32.gmra.mxu0 %v788_v33  ;;  %v790_v20 = vld [vmem:[#allocation2 + $0xda] sm:$0xff] }
 0x3c8   :  { %v1599_v59 = vpop.f32.mrf.mxu2 }
 0x3c9   :  { %v1600_v22 = vadd.f32 %v1599_v59, %v11601_v6  ;;  %2514 = vmatmul.f32.gmra.mxu3 %v729_v51 }
 0x3cb   :  { %v1809_v32 = vadd.f32 %v1808_v35, %v1600_v22  ;;  %v730_v35 = vld [vmem:[#allocation2 + $0x109] sm:$0xff] }
 0x3cc   :  { %v2020_v25 = vpop.f32.mrf.mxu0 }
 0x3cd   :  { %v8116_v29 = vadd.f32 %v2017_v24, %v1809_v32  ;;  %2293 = vmatmul.f32.gmra.mxu2 %v661_v8  ;;  %v2467_v52 = vpop.f32.mrf.mxu3  ;;  %v11605_v24 = vld [vmem:[#allocation62_spill] sm:$0xff]  ;;  %v663_v8 = vld [vmem:[#allocation2 + $0xe0] sm:$0xff] }
 0x3cf   :  { %11602 = vst [vmem:[#allocation51_spill] sm:$0xff] %v8116_v29  ;;  %2711 = vmatmul.f32.gmra.mxu0 %v789_v45  ;;  %v791_v29 = vld [vmem:[#allocation2 + $0xe2] sm:$0xff] }
 0x3d0   :  { %v1602_v27 = vpop.f32.mrf.mxu2 }
 0x3d1   :  { %v1603_v0 = vadd.f32 %v1602_v27, %v11603_v5  ;;  %2517 = vmatmul.f32.gmra.mxu3 %v730_v35 }
 0x3d3   :  { %v1812_v33 = vadd.f32 %v1811_v43, %v1603_v0  ;;  %v731_v43 = vld [vmem:[#allocation2 + $0x111] sm:$0xff] }
 0x3d4   :  { %v2023_v1 = vpop.f32.mrf.mxu0 }
 0x3d5   :  { %v8119_v59 = vadd.f32 %v2020_v25, %v1812_v33  ;;  %2296 = vmatmul.f32.gmra.mxu2 %v662_v46  ;;  %v2470_v32 = vpop.f32.mrf.mxu3  ;;  %v11607_v25 = vld [vmem:[#allocation64_spill] sm:$0xff]  ;;  %v664_v46 = vld [vmem:[#allocation2 + $0xf0] sm:$0xff] }
 0x3d7   :  { %11604 = vst [vmem:[#allocation61_spill] sm:$0xff] %v8119_v59  ;;  %2714 = vmatmul.f32.gmra.mxu0 %v790_v20  ;;  %v792_v59 = vld [vmem:[#allocation2 + $0xf2] sm:$0xff] }
 0x3d8   :  { %v1605_v6 = vpop.f32.mrf.mxu2 }
 0x3d9   :  { %v1606_v22 = vadd.f32 %v1605_v6, %v11605_v24  ;;  %2520 = vmatmul.f32.gmra.mxu3 %v731_v43  ;;  %v793_v43 = vld [vmem:[#allocation2 + $0xfa] sm:$0xff] }
 0x3db   :  { %v1815_v45 = vadd.f32 %v1814_v18, %v1606_v22  ;;  %v732_v18 = vld [vmem:[#allocation2 + $0x121] sm:$0xff]  ;;  %v665_v22 = vld [vmem:[#allocation2 + $0xf8] sm:$0xff] }
 0x3dc   :  { %v2026_v51 = vpop.f32.mrf.mxu0 }
 0x3dd   :  { %v8122_v27 = vadd.f32 %v2023_v1, %v1815_v45  ;;  %2299 = vmatmul.f32.gmra.mxu2 %v663_v8  ;;  %v2473_v33 = vpop.f32.mrf.mxu3 }
 0x3df   :  { %11606 = vst [vmem:[#allocation54_spill] sm:$0xff] %v8122_v27  ;;  %2717 = vmatmul.f32.gmra.mxu0 %v791_v29 }
 0x3e0   :  { %v1608_v5 = vpop.f32.mrf.mxu2 }
 0x3e1   :  { %v1609_v0 = vadd.f32 %v1608_v5, %v11607_v25  ;;  %2523 = vmatmul.f32.gmra.mxu3 %v732_v18  ;;  %v794_v18 = vld [vmem:[#allocation2 + $0x10a] sm:$0xff] }
 0x3e3   :  { %v1818_v20 = vadd.f32 %v1817_v50, %v1609_v0  ;;  %v733_v50 = vld [vmem:[#allocation2 + $0x129] sm:$0xff] }
 0x3e4   :  { %v2673_v35 = vpop.f32.mrf.mxu0  ;;  %v666_v0 = vld [vmem:[#allocation2 + $0x108] sm:$0xff] }
 0x3e5   :  { %v8125_v6 = vadd.f32 %v2026_v51, %v1818_v20  ;;  %2302 = vmatmul.f32.gmra.mxu2 %v664_v46  ;;  %v2476_v8 = vpop.f32.mrf.mxu3 }
 0x3e7   :  { %11608 = vst [vmem:[#allocation63_spill] sm:$0xff] %v8125_v6  ;;  %2720 = vmatmul.f32.gmra.mxu0 %v792_v59  ;;  %v809_v6 = vld [vmem:[#allocation2 + $0x1ea] sm:$0xff] }
 0x3e8   :  { %v2255_v24 = vpop.f32.mrf.mxu2 }
 0x3e9   :  { %v2256_v1 = vadd.f32 %v2255_v24, %v7438_v40  ;;  %2526 = vmatmul.f32.gmra.mxu3 %v733_v50 }
 0x3eb   :  { %v2465_v29 = vadd.f32 %v2464_v36, %v2256_v1  ;;  %v734_v36 = vld [vmem:[#allocation2 + $0x139] sm:$0xff] }
 0x3ec   :  { %v2676_v45 = vpop.f32.mrf.mxu0  ;;  %v3941_v1 = vld [vmem:[%s11332_s4 + $0x78] sm:$0xff] }
 0x3ed   :  { %v8128_v5 = vadd.f32 %v2673_v35, %v2465_v29  ;;  %2305 = vmatmul.f32.gmra.mxu2 %v665_v22  ;;  %v2479_v46 = vpop.f32.mrf.mxu3  ;;  %v667_v22 = vld [vmem:[#allocation2 + $0x110] sm:$0xff]  ;;  %4070 = vmatpush.msra.mxu1 %v3941_v1  ;;  %v669_v1 = vld [vmem:[#allocation2 + $0x128] sm:$0xff] }
 0x3ef   :  { %11609 = vst [vmem:[#allocation57_spill] sm:$0xff] %v8128_v5  ;;  %2723 = vmatmul.f32.gmra.mxu0 %v793_v43  ;;  %v795_v43 = vld [vmem:[#allocation2 + $0x112] sm:$0xff] }
 0x3f0   :  { %v2258_v25 = vpop.f32.mrf.mxu2 }
 0x3f1   :  { %v2259_v51 = vadd.f32 %v2258_v25, %v7453_v53  ;;  %2529 = vmatmul.f32.gmra.mxu3 %v734_v36  ;;  %v796_v36 = vld [vmem:[#allocation2 + $0x122] sm:$0xff] }
 0x3f3   :  { %v2468_v59 = vadd.f32 %v2467_v52, %v2259_v51 }
 0x3f4   :  { %v2679_v20 = vpop.f32.mrf.mxu0 }
 0x3f5   :  { %v8131_v40 = vadd.f32 %v2676_v45, %v2468_v59  ;;  %2308 = vmatmul.f32.gmra.mxu2 %v666_v0  ;;  %v2482_v52 = vpop.f32.mrf.mxu3  ;;  %v735_v45 = vld [vmem:[#allocation2 + $0x141] sm:$0xff] }
 0x3f7   :  { %11610 = vst [vmem:[#allocation5_spill] sm:$0xff] %v8131_v40  ;;  %2726 = vmatmul.f32.gmra.mxu0 %v794_v18 }
 0x3f8   :  { %v2261_v24 = vpop.f32.mrf.mxu2 }
 0x3f9   :  { %v2262_v35 = vadd.f32 %v2261_v24, %v7467_v9  ;;  %2532 = vmatmul.f32.gmra.mxu3 %v735_v45  ;;  %v668_v9 = vld [vmem:[#allocation2 + $0x120] sm:$0xff]  ;;  %v797_v45 = vld [vmem:[#allocation2 + $0x12a] sm:$0xff] }
 0x3fb   :  { %v2471_v53 = vadd.f32 %v2470_v32, %v2262_v35  ;;  %v736_v32 = vld [vmem:[#allocation2 + $0x151] sm:$0xff] }
 0x3fc   :  { %v2682_v29 = vpop.f32.mrf.mxu0 }
 0x3fd   :  { %v8137_v50 = vadd.f32 %v2679_v20, %v2471_v53  ;;  %2311 = vmatmul.f32.gmra.mxu2 %v667_v22  ;;  %v2485_v59 = vpop.f32.mrf.mxu3 }
 0x3ff   :  { %11611 = vst [vmem:[#allocation3_spill] sm:$0xff] %v8137_v50  ;;  %2729 = vmatmul.f32.gmra.mxu0 %v795_v43 }
 0x400   :  { %v2264_v25 = vpop.f32.mrf.mxu2 }
 0x401   :  { %v2265_v51 = vadd.f32 %v2264_v25, %v7484_v57  ;;  %2535 = vmatmul.f32.gmra.mxu3 %v736_v32  ;;  %v798_v32 = vld [vmem:[#allocation2 + $0x13a] sm:$0xff] }
 0x403   :  { %v2474_v0 = vadd.f32 %v2473_v33, %v2265_v51  ;;  %v737_v33 = vld [vmem:[#allocation2 + $0x159] sm:$0xff] }
 0x404   :  { %v2685_v18 = vpop.f32.mrf.mxu0  ;;  %v670_v51 = vld [vmem:[#allocation2 + $0x138] sm:$0xff] }
 0x405   :  { %v8140_v24 = vadd.f32 %v2682_v29, %v2474_v0  ;;  %2314 = vmatmul.f32.gmra.mxu2 %v668_v9  ;;  %v2488_v53 = vpop.f32.mrf.mxu3 }
 0x407   :  { %2732 = vmatmul.f32.gmra.mxu0 %v796_v36 }
 0x408   :  { %v2267_v35 = vpop.f32.mrf.mxu2 }
 0x409   :  { %v2268_v20 = vadd.f32 %v2267_v35, %v7501_v44  ;;  %2538 = vmatmul.f32.gmra.mxu3 %v737_v33 }
 0x40b   :  { %v2477_v22 = vadd.f32 %v2476_v8, %v2268_v20  ;;  %v738_v8 = vld [vmem:[#allocation2 + $0x169] sm:$0xff] }
 0x40c   :  { %v2688_v43 = vpop.f32.mrf.mxu0  ;;  %v3940_v20 = vld [vmem:[%s11332_s4 + $0x70] sm:$0xff] }
 0x40d   :  { %v8143_v57 = vadd.f32 %v2685_v18, %v2477_v22  ;;  %2317 = vmatmul.f32.gmra.mxu2 %v669_v1  ;;  %v2491_v0 = vpop.f32.mrf.mxu3  ;;  %v671_v1 = vld [vmem:[#allocation2 + $0x140] sm:$0xff]  ;;  %4071 = vmatpush.msra.mxu1 %v3940_v20  ;;  %v673_v20 = vld [vmem:[#allocation2 + $0x158] sm:$0xff] }
 0x40f   :  { %11612 = vst [vmem:[#allocation6_spill] sm:$0xff] %v8143_v57  ;;  %2735 = vmatmul.f32.gmra.mxu0 %v797_v45  ;;  %v799_v45 = vld [vmem:[#allocation2 + $0x142] sm:$0xff] }
 0x410   :  { %v2270_v25 = vpop.f32.mrf.mxu2 }
 0x411   :  { %v2271_v29 = vadd.f32 %v2270_v25, %v7518_v38  ;;  %2541 = vmatmul.f32.gmra.mxu3 %v738_v8  ;;  %v800_v8 = vld [vmem:[#allocation2 + $0x152] sm:$0xff] }
 0x413   :  { %v2480_v9 = vadd.f32 %v2479_v46, %v2271_v29 }
 0x414   :  { %v2691_v36 = vpop.f32.mrf.mxu0 }
 0x415   :  { %v8146_v44 = vadd.f32 %v2688_v43, %v2480_v9  ;;  %2320 = vmatmul.f32.gmra.mxu2 %v670_v51  ;;  %v2494_v46 = vpop.f32.mrf.mxu3  ;;  %v739_v43 = vld [vmem:[#allocation2 + $0x171] sm:$0xff] }
 0x417   :  { %11613 = vst [vmem:[#allocation4_spill] sm:$0xff] %v8146_v44  ;;  %2738 = vmatmul.f32.gmra.mxu0 %v798_v32 }
 0x418   :  { %v2273_v35 = vpop.f32.mrf.mxu2 }
 0x419   :  { %v2274_v18 = vadd.f32 %v2273_v35, %v7532_v10  ;;  %2544 = vmatmul.f32.gmra.mxu3 %v739_v43  ;;  %v672_v10 = vld [vmem:[#allocation2 + $0x150] sm:$0xff]  ;;  %v801_v43 = vld [vmem:[#allocation2 + $0x15a] sm:$0xff] }
 0x41b   :  { %v2483_v38 = vadd.f32 %v2482_v52, %v2274_v18  ;;  %v740_v52 = vld [vmem:[#allocation2 + $0x181] sm:$0xff] }
 0x41c   :  { %v2694_v22 = vpop.f32.mrf.mxu0 }
 0x41d   :  { %v8152_v33 = vadd.f32 %v2691_v36, %v2483_v38  ;;  %2323 = vmatmul.f32.gmra.mxu2 %v671_v1  ;;  %v2497_v9 = vpop.f32.mrf.mxu3 }
 0x41f   :  { %11614 = vst [vmem:[#allocation7_spill] sm:$0xff] %v8152_v33  ;;  %2741 = vmatmul.f32.gmra.mxu0 %v799_v45 }
 0x420   :  { %v2276_v25 = vpop.f32.mrf.mxu2 }
 0x421   :  { %v2277_v29 = vadd.f32 %v2276_v25, %v7550_v31  ;;  %2547 = vmatmul.f32.gmra.mxu3 %v740_v52  ;;  %v802_v52 = vld [vmem:[#allocation2 + $0x16a] sm:$0xff] }
 0x423   :  { %v2486_v51 = vadd.f32 %v2485_v59, %v2277_v29  ;;  %v741_v59 = vld [vmem:[#allocation2 + $0x189] sm:$0xff] }
 0x424   :  { %v2697_v32 = vpop.f32.mrf.mxu0  ;;  %v674_v29 = vld [vmem:[#allocation2 + $0x168] sm:$0xff] }
 0x425   :  { %v8155_v35 = vadd.f32 %v2694_v22, %v2486_v51  ;;  %2326 = vmatmul.f32.gmra.mxu2 %v672_v10  ;;  %v2500_v38 = vpop.f32.mrf.mxu3 }
 0x427   :  { %11615 = vst [vmem:[#allocation8_spill] sm:$0xff] %v8155_v35  ;;  %2744 = vmatmul.f32.gmra.mxu0 %v800_v8 }
 0x428   :  { %v2279_v18 = vpop.f32.mrf.mxu2 }
 0x429   :  { %v2280_v36 = vadd.f32 %v2279_v18, %v7573_v23  ;;  %2550 = vmatmul.f32.gmra.mxu3 %v741_v59 }
 0x42b   :  { %v2489_v1 = vadd.f32 %v2488_v53, %v2280_v36  ;;  %v742_v53 = vld [vmem:[#allocation2 + $0x199] sm:$0xff]  ;;  %v3939_v36 = vld [vmem:[%s11332_s4 + $0x68] sm:$0xff] }
 0x42c   :  { %v2700_v45 = vpop.f32.mrf.mxu0  ;;  %4072 = vmatpush.msra.mxu1 %v3939_v36  ;;  %v677_v36 = vld [vmem:[#allocation2 + $0x188] sm:$0xff] }
 0x42d   :  { %v8158_v31 = vadd.f32 %v2697_v32, %v2489_v1  ;;  %2329 = vmatmul.f32.gmra.mxu2 %v673_v20  ;;  %v2503_v51 = vpop.f32.mrf.mxu3  ;;  %v675_v20 = vld [vmem:[#allocation2 + $0x170] sm:$0xff] }
 0x42f   :  { %11616 = vst [vmem:[#allocation9_spill] sm:$0xff] %v8158_v31  ;;  %2747 = vmatmul.f32.gmra.mxu0 %v801_v43  ;;  %v803_v43 = vld [vmem:[#allocation2 + $0x172] sm:$0xff] }
 0x430   :  { %v2282_v25 = vpop.f32.mrf.mxu2 }
 0x431   :  { %v2283_v22 = vadd.f32 %v2282_v25, %v7597_v56  ;;  %2553 = vmatmul.f32.gmra.mxu3 %v742_v53  ;;  %v804_v53 = vld [vmem:[#allocation2 + $0x182] sm:$0xff] }
 0x433   :  { %v2492_v10 = vadd.f32 %v2491_v0, %v2283_v22 }
 0x434   :  { %v2703_v8 = vpop.f32.mrf.mxu0 }
 0x435   :  { %v8161_v23 = vadd.f32 %v2700_v45, %v2492_v10  ;;  %2332 = vmatmul.f32.gmra.mxu2 %v674_v29  ;;  %v2506_v0 = vpop.f32.mrf.mxu3  ;;  %v743_v45 = vld [vmem:[#allocation2 + $0x1a1] sm:$0xff] }
 0x437   :  { %11617 = vst [vmem:[#allocation10_spill] sm:$0xff] %v8161_v23  ;;  %2750 = vmatmul.f32.gmra.mxu0 %v802_v52 }
 0x438   :  { %v2285_v18 = vpop.f32.mrf.mxu2 }
 0x439   :  { %v2286_v32 = vadd.f32 %v2285_v18, %v7612_v13  ;;  %2556 = vmatmul.f32.gmra.mxu3 %v743_v45  ;;  %v676_v13 = vld [vmem:[#allocation2 + $0x180] sm:$0xff]  ;;  %v805_v45 = vld [vmem:[#allocation2 + $0x18a] sm:$0xff] }
 0x43b   :  { %v2495_v56 = vadd.f32 %v2494_v46, %v2286_v32  ;;  %v744_v46 = vld [vmem:[#allocation2 + $0x1e1] sm:$0xff] }
 0x43c   :  { %v2706_v1 = vpop.f32.mrf.mxu0 }
 0x43d   :  { %v8167_v59 = vadd.f32 %v2703_v8, %v2495_v56  ;;  %2335 = vmatmul.f32.gmra.mxu2 %v675_v20  ;;  %v2509_v10 = vpop.f32.mrf.mxu3 }
 0x43f   :  { %11618 = vst [vmem:[#allocation11_spill] sm:$0xff] %v8167_v59  ;;  %2753 = vmatmul.f32.gmra.mxu0 %v803_v43 }
 0x440   :  { %v2288_v25 = vpop.f32.mrf.mxu2 }
 0x441   :  { %v2289_v22 = vadd.f32 %v2288_v25, %v7626_v15  ;;  %2559 = vmatmul.f32.gmra.mxu3 %v744_v46 }
 0x443   :  { %v2498_v29 = vadd.f32 %v2497_v9, %v2289_v22  ;;  %v745_v9 = vld [vmem:[#allocation2 + $0x1e9] sm:$0xff] }
 0x444   :  { %v2709_v52 = vpop.f32.mrf.mxu0 }
 0x445   :  { %v8170_v18 = vadd.f32 %v2706_v1, %v2498_v29  ;;  %2338 = vmatmul.f32.gmra.mxu2 %v676_v13  ;;  %v2512_v56 = vpop.f32.mrf.mxu3 }
 0x447   :  { %11619 = vst [vmem:[#allocation12_spill] sm:$0xff] %v8170_v18  ;;  %2756 = vmatmul.f32.gmra.mxu0 %v804_v53  ;;  %v806_v53 = vld [vmem:[#allocation2 + $0x19a] sm:$0xff] }
 0x448   :  { %v2291_v32 = vpop.f32.mrf.mxu2 }
 0x449   :  { %v2292_v8 = vadd.f32 %v2291_v32, %v7640_v60  ;;  %2562 = vmatmul.f32.gmra.mxu3 %v745_v9  ;;  %v8178_v60 = vld [vmem:[#allocation2 + $0x1b0] sm:$0xff] }
 0x44b   :  { %v2501_v20 = vadd.f32 %v2500_v38, %v2292_v8  ;;  %v746_v38 = vld [vmem:[#allocation2 + $0x1f9] sm:$0xff] }
 0x44c   :  { %v2712_v43 = vpop.f32.mrf.mxu0 }
 0x44d   :  { %v8173_v15 = vadd.f32 %v2709_v52, %v2501_v20  ;;  %2341 = vmatmul.f32.gmra.mxu2 %v677_v36  ;;  %v2515_v13 = vpop.f32.mrf.mxu3  ;;  %v807_v20 = vld [vmem:[#allocation2 + $0x1a2] sm:$0xff] }
 0x44f   :  { %11620 = vst [vmem:[#allocation13_spill] sm:$0xff] %v8173_v15  ;;  %2759 = vmatmul.f32.gmra.mxu0 %v805_v45  ;;  %v747_v45 = vld [vmem:[#allocation2 + $0x201] sm:$0xff] }
 0x450   :  { %v2294_v25 = vpop.f32.mrf.mxu2 }
 0x451   :  { %v2295_v1 = vadd.f32 %v2294_v25, %v7657_v12  ;;  %2565 = vmatmul.f32.gmra.mxu3 %v746_v38  ;;  %v3938_v12 = vld [vmem:[%s11332_s4 + $0x60] sm:$0xff] }
 0x452   :  { %4073 = vmatpush.msra.mxu1 %v3938_v12  ;;  %v808_v38 = vld [vmem:[#allocation2 + $0x1e2] sm:$0xff] }
 0x453   :  { %v2504_v22 = vadd.f32 %v2503_v51, %v2295_v1  ;;  %v681_v12 = vld [vmem:[#allocation2 + $0x1e8] sm:$0xff] }
 0x454   :  { %v2715_v29 = vpop.f32.mrf.mxu0 }
 0x455   :  { %v8176_v46 = vadd.f32 %v2712_v43, %v2504_v22  ;;  %2344 = vmatmul.f32.gmra.mxu2 %v8178_v60  ;;  %v2518_v8 = vpop.f32.mrf.mxu3 }
 0x457   :  { %11621 = vst [vmem:[#allocation14_spill] sm:$0xff] %v8176_v46  ;;  %2762 = vmatmul.f32.gmra.mxu0 %v806_v53 }
 0x458   :  { %v2297_v52 = vpop.f32.mrf.mxu2 }
 0x459   :  { %v2298_v32 = vadd.f32 %v2297_v52, %v7672_v4  ;;  %2568 = vmatmul.f32.gmra.mxu3 %v747_v45  ;;  %v680_v4 = vld [vmem:[#allocation2 + $0x1e0] sm:$0xff] }
 0x45b   :  { %v2507_v51 = vadd.f32 %v2506_v0, %v2298_v32  ;;  %v748_v0 = vld [vmem:[#allocation2 + $0x211] sm:$0xff] }
 0x45c   :  { %v2718_v36 = vpop.f32.mrf.mxu0 }
 0x45d   :  { %v8185_v43 = vadd.f32 %v2715_v29, %v2507_v51  ;;  %2347 = vmatmul.f32.gmra.mxu2 %v8178_v60  ;;  %v2521_v22 = vpop.f32.mrf.mxu3 }
 0x45f   :  { %11622 = vst [vmem:[#allocation15_spill] sm:$0xff] %v8185_v43  ;;  %2765 = vmatmul.f32.gmra.mxu0 %v807_v20 }
 0x460   :  { %v2300_v9 = vpop.f32.mrf.mxu2 }
 0x461   :  { %v2301_v25 = vadd.f32 %v2300_v9, %v7689_v17  ;;  %2571 = vmatmul.f32.gmra.mxu3 %v748_v0  ;;  %v810_v0 = vld [vmem:[#allocation2 + $0x1fa] sm:$0xff] }
 0x463   :  { %v2510_v1 = vadd.f32 %v2509_v10, %v2301_v25  ;;  %v749_v10 = vld [vmem:[#allocation2 + $0x219] sm:$0xff] }
 0x464   :  { %v2721_v53 = vpop.f32.mrf.mxu0  ;;  %v682_v25 = vld [vmem:[#allocation2 + $0x1f8] sm:$0xff] }
 0x465   :  { %v8189_v52 = vadd.f32 %v2718_v36, %v2510_v1  ;;  %2350 = vmatmul.f32.gmra.mxu2 %v680_v4  ;;  %v2524_v20 = vpop.f32.mrf.mxu3 }
 0x467   :  { %11623 = vst [vmem:[#allocation16_spill] sm:$0xff] %v8189_v52  ;;  %2768 = vmatmul.f32.gmra.mxu0 %v808_v38 }
 0x468   :  { %v2303_v29 = vpop.f32.mrf.mxu2 }
 0x469   :  { %v2304_v32 = vadd.f32 %v2303_v29, %v7705_v37  ;;  %2574 = vmatmul.f32.gmra.mxu3 %v749_v10 }
 0x46b   :  { %v2513_v51 = vadd.f32 %v2512_v56, %v2304_v32  ;;  %v750_v56 = vld [vmem:[#allocation2 + $0x229] sm:$0xff]  ;;  %v683_v32 = vld [vmem:[#allocation2 + $0x200] sm:$0xff] }
 0x46c   :  { %v2724_v45 = vpop.f32.mrf.mxu0 }
 0x46d   :  { %v8192_v17 = vadd.f32 %v2721_v53, %v2513_v51  ;;  %2353 = vmatmul.f32.gmra.mxu2 %v681_v12  ;;  %v2527_v1 = vpop.f32.mrf.mxu3  ;;  %v811_v51 = vld [vmem:[#allocation2 + $0x202] sm:$0xff] }
 0x46f   :  { %11624 = vst [vmem:[#allocation17_spill] sm:$0xff] %v8192_v17  ;;  %2771 = vmatmul.f32.gmra.mxu0 %v809_v6  ;;  %v3937_v6 = vld [vmem:[%s11332_s4 + $0x58] sm:$0xff] }
 0x470   :  { %v2306_v9 = vpop.f32.mrf.mxu2  ;;  %4074 = vmatpush.msra.mxu1 %v3937_v6  ;;  %v685_v6 = vld [vmem:[#allocation2 + $0x218] sm:$0xff] }
 0x471   :  { %v2307_v36 = vadd.f32 %v2306_v9, %v7722_v28  ;;  %2577 = vmatmul.f32.gmra.mxu3 %v750_v56  ;;  %v812_v56 = vld [vmem:[#allocation2 + $0x212] sm:$0xff] }
 0x473   :  { %v2516_v4 = vadd.f32 %v2515_v13, %v2307_v36 }
 0x474   :  { %v2727_v38 = vpop.f32.mrf.mxu0 }
 0x475   :  { %v8195_v37 = vadd.f32 %v2724_v45, %v2516_v4  ;;  %2356 = vmatmul.f32.gmra.mxu2 %v682_v25  ;;  %v2530_v13 = vpop.f32.mrf.mxu3  ;;  %v751_v45 = vld [vmem:[#allocation2 + $0x231] sm:$0xff] }
 0x477   :  { %11625 = vst [vmem:[#allocation18_spill] sm:$0xff] %v8195_v37  ;;  %2774 = vmatmul.f32.gmra.mxu0 %v810_v0 }
 0x478   :  { %v2309_v29 = vpop.f32.mrf.mxu2 }
 0x479   :  { %v2310_v53 = vadd.f32 %v2309_v29, %v7736_v58  ;;  %2580 = vmatmul.f32.gmra.mxu3 %v751_v45  ;;  %v684_v58 = vld [vmem:[#allocation2 + $0x210] sm:$0xff]  ;;  %v813_v45 = vld [vmem:[#allocation2 + $0x21a] sm:$0xff] }
 0x47b   :  { %v2519_v28 = vadd.f32 %v2518_v8, %v2310_v53  ;;  %v752_v8 = vld [vmem:[#allocation2 + $0x241] sm:$0xff] }
 0x47c   :  { %v2730_v12 = vpop.f32.mrf.mxu0 }
 0x47d   :  { %v8201_v10 = vadd.f32 %v2727_v38, %v2519_v28  ;;  %2359 = vmatmul.f32.gmra.mxu2 %v683_v32  ;;  %v2533_v4 = vpop.f32.mrf.mxu3 }
 0x47f   :  { %11626 = vst [vmem:[#allocation19_spill] sm:$0xff] %v8201_v10  ;;  %2777 = vmatmul.f32.gmra.mxu0 %v811_v51 }
 0x480   :  { %v2312_v9 = vpop.f32.mrf.mxu2 }
 0x481   :  { %v2313_v36 = vadd.f32 %v2312_v9, %v7753_v55  ;;  %2583 = vmatmul.f32.gmra.mxu3 %v752_v8  ;;  %v814_v8 = vld [vmem:[#allocation2 + $0x22a] sm:$0xff] }
 0x483   :  { %v2522_v25 = vadd.f32 %v2521_v22, %v2313_v36  ;;  %v753_v22 = vld [vmem:[#allocation2 + $0x249] sm:$0xff] }
 0x484   :  { %v2733_v0 = vpop.f32.mrf.mxu0  ;;  %v686_v36 = vld [vmem:[#allocation2 + $0x228] sm:$0xff] }
 0x485   :  { %v8204_v29 = vadd.f32 %v2730_v12, %v2522_v25  ;;  %2362 = vmatmul.f32.gmra.mxu2 %v684_v58  ;;  %v2536_v28 = vpop.f32.mrf.mxu3 }
 0x487   :  { %11627 = vst [vmem:[#allocation21_spill] sm:$0xff] %v8204_v29  ;;  %2780 = vmatmul.f32.gmra.mxu0 %v812_v56 }
 0x488   :  { %v2315_v53 = vpop.f32.mrf.mxu2 }
 0x489   :  { %v2316_v38 = vadd.f32 %v2315_v53, %v7770_v63  ;;  %2586 = vmatmul.f32.gmra.mxu3 %v753_v22 }
 0x48b   :  { %v2525_v32 = vadd.f32 %v2524_v20, %v2316_v38  ;;  %v754_v20 = vld [vmem:[#allocation2 + $0x259] sm:$0xff]  ;;  %v3936_v38 = vld [vmem:[%s11332_s4 + $0x50] sm:$0xff] }
 0x48c   :  { %v2736_v51 = vpop.f32.mrf.mxu0  ;;  %4075 = vmatpush.msra.mxu1 %v3936_v38  ;;  %v689_v38 = vld [vmem:[#allocation2 + $0x248] sm:$0xff] }
 0x48d   :  { %v8207_v55 = vadd.f32 %v2733_v0, %v2525_v32  ;;  %2365 = vmatmul.f32.gmra.mxu2 %v685_v6  ;;  %v2539_v25 = vpop.f32.mrf.mxu3  ;;  %v687_v6 = vld [vmem:[#allocation2 + $0x230] sm:$0xff] }
 0x48f   :  { %11628 = vst [vmem:[#allocation23_spill] sm:$0xff] %v8207_v55  ;;  %2783 = vmatmul.f32.gmra.mxu0 %v813_v45  ;;  %v815_v45 = vld [vmem:[#allocation2 + $0x232] sm:$0xff] }
 0x490   :  { %v2318_v9 = vpop.f32.mrf.mxu2 }
 0x491   :  { %v2319_v12 = vadd.f32 %v2318_v9, %v7787_v48  ;;  %2589 = vmatmul.f32.gmra.mxu3 %v754_v20  ;;  %v816_v20 = vld [vmem:[#allocation2 + $0x242] sm:$0xff] }
 0x493   :  { %v2528_v58 = vadd.f32 %v2527_v1, %v2319_v12 }
 0x494   :  { %v2739_v56 = vpop.f32.mrf.mxu0 }
 0x495   :  { %v8210_v63 = vadd.f32 %v2736_v51, %v2528_v58  ;;  %2368 = vmatmul.f32.gmra.mxu2 %v686_v36  ;;  %v2542_v1 = vpop.f32.mrf.mxu3  ;;  %v755_v51 = vld [vmem:[#allocation2 + $0x261] sm:$0xff] }
 0x497   :  { %11629 = vst [vmem:[#allocation25_spill] sm:$0xff] %v8210_v63  ;;  %2786 = vmatmul.f32.gmra.mxu0 %v814_v8 }
 0x498   :  { %v2321_v53 = vpop.f32.mrf.mxu2 }
 0x499   :  { %v2322_v0 = vadd.f32 %v2321_v53, %v7801_v41  ;;  %2592 = vmatmul.f32.gmra.mxu3 %v755_v51  ;;  %v688_v41 = vld [vmem:[#allocation2 + $0x240] sm:$0xff]  ;;  %v817_v51 = vld [vmem:[#allocation2 + $0x24a] sm:$0xff] }
 0x49b   :  { %v2531_v48 = vadd.f32 %v2530_v13, %v2322_v0  ;;  %v756_v13 = vld [vmem:[#allocation2 + $0x271] sm:$0xff] }
 0x49c   :  { %v2742_v32 = vpop.f32.mrf.mxu0 }
 0x49d   :  { %v8216_v22 = vadd.f32 %v2739_v56, %v2531_v48  ;;  %2371 = vmatmul.f32.gmra.mxu2 %v687_v6  ;;  %v2545_v58 = vpop.f32.mrf.mxu3 }
 0x49f   :  { %11630 = vst [vmem:[#allocation28_spill] sm:$0xff] %v8216_v22  ;;  %2789 = vmatmul.f32.gmra.mxu0 %v815_v45 }
 0x4a0   :  { %v2324_v9 = vpop.f32.mrf.mxu2 }
 0x4a1   :  { %v2325_v12 = vadd.f32 %v2324_v9, %v7818_v7  ;;  %2595 = vmatmul.f32.gmra.mxu3 %v756_v13  ;;  %v818_v13 = vld [vmem:[#allocation2 + $0x25a] sm:$0xff] }
 0x4a3   :  { %v2534_v36 = vadd.f32 %v2533_v4, %v2325_v12  ;;  %v757_v4 = vld [vmem:[#allocation2 + $0x279] sm:$0xff] }
 0x4a4   :  { %v2745_v8 = vpop.f32.mrf.mxu0  ;;  %v690_v12 = vld [vmem:[#allocation2 + $0x258] sm:$0xff] }
 0x4a5   :  { %v8219_v53 = vadd.f32 %v2742_v32, %v2534_v36  ;;  %2374 = vmatmul.f32.gmra.mxu2 %v688_v41  ;;  %v2548_v48 = vpop.f32.mrf.mxu3 }
 0x4a7   :  { %11631 = vst [vmem:[#allocation31_spill] sm:$0xff] %v8219_v53  ;;  %2792 = vmatmul.f32.gmra.mxu0 %v816_v20 }
 0x4a8   :  { %v2327_v0 = vpop.f32.mrf.mxu2 }
 0x4a9   :  { %v2328_v56 = vadd.f32 %v2327_v0, %v7833_v14  ;;  %2598 = vmatmul.f32.gmra.mxu3 %v757_v4 }
 0x4ab   :  { %v2537_v6 = vadd.f32 %v2536_v28, %v2328_v56  ;;  %v758_v28 = vld [vmem:[#allocation2 + $0x289] sm:$0xff] }
 0x4ac   :  { %v2748_v45 = vpop.f32.mrf.mxu0  ;;  %v3935_v56 = vld [vmem:[%s11332_s4 + $0x48] sm:$0xff] }
 0x4ad   :  { %v8222_v7 = vadd.f32 %v2745_v8, %v2537_v6  ;;  %2377 = vmatmul.f32.gmra.mxu2 %v689_v38  ;;  %v2551_v36 = vpop.f32.mrf.mxu3  ;;  %v691_v38 = vld [vmem:[#allocation2 + $0x260] sm:$0xff]  ;;  %4076 = vmatpush.msra.mxu1 %v3935_v56  ;;  %v693_v56 = vld [vmem:[#allocation2 + $0x278] sm:$0xff] }
 0x4af   :  { %11632 = vst [vmem:[#allocation34_spill] sm:$0xff] %v8222_v7  ;;  %2795 = vmatmul.f32.gmra.mxu0 %v817_v51  ;;  %v819_v51 = vld [vmem:[#allocation2 + $0x262] sm:$0xff] }
 0x4b0   :  { %v2330_v9 = vpop.f32.mrf.mxu2 }
 0x4b1   :  { %v2331_v32 = vadd.f32 %v2330_v9, %v7848_v2  ;;  %2601 = vmatmul.f32.gmra.mxu3 %v758_v28  ;;  %v820_v28 = vld [vmem:[#allocation2 + $0x272] sm:$0xff] }
 0x4b3   :  { %v2540_v41 = vadd.f32 %v2539_v25, %v2331_v32 }
 0x4b4   :  { %v2751_v20 = vpop.f32.mrf.mxu0 }
 0x4b5   :  { %v8225_v14 = vadd.f32 %v2748_v45, %v2540_v41  ;;  %2380 = vmatmul.f32.gmra.mxu2 %v690_v12  ;;  %v2554_v25 = vpop.f32.mrf.mxu3  ;;  %v759_v45 = vld [vmem:[#allocation2 + $0x291] sm:$0xff] }
 0x4b7   :  { %11633 = vst [vmem:[#allocation37_spill] sm:$0xff] %v8225_v14  ;;  %2798 = vmatmul.f32.gmra.mxu0 %v818_v13 }
 0x4b8   :  { %v2333_v0 = vpop.f32.mrf.mxu2 }
 0x4b9   :  { %v2334_v8 = vadd.f32 %v2333_v0, %v7860_v47  ;;  %2604 = vmatmul.f32.gmra.mxu3 %v759_v45  ;;  %v692_v47 = vld [vmem:[#allocation2 + $0x270] sm:$0xff]  ;;  %v821_v45 = vld [vmem:[#allocation2 + $0x27a] sm:$0xff] }
 0x4bb   :  { %v2543_v2 = vadd.f32 %v2542_v1, %v2334_v8  ;;  %v760_v1 = vld [vmem:[#allocation2 + $0x2a1] sm:$0xff] }
 0x4bc   :  { %v2754_v6 = vpop.f32.mrf.mxu0 }
 0x4bd   :  { %v8231_v4 = vadd.f32 %v2751_v20, %v2543_v2  ;;  %2383 = vmatmul.f32.gmra.mxu2 %v691_v38  ;;  %v2557_v41 = vpop.f32.mrf.mxu3 }
 0x4bf   :  { %11634 = vst [vmem:[#allocation40_spill] sm:$0xff] %v8231_v4  ;;  %2801 = vmatmul.f32.gmra.mxu0 %v819_v51 }
 0x4c0   :  { %v2336_v9 = vpop.f32.mrf.mxu2 }
 0x4c1   :  { %v2337_v32 = vadd.f32 %v2336_v9, %v7874_v16  ;;  %2607 = vmatmul.f32.gmra.mxu3 %v760_v1  ;;  %v822_v1 = vld [vmem:[#allocation2 + $0x28a] sm:$0xff] }
 0x4c3   :  { %v2546_v12 = vadd.f32 %v2545_v58, %v2337_v32  ;;  %v761_v58 = vld [vmem:[#allocation2 + $0x2a9] sm:$0xff] }
 0x4c4   :  { %v2757_v13 = vpop.f32.mrf.mxu0  ;;  %v694_v32 = vld [vmem:[#allocation2 + $0x288] sm:$0xff] }
 0x4c5   :  { %v8234_v0 = vadd.f32 %v2754_v6, %v2546_v12  ;;  %2386 = vmatmul.f32.gmra.mxu2 %v692_v47  ;;  %v2560_v2 = vpop.f32.mrf.mxu3 }
 0x4c7   :  { %11635 = vst [vmem:[#allocation43_spill] sm:$0xff] %v8234_v0  ;;  %2804 = vmatmul.f32.gmra.mxu0 %v820_v28 }
 0x4c8   :  { %v2339_v8 = vpop.f32.mrf.mxu2 }
 0x4c9   :  { %v2340_v20 = vadd.f32 %v2339_v8, %v7888_v19  ;;  %2610 = vmatmul.f32.gmra.mxu3 %v761_v58 }
 0x4cb   :  { %v2549_v38 = vadd.f32 %v2548_v48, %v2340_v20  ;;  %v762_v48 = vld [vmem:[#allocation2 + $0x2b9] sm:$0xff] }
 0x4cc   :  { %v2760_v51 = vpop.f32.mrf.mxu0  ;;  %v3934_v20 = vld [vmem:[%s11332_s4 + $0x40] sm:$0xff] }
 0x4cd   :  { %v8237_v16 = vadd.f32 %v2757_v13, %v2549_v38  ;;  %2389 = vmatmul.f32.gmra.mxu2 %v693_v56  ;;  %v2563_v12 = vpop.f32.mrf.mxu3  ;;  %v695_v56 = vld [vmem:[#allocation2 + $0x290] sm:$0xff]  ;;  %4077 = vmatpush.msra.mxu1 %v3934_v20  ;;  %v697_v20 = vld [vmem:[#allocation2 + $0x2a8] sm:$0xff] }
 0x4cf   :  { %11636 = vst [vmem:[#allocation46_spill] sm:$0xff] %v8237_v16  ;;  %2807 = vmatmul.f32.gmra.mxu0 %v821_v45  ;;  %v823_v45 = vld [vmem:[#allocation2 + $0x292] sm:$0xff] }
 0x4d0   :  { %v2342_v9 = vpop.f32.mrf.mxu2 }
 0x4d1   :  { %v2343_v6 = vadd.f32 %v2342_v9, %v7902_v11  ;;  %2613 = vmatmul.f32.gmra.mxu3 %v762_v48  ;;  %v824_v48 = vld [vmem:[#allocation2 + $0x2a2] sm:$0xff] }
 0x4d3   :  { %v2552_v47 = vadd.f32 %v2551_v36, %v2343_v6 }
 0x4d4   :  { %v2763_v28 = vpop.f32.mrf.mxu0 }
 0x4d5   :  { %v8240_v19 = vadd.f32 %v2760_v51, %v2552_v47  ;;  %2392 = vmatmul.f32.gmra.mxu2 %v694_v32  ;;  %v2566_v36 = vpop.f32.mrf.mxu3  ;;  %v763_v51 = vld [vmem:[#allocation2 + $0x2c1] sm:$0xff] }
 0x4d7   :  { %11637 = vst [vmem:[#allocation49_spill] sm:$0xff] %v8240_v19  ;;  %2810 = vmatmul.f32.gmra.mxu0 %v822_v1 }
 0x4d8   :  { %v2345_v8 = vpop.f32.mrf.mxu2 }
 0x4d9   :  { %v2346_v13 = vadd.f32 %v2345_v8, %v7913_v34  ;;  %2616 = vmatmul.f32.gmra.mxu3 %v763_v51  ;;  %v696_v34 = vld [vmem:[#allocation2 + $0x2a0] sm:$0xff]  ;;  %v825_v51 = vld [vmem:[#allocation2 + $0x2aa] sm:$0xff] }
 0x4db   :  { %v2555_v11 = vadd.f32 %v2554_v25, %v2346_v13  ;;  %v764_v25 = vld [vmem:[#allocation2 + $0x2d1] sm:$0xff] }
 0x4dc   :  { %v2766_v38 = vpop.f32.mrf.mxu0 }
 0x4dd   :  { %v8246_v58 = vadd.f32 %v2763_v28, %v2555_v11  ;;  %2395 = vmatmul.f32.gmra.mxu2 %v695_v56  ;;  %v2569_v47 = vpop.f32.mrf.mxu3 }
 0x4df   :  { %11638 = vst [vmem:[#allocation52_spill] sm:$0xff] %v8246_v58  ;;  %2813 = vmatmul.f32.gmra.mxu0 %v823_v45 }
 0x4e0   :  { %v2348_v9 = vpop.f32.mrf.mxu2 }
 0x4e1   :  { %v2349_v6 = vadd.f32 %v2348_v9, %v7927_v61  ;;  %2619 = vmatmul.f32.gmra.mxu3 %v764_v25  ;;  %v826_v25 = vld [vmem:[#allocation2 + $0x2ba] sm:$0xff] }
 0x4e3   :  { %v2558_v32 = vadd.f32 %v2557_v41, %v2349_v6  ;;  %v765_v41 = vld [vmem:[#allocation2 + $0x2d9] sm:$0xff] }
 0x4e4   :  { %v2769_v1 = vpop.f32.mrf.mxu0  ;;  %v698_v6 = vld [vmem:[#allocation2 + $0x2b8] sm:$0xff] }
 0x4e5   :  { %v8249_v8 = vadd.f32 %v2766_v38, %v2558_v32  ;;  %2398 = vmatmul.f32.gmra.mxu2 %v696_v34  ;;  %v2572_v11 = vpop.f32.mrf.mxu3 }
 0x4e7   :  { %11639 = vst [vmem:[#allocation55_spill] sm:$0xff] %v8249_v8  ;;  %2816 = vmatmul.f32.gmra.mxu0 %v824_v48 }
 0x4e8   :  { %v2351_v13 = vpop.f32.mrf.mxu2 }
 0x4e9   :  { %v2352_v28 = vadd.f32 %v2351_v13, %v7941_v21  ;;  %2622 = vmatmul.f32.gmra.mxu3 %v765_v41  ;;  %v8255_v21 = vpop.f32.mrf.mxu1  ;;  %v766_v13 = vld [vmem:[#allocation2 + $0x2e9] sm:$0xff] }
 0x4ea   :  { %v827_v41 = vld [vmem:[#allocation2 + $0x2c2] sm:$0xff] }
 0x4eb   :  { %v2561_v56 = vadd.f32 %v2560_v2, %v2352_v28 }
 0x4ec   :  { %v2772_v45 = vpop.f32.mrf.mxu0 }
 0x4ed   :  { %v8252_v61 = vadd.f32 %v2769_v1, %v2561_v56  ;;  %2401 = vmatmul.f32.gmra.mxu2 %v697_v20  ;;  %v2575_v32 = vpop.f32.mrf.mxu3  ;;  %v699_v20 = vld [vmem:[#allocation2 + $0x2c0] sm:$0xff] }
 0x4ef   :  { %11640 = vst [vmem:[#allocation58_spill] sm:$0xff] %v8252_v61  ;;  %2819 = vmatmul.f32.gmra.mxu0 %v825_v51 }
 0x4f0   :  { %v2354_v9 = vpop.f32.mrf.mxu2 }
 0x4f1   :  { %v2355_v38 = vadd.f32 %v2354_v9, %v7953_v39  ;;  %2625 = vmatmul.f32.gmra.mxu3 %v766_v13  ;;  %v3933_v39 = vld [vmem:[%s11332_s4 + $0x38] sm:$0xff] }
 0x4f2   :  { %4078 = vmatpush.msra.mxu1 %v3933_v39  ;;  %v828_v39 = vld [vmem:[#allocation2 + $0x2d2] sm:$0xff] }
 0x4f3   :  { %v2564_v34 = vadd.f32 %v2563_v12, %v2355_v38  ;;  %v8265_v38 = vpop.f32.mrf.mxu1 }
 0x4f4   :  { %v2775_v48 = vpop.f32.mrf.mxu0 }
 0x4f5   :  { %v8257_v2 = vadd.f32 %v2772_v45, %v2564_v34  ;;  %2404 = vmatmul.f32.gmra.mxu2 %v698_v6  ;;  %v2578_v56 = vpop.f32.mrf.mxu3  ;;  %v767_v45 = vld [vmem:[#allocation2 + $0x2f1] sm:$0xff] }
 0x4f6   :  { %v700_v34 = vld [vmem:[#allocation2 + $0x2d0] sm:$0xff] }
 0x4f7   :  { %11641 = vst [vmem:[#allocation60_spill] sm:$0xff] %v8257_v2  ;;  %2822 = vmatmul.f32.gmra.mxu0 %v826_v25 }
 0x4f8   :  { %v2357_v1 = vpop.f32.mrf.mxu2 }
 0x4f9   :  { %v2358_v28 = vadd.f32 %v2357_v1, %v7963_v26  ;;  %2628 = vmatmul.f32.gmra.mxu3 %v767_v45 }
 0x4fb   :  { %v2567_v12 = vadd.f32 %v2566_v36, %v2358_v28  ;;  %v768_v28 = vld [vmem:[#allocation2 + $0x301] sm:$0xff] }
 0x4fc   :  { %v2778_v51 = vpop.f32.mrf.mxu0 }
 0x4fd   :  { %v8263_v9 = vadd.f32 %v2775_v48, %v2567_v12  ;;  %2407 = vmatmul.f32.gmra.mxu2 %v699_v20  ;;  %v2581_v13 = vpop.f32.mrf.mxu3  ;;  %v8270_v20 = vpop.f32.mrf.mxu1 }
 0x4ff   :  { %11642 = vst [vmem:[#allocation62_spill] sm:$0xff] %v8263_v9  ;;  %2825 = vmatmul.f32.gmra.mxu0 %v827_v41  ;;  %v701_v41 = vld [vmem:[#allocation2 + $0x2d8] sm:$0xff] }
 0x500   :  { %v2360_v6 = vpop.f32.mrf.mxu2 }
 0x501   :  { %v2361_v26 = vadd.f32 %v2360_v6, %v7976_v62  ;;  %2631 = vmatmul.f32.gmra.mxu3 %v768_v28 }
 0x503   :  { %v2570_v25 = vadd.f32 %v2569_v47, %v2361_v26  ;;  %v829_v47 = vld [vmem:[#allocation2 + $0x2da] sm:$0xff] }
 0x504   :  { %v2781_v1 = vpop.f32.mrf.mxu0 }
 0x505   :  { %v8268_v36 = vadd.f32 %v2778_v51, %v2570_v25  ;;  %2410 = vmatmul.f32.gmra.mxu2 %v700_v34  ;;  %v8273_v27 = vpop.f32.mrf.mxu3  ;;  %v769_v51 = vld [vmem:[#allocation2 + $0x309] sm:$0xff]  ;;  %v11645_v34 = vld [vmem:[#allocation27_spill] sm:$0xff]  ;;  %v8278_v28 = vpop.f32.mrf.mxu1 }
 0x507   :  { %11643 = vst [vmem:[#allocation64_spill] sm:$0xff] %v8268_v36  ;;  %2828 = vmatmul.f32.gmra.mxu0 %v828_v39  ;;  %v702_v39 = vld [vmem:[#allocation2 + $0x2e8] sm:$0xff] }
 0x508   :  { %v2363_v48 = vpop.f32.mrf.mxu2 }
 0x509   :  { %v2364_v12 = vadd.f32 %v2363_v48, %v7989_v30  ;;  %2634 = vmatmul.f32.gmra.mxu3 %v769_v51  ;;  %v830_v48 = vld [vmem:[#allocation2 + $0x2ea] sm:$0xff] }
 0x50a   :  { %v3932_v51 = vld [vmem:[%s11332_s4 + $0x30] sm:$0xff] }
 0x50b   :  { %v2573_v45 = vadd.f32 %v2572_v11, %v2364_v12  ;;  %4079 = vmatpush.msra.mxu1 %v3932_v51 }
 0x50c   :  { %v2784_v62 = vpop.f32.mrf.mxu0 }
 0x50d   :  { %v8275_v6 = vadd.f32 %v2781_v1, %v2573_v45  ;;  %2413 = vmatmul.f32.gmra.mxu2 %v701_v41  ;;  %v8280_v30 = vpop.f32.mrf.mxu3  ;;  %v770_v1 = vld [vmem:[#allocation2 + $0x319] sm:$0xff]  ;;  %v11647_v45 = vld [vmem:[#allocation20_spill] sm:$0xff] }
 0x50f   :  { %11644 = vst [vmem:[#allocation65_spill] sm:$0xff] %v8275_v6  ;;  %2831 = vmatmul.f32.gmra.mxu0 %v829_v47 }
 0x510   :  { %v2366_v26 = vpop.f32.mrf.mxu2 }
 0x511   :  { %v2367_v25 = vadd.f32 %v2366_v26, %v11645_v34  ;;  %2637 = vmatmul.f32.gmra.mxu3 %v770_v1  ;;  %v703_v26 = vld [vmem:[#allocation2 + $0x2f0] sm:$0xff]  ;;  %v11650_v1 = vld [vmem:[#allocation30_spill] sm:$0xff] }
 0x513   :  { %v2576_v3 = vadd.f32 %v2575_v32, %v2367_v25 }
 0x514   :  { %v2787_v11 = vpop.f32.mrf.mxu0 }
 0x515   :  { %v8282_v12 = vadd.f32 %v2784_v62, %v2576_v3  ;;  %2416 = vmatmul.f32.gmra.mxu2 %v702_v39  ;;  %v8288_v34 = vpop.f32.mrf.mxu3  ;;  %v8290_v3 = vpop.f32.mrf.mxu1  ;;  %v771_v39 = vld [vmem:[#allocation2 + $0x321] sm:$0xff] }
 0x516   :  { %11648 = vst [vmem:[#allocation20_spill] sm:$0xff] %v8288_v34  ;;  %v772_v34 = vld [vmem:[#allocation2 + $0x331] sm:$0xff] }
 0x517   :  { %11646 = vst [vmem:[#allocation27_spill] sm:$0xff] %v8282_v12  ;;  %2834 = vmatmul.f32.gmra.mxu0 %v830_v48 }
 0x518   :  { %v2369_v41 = vpop.f32.mrf.mxu2 }
 0x519   :  { %v2370_v47 = vadd.f32 %v2369_v41, %v11647_v45  ;;  %2640 = vmatmul.f32.gmra.mxu3 %v771_v39  ;;  %v704_v45 = vld [vmem:[#allocation2 + $0x300] sm:$0xff] }
 0x51b   :  { %v2579_v32 = vadd.f32 %v2578_v56, %v2370_v47  ;;  %v832_v47 = vld [vmem:[#allocation2 + $0x302] sm:$0xff] }
 0x51c   :  { %v2790_v25 = vpop.f32.mrf.mxu0 }
 0x51d   :  { %v8292_v62 = vadd.f32 %v2787_v11, %v2579_v32  ;;  %2419 = vmatmul.f32.gmra.mxu2 %v703_v26  ;;  %v8295_v54 = vpop.f32.mrf.mxu3  ;;  %v8301_v11 = vpop.f32.mrf.mxu1 }
 0x51e   :  { %11651 = vst [vmem:[#allocation30_spill] sm:$0xff] %v8295_v54 }
 0x51f   :  { %11649 = vst [vmem:[#allocation66_spill] sm:$0xff] %v8292_v62  ;;  %2837 = vmatmul.f32.gmra.mxu0 %v831_v42  ;;  %v705_v42 = vld [vmem:[#allocation2 + $0x308] sm:$0xff] }
 0x520   :  { %v2372_v48 = vpop.f32.mrf.mxu2  ;;  %11653 = vst [vmem:[#allocation68_spill] sm:$0xff] %v8301_v11  ;;  %v838_v11 = vld [vmem:[#allocation2 + $0x34a] sm:$0xff] }
 0x521   :  { %v2373_v41 = vadd.f32 %v2372_v48, %v11650_v1  ;;  %2643 = vmatmul.f32.gmra.mxu3 %v772_v34  ;;  %v773_v48 = vld [vmem:[#allocation2 + $0x339] sm:$0xff] }
 0x522   :  { %v834_v34 = vld [vmem:[#allocation2 + $0x31a] sm:$0xff] }
 0x523   :  { %v2582_v49 = vadd.f32 %v2581_v13, %v2373_v41  ;;  %v833_v13 = vld [vmem:[#allocation2 + $0x30a] sm:$0xff] }
 0x524   :  { %v8297_v56 = vpop.f32.mrf.mxu0 }
 0x525   :  { %v8299_v51 = vadd.f32 %v2790_v25, %v2582_v49  ;;  %2422 = vmatmul.f32.gmra.mxu2 %v704_v45  ;;  %v8305_v32 = vpop.f32.mrf.mxu3  ;;  %v8311_v49 = vpop.f32.mrf.mxu1  ;;  %v706_v25 = vld [vmem:[#allocation2 + $0x318] sm:$0xff] }
 0x526   :  { %11654 = vst [vmem:[#allocation69_spill] sm:$0xff] %v8305_v32 }
 0x527   :  { %11652 = vst [vmem:[#allocation67_spill] sm:$0xff] %v8299_v51  ;;  %2840 = vmatmul.f32.gmra.mxu0 %v832_v47  ;;  %v774_v47 = vld [vmem:[#allocation2 + $0x349] sm:$0xff]  ;;  %v836_v51 = vld [vmem:[#allocation2 + $0x332] sm:$0xff] }
 0x528   :  { %v8303_v26 = vpop.f32.mrf.mxu2  ;;  %11656 = vst [vmem:[#allocation71_spill] sm:$0xff] %v8311_v49 }
 0x529   :  { %2646 = vmatmul.f32.gmra.mxu3 %v773_v48 }
 0x52c   :  { %v8307_v39 = vpop.f32.mrf.mxu0 }
 0x52d   :  { %11655 = vst [vmem:[#allocation70_spill] sm:$0xff] %v8307_v39  ;;  %2425 = vmatmul.f32.gmra.mxu2 %v705_v42  ;;  %v8313_v41 = vpop.f32.mrf.mxu3  ;;  %v3931_v42 = vld [vmem:[%s11332_s4 + $0x28] sm:$0xff]  ;;  %v8322_v48 = vpop.f32.mrf.mxu1 }
 0x52e   :  { %11657 = vst [vmem:[#allocation72_spill] sm:$0xff] %v8313_v41  ;;  %4080 = vmatpush.msra.mxu1 %v3931_v42 }
 0x52f   :  { %2843 = vmatmul.f32.gmra.mxu0 %v833_v13  ;;  %v707_v13 = vld [vmem:[#allocation2 + $0x320] sm:$0xff]  ;;  %11659 = vst [vmem:[#allocation74_spill] sm:$0xff] %v8322_v48 }
 0x530   :  { %v8309_v1 = vpop.f32.mrf.mxu2 }
 0x531   :  { %2649 = vmatmul.f32.gmra.mxu3 %v774_v47  ;;  %v708_v47 = vld [vmem:[#allocation2 + $0x330] sm:$0xff] }
 0x534   :  { %v8315_v45 = vpop.f32.mrf.mxu0 }
 0x535   :  { %11658 = vst [vmem:[#allocation73_spill] sm:$0xff] %v8315_v45  ;;  %2428 = vmatmul.f32.gmra.mxu2 %v706_v25  ;;  %v8324_v54 = vpop.f32.mrf.mxu3  ;;  %v835_v45 = vld [vmem:[#allocation2 + $0x322] sm:$0xff]  ;;  %v775_v25 = vld [vmem:[#allocation2 + $0x351] sm:$0xff]  ;;  %v8334_v42 = vpop.f32.mrf.mxu1 }
 0x536   :  { %11660 = vst [vmem:[#allocation75_spill] sm:$0xff] %v8324_v54 }
 0x537   :  { %2846 = vmatmul.f32.gmra.mxu0 %v834_v34  ;;  %11664 = vst [vmem:[#allocation79_spill] sm:$0xff] %v8334_v42 }
 0x538   :  { %v8317_v32 = vpop.f32.mrf.mxu2 }
 0x539   :  { %2652 = vmatmul.f32.gmra.mxu3 %v775_v25 }
 0x53c   :  { %v8326_v41 = vpop.f32.mrf.mxu0 }
 0x53d   :  { %11661 = vst [vmem:[#allocation76_spill] sm:$0xff] %v8326_v41  ;;  %2431 = vmatmul.f32.gmra.mxu2 %v707_v13  ;;  %v8330_v49 = vpop.f32.mrf.mxu3  ;;  %v709_v41 = vld [vmem:[#allocation2 + $0x338] sm:$0xff]  ;;  %v8342_v25 = vpop.f32.mrf.mxu1 }
 0x53e   :  { %11662 = vst [vmem:[#allocation77_spill] sm:$0xff] %v8330_v49 }
 0x53f   :  { %2849 = vmatmul.f32.gmra.mxu0 %v835_v45  ;;  %v837_v45 = vld [vmem:[#allocation2 + $0x33a] sm:$0xff]  ;;  %11668 = vst [vmem:[#allocation83_spill] sm:$0xff] %v8342_v25 }
 0x540   :  { %v8328_v34 = vpop.f32.mrf.mxu2 }
 0x544   :  { %v8332_v39 = vpop.f32.mrf.mxu0 }
 0x545   :  { %11663 = vst [vmem:[#allocation78_spill] sm:$0xff] %v8332_v39  ;;  %2434 = vmatmul.f32.gmra.mxu2 %v708_v47  ;;  %v8338_v48 = vpop.f32.mrf.mxu3  ;;  %v8353_v47 = vpop.f32.mrf.mxu1 }
 0x546   :  { %11666 = vst [vmem:[#allocation81_spill] sm:$0xff] %v8338_v48  ;;  %v839_v48 = vld [vmem:[#allocation2 + $0x352] sm:$0xff] }
 0x547   :  { %2852 = vmatmul.f32.gmra.mxu0 %v836_v51  ;;  %11673 = vst [vmem:[#allocation88_spill] sm:$0xff] %v8353_v47  ;;  %v2935_v47 = vmul.f32 %v8131_v40, %v8131_v40 }
 0x548   :  { %v8336_v54 = vpop.f32.mrf.mxu2 }
 0x549   :  { %11665 = vst [vmem:[#allocation80_spill] sm:$0xff] %v8336_v54 }
 0x54c   :  { %v8340_v13 = vpop.f32.mrf.mxu0 }
 0x54d   :  { %11667 = vst [vmem:[#allocation82_spill] sm:$0xff] %v8340_v13  ;;  %2437 = vmatmul.f32.gmra.mxu2 %v709_v41  ;;  %v8348_v42 = vpop.f32.mrf.mxu3  ;;  %v3930_v41 = vld [vmem:[%s11332_s4 + $0x20] sm:$0xff] }
 0x54e   :  { %11671 = vst [vmem:[#allocation86_spill] sm:$0xff] %v8348_v42  ;;  %4081 = vmatpush.msra.mxu1 %v3930_v41  ;;  %v2934_v41 = vmul.f32 %v8128_v5, %v8128_v5 }
 0x54f   :  { %2855 = vmatmul.f32.gmra.mxu0 %v837_v45 }
 0x550   :  { %v8344_v49 = vpop.f32.mrf.mxu2 }
 0x551   :  { %11669 = vst [vmem:[#allocation84_spill] sm:$0xff] %v8344_v49 }
 0x554   :  { %v8346_v39 = vpop.f32.mrf.mxu0 }
 0x555   :  { %11670 = vst [vmem:[#allocation85_spill] sm:$0xff] %v8346_v39  ;;  %2440 = vmatmul.f32.gmra.mxu2 %v8178_v60  ;;  %v8361_v39 = vpop.f32.mrf.mxu3 }
 0x556   :  { %11675 = vst [vmem:[#allocation90_spill] sm:$0xff] %v8361_v39  ;;  %v2998_v39 = vadd.f32 %v2935_v47, %v2934_v41 }
 0x557   :  { %2858 = vmatmul.f32.gmra.mxu0 %v838_v11  ;;  %v8365_v11 = vpop.f32.mrf.mxu1 }
 0x558   :  { %v8351_v51 = vpop.f32.mrf.mxu2  ;;  %11677 = vst [vmem:[#allocation92_spill] sm:$0xff] %v8365_v11 }
 0x559   :  { %11672 = vst [vmem:[#allocation87_spill] sm:$0xff] %v8351_v51  ;;  %v2938_v51 = vmul.f32 %v8143_v57, %v8143_v57 }
 0x55c   :  { %v8358_v45 = vpop.f32.mrf.mxu0 }
 0x55d   :  { %11674 = vst [vmem:[#allocation89_spill] sm:$0xff] %v8358_v45  ;;  %2443 = vmatmul.f32.gmra.mxu2 %v8178_v60  ;;  %v2936_v45 = vmul.f32 %v8137_v50, %v8137_v50  ;;  %v8377_v60 = vpop.f32.mrf.mxu3 }
 0x55e   :  { %11680 = vst [vmem:[#allocation95_spill] sm:$0xff] %v8377_v60 }
 0x55f   :  { %2861 = vmatmul.f32.gmra.mxu0 %v839_v48  ;;  %v2865_v48 = vadd.f32 %v8131_v40, %v8128_v5  ;;  %v8388_v54 = vpop.f32.mrf.mxu1  ;;  %v2939_v40 = vmul.f32 %v8146_v44, %v8146_v44  ;;  %v2941_v5 = vmul.f32 %v8155_v35, %v8155_v35 }
 0x560   :  { %v8363_v42 = vpop.f32.mrf.mxu2 }
 0x561   :  { %11676 = vst [vmem:[#allocation91_spill] sm:$0xff] %v8363_v42  ;;  %v2866_v11 = vadd.f32 %v2865_v48, %v8137_v50  ;;  %v2999_v42 = vadd.f32 %v2998_v39, %v2936_v45  ;;  %v2940_v48 = vmul.f32 %v8152_v33, %v8152_v33 }
 0x564   :  { %v8367_v13 = vpop.f32.mrf.mxu0 }
 0x565   :  { %11678 = vst [vmem:[#allocation93_spill] sm:$0xff] %v8367_v13  ;;  %v2937_v13 = vmul.f32 %v8140_v24, %v8140_v24 }
 0x567   :  { %v3000_v60 = vadd.f32 %v2999_v42, %v2937_v13 }
 0x568   :  { %v8375_v25 = vpop.f32.mrf.mxu2 }
 0x569   :  { %11679 = vst [vmem:[#allocation94_spill] sm:$0xff] %v8375_v25  ;;  %v2867_v25 = vadd.f32 %v2866_v11, %v8140_v24  ;;  %v3001_v41 = vadd.f32 %v3000_v60, %v2938_v51 }
 0x56b   :  { %v2868_v47 = vadd.f32 %v2867_v25, %v8143_v57  ;;  %v3002_v50 = vadd.f32 %v3001_v41, %v2939_v40  ;;  %v2942_v25 = vmul.f32 %v8158_v31, %v8158_v31  ;;  %v8411_v40 = vpop.f32.mrf.mxu1 }
 0x56c   :  { %v8386_v49 = vpop.f32.mrf.mxu0 }
 0x56d   :  { %11681 = vst [vmem:[#allocation96_spill] sm:$0xff] %v8386_v49  ;;  %v2869_v45 = vadd.f32 %v2868_v47, %v8146_v44  ;;  %v8401_v49 = vpop.f32.mrf.mxu3  ;;  %v3003_v13 = vadd.f32 %v3002_v50, %v2940_v48  ;;  %v2943_v47 = vmul.f32 %v8161_v23, %v8161_v23 }
 0x56f   :  { %v2870_v42 = vadd.f32 %v2869_v45, %v8152_v33  ;;  %v3004_v60 = vadd.f32 %v3003_v13, %v2941_v5  ;;  %v2944_v45 = vmul.f32 %v8167_v59, %v8167_v59  ;;  %v2945_v13 = vmul.f32 %v8170_v18, %v8170_v18 }
 0x570   :  { %v8396_v39 = vpop.f32.mrf.mxu2 }
 0x571   :  { %v2871_v11 = vadd.f32 %v2870_v42, %v8155_v35  ;;  %v3005_v44 = vadd.f32 %v3004_v60, %v2942_v25  ;;  %v3929_v42 = vld [vmem:[%s11332_s4 + $0x18] sm:$0xff]  ;;  %v2946_v25 = vmul.f32 %v8173_v15, %v8173_v15 }
 0x572   :  { %4082 = vmatpush.msra.mxu1 %v3929_v42 }
 0x573   :  { %v2872_v41 = vadd.f32 %v2871_v11, %v8158_v31  ;;  %v3006_v5 = vadd.f32 %v3005_v44, %v2943_v47  ;;  %v2947_v44 = vmul.f32 %v8176_v46, %v8176_v46  ;;  %v8439_v42 = vpop.f32.mrf.mxu1 }
 0x574   :  { %v8406_v51 = vpop.f32.mrf.mxu0 }
 0x575   :  { %v2873_v48 = vadd.f32 %v2872_v41, %v8161_v23  ;;  %v3007_v11 = vadd.f32 %v3006_v5, %v2944_v45  ;;  %v8429_v31 = vpop.f32.mrf.mxu3 }
 0x577   :  { %v2874_v35 = vadd.f32 %v2873_v48, %v8167_v59  ;;  %v3008_v23 = vadd.f32 %v3007_v11, %v2945_v13  ;;  %v2948_v48 = vmul.f32 %v8185_v43, %v8185_v43 }
 0x578   :  { %v8416_v50 = vpop.f32.mrf.mxu2 }
 0x579   :  { %v2875_v41 = vadd.f32 %v2874_v35, %v8170_v18  ;;  %v3009_v33 = vadd.f32 %v3008_v23, %v2946_v25  ;;  %v2949_v35 = vmul.f32 %v8189_v52, %v8189_v52  ;;  %v2951_v18 = vmul.f32 %v8195_v37, %v8195_v37 }
 0x57b   :  { %v2876_v47 = vadd.f32 %v2875_v41, %v8173_v15  ;;  %v3010_v59 = vadd.f32 %v3009_v33, %v2947_v44  ;;  %v2950_v41 = vmul.f32 %v8192_v17, %v8192_v17 }
 0x57c   :  { %v8427_v60 = vpop.f32.mrf.mxu0 }
 0x57d   :  { %v2877_v5 = vadd.f32 %v2876_v47, %v8176_v46  ;;  %v3011_v11 = vadd.f32 %v3010_v59, %v2948_v48  ;;  %v8452_v57 = vpop.f32.mrf.mxu3  ;;  %v2952_v47 = vmul.f32 %v8201_v10, %v8201_v10  ;;  %v11708_v46 = vld [vmem:[#allocation72_spill] sm:$0xff] }
 0x57f   :  { %v2878_v13 = vadd.f32 %v2877_v5, %v8185_v43  ;;  %v3012_v15 = vadd.f32 %v3011_v11, %v2949_v35  ;;  %v8462_v35 = vpop.f32.mrf.mxu1 }
 0x580   :  { %v8437_v45 = vpop.f32.mrf.mxu2 }
 0x581   :  { %v2879_v25 = vadd.f32 %v2878_v13, %v8189_v52  ;;  %v3013_v44 = vadd.f32 %v3012_v15, %v2950_v41  ;;  %v2953_v13 = vmul.f32 %v8204_v29, %v8204_v29 }
 0x583   :  { %v2880_v33 = vadd.f32 %v2879_v25, %v8192_v17  ;;  %v3014_v5 = vadd.f32 %v3013_v44, %v2951_v18  ;;  %v2954_v25 = vmul.f32 %v8207_v55, %v8207_v55 }
 0x584   :  { %v8447_v23 = vpop.f32.mrf.mxu0 }
 0x585   :  { %v2881_v48 = vadd.f32 %v2880_v33, %v8195_v37  ;;  %v3015_v52 = vadd.f32 %v3014_v5, %v2952_v47  ;;  %v2955_v33 = vmul.f32 %v8210_v63, %v8210_v63  ;;  %v2956_v37 = vmul.f32 %v8216_v22, %v8216_v22  ;;  %v8477_v47 = vpop.f32.mrf.mxu3 }
 0x587   :  { %v2882_v11 = vadd.f32 %v2881_v48, %v8201_v10  ;;  %v3016_v17 = vadd.f32 %v3015_v52, %v2953_v13 }
 0x588   :  { %v8457_v59 = vpop.f32.mrf.mxu2 }
 0x589   :  { %v2883_v41 = vadd.f32 %v2882_v11, %v8204_v29  ;;  %v3017_v44 = vadd.f32 %v3016_v17, %v2954_v25  ;;  %v2957_v11 = vmul.f32 %v8219_v53, %v8219_v53  ;;  %v8487_v25 = vpop.f32.mrf.mxu1 }
 0x58b   :  { %v2884_v18 = vadd.f32 %v2883_v41, %v8207_v55  ;;  %v3018_v5 = vadd.f32 %v3017_v44, %v2955_v33  ;;  %v2958_v41 = vmul.f32 %v8222_v7, %v8222_v7 }
 0x58c   :  { %v8467_v15 = vpop.f32.mrf.mxu0 }
 0x58d   :  { %v2885_v48 = vadd.f32 %v2884_v18, %v8210_v63  ;;  %v3019_v13 = vadd.f32 %v3018_v5, %v2956_v37  ;;  %v2959_v18 = vmul.f32 %v8225_v14, %v8225_v14 }
 0x58f   :  { %v2886_v52 = vadd.f32 %v2885_v48, %v8216_v22  ;;  %v3020_v29 = vadd.f32 %v3019_v13, %v2957_v11  ;;  %v2960_v48 = vmul.f32 %v8231_v4, %v8231_v4  ;;  %v3928_v22 = vld [vmem:[%s11332_s4 + $0x10] sm:$0xff]  ;;  %v2961_v11 = vmul.f32 %v8234_v0, %v8234_v0 }
 0x590   :  { %v8475_v43 = vpop.f32.mrf.mxu2  ;;  %4083 = vmatpush.msra.mxu1 %v3928_v22  ;;  %v2962_v13 = vmul.f32 %v8237_v16, %v8237_v16  ;;  %v2964_v22 = vmul.f32 %v8246_v58, %v8246_v58 }
 0x591   :  { %v2887_v55 = vadd.f32 %v2886_v52, %v8219_v53  ;;  %v3021_v44 = vadd.f32 %v3020_v29, %v2958_v41  ;;  %v8503_v52 = vpop.f32.mrf.mxu3 }
 0x593   :  { %v2888_v33 = vadd.f32 %v2887_v55, %v8222_v7  ;;  %v3022_v63 = vadd.f32 %v3021_v44, %v2959_v18  ;;  %v2963_v18 = vmul.f32 %v8240_v19, %v8240_v19  ;;  %v8513_v44 = vpop.f32.mrf.mxu1 }
 0x594   :  { %v8485_v17 = vpop.f32.mrf.mxu0 }
 0x595   :  { %v2889_v5 = vadd.f32 %v2888_v33, %v8225_v14  ;;  %v3023_v55 = vadd.f32 %v3022_v63, %v2960_v48 }
 0x597   :  { %v2890_v29 = vadd.f32 %v2889_v5, %v8231_v4  ;;  %v3024_v14 = vadd.f32 %v3023_v55, %v2961_v11 }
 0x598   :  { %v8495_v37 = vpop.f32.mrf.mxu2 }
 0x599   :  { %v2891_v33 = vadd.f32 %v2890_v29, %v8234_v0  ;;  %v3025_v53 = vadd.f32 %v3024_v14, %v2962_v13  ;;  %v2965_v29 = vmul.f32 %v8249_v8, %v8249_v8  ;;  %v2966_v0 = vmul.f32 %v8252_v61, %v8252_v61  ;;  %v8528_v14 = vpop.f32.mrf.mxu3 }
 0x59b   :  { %v2892_v7 = vadd.f32 %v2891_v33, %v8237_v16  ;;  %v3026_v5 = vadd.f32 %v3025_v53, %v2963_v18  ;;  %v11682_v33 = vld [vmem:[#allocation22_spill] sm:$0xff]  ;;  %v2967_v53 = vmul.f32 %v8257_v2, %v8257_v2 }
 0x59c   :  { %v8508_v41 = vpop.f32.mrf.mxu0  ;;  %v2167_v16 = vadd.f32 %v8255_v21, %v11682_v33 }
 0x59d   :  { %v2893_v48 = vadd.f32 %v2892_v7, %v8240_v19  ;;  %v3027_v55 = vadd.f32 %v3026_v5, %v2964_v22 }
 0x59e   :  { %v2376_v19 = vadd.f32 %v8303_v26, %v2167_v16  ;;  %v2970_v16 = vmul.f32 %v8275_v6, %v8275_v6 }
 0x59f   :  { %v2894_v11 = vadd.f32 %v2893_v48, %v8246_v58  ;;  %v3028_v7 = vadd.f32 %v3027_v55, %v2965_v29  ;;  %v11683_v48 = vld [vmem:[#allocation33_spill] sm:$0xff]  ;;  %v2968_v58 = vmul.f32 %v8263_v9, %v8263_v9  ;;  %v11684_v29 = vld [vmem:[#allocation24_spill] sm:$0xff] }
 0x5a0   :  { %v8518_v63 = vpop.f32.mrf.mxu2  ;;  %v2170_v22 = vadd.f32 %v8265_v38, %v11683_v48  ;;  %v2173_v55 = vadd.f32 %v8270_v20, %v11684_v29  ;;  %v2585_v26 = vadd.f32 %v8273_v27, %v2376_v19 }
 0x5a1   :  { %v2895_v13 = vadd.f32 %v2894_v11, %v8249_v8  ;;  %v3029_v5 = vadd.f32 %v3028_v7, %v2966_v0  ;;  %v8543_v11 = vpop.f32.mrf.mxu1  ;;  %v11704_v8 = vld [vmem:[#allocation87_spill] sm:$0xff] }
 0x5a2   :  { %v2379_v0 = vadd.f32 %v8309_v1, %v2170_v22  ;;  %v2382_v48 = vadd.f32 %v8317_v32, %v2173_v55  ;;  %v2971_v1 = vmul.f32 %v8282_v12, %v8282_v12  ;;  %v8564_v22 = vpop.f32.mrf.mxu3  ;;  %v11688_v55 = vld [vmem:[#allocation20_spill] sm:$0xff] }
 0x5a3   :  { %v2896_v18 = vadd.f32 %v2895_v13, %v8252_v61  ;;  %v3030_v33 = vadd.f32 %v3029_v5, %v2967_v53  ;;  %v2969_v13 = vmul.f32 %v8268_v36, %v8268_v36 }
 0x5a4   :  { %v8526_v4 = vpop.f32.mrf.mxu0 }
 0x5a5   :  { %v2897_v21 = vadd.f32 %v2896_v18, %v8257_v2  ;;  %v3031_v7 = vadd.f32 %v3030_v33, %v2968_v58  ;;  %v11685_v2 = vld [vmem:[#allocation36_spill] sm:$0xff]  ;;  %v2588_v58 = vadd.f32 %v8280_v30, %v2379_v0  ;;  %v2591_v33 = vadd.f32 %v11688_v55, %v2382_v48  ;;  %v11689_v30 = vld [vmem:[#allocation39_spill] sm:$0xff]  ;;  %v11697_v55 = vld [vmem:[#allocation30_spill] sm:$0xff] }
 0x5a6   :  { %v2176_v20 = vadd.f32 %v8278_v28, %v11685_v2  ;;  %v2972_v2 = vmul.f32 %v8292_v62, %v8292_v62  ;;  %v8573_v28 = vadd.f32 %v8297_v56, %v2585_v26  ;;  %v11690_v0 = vld [vmem:[#allocation68_spill] sm:$0xff]  ;;  %v11695_v56 = vld [vmem:[#allocation29_spill] sm:$0xff]  ;;  %v11696_v26 = vld [vmem:[#allocation71_spill] sm:$0xff] }
 0x5a7   :  { %v2898_v38 = vadd.f32 %v2897_v21, %v8263_v9  ;;  %v3032_v5 = vadd.f32 %v3031_v7, %v2969_v13  ;;  %v11686_v21 = vld [vmem:[#allocation26_spill] sm:$0xff]  ;;  %v11691_v7 = vld [vmem:[#allocation80_spill] sm:$0xff] }
 0x5a8   :  { %v8541_v10 = vpop.f32.mrf.mxu2  ;;  %v2179_v27 = vadd.f32 %v8290_v3, %v11686_v21  ;;  %v2385_v32 = vadd.f32 %v8328_v34, %v2176_v20  ;;  %11687 = vst [vmem:[#allocation22_spill] sm:$0xff] %v8573_v28  ;;  %v11692_v34 = vld [vmem:[#allocation67_spill] sm:$0xff]  ;;  %v11693_v20 = vld [vmem:[#allocation70_spill] sm:$0xff]  ;;  %v11698_v9 = vld [vmem:[#allocation84_spill] sm:$0xff] }
 0x5a9   :  { %v2899_v53 = vadd.f32 %v2898_v38, %v8268_v36  ;;  %v3033_v29 = vadd.f32 %v3032_v5, %v2970_v16  ;;  %v2182_v38 = vadd.f32 %v11690_v0, %v11689_v30  ;;  %v2973_v16 = vmul.f32 %v11692_v34, %v11692_v34  ;;  %v8589_v48 = vpop.f32.mrf.mxu1 }
 0x5aa   :  { %v2388_v3 = vadd.f32 %v11691_v7, %v2179_v27  ;;  %v8585_v5 = vadd.f32 %v11693_v20, %v2588_v58  ;;  %v2594_v36 = vadd.f32 %v11697_v55, %v2385_v32  ;;  %v11701_v7 = vld [vmem:[#allocation42_spill] sm:$0xff] }
 0x5ab   :  { %v2900_v19 = vadd.f32 %v2899_v53, %v8275_v6  ;;  %v3034_v21 = vadd.f32 %v3033_v29, %v2971_v1  ;;  %v2185_v6 = vadd.f32 %v11696_v26, %v11695_v56  ;;  %v2391_v30 = vadd.f32 %v11698_v9, %v2182_v38  ;;  %v11702_v20 = vld [vmem:[#allocation74_spill] sm:$0xff]  ;;  %v11703_v26 = vld [vmem:[#allocation69_spill] sm:$0xff] }
 0x5ac   :  { %v8556_v18 = vpop.f32.mrf.mxu0  ;;  %11694 = vst [vmem:[#allocation33_spill] sm:$0xff] %v8585_v5  ;;  %v2974_v1 = vmul.f32 %v8573_v28, %v8573_v28  ;;  %v2188_v56 = vadd.f32 %v11702_v20, %v11701_v7  ;;  %v2597_v61 = vadd.f32 %v11703_v26, %v2388_v3 }
 0x5ad   :  { %v2901_v53 = vadd.f32 %v2900_v19, %v8282_v12  ;;  %v3035_v0 = vadd.f32 %v3034_v21, %v2972_v2  ;;  %v11699_v19 = vld [vmem:[#allocation73_spill] sm:$0xff]  ;;  %v2394_v32 = vadd.f32 %v11704_v8, %v2185_v6  ;;  %v2975_v2 = vmul.f32 %v8585_v5, %v8585_v5  ;;  %v11706_v21 = vld [vmem:[#allocation79_spill] sm:$0xff] }
 0x5ae   :  { %v8597_v29 = vadd.f32 %v11699_v19, %v2591_v33  ;;  %v11707_v33 = vld [vmem:[#allocation76_spill] sm:$0xff]  ;;  %v11709_v12 = vld [vmem:[#allocation91_spill] sm:$0xff] }
 0x5af   :  { %v2902_v27 = vadd.f32 %v2901_v53, %v8292_v62  ;;  %v3036_v38 = vadd.f32 %v3035_v0, %v2973_v16  ;;  %v11705_v53 = vld [vmem:[#allocation32_spill] sm:$0xff]  ;;  %v8611_v19 = vadd.f32 %v11707_v33, %v2594_v36  ;;  %v2600_v62 = vadd.f32 %v11708_v46, %v2391_v30  ;;  %v8620_v16 = vpop.f32.mrf.mxu3  ;;  %v11711_v0 = vld [vmem:[#allocation83_spill] sm:$0xff]  ;;  %v11714_v30 = vld [vmem:[#allocation94_spill] sm:$0xff] }
 0x5b0   :  { %v8576_v13 = vpop.f32.mrf.mxu2  ;;  %11700 = vst [vmem:[#allocation24_spill] sm:$0xff] %v8597_v29  ;;  %v2191_v55 = vadd.f32 %v11706_v21, %v11705_v53  ;;  %v2397_v7 = vadd.f32 %v11709_v12, %v2188_v56  ;;  %v2976_v8 = vmul.f32 %v8597_v29, %v8597_v29  ;;  %v11712_v53 = vld [vmem:[#allocation78_spill] sm:$0xff]  ;;  %v11713_v21 = vld [vmem:[#allocation75_spill] sm:$0xff] }
 0x5b1   :  { %v2903_v9 = vadd.f32 %v2902_v27, %v11692_v34  ;;  %v3037_v20 = vadd.f32 %v3036_v38, %v2974_v1  ;;  %v11710_v27 = vld [vmem:[#allocation45_spill] sm:$0xff]  ;;  %v8625_v36 = vadd.f32 %v11712_v53, %v2597_v61  ;;  %v2603_v46 = vadd.f32 %v11713_v21, %v2394_v32  ;;  %v3927_v1 = vld [vmem:[%s11332_s4 + $0x8] sm:$0xff]  ;;  %v11715_v56 = vld [vmem:[#allocation35_spill] sm:$0xff] }
 0x5b2   :  { %v2194_v26 = vadd.f32 %v11711_v0, %v11710_v27  ;;  %v2400_v12 = vadd.f32 %v11714_v30, %v2191_v55  ;;  %4084 = vmatpush.msra.mxu1 %v3927_v1  ;;  %v2977_v27 = vmul.f32 %v8611_v19, %v8611_v19  ;;  %v11717_v61 = vld [vmem:[#allocation82_spill] sm:$0xff]  ;;  %v11718_v32 = vld [vmem:[#allocation77_spill] sm:$0xff] }
 0x5b3   :  { %v2904_v3 = vadd.f32 %v2903_v9, %v8573_v28  ;;  %v11716_v9 = vld [vmem:[#allocation88_spill] sm:$0xff]  ;;  %v3038_v28 = vadd.f32 %v3037_v20, %v2975_v2  ;;  %v8638_v0 = vadd.f32 %v11717_v61, %v2600_v62  ;;  %v2606_v53 = vadd.f32 %v11718_v32, %v2397_v7  ;;  %v11720_v1 = vld [vmem:[#allocation81_spill] sm:$0xff] }
 0x5b4   :  { %v8599_v58 = vpop.f32.mrf.mxu0  ;;  %v2197_v38 = vadd.f32 %v11716_v9, %v11715_v56  ;;  %v2403_v55 = vadd.f32 %v8396_v39, %v2194_v26  ;;  %v8645_v56 = vpop.f32.mrf.mxu1  ;;  %v2978_v2 = vmul.f32 %v8625_v36, %v8625_v36  ;;  %v2609_v62 = vadd.f32 %v11720_v1, %v2400_v12  ;;  %v11721_v7 = vld [vmem:[#allocation48_spill] sm:$0xff] }
 0x5b5   :  { %v2905_v33 = vadd.f32 %v2904_v3, %v8585_v5  ;;  %v3039_v30 = vadd.f32 %v3038_v28, %v2976_v8  ;;  %v11719_v3 = vld [vmem:[#allocation85_spill] sm:$0xff]  ;;  %v11722_v61 = vld [vmem:[#allocation92_spill] sm:$0xff]  ;;  %v2979_v8 = vmul.f32 %v8638_v0, %v8638_v0 }
 0x5b6   :  { %v8650_v20 = vadd.f32 %v11719_v3, %v2603_v46  ;;  %v2406_v9 = vadd.f32 %v8416_v50, %v2197_v38  ;;  %v2200_v39 = vadd.f32 %v11722_v61, %v11721_v7  ;;  %v11725_v46 = vld [vmem:[#allocation38_spill] sm:$0xff] }
 0x5b7   :  { %v2906_v21 = vadd.f32 %v2905_v33, %v8597_v29  ;;  %v3040_v28 = vadd.f32 %v3039_v30, %v2977_v27  ;;  %v11723_v33 = vld [vmem:[#allocation89_spill] sm:$0xff]  ;;  %v11724_v29 = vld [vmem:[#allocation86_spill] sm:$0xff]  ;;  %v2203_v3 = vadd.f32 %v8388_v54, %v11725_v46  ;;  %v11731_v46 = vld [vmem:[#allocation95_spill] sm:$0xff] }
 0x5b8   :  { %v8618_v6 = vpop.f32.mrf.mxu2  ;;  %v8660_v32 = vadd.f32 %v11723_v33, %v2606_v53  ;;  %v2612_v5 = vadd.f32 %v11724_v29, %v2403_v55  ;;  %v2409_v50 = vadd.f32 %v8437_v45, %v2200_v39  ;;  %v2980_v27 = vmul.f32 %v8650_v20, %v8650_v20  ;;  %v11727_v53 = vld [vmem:[#allocation90_spill] sm:$0xff]  ;;  %v11729_v39 = vld [vmem:[#allocation96_spill] sm:$0xff] }
 0x5b9   :  { %v2907_v26 = vadd.f32 %v2906_v21, %v8611_v19  ;;  %v3041_v1 = vadd.f32 %v3040_v28, %v2978_v2  ;;  %v11726_v21 = vld [vmem:[#allocation93_spill] sm:$0xff]  ;;  %v2615_v7 = vadd.f32 %v11727_v53, %v2406_v9  ;;  %v11728_v61 = vld [vmem:[#allocation50_spill] sm:$0xff]  ;;  %v2412_v55 = vadd.f32 %v8457_v59, %v2203_v3 }
 0x5ba   :  { %v8672_v30 = vadd.f32 %v11726_v21, %v2609_v62  ;;  %v2206_v29 = vadd.f32 %v8411_v40, %v11728_v61  ;;  %v2981_v2 = vmul.f32 %v8660_v32, %v8660_v32  ;;  %v8684_v28 = vadd.f32 %v11729_v39, %v2612_v5  ;;  %v11730_v62 = vld [vmem:[#allocation41_spill] sm:$0xff]  ;;  %v11733_v61 = vld [vmem:[#allocation44_spill] sm:$0xff] }
 0x5bb   :  { %v2908_v12 = vadd.f32 %v2907_v26, %v8625_v36  ;;  %v8679_v26 = vpop.f32.mrf.mxu3  ;;  %v3042_v45 = vadd.f32 %v3041_v1, %v2979_v8  ;;  %v2209_v33 = vadd.f32 %v8439_v42, %v11730_v62  ;;  %v2618_v40 = vadd.f32 %v11731_v46, %v2409_v50  ;;  %v11732_v5 = vld [vmem:[#allocation53_spill] sm:$0xff] }
 0x5bc   :  { %v8643_v34 = vpop.f32.mrf.mxu0  ;;  %v2982_v8 = vmul.f32 %v8672_v30, %v8672_v30  ;;  %v8696_v3 = vadd.f32 %v8406_v51, %v2615_v7  ;;  %v2212_v1 = vadd.f32 %v8462_v35, %v11732_v5  ;;  %v2621_v53 = vadd.f32 %v8401_v49, %v2412_v55 }
 0x5bd   :  { %v2909_v54 = vadd.f32 %v2908_v12, %v8638_v0  ;;  %v2415_v12 = vadd.f32 %v8475_v43, %v2206_v29  ;;  %v3043_v59 = vadd.f32 %v3042_v45, %v2980_v27  ;;  %v2418_v50 = vadd.f32 %v8495_v37, %v2209_v33  ;;  %v2229_v29 = vpop.f32.mrf.mxu1 }
 0x5be   :  { %v2215_v43 = vadd.f32 %v8487_v25, %v11733_v61  ;;  %v8709_v7 = vadd.f32 %v8427_v60, %v2618_v40  ;;  %v2421_v45 = vadd.f32 %v8518_v63, %v2212_v1  ;;  %v2984_v37 = vmul.f32 %v8696_v3, %v8696_v3  ;;  %v11734_v60 = vld [vmem:[#allocation56_spill] sm:$0xff] }
 0x5bf   :  { %v2910_v9 = vadd.f32 %v2909_v54, %v8650_v20  ;;  %v3044_v27 = vadd.f32 %v3043_v59, %v2981_v2  ;;  %v2983_v54 = vmul.f32 %v8684_v28, %v8684_v28  ;;  %v2624_v35 = vadd.f32 %v8429_v31, %v2415_v12  ;;  %v11735_v12 = vld [vmem:[#allocation47_spill] sm:$0xff] }
 0x5c0   :  { %v8667_v38 = vpop.f32.mrf.mxu2  ;;  %v8717_v2 = vadd.f32 %v8447_v23, %v2621_v53  ;;  %v2627_v39 = vadd.f32 %v8452_v57, %v2418_v50  ;;  %v2424_v62 = vadd.f32 %v8541_v10, %v2215_v43  ;;  %v2218_v33 = vadd.f32 %v8513_v44, %v11734_v60 }
 0x5c1   :  { %v2911_v42 = vadd.f32 %v2910_v9, %v8660_v32  ;;  %v3045_v55 = vadd.f32 %v3044_v27, %v2982_v8  ;;  %v2985_v9 = vmul.f32 %v8709_v7, %v8709_v7  ;;  %v8727_v46 = vadd.f32 %v8467_v15, %v2624_v35 }
 0x5c2   :  { %v2630_v40 = vadd.f32 %v8477_v47, %v2421_v45  ;;  %v2221_v57 = vadd.f32 %v8543_v11, %v11735_v12  ;;  %v2427_v10 = vadd.f32 %v8576_v13, %v2218_v33  ;;  %v2986_v8 = vmul.f32 %v8717_v2, %v8717_v2 }
 0x5c3   :  { %v2912_v51 = vadd.f32 %v2911_v42, %v8672_v30  ;;  %v3046_v31 = vadd.f32 %v3045_v55, %v2983_v54  ;;  %v2647_v23 = vpop.f32.mrf.mxu3  ;;  %v8737_v5 = vadd.f32 %v8485_v17, %v2627_v39  ;;  %v2633_v15 = vadd.f32 %v8503_v52, %v2424_v62  ;;  %v11736_v42 = vld [vmem:[#allocation59_spill] sm:$0xff] }
 0x5c4   :  { %v8691_v21 = vpop.f32.mrf.mxu0  ;;  %v2224_v47 = vadd.f32 %v8589_v48, %v11736_v42  ;;  %v2430_v53 = vadd.f32 %v8618_v6, %v2221_v57  ;;  %v2987_v13 = vmul.f32 %v8727_v46, %v8727_v46  ;;  %v8747_v61 = vadd.f32 %v8508_v41, %v2630_v40  ;;  %v11737_v17 = vld [vmem:[#allocation51_spill] sm:$0xff]  ;;  %v11738_v41 = vld [vmem:[#allocation61_spill] sm:$0xff] }
 0x5c5   :  { %v2913_v25 = vadd.f32 %v2912_v51, %v8684_v28  ;;  %v3047_v59 = vadd.f32 %v3046_v31, %v2984_v37  ;;  %v2227_v27 = vadd.f32 %v8645_v56, %v11737_v17  ;;  %v2232_v52 = vpop.f32.mrf.mxu1  ;;  %v2636_v54 = vadd.f32 %v8528_v14, %v2427_v10 }
 0x5c6   :  { %v2433_v48 = vadd.f32 %v8667_v38, %v2224_v47  ;;  %v2988_v35 = vmul.f32 %v8737_v5, %v8737_v5  ;;  %v8757_v45 = vadd.f32 %v8526_v4, %v2633_v15  ;;  %v2230_v55 = vadd.f32 %v2229_v29, %v11738_v41 }
 0x5c7   :  { %v2914_v63 = vadd.f32 %v2913_v25, %v8696_v3  ;;  %v3048_v11 = vadd.f32 %v3047_v59, %v2985_v9  ;;  %v2639_v37 = vadd.f32 %v8564_v22, %v2430_v53  ;;  %v2989_v14 = vmul.f32 %v8747_v61, %v8747_v61 }
 0x5c8   :  { %v2435_v49 = vpop.f32.mrf.mxu2  ;;  %v8765_v38 = vadd.f32 %v8556_v18, %v2636_v54  ;;  %v2642_v62 = vadd.f32 %v8620_v16, %v2433_v48  ;;  %v2990_v29 = vmul.f32 %v8757_v45, %v8757_v45 }
 0x5c9   :  { %v2915_v44 = vadd.f32 %v2914_v63, %v8709_v7  ;;  %v3049_v51 = vadd.f32 %v3048_v11, %v2986_v8  ;;  %v2436_v25 = vadd.f32 %v2435_v49, %v2227_v27  ;;  %v11739_v49 = vld [vmem:[#allocation54_spill] sm:$0xff]  ;;  %v8773_v63 = vadd.f32 %v8599_v58, %v2639_v37 }
 0x5ca   :  { %v2233_v31 = vadd.f32 %v2232_v52, %v11739_v49  ;;  %v2991_v57 = vmul.f32 %v8765_v38, %v8765_v38  ;;  %v8780_v59 = vadd.f32 %v8643_v34, %v2642_v62 }
 0x5cb   :  { %v2916_v50 = vadd.f32 %v2915_v44, %v8717_v2  ;;  %v3050_v56 = vadd.f32 %v3049_v51, %v2987_v13  ;;  %v2650_v22 = vpop.f32.mrf.mxu3  ;;  %v2645_v9 = vadd.f32 %v8679_v26, %v2436_v25  ;;  %v2992_v26 = vmul.f32 %v8773_v63, %v8773_v63  ;;  %v11740_v13 = vld [vmem:[#allocation63_spill] sm:$0xff] }
 0x5cc   :  { %v2856_v1 = vpop.f32.mrf.mxu0  ;;  %v2993_v34 = vmul.f32 %v8780_v59, %v8780_v59 }
 0x5cd   :  { %v2917_v6 = vadd.f32 %v2916_v50, %v8727_v46  ;;  %v3051_v33 = vadd.f32 %v3050_v56, %v2988_v35  ;;  %v2235_v15 = vpop.f32.mrf.mxu1  ;;  %v8786_v42 = vadd.f32 %v8691_v21, %v2645_v9  ;;  %v3956_v9 = vld [vmem:[%s11332_s4 + $0xf0] sm:$0xff] }
 0x5cf   :  { %v2918_v39 = vadd.f32 %v2917_v6, %v8737_v5  ;;  %v3052_v40 = vadd.f32 %v3051_v33, %v2989_v14  ;;  %v2994_v27 = vmul.f32 %v8786_v42, %v8786_v42 }
 0x5d0   :  { %v2438_v43 = vpop.f32.mrf.mxu2 }
 0x5d1   :  { %v2439_v60 = vadd.f32 %v2438_v43, %v2230_v55  ;;  %v2919_v4 = vadd.f32 %v2918_v39, %v8747_v61  ;;  %v3053_v8 = vadd.f32 %v3052_v40, %v2990_v29  ;;  %v2236_v43 = vadd.f32 %v2235_v15, %v11740_v13 }
 0x5d3   :  { %v2920_v18 = vadd.f32 %v2919_v4, %v8757_v45  ;;  %v2648_v10 = vadd.f32 %v2647_v23, %v2439_v60  ;;  %v3054_v53 = vadd.f32 %v3053_v8, %v2991_v57  ;;  %v3957_v23 = vld [vmem:[%s11332_s4 + $0xf8] sm:$0xff]  ;;  %v2653_v48 = vpop.f32.mrf.mxu3 }
 0x5d4   :  { %v2859_v16 = vpop.f32.mrf.mxu0  ;;  %4279 = vmatpush.msrb.mxu2 %v3957_v23 }
 0x5d5   :  { %v2921_v58 = vadd.f32 %v2920_v18, %v8765_v38  ;;  %v8791_v50 = vadd.f32 %v2856_v1, %v2648_v10  ;;  %v3055_v17 = vadd.f32 %v3054_v53, %v2992_v26 }
 0x5d6   :  { %4280 = vmatpush.msrb.mxu2 %v3956_v9  ;;  %v11745_v9 = vld [vmem:[#allocation4_spill] sm:$0xff] }
 0x5d7   :  { %v2922_v11 = vadd.f32 %v2921_v58, %v8773_v63  ;;  %v3056_v51 = vadd.f32 %v3055_v17, %v2993_v34  ;;  %v2995_v6 = vmul.f32 %v8791_v50, %v8791_v50  ;;  %v3973_v34 = vld [vmem:[%s11332_s4 + $0x178] sm:$0xff] }
 0x5d8   :  { %v2441_v12 = vpop.f32.mrf.mxu2  ;;  %4488 = vmatpush.msrb.mxu3 %v3973_v34  ;;  %v11753_v34 = vld [vmem:[#allocation22_spill] sm:$0xff] }
 0x5d9   :  { %v2442_v44 = vadd.f32 %v2441_v12, %v2233_v31  ;;  %v2923_v21 = vadd.f32 %v2922_v11, %v8780_v59  ;;  %v3057_v55 = vadd.f32 %v3056_v51, %v2994_v27 }
 0x5db   :  { %v2651_v47 = vadd.f32 %v2650_v22, %v2442_v44  ;;  %v2924_v1 = vadd.f32 %v2923_v21, %v8786_v42  ;;  %v3058_v39 = vadd.f32 %v3057_v55, %v2995_v6  ;;  %v3085_v6 = vld [vmem:[%s11334_s3] sm:$0x1] }
 0x5dc   :  { %v2862_v41 = vpop.f32.mrf.mxu0 }
 0x5dd   :  { %v8800_v52 = vadd.f32 %v2859_v16, %v2651_v47  ;;  %v2925_v37 = vadd.f32 %v2924_v1, %v8791_v50 }
 0x5df   :  { %v2996_v25 = vmul.f32 %v8800_v52, %v8800_v52  ;;  %v2926_v14 = vadd.f32 %v2925_v37, %v8800_v52 }
 0x5e0   :  { %v2444_v54 = vpop.f32.mrf.mxu2 }
 0x5e1   :  { %v2445_v35 = vadd.f32 %v2444_v54, %v2236_v43  ;;  %v3059_v60 = vadd.f32 %v3058_v39, %v2996_v25  ;;  %v3072_v54 = vld [vmem:[%s11333_s2] sm:$0x1] }
 0x5e3   :  { %v2654_v56 = vadd.f32 %v2653_v48, %v2445_v35 }
 0x5e5   :  { %v2863_v62 = vadd.f32 %v2862_v41, %v2654_v56 }
 0x5e7   :  { %v2927_v33 = vadd.f32 %v2926_v14, %v2863_v62  ;;  %v2997_v4 = vmul.f32 %v2863_v62, %v2863_v62  ;;  %v11741_v14 = vld [vmem:[#allocation57_spill] sm:$0xff] }
 0x5e9   :  { %v2928_v29 = vrot.slane %v2927_v33, 4  ;;  %v3060_v22 = vadd.f32 %v3059_v60, %v2997_v4 }
 0x5eb   :  { %v2929_v49 = vadd.f32 %v2928_v29, %v2927_v33  ;;  %v3061_v31 = vrot.slane %v3060_v22, 4  ;;  %v11742_v33 = vld [vmem:[#allocation5_spill] sm:$0xff]  ;;  %v11743_v29 = vld [vmem:[#allocation3_spill] sm:$0xff] }
 0x5ed   :  { %v2930_v40 = vrot.slane %v2929_v49, 2  ;;  %v3062_v18 = vadd.f32 %v3061_v31, %v3060_v22  ;;  %v11744_v31 = vld [vmem:[#allocation6_spill] sm:$0xff] }
 0x5ef   :  { %v2931_v12 = vadd.f32 %v2930_v40, %v2929_v49  ;;  %v3063_v16 = vrot.slane %v3062_v18, 2 }
 0x5f1   :  { %v2932_v57 = vrot.slane %v2931_v12, 1  ;;  %v3064_v10 = vadd.f32 %v3063_v16, %v3062_v18  ;;  %v11746_v18 = vld [vmem:[#allocation7_spill] sm:$0xff]  ;;  %v11747_v16 = vld [vmem:[#allocation8_spill] sm:$0xff] }
 0x5f3   :  { %v2933_v44 = vadd.f32 %v2932_v57, %v2931_v12  ;;  %v3065_v8 = vrot.slane %v3064_v10, 1 }
 0x5f5   :  { %v3066_v15 = vadd.f32 %v3065_v8, %v3064_v10  ;;  %v3067_v58 = vmul.f32 0.001953125, %v2933_v44  ;;  %v11748_v10 = vld [vmem:[#allocation9_spill] sm:$0xff]  ;;  %v11749_v8 = vld [vmem:[#allocation10_spill] sm:$0xff] }
 0x5f7   :  { %v3068_v26 = vmul.f32 0.001953125, %v3066_v15  ;;  %v3069_v47 = vmul.f32 %v3067_v58, %v3067_v58  ;;  %v11750_v15 = vld [vmem:[#allocation27_spill] sm:$0xff] }
 0x5f9   :  { %v3070_v53 = vsub.f32 %v3068_v26, %v3069_v47  ;;  %v11751_v26 = vld [vmem:[#allocation66_spill] sm:$0xff] }
 0x5fb   :  { %v3071_v11 = vmax.f32 %v3070_v53, 0.0  ;;  %v11752_v53 = vld [vmem:[#allocation67_spill] sm:$0xff] }
 0x5fd   :  { %v3073_v23 = vadd.f32 1e-05, %v3071_v11 }
 0x5ff   :  { %6473 = vrsqrt.f32 %v3073_v23  ;;  %vm3080_vm1 = vweird.f32 %v3073_v23 }
 0x605   :  { %v6474_v13 = vpop.eup %6473 }
 0x606   :  { %v3075_v43 = vmul.f32 %v6474_v13, %v3073_v23  ;;  %vm3081_vm0 = vweird.f32 %v6474_v13 }
 0x607   :  { %vm3082_vm2 = vmor %vm3080_vm1, %vm3081_vm0 }
 0x608   :  { %v3076_v17 = vmul.f32 %v6474_v13, %v3075_v43 }
 0x60a   :  { %v3077_v21 = vmul.f32 0.5, %v3076_v17  ;;  %v11755_v17 = vld [vmem:[#allocation24_spill] sm:$0xff] }
 0x60c   :  { %v3078_v27 = vsub.f32 1.5, %v3077_v21 }
 0x60e   :  { %v3079_v48 = vmul.f32 %v6474_v13, %v3078_v27 }
 0x610   :  { %v3083_v51 = vsel %vm3082_vm2, %v6474_v13, %v3079_v48  ;;  %v11754_v13 = vld [vmem:[#allocation33_spill] sm:$0xff] }
 0x611   :  { %v3084_v1 = vmul.f32 %v3083_v51, %v3072_v54 }
 0x613   :  { %v3086_v35 = vmul.f32 %v3084_v1, %v3067_v58  ;;  %v8821_v41 = vperm.slane %v3084_v1, 0 }
 0x615   :  { %v3087_v55 = vsub.f32 %v3085_v6, %v3086_v35  ;;  %v3154_v37 = vmul.f32 %v8821_v41, %v2863_v62  ;;  %v3091_v60 = vmul.f32 %v8821_v41, %v11741_v14  ;;  %v3092_v4 = vmul.f32 %v8821_v41, %v11742_v33  ;;  %v3955_v35 = vld [vmem:[%s11332_s4 + $0xe8] sm:$0xff] }
 0x616   :  { %v3093_v22 = vmul.f32 %v8821_v41, %v11743_v29  ;;  %v3094_v49 = vmul.f32 %v8821_v41, %v8140_v24  ;;  %v3095_v62 = vmul.f32 %v8821_v41, %v11744_v31  ;;  %v3096_v40 = vmul.f32 %v8821_v41, %v11745_v9  ;;  %4281 = vmatpush.msrb.mxu2 %v3955_v35  ;;  %v3970_v29 = vld [vmem:[%s11332_s4 + $0x160] sm:$0xff]  ;;  %v3967_v35 = vld [vmem:[%s11332_s4 + $0x148] sm:$0xff] }
 0x617   :  { %v8824_v25 = vperm.slane %v3087_v55, 0  ;;  %v3097_v12 = vmul.f32 %v8821_v41, %v11746_v18  ;;  %v8843_v57 = vmul.f32 %v8821_v41, %v11747_v16  ;;  %v8847_v44 = vmul.f32 %v8821_v41, %v11748_v10  ;;  %v3969_v10 = vld [vmem:[%s11332_s4 + $0x158] sm:$0xff] }
 0x618   :  { %v8851_v24 = vmul.f32 %v8821_v41, %v11749_v8  ;;  %v3128_v58 = vmul.f32 %v8821_v41, %v11750_v15  ;;  %v3129_v47 = vmul.f32 %v8821_v41, %v11751_v26  ;;  %v3130_v11 = vmul.f32 %v8821_v41, %v11752_v53  ;;  %v3951_v8 = vld [vmem:[%s11332_s4 + $0xc8] sm:$0xff] }
 0x619   :  { %v3221_v56 = vadd.f32 %v8824_v25, %v3154_v37  ;;  %v3131_v23 = vmul.f32 %v8821_v41, %v11753_v34  ;;  %v3132_v43 = vmul.f32 %v8821_v41, %v11754_v13  ;;  %v3133_v21 = vmul.f32 %v8821_v41, %v11755_v17  ;;  %v3968_v13 = vld [vmem:[%s11332_s4 + $0x150] sm:$0xff] }
 0x61a   :  { %v3134_v27 = vmul.f32 %v8821_v41, %v8611_v19  ;;  %v3135_v54 = vmul.f32 %v8821_v41, %v8625_v36  ;;  %v3136_v48 = vmul.f32 %v8821_v41, %v8638_v0  ;;  %v3137_v51 = vmul.f32 %v8821_v41, %v8650_v20 }
 0x61b   :  { %v3285_v39 = vmax.f32 %v3221_v56, 0.0  ;;  %v3138_v1 = vmul.f32 %v8821_v41, %v8660_v32  ;;  %v3139_v6 = vmul.f32 %v8821_v41, %v8672_v30  ;;  %v3140_v19 = vmul.f32 %v8821_v41, %v8684_v28 }
 0x61c   :  { %v3141_v36 = vmul.f32 %v8821_v41, %v8696_v3  ;;  %v3142_v0 = vmul.f32 %v8821_v41, %v8709_v7  ;;  %v3143_v20 = vmul.f32 %v8821_v41, %v8717_v2  ;;  %v3144_v32 = vmul.f32 %v8821_v41, %v8727_v46  ;;  %v3972_v3 = vld [vmem:[%s11332_s4 + $0x170] sm:$0xff]  ;;  %v3954_v7 = vld [vmem:[%s11332_s4 + $0xe0] sm:$0xff] }
 0x61d   :  { %3349 = vst [vmem:[#allocation2 + $0x339] sm:$0xff] %v3285_v39  ;;  %v3145_v30 = vmul.f32 %v8821_v41, %v8737_v5  ;;  %v3146_v55 = vmul.f32 %v8821_v41, %v8747_v61  ;;  %v3147_v28 = vmul.f32 %v8821_v41, %v8757_v45  ;;  %v3148_v2 = vmul.f32 %v8821_v41, %v8765_v38 }
 0x61e   :  { %v3149_v46 = vmul.f32 %v8821_v41, %v8773_v63  ;;  %v3150_v5 = vmul.f32 %v8821_v41, %v8780_v59  ;;  %v3151_v61 = vmul.f32 %v8821_v41, %v8786_v42  ;;  %4489 = vmatpush.msrb.mxu3 %v3972_v3  ;;  %v3152_v45 = vmul.f32 %v8821_v41, %v8791_v50  ;;  %v3971_v63 = vld [vmem:[%s11332_s4 + $0x168] sm:$0xff]  ;;  %v3953_v59 = vld [vmem:[%s11332_s4 + $0xd8] sm:$0xff] }
 0x61f   :  { %v3153_v37 = vmul.f32 %v8821_v41, %v8800_v52  ;;  %v8915_v56 = vadd.f32 %v8824_v25, %v3091_v60  ;;  %v8918_v38 = vadd.f32 %v8824_v25, %v3092_v4  ;;  %4282 = vmatpush.msrb.mxu2 %v3954_v7  ;;  %v8927_v42 = vadd.f32 %v8824_v25, %v3093_v22  ;;  %v3952_v22 = vld [vmem:[%s11332_s4 + $0xd0] sm:$0xff]  ;;  %v11757_v7 = vld [vmem:[#allocation12_spill] sm:$0xff] }
 0x620   :  { %v8930_v50 = vadd.f32 %v8824_v25, %v3094_v49  ;;  %v8933_v52 = vadd.f32 %v8824_v25, %v3095_v62  ;;  %v8936_v39 = vadd.f32 %v8824_v25, %v3096_v40  ;;  %4490 = vmatpush.msrb.mxu3 %v3971_v63  ;;  %v8939_v14 = vadd.f32 %v8824_v25, %v3097_v12 }
 0x621   :  { %v8942_v60 = vadd.f32 %v8824_v25, %v3128_v58  ;;  %v8945_v33 = vadd.f32 %v8824_v25, %v3129_v47  ;;  %v8948_v4 = vadd.f32 %v8824_v25, %v3130_v11  ;;  %4283 = vmatpush.msrb.mxu2 %v3953_v59  ;;  %v8957_v49 = vadd.f32 %v8824_v25, %v3131_v23  ;;  %v11759_v59 = vld [vmem:[#allocation14_spill] sm:$0xff] }
 0x622   :  { %v8960_v31 = vadd.f32 %v8824_v25, %v3132_v43  ;;  %v8963_v62 = vadd.f32 %v8824_v25, %v3133_v21  ;;  %v8966_v9 = vadd.f32 %v8824_v25, %v3134_v27  ;;  %4491 = vmatpush.msrb.mxu3 %v3970_v29  ;;  %v8969_v40 = vadd.f32 %v8824_v25, %v3135_v54  ;;  %v3950_v43 = vld [vmem:[%s11332_s4 + $0xc0] sm:$0xff] }
 0x623   :  { %v8972_v18 = vadd.f32 %v8824_v25, %v3136_v48  ;;  %v8975_v12 = vadd.f32 %v8824_v25, %v3137_v51  ;;  %v8978_v16 = vadd.f32 %v8824_v25, %v3138_v1  ;;  %4284 = vmatpush.msrb.mxu2 %v3952_v22  ;;  %v8987_v15 = vadd.f32 %v8824_v25, %v3139_v6 }
 0x624   :  { %v8990_v58 = vadd.f32 %v8824_v25, %v3140_v19  ;;  %v8993_v26 = vadd.f32 %v8824_v25, %v3141_v36  ;;  %v8996_v47 = vadd.f32 %v8824_v25, %v3142_v0  ;;  %4492 = vmatpush.msrb.mxu3 %v3969_v10  ;;  %v8999_v53 = vadd.f32 %v8824_v25, %v3143_v20  ;;  %v3949_v19 = vld [vmem:[%s11332_s4 + $0xb8] sm:$0xff] }
 0x625   :  { %v9002_v11 = vadd.f32 %v8824_v25, %v3144_v32  ;;  %v9005_v34 = vadd.f32 %v8824_v25, %v3145_v30  ;;  %v9008_v23 = vadd.f32 %v8824_v25, %v3146_v55  ;;  %4285 = vmatpush.msrb.mxu2 %v3951_v8  ;;  %v9017_v17 = vadd.f32 %v8824_v25, %v3147_v28  ;;  %v11756_v30 = vld [vmem:[#allocation11_spill] sm:$0xff]  ;;  %v3947_v8 = vld [vmem:[%s11332_s4 + $0xa8] sm:$0xff] }
 0x626   :  { %v9020_v21 = vadd.f32 %v8824_v25, %v3148_v2  ;;  %v9023_v27 = vadd.f32 %v8824_v25, %v3149_v46  ;;  %v9026_v54 = vadd.f32 %v8824_v25, %v3150_v5  ;;  %4493 = vmatpush.msrb.mxu3 %v3968_v13  ;;  %v9029_v48 = vadd.f32 %v8824_v25, %v3151_v61  ;;  %v3948_v5 = vld [vmem:[%s11332_s4 + $0xb0] sm:$0xff]  ;;  %v11760_v13 = vld [vmem:[#allocation15_spill] sm:$0xff] }
 0x627   :  { %v9032_v51 = vadd.f32 %v8824_v25, %v3152_v45  ;;  %v9035_v1 = vadd.f32 %v8824_v25, %v3153_v37  ;;  %v11393_v6 = vmax.f32 %v8915_v56, 0.0  ;;  %4286 = vmatpush.msrb.mxu2 %v3950_v43  ;;  %v9046_v36 = vadd.f32 %v8824_v25, %v8843_v57  ;;  %v3966_v57 = vld [vmem:[%s11332_s4 + $0x140] sm:$0xff]  ;;  %v11758_v61 = vld [vmem:[#allocation13_spill] sm:$0xff] }
 0x628   :  { %v11391_v0 = vmax.f32 %v8918_v38, 0.0  ;;  %v11389_v20 = vmax.f32 %v8927_v42, 0.0  ;;  %v11387_v32 = vmax.f32 %v8930_v50, 0.0  ;;  %4494 = vmatpush.msrb.mxu3 %v3967_v35  ;;  %v3101_v55 = vmul.f32 %v8821_v41, %v11756_v30  ;;  %v3964_v30 = vld [vmem:[%s11332_s4 + $0x130] sm:$0xff] }
 0x629   :  { %v9055_v28 = vadd.f32 %v8824_v25, %v8847_v44  ;;  %v11385_v3 = vmax.f32 %v8933_v52, 0.0  ;;  %3286 = vst [vmem:[#allocation2 + $0x19] sm:$0xff] %v11393_v6  ;;  %4287 = vmatpush.msrb.mxu2 %v3949_v19  ;;  %v3102_v2 = vmul.f32 %v8821_v41, %v11757_v7  ;;  %v9067_v46 = vadd.f32 %v8824_v25, %v8851_v24  ;;  %v3965_v24 = vld [vmem:[%s11332_s4 + $0x138] sm:$0xff] }
 0x62a   :  { %v11383_v44 = vmax.f32 %v8936_v39, 0.0  ;;  %3287 = vst [vmem:[#allocation2 + $0x21] sm:$0xff] %v11391_v0  ;;  %4495 = vmatpush.msrb.mxu3 %v3966_v57  ;;  %v3103_v45 = vmul.f32 %v8821_v41, %v11758_v61  ;;  %v9078_v37 = vadd.f32 %v8824_v25, %v3101_v55  ;;  %v11381_v63 = vmax.f32 %v8939_v14, 0.0  ;;  %v11762_v55 = vld [vmem:[#allocation16_spill] sm:$0xff]  ;;  %v11764_v61 = vld [vmem:[#allocation17_spill] sm:$0xff] }
 0x62b   :  { %3288 = vst [vmem:[#allocation2 + $0x31] sm:$0xff] %v11389_v20  ;;  %4288 = vmatpush.msrb.mxu2 %v3948_v5  ;;  %v3104_v29 = vmul.f32 %v8821_v41, %v11759_v59  ;;  %v9089_v22 = vadd.f32 %v8824_v25, %v3102_v2  ;;  %v11382_v10 = vmax.f32 %v9046_v36, 0.0  ;;  %v3105_v43 = vmul.f32 %v8821_v41, %v11760_v13  ;;  %v3946_v5 = vld [vmem:[%s11332_s4 + $0xa0] sm:$0xff] }
 0x62c   :  { %3289 = vst [vmem:[#allocation2 + $0x39] sm:$0xff] %v11387_v32  ;;  %4496 = vmatpush.msrb.mxu3 %v3965_v24  ;;  %v9100_v35 = vadd.f32 %v8824_v25, %v3103_v45  ;;  %v11384_v19 = vmax.f32 %v9055_v28, 0.0  ;;  %v3106_v57 = vmul.f32 %v8821_v41, %v11762_v55  ;;  %v11386_v2 = vmax.f32 %v9067_v46, 0.0 }
 0x62d   :  { %3290 = vst [vmem:[#allocation2 + $0x49] sm:$0xff] %v11385_v3  ;;  %4289 = vmatpush.msrb.mxu2 %v3947_v8  ;;  %v9111_v7 = vadd.f32 %v8824_v25, %v3104_v29  ;;  %v3107_v45 = vmul.f32 %v8821_v41, %v11764_v61  ;;  %v9122_v24 = vadd.f32 %v8824_v25, %v3105_v43  ;;  %v11388_v59 = vmax.f32 %v9078_v37, 0.0  ;;  %v3963_v29 = vld [vmem:[%s11332_s4 + $0x128] sm:$0xff]  ;;  %v11766_v8 = vld [vmem:[#allocation18_spill] sm:$0xff] }
 0x62e   :  { %11761 = vst [vmem:[#allocation36_spill] sm:$0xff] %v9100_v35  ;;  %4497 = vmatpush.msrb.mxu3 %v3964_v30  ;;  %v3108_v13 = vmul.f32 %v8821_v41, %v11766_v8  ;;  %v9133_v30 = vadd.f32 %v8824_v25, %v3106_v57  ;;  %v11390_v55 = vmax.f32 %v9089_v22, 0.0  ;;  %v3989_v43 = vld [vmem:[%s11332_s4 + $0x1f8] sm:$0xff]  ;;  %v11392_v8 = vmax.f32 %v9100_v35, 0.0 }
 0x62f   :  { %11763 = vst [vmem:[#allocation26_spill] sm:$0xff] %v9111_v7  ;;  %4290 = vmatpush.msrb.mxu2 %v3946_v5  ;;  %v11768_v5 = vld [vmem:[#allocation19_spill] sm:$0xff]  ;;  %4697 = vmatpush.msrb.mxu0 %v3989_v43  ;;  %v3945_v57 = vld [vmem:[%s11332_s4 + $0x98] sm:$0xff] }
 0x630   :  { %3291 = vst [vmem:[#allocation2 + $0x51] sm:$0xff] %v11383_v44  ;;  %4498 = vmatpush.msrb.mxu3 %v3963_v29  ;;  %v3109_v61 = vmul.f32 %v8821_v41, %v11768_v5  ;;  %v11770_v29 = vld [vmem:[#allocation21_spill] sm:$0xff]  ;;  %v9155_v44 = vadd.f32 %v8824_v25, %v3108_v13  ;;  %v11394_v5 = vmax.f32 %v9111_v7, 0.0  ;;  %v11772_v43 = vld [vmem:[#allocation23_spill] sm:$0xff] }
 0x631   :  { %11765 = vst [vmem:[#allocation20_spill] sm:$0xff] %v9122_v24  ;;  %4291 = vmatpush.msrb.mxu2 %v3945_v57  ;;  %v3988_v13 = vld [vmem:[%s11332_s4 + $0x1f0] sm:$0xff] }
 0x632   :  { %3292 = vst [vmem:[#allocation2 + $0x61] sm:$0xff] %v11381_v63  ;;  %v9144_v63 = vadd.f32 %v8824_v25, %v3107_v45  ;;  %v3962_v45 = vld [vmem:[%s11332_s4 + $0x120] sm:$0xff]  ;;  %v9166_v3 = vadd.f32 %v8824_v25, %v3109_v61  ;;  %v11774_v57 = vld [vmem:[#allocation25_spill] sm:$0xff]  ;;  %4698 = vmatpush.msrb.mxu0 %v3988_v13 }
 0x633   :  { %11767 = vst [vmem:[#allocation39_spill] sm:$0xff] %v9133_v30  ;;  %4499 = vmatpush.msrb.mxu3 %v3962_v45  ;;  %v3944_v61 = vld [vmem:[%s11332_s4 + $0x90] sm:$0xff]  ;;  %v11776_v45 = vld [vmem:[#allocation28_spill] sm:$0xff]  ;;  %v11778_v13 = vld [vmem:[#allocation31_spill] sm:$0xff] }
 0x634   :  { %3293 = vst [vmem:[#allocation2 + $0x69] sm:$0xff] %v11382_v10  ;;  %v3110_v10 = vmul.f32 %v8821_v41, %v11770_v29  ;;  %v11395_v29 = vmax.f32 %v9122_v24, 0.0  ;;  %4292 = vmatpush.msrb.mxu2 %v3944_v61  ;;  %v11780_v61 = vld [vmem:[#allocation34_spill] sm:$0xff]  ;;  %v11787_v24 = vld [vmem:[#allocation43_spill] sm:$0xff] }
 0x635   :  { %11769 = vst [vmem:[#allocation68_spill] sm:$0xff] %v9144_v63  ;;  %v3118_v7 = vmul.f32 %v8821_v41, %v11787_v24 }
 0x636   :  { %3294 = vst [vmem:[#allocation2 + $0x79] sm:$0xff] %v11384_v19  ;;  %v3111_v19 = vmul.f32 %v8821_v41, %v11772_v43  ;;  %v9177_v32 = vadd.f32 %v8824_v25, %v3110_v10  ;;  %v11396_v43 = vmax.f32 %v9133_v30, 0.0  ;;  %v3961_v10 = vld [vmem:[%s11332_s4 + $0x118] sm:$0xff]  ;;  %v3958_v30 = vld [vmem:[%s11332_s4 + $0x100] sm:$0xff] }
 0x637   :  { %11771 = vst [vmem:[#allocation80_spill] sm:$0xff] %v9155_v44  ;;  %4500 = vmatpush.msrb.mxu3 %v3961_v10  ;;  %v3960_v10 = vld [vmem:[%s11332_s4 + $0x110] sm:$0xff] }
 0x638   :  { %3295 = vst [vmem:[#allocation2 + $0x81] sm:$0xff] %v11386_v2  ;;  %v3112_v2 = vmul.f32 %v8821_v41, %v11774_v57  ;;  %v9188_v20 = vadd.f32 %v8824_v25, %v3111_v19  ;;  %v3987_v19 = vld [vmem:[%s11332_s4 + $0x1e8] sm:$0xff] }
 0x639   :  { %11773 = vst [vmem:[#allocation70_spill] sm:$0xff] %v9166_v3  ;;  %4699 = vmatpush.msrb.mxu0 %v3987_v19  ;;  %4501 = vmatpush.msrb.mxu3 %v3960_v10  ;;  %v11786_v10 = vmax.f32 %v9144_v63, 0.0 }
 0x63a   :  { %3296 = vst [vmem:[#allocation2 + $0x91] sm:$0xff] %v11388_v59  ;;  %v3113_v59 = vmul.f32 %v8821_v41, %v11776_v45  ;;  %v9199_v0 = vadd.f32 %v8824_v25, %v3112_v2  ;;  %v3943_v2 = vld [vmem:[%s11332_s4 + $0x88] sm:$0xff] }
 0x63b   :  { %11775 = vst [vmem:[#allocation29_spill] sm:$0xff] %v9177_v32  ;;  %4293 = vmatpush.msrb.mxu2 %v3943_v2  ;;  %v3959_v45 = vld [vmem:[%s11332_s4 + $0x108] sm:$0xff]  ;;  %v11790_v2 = vld [vmem:[#allocation46_spill] sm:$0xff] }
 0x63c   :  { %3297 = vst [vmem:[#allocation2 + $0x99] sm:$0xff] %v11390_v55  ;;  %v3114_v55 = vmul.f32 %v8821_v41, %v11778_v13  ;;  %v9210_v6 = vadd.f32 %v8824_v25, %v3113_v59  ;;  %v11782_v59 = vld [vmem:[#allocation37_spill] sm:$0xff]  ;;  %4502 = vmatpush.msrb.mxu3 %v3959_v45  ;;  %v3119_v63 = vmul.f32 %v8821_v41, %v11790_v2  ;;  %v11793_v2 = vmax.f32 %v9177_v32, 0.0 }
 0x63d   :  { %11777 = vst [vmem:[#allocation71_spill] sm:$0xff] %v9188_v20  ;;  %v11806_v32 = vld [vmem:[#allocation65_spill] sm:$0xff] }
 0x63e   :  { %3298 = vst [vmem:[#allocation2 + $0xa9] sm:$0xff] %v11392_v8  ;;  %v3115_v8 = vmul.f32 %v8821_v41, %v11780_v61  ;;  %v3986_v61 = vld [vmem:[%s11332_s4 + $0x1e0] sm:$0xff]  ;;  %v9227_v13 = vadd.f32 %v8824_v25, %v3114_v55  ;;  %v3985_v55 = vld [vmem:[%s11332_s4 + $0x1d8] sm:$0xff]  ;;  %4503 = vmatpush.msrb.mxu3 %v3958_v30 }
 0x63f   :  { %11779 = vst [vmem:[#allocation30_spill] sm:$0xff] %v9199_v0  ;;  %4700 = vmatpush.msrb.mxu0 %v3986_v61  ;;  %v3984_v61 = vld [vmem:[%s11332_s4 + $0x1d0] sm:$0xff]  ;;  %v11796_v30 = vld [vmem:[#allocation55_spill] sm:$0xff] }
 0x640   :  { %3299 = vst [vmem:[#allocation2 + $0xb1] sm:$0xff] %v11394_v5  ;;  %v3116_v5 = vmul.f32 %v8821_v41, %v11782_v59  ;;  %v11784_v59 = vld [vmem:[#allocation40_spill] sm:$0xff]  ;;  %v9244_v57 = vadd.f32 %v8824_v25, %v3115_v8  ;;  %v11791_v8 = vmax.f32 %v9166_v3, 0.0 }
 0x641   :  { %11781 = vst [vmem:[#allocation84_spill] sm:$0xff] %v9210_v6  ;;  %v3117_v19 = vmul.f32 %v8821_v41, %v11784_v59  ;;  %v11789_v59 = vmax.f32 %v9155_v44, 0.0  ;;  %4701 = vmatpush.msrb.mxu0 %v3985_v55 }
 0x642   :  { %3300 = vst [vmem:[#allocation2 + $0xc1] sm:$0xff] %v11395_v29  ;;  %v3942_v29 = vld [vmem:[%s11332_s4 + $0x80] sm:$0xff]  ;;  %v9255_v35 = vadd.f32 %v8824_v25, %v3116_v5  ;;  %v11794_v5 = vld [vmem:[#allocation52_spill] sm:$0xff] }
 0x643   :  { %11783 = vst [vmem:[#allocation73_spill] sm:$0xff] %v9227_v13  ;;  %4294 = vmatpush.msrb.mxu2 %v3942_v29  ;;  %v9266_v24 = vadd.f32 %v8824_v25, %v3117_v19  ;;  %v11792_v29 = vld [vmem:[#allocation49_spill] sm:$0xff]  ;;  %v3983_v19 = vld [vmem:[%s11332_s4 + $0x1c8] sm:$0xff]  ;;  %v3121_v55 = vmul.f32 %v8821_v41, %v11794_v5  ;;  %4702 = vmatpush.msrb.mxu0 %v3984_v61  ;;  %v11797_v5 = vmax.f32 %v9199_v0, 0.0 }
 0x644   :  { %3301 = vst [vmem:[#allocation2 + $0xc9] sm:$0xff] %v11396_v43  ;;  %v3414_v43 = vld [vmem:[#allocation2 + $0x1] sm:$0xff]  ;;  %v3120_v45 = vmul.f32 %v8821_v41, %v11792_v29  ;;  %v11805_v3 = vmax.f32 %v9255_v35, 0.0 }
 0x645   :  { %11785 = vst [vmem:[#allocation42_spill] sm:$0xff] %v9244_v57  ;;  %4295 = vmatmul.f32.vlgmr.msrb.gmra.mxu2 %v3414_v43  ;;  %v9285_v43 = vadd.f32 %v8824_v25, %v3119_v63  ;;  %v3926_v29 = vld [vmem:[%s11332_s4] sm:$0xff]  ;;  %4703 = vmatpush.msrb.mxu0 %v3983_v19  ;;  %v9310_v63 = vld [vmem:[#allocation2 + $0x1b0] sm:$0xff]  ;;  %v11802_v19 = vld [vmem:[#allocation62_spill] sm:$0xff] }
 0x646   :  { %3302 = vst [vmem:[#allocation2 + $0xd9] sm:$0xff] %v11786_v10  ;;  %v3478_v10 = vld [vmem:[#allocation2 + $0x2] sm:$0xff]  ;;  %v9296_v44 = vadd.f32 %v8824_v25, %v3120_v45  ;;  %4085 = vmatpush.msra.mxu1 %v3926_v29  ;;  %v11799_v45 = vmax.f32 %v9210_v6, 0.0 }
 0x647   :  { %11788 = vst [vmem:[#allocation74_spill] sm:$0xff] %v9255_v35  ;;  %4504 = vmatmul.f32.vlgmr.msrb.gmra.mxu3 %v3478_v10  ;;  %v3188_v10 = vadd.f32 %v8824_v25, %v3121_v55  ;;  %4086 = vmatmul.f32.vlgmr.msra.gmra.mxu1 %v9310_v63  ;;  %v11800_v29 = vld [vmem:[#allocation60_spill] sm:$0xff]  ;;  %v3981_v55 = vld [vmem:[%s11332_s4 + $0x1b8] sm:$0xff] }
 0x648   :  { %3303 = vst [vmem:[#allocation2 + $0xe1] sm:$0xff] %v11789_v59  ;;  %v9274_v59 = vadd.f32 %v8824_v25, %v3118_v7  ;;  %v11795_v7 = vmax.f32 %v9188_v20, 0.0  ;;  %v3979_v35 = vld [vmem:[%s11332_s4 + $0x1a8] sm:$0xff] }
 0x649   :  { %3304 = vst [vmem:[#allocation2 + $0xf1] sm:$0xff] %v11791_v8  ;;  %v11798_v8 = vld [vmem:[#allocation58_spill] sm:$0xff] }
 0x64a   :  { %3305 = vst [vmem:[#allocation2 + $0xf9] sm:$0xff] %v11793_v2  ;;  %v3122_v2 = vmul.f32 %v8821_v41, %v11796_v30  ;;  %v3123_v61 = vmul.f32 %v8821_v41, %v11798_v8  ;;  %v11801_v8 = vmax.f32 %v9227_v13, 0.0  ;;  %v3125_v30 = vmul.f32 %v8821_v41, %v11802_v19  ;;  %v3479_v19 = vld [vmem:[#allocation2 + $0xa] sm:$0xff] }
 0x64b   :  { %3306 = vst [vmem:[#allocation2 + $0x109] sm:$0xff] %v11795_v7  ;;  %v3982_v7 = vld [vmem:[%s11332_s4 + $0x1c0] sm:$0xff] }
 0x64c   :  { %3307 = vst [vmem:[#allocation2 + $0x111] sm:$0xff] %v11797_v5  ;;  %v3124_v5 = vmul.f32 %v8821_v41, %v11800_v29  ;;  %v3189_v0 = vadd.f32 %v8824_v25, %v3122_v2  ;;  %v3190_v6 = vadd.f32 %v8824_v25, %v3123_v61  ;;  %v11803_v29 = vmax.f32 %v9244_v57, 0.0  ;;  %4704 = vmatpush.msrb.mxu0 %v3982_v7  ;;  %v11804_v2 = vld [vmem:[#allocation64_spill] sm:$0xff]  ;;  %v3980_v61 = vld [vmem:[%s11332_s4 + $0x1b0] sm:$0xff] }
 0x64d   :  { %3308 = vst [vmem:[#allocation2 + $0x121] sm:$0xff] %v11799_v45  ;;  %v3415_v45 = vld [vmem:[#allocation2 + $0x9] sm:$0xff]  ;;  %v3126_v20 = vmul.f32 %v8821_v41, %v11804_v2  ;;  %v3127_v57 = vmul.f32 %v8821_v41, %v11806_v32  ;;  %v3192_v7 = vadd.f32 %v8824_v25, %v3125_v30  ;;  %v11807_v2 = vmax.f32 %v9266_v24, 0.0 }
 0x64e   :  { %3309 = vst [vmem:[#allocation2 + $0x129] sm:$0xff] %v11801_v8  ;;  %v3191_v8 = vadd.f32 %v8824_v25, %v3124_v5  ;;  %4705 = vmatpush.msrb.mxu0 %v3981_v55  ;;  %4298 = vmatmul.f32.gmra.mxu2 %v3415_v45  ;;  %v3253_v13 = vmax.f32 %v3189_v0, 0.0  ;;  %v3254_v32 = vmax.f32 %v3190_v6, 0.0  ;;  %v11810_v55 = vmax.f32 %v9296_v44, 0.0  ;;  %v3978_v0 = vld [vmem:[%s11332_s4 + $0x1a0] sm:$0xff] }
 0x64f   :  { %3310 = vst [vmem:[#allocation2 + $0x139] sm:$0xff] %v11803_v29  ;;  %v3252_v29 = vmax.f32 %v3188_v10, 0.0  ;;  %v3193_v5 = vadd.f32 %v8824_v25, %v3126_v20  ;;  %v3194_v41 = vadd.f32 %v8824_v25, %v3127_v57  ;;  %v11809_v10 = vmax.f32 %v9285_v43, 0.0  ;;  %4507 = vmatmul.f32.gmra.mxu3 %v3479_v19  ;;  %v4005_v25 = vld [vmem:[%s11332_s4 + $0x278] sm:$0xff]  ;;  %4089 = vmatmul.f32.gmra.mxu1 %v9310_v63 }
 0x650   :  { %3311 = vst [vmem:[#allocation2 + $0x141] sm:$0xff] %v11805_v3  ;;  %v11808_v3 = vmax.f32 %v9274_v59, 0.0  ;;  %4706 = vmatpush.msrb.mxu0 %v3980_v61  ;;  %v3255_v30 = vmax.f32 %v3191_v8, 0.0  ;;  %v3256_v20 = vmax.f32 %v3192_v7, 0.0  ;;  %4906 = vmatpush.msrb.mxu1 %v4005_v25  ;;  %v3977_v57 = vld [vmem:[%s11332_s4 + $0x198] sm:$0xff]  ;;  %v3259_v8 = vmax.f32 %v8942_v60, 0.0 }
 0x651   :  { %3312 = vst [vmem:[#allocation2 + $0x151] sm:$0xff] %v11807_v2  ;;  %v3257_v6 = vmax.f32 %v3193_v5, 0.0  ;;  %v3258_v45 = vmax.f32 %v3194_v41, 0.0  ;;  %v3976_v61 = vld [vmem:[%s11332_s4 + $0x190] sm:$0xff]  ;;  %v3260_v19 = vmax.f32 %v8945_v33, 0.0  ;;  %v11811_v7 = vmax.f32 %v8915_v56, 0.0 }
 0x652   :  { %3313 = vst [vmem:[#allocation2 + $0x159] sm:$0xff] %v11808_v3  ;;  %4707 = vmatpush.msrb.mxu0 %v3979_v35  ;;  %v3480_v35 = vld [vmem:[#allocation2 + $0x1a] sm:$0xff]  ;;  %v3975_v60 = vld [vmem:[%s11332_s4 + $0x188] sm:$0xff]  ;;  %v3262_v5 = vmax.f32 %v8957_v49, 0.0  ;;  %v3263_v33 = vmax.f32 %v8960_v31, 0.0  ;;  %v3265_v3 = vmax.f32 %v8966_v9, 0.0 }
 0x653   :  { %3314 = vst [vmem:[#allocation2 + $0x169] sm:$0xff] %v11809_v10  ;;  %v3352_v2 = vld [vmem:[#allocation2 + $0x18] sm:$0xff]  ;;  %v3974_v56 = vld [vmem:[%s11332_s4 + $0x180] sm:$0xff]  ;;  %v3266_v49 = vmax.f32 %v8969_v40, 0.0  ;;  %v3267_v41 = vmax.f32 %v8972_v18, 0.0  ;;  %v3268_v31 = vmax.f32 %v8975_v12, 0.0 }
 0x654   :  { %3315 = vst [vmem:[#allocation2 + $0x171] sm:$0xff] %v11810_v55  ;;  %4708 = vmatpush.msrb.mxu0 %v3978_v0  ;;  %v3481_v10 = vld [vmem:[#allocation2 + $0x22] sm:$0xff]  ;;  %v3270_v9 = vmax.f32 %v8987_v15, 0.0  ;;  %v3271_v40 = vmax.f32 %v8990_v58, 0.0  ;;  %v3273_v12 = vmax.f32 %v8996_v47, 0.0  ;;  %v3276_v15 = vmax.f32 %v9005_v34, 0.0 }
 0x655   :  { %3316 = vst [vmem:[#allocation2 + $0x181] sm:$0xff] %v3252_v29  ;;  %v3261_v29 = vmax.f32 %v8948_v4, 0.0  ;;  %v3264_v4 = vmax.f32 %v8963_v62, 0.0  ;;  %v3269_v62 = vmax.f32 %v8978_v16, 0.0  ;;  %v3353_v18 = vld [vmem:[#allocation2 + $0x20] sm:$0xff]  ;;  %v3275_v16 = vmax.f32 %v9002_v11, 0.0 }
 0x656   :  { %3317 = vst [vmem:[#allocation2 + $0x189] sm:$0xff] %v3253_v13  ;;  %v4004_v13 = vld [vmem:[%s11332_s4 + $0x270] sm:$0xff]  ;;  %4709 = vmatpush.msrb.mxu0 %v3977_v57  ;;  %4301 = vmatmul.f32.gmra.mxu2 %v11811_v7  ;;  %v11813_v58 = vmax.f32 %v8927_v42, 0.0  ;;  %v3278_v47 = vmax.f32 %v9017_v17, 0.0  ;;  %v3280_v0 = vmax.f32 %v9023_v27, 0.0  ;;  %v3281_v34 = vmax.f32 %v9026_v54, 0.0 }
 0x657   :  { %3318 = vst [vmem:[#allocation2 + $0x1c9] sm:$0xff] %v3254_v32  ;;  %4907 = vmatpush.msrb.mxu1 %v4004_v13  ;;  %4510 = vmatmul.f32.gmra.mxu3 %v3480_v35  ;;  %v11812_v32 = vmax.f32 %v8918_v38, 0.0  ;;  %v3274_v38 = vmax.f32 %v8999_v53, 0.0  ;;  %v3482_v55 = vld [vmem:[#allocation2 + $0x32] sm:$0xff]  ;;  %v3279_v53 = vmax.f32 %v9020_v21, 0.0  ;;  %v3282_v42 = vmax.f32 %v9029_v48, 0.0 }
 0x658   :  { %3319 = vst [vmem:[#allocation2 + $0x1d1] sm:$0xff] %v3255_v30  ;;  %4710 = vmatpush.msrb.mxu0 %v3976_v61  ;;  %4092 = vmatmul.f32.gmra.mxu1 %v3352_v2  ;;  %v3272_v30 = vmax.f32 %v8993_v26, 0.0  ;;  %v3277_v26 = vmax.f32 %v9008_v23, 0.0  ;;  %v3354_v11 = vld [vmem:[#allocation2 + $0x30] sm:$0xff]  ;;  %v3283_v23 = vmax.f32 %v9032_v51, 0.0  ;;  %v4003_v17 = vld [vmem:[%s11332_s4 + $0x268] sm:$0xff] }
 0x659   :  { %3320 = vst [vmem:[#allocation2 + $0x1e1] sm:$0xff] %v3256_v20  ;;  %v3284_v21 = vmax.f32 %v9035_v1, 0.0  ;;  %v11814_v27 = vmax.f32 %v8930_v50, 0.0  ;;  %4908 = vmatpush.msrb.mxu1 %v4003_v17  ;;  %v3483_v54 = vld [vmem:[#allocation2 + $0x3a] sm:$0xff]  ;;  %v11815_v51 = vmax.f32 %v8933_v52, 0.0  ;;  %v3484_v20 = vld [vmem:[#allocation2 + $0x4a] sm:$0xff] }
 0x65a   :  { %3321 = vst [vmem:[#allocation2 + $0x1e9] sm:$0xff] %v3257_v6  ;;  %4711 = vmatpush.msrb.mxu0 %v3975_v60  ;;  %v3355_v48 = vld [vmem:[#allocation2 + $0x38] sm:$0xff]  ;;  %v3356_v1 = vld [vmem:[#allocation2 + $0x48] sm:$0xff]  ;;  %v11816_v50 = vmax.f32 %v8936_v39, 0.0  ;;  %v3357_v6 = vld [vmem:[#allocation2 + $0x50] sm:$0xff]  ;;  %v11817_v57 = vmax.f32 %v8939_v14, 0.0 }
 0x65b   :  { %3322 = vst [vmem:[#allocation2 + $0x1f9] sm:$0xff] %v3258_v45  ;;  %v3485_v25 = vld [vmem:[#allocation2 + $0x52] sm:$0xff]  ;;  %v3486_v45 = vld [vmem:[#allocation2 + $0x62] sm:$0xff]  ;;  %v11818_v39 = vmax.f32 %v9046_v36, 0.0  ;;  %v3487_v61 = vld [vmem:[#allocation2 + $0x6a] sm:$0xff]  ;;  %v11819_v14 = vmax.f32 %v9055_v28, 0.0 }
 0x65c   :  { %3323 = vst [vmem:[#allocation2 + $0x201] sm:$0xff] %v3259_v8  ;;  %4712 = vmatpush.msrb.mxu0 %v3974_v56  ;;  %v3358_v52 = vld [vmem:[#allocation2 + $0x60] sm:$0xff]  ;;  %v3359_v35 = vld [vmem:[#allocation2 + $0x68] sm:$0xff]  ;;  %v11820_v7 = vmax.f32 %v9067_v46, 0.0  ;;  %v11821_v60 = vmax.f32 %v9078_v37, 0.0  ;;  %v3362_v28 = vld [vmem:[#allocation2 + $0x90] sm:$0xff] }
 0x65d   :  { %3324 = vst [vmem:[#allocation2 + $0x211] sm:$0xff] %v3260_v19  ;;  %4713 = vmatmul.f32.vlgmr.msrb.gmra.mxu0 %v3352_v2  ;;  %v4002_v8 = vld [vmem:[%s11332_s4 + $0x260] sm:$0xff]  ;;  %v3360_v19 = vld [vmem:[#allocation2 + $0x78] sm:$0xff]  ;;  %v11822_v46 = vmax.f32 %v9089_v22, 0.0  ;;  %v11823_v37 = vld [vmem:[#allocation36_spill] sm:$0xff] }
 0x65e   :  { %3325 = vst [vmem:[#allocation2 + $0x219] sm:$0xff] %v3261_v29  ;;  %4304 = vmatmul.f32.gmra.mxu2 %v11812_v32  ;;  %4909 = vmatpush.msrb.mxu1 %v4002_v8  ;;  %v3488_v13 = vld [vmem:[#allocation2 + $0x7a] sm:$0xff]  ;;  %v3489_v29 = vld [vmem:[#allocation2 + $0x82] sm:$0xff]  ;;  %v3490_v2 = vld [vmem:[#allocation2 + $0x92] sm:$0xff] }
 0x65f   :  { %3326 = vst [vmem:[#allocation2 + $0x229] sm:$0xff] %v3262_v5  ;;  %4513 = vmatmul.f32.gmra.mxu3 %v3481_v10  ;;  %v3361_v36 = vld [vmem:[#allocation2 + $0x80] sm:$0xff]  ;;  %v4001_v5 = vld [vmem:[%s11332_s4 + $0x258] sm:$0xff]  ;;  %v3365_v22 = vld [vmem:[#allocation2 + $0xb0] sm:$0xff] }
 0x660   :  { %3327 = vst [vmem:[#allocation2 + $0x231] sm:$0xff] %v3263_v33  ;;  %4095 = vmatmul.f32.gmra.mxu1 %v3353_v18  ;;  %v3491_v33 = vld [vmem:[#allocation2 + $0x9a] sm:$0xff]  ;;  %v3493_v32 = vld [vmem:[#allocation2 + $0xb2] sm:$0xff] }
 0x661   :  { %3328 = vst [vmem:[#allocation2 + $0x241] sm:$0xff] %v3264_v4  ;;  %4910 = vmatpush.msrb.mxu1 %v4001_v5  ;;  %v3363_v56 = vld [vmem:[#allocation2 + $0x98] sm:$0xff]  ;;  %v11824_v4 = vmax.f32 %v11823_v37, 0.0 }
 0x662   :  { %3329 = vst [vmem:[#allocation2 + $0x249] sm:$0xff] %v3265_v3  ;;  %v3492_v3 = vld [vmem:[#allocation2 + $0xaa] sm:$0xff] }
 0x663   :  { %3330 = vst [vmem:[#allocation2 + $0x259] sm:$0xff] %v3266_v49  ;;  %v3364_v49 = vld [vmem:[#allocation2 + $0xa8] sm:$0xff] }
 0x664   :  { %3331 = vst [vmem:[#allocation2 + $0x261] sm:$0xff] %v3267_v41  ;;  %v11825_v41 = vld [vmem:[#allocation26_spill] sm:$0xff] }
 0x665   :  { %3332 = vst [vmem:[#allocation2 + $0x271] sm:$0xff] %v3268_v31  ;;  %4716 = vmatmul.f32.gmra.mxu0 %v3353_v18  ;;  %v11826_v31 = vmax.f32 %v11825_v41, 0.0 }
 0x666   :  { %3333 = vst [vmem:[#allocation2 + $0x279] sm:$0xff] %v3269_v62  ;;  %4307 = vmatmul.f32.gmra.mxu2 %v11813_v58  ;;  %v11827_v62 = vld [vmem:[#allocation20_spill] sm:$0xff]  ;;  %v11829_v58 = vld [vmem:[#allocation39_spill] sm:$0xff] }
 0x667   :  { %3334 = vst [vmem:[#allocation2 + $0x289] sm:$0xff] %v3270_v9  ;;  %4516 = vmatmul.f32.gmra.mxu3 %v3482_v55  ;;  %v11828_v10 = vmax.f32 %v11827_v62, 0.0 }
 0x668   :  { %3335 = vst [vmem:[#allocation2 + $0x291] sm:$0xff] %v3271_v40  ;;  %4098 = vmatmul.f32.gmra.mxu1 %v3354_v11  ;;  %v3494_v40 = vld [vmem:[#allocation2 + $0xc2] sm:$0xff] }
 0x669   :  { %3336 = vst [vmem:[#allocation2 + $0x2a1] sm:$0xff] %v3272_v30  ;;  %v3366_v30 = vld [vmem:[#allocation2 + $0xc0] sm:$0xff] }
 0x66a   :  { %3337 = vst [vmem:[#allocation2 + $0x2a9] sm:$0xff] %v3273_v12 }
 0x66b   :  { %3338 = vst [vmem:[#allocation2 + $0x2b9] sm:$0xff] %v3274_v38 }
 0x66c   :  { %3339 = vst [vmem:[#allocation2 + $0x2c1] sm:$0xff] %v3275_v16 }
 0x66d   :  { %3340 = vst [vmem:[#allocation2 + $0x2d1] sm:$0xff] %v3276_v15  ;;  %4719 = vmatmul.f32.gmra.mxu0 %v3354_v11  ;;  %v4000_v15 = vld [vmem:[%s11332_s4 + $0x250] sm:$0xff]  ;;  %v3367_v11 = vld [vmem:[#allocation2 + $0xc8] sm:$0xff] }
 0x66e   :  { %3341 = vst [vmem:[#allocation2 + $0x2d9] sm:$0xff] %v3277_v26  ;;  %4310 = vmatmul.f32.gmra.mxu2 %v11814_v27  ;;  %v11830_v26 = vmax.f32 %v11829_v58, 0.0  ;;  %4911 = vmatpush.msrb.mxu1 %v4000_v15  ;;  %v3496_v27 = vld [vmem:[#allocation2 + $0xda] sm:$0xff] }
 0x66f   :  { %3342 = vst [vmem:[#allocation2 + $0x2e9] sm:$0xff] %v3278_v47  ;;  %4519 = vmatmul.f32.gmra.mxu3 %v3483_v54  ;;  %v3495_v47 = vld [vmem:[#allocation2 + $0xca] sm:$0xff]  ;;  %v3368_v54 = vld [vmem:[#allocation2 + $0xd8] sm:$0xff] }
 0x670   :  { %3343 = vst [vmem:[#allocation2 + $0x2f1] sm:$0xff] %v3279_v53  ;;  %4101 = vmatmul.f32.gmra.mxu1 %v3355_v48 }
 0x671   :  { %3344 = vst [vmem:[#allocation2 + $0x301] sm:$0xff] %v3280_v0 }
 0x672   :  { %3345 = vst [vmem:[#allocation2 + $0x309] sm:$0xff] %v3281_v34 }
 0x673   :  { %3346 = vst [vmem:[#allocation2 + $0x319] sm:$0xff] %v3282_v42 }
 0x674   :  { %3347 = vst [vmem:[#allocation2 + $0x321] sm:$0xff] %v3283_v23  ;;  %v11831_v23 = vld [vmem:[#allocation68_spill] sm:$0xff] }
 0x675   :  { %3348 = vst [vmem:[#allocation2 + $0x331] sm:$0xff] %v3284_v21  ;;  %4722 = vmatmul.f32.gmra.mxu0 %v3355_v48  ;;  %v11832_v17 = vmax.f32 %v11831_v23, 0.0 }
 0x676   :  { %4313 = vmatmul.f32.gmra.mxu2 %v11815_v51 }
 0x677   :  { %4522 = vmatmul.f32.gmra.mxu3 %v3484_v20 }
 0x678   :  { %4104 = vmatmul.f32.gmra.mxu1 %v3356_v1 }
 0x67d   :  { %4725 = vmatmul.f32.gmra.mxu0 %v3356_v1 }
 0x67e   :  { %4316 = vmatmul.f32.gmra.mxu2 %v11816_v50 }
 0x67f   :  { %4525 = vmatmul.f32.gmra.mxu3 %v3485_v25  ;;  %v11833_v25 = vld [vmem:[#allocation80_spill] sm:$0xff] }
 0x680   :  { %4107 = vmatmul.f32.gmra.mxu1 %v3357_v6 }
 0x685   :  { %4728 = vmatmul.f32.gmra.mxu0 %v3357_v6  ;;  %v11834_v6 = vmax.f32 %v11833_v25, 0.0  ;;  %v3374_v25 = vld [vmem:[#allocation2 + $0x120] sm:$0xff] }
 0x686   :  { %4319 = vmatmul.f32.gmra.mxu2 %v11817_v57 }
 0x687   :  { %4528 = vmatmul.f32.gmra.mxu3 %v3486_v45  ;;  %v3497_v45 = vld [vmem:[#allocation2 + $0xe2] sm:$0xff] }
 0x688   :  { %4110 = vmatmul.f32.gmra.mxu1 %v3358_v52 }
 0x68d   :  { %4731 = vmatmul.f32.gmra.mxu0 %v3358_v52  ;;  %v3369_v52 = vld [vmem:[#allocation2 + $0xe0] sm:$0xff] }
 0x68e   :  { %4322 = vmatmul.f32.gmra.mxu2 %v11818_v39 }
 0x68f   :  { %4531 = vmatmul.f32.gmra.mxu3 %v3487_v61 }
 0x690   :  { %4113 = vmatmul.f32.gmra.mxu1 %v3359_v35 }
 0x695   :  { %4734 = vmatmul.f32.gmra.mxu0 %v3359_v35 }
 0x696   :  { %4325 = vmatmul.f32.gmra.mxu2 %v11819_v14 }
 0x697   :  { %4534 = vmatmul.f32.gmra.mxu3 %v3488_v13  ;;  %v11835_v13 = vld [vmem:[#allocation70_spill] sm:$0xff] }
 0x698   :  { %4116 = vmatmul.f32.gmra.mxu1 %v3360_v19 }
 0x69d   :  { %4737 = vmatmul.f32.gmra.mxu0 %v3360_v19  ;;  %v11836_v19 = vmax.f32 %v11835_v13, 0.0 }
 0x69e   :  { %4328 = vmatmul.f32.gmra.mxu2 %v11820_v7 }
 0x69f   :  { %4537 = vmatmul.f32.gmra.mxu3 %v3489_v29  ;;  %v3498_v29 = vld [vmem:[#allocation2 + $0xf2] sm:$0xff] }
 0x6a0   :  { %4119 = vmatmul.f32.gmra.mxu1 %v3361_v36 }
 0x6a5   :  { %4740 = vmatmul.f32.gmra.mxu0 %v3361_v36  ;;  %v3370_v36 = vld [vmem:[#allocation2 + $0xf0] sm:$0xff] }
 0x6a6   :  { %4331 = vmatmul.f32.gmra.mxu2 %v11821_v60 }
 0x6a7   :  { %4540 = vmatmul.f32.gmra.mxu3 %v3490_v2 }
 0x6a8   :  { %4122 = vmatmul.f32.gmra.mxu1 %v3362_v28 }
 0x6ad   :  { %4743 = vmatmul.f32.gmra.mxu0 %v3362_v28 }
 0x6ae   :  { %4334 = vmatmul.f32.gmra.mxu2 %v11822_v46 }
 0x6af   :  { %4543 = vmatmul.f32.gmra.mxu3 %v3491_v33  ;;  %v3999_v33 = vld [vmem:[%s11332_s4 + $0x248] sm:$0xff] }
 0x6b0   :  { %4125 = vmatmul.f32.gmra.mxu1 %v3363_v56 }
 0x6b1   :  { %4912 = vmatpush.msrb.mxu1 %v3999_v33 }
 0x6b5   :  { %4746 = vmatmul.f32.gmra.mxu0 %v3363_v56  ;;  %v11837_v56 = vld [vmem:[#allocation29_spill] sm:$0xff] }
 0x6b6   :  { %4337 = vmatmul.f32.gmra.mxu2 %v11824_v4  ;;  %v11838_v37 = vmax.f32 %v11837_v56, 0.0  ;;  %v11847_v56 = vld [vmem:[#allocation42_spill] sm:$0xff] }
 0x6b7   :  { %4546 = vmatmul.f32.gmra.mxu3 %v3492_v3  ;;  %v3499_v3 = vld [vmem:[#allocation2 + $0xfa] sm:$0xff] }
 0x6b8   :  { %4128 = vmatmul.f32.gmra.mxu1 %v3364_v49 }
 0x6bd   :  { %4749 = vmatmul.f32.gmra.mxu0 %v3364_v49  ;;  %v3371_v49 = vld [vmem:[#allocation2 + $0xf8] sm:$0xff] }
 0x6be   :  { %4340 = vmatmul.f32.gmra.mxu2 %v11826_v31 }
 0x6bf   :  { %4549 = vmatmul.f32.gmra.mxu3 %v3493_v32 }
 0x6c0   :  { %4131 = vmatmul.f32.gmra.mxu1 %v3365_v22 }
 0x6c4   :  { %v4087_v9 = vpop.f32.mrf.mxu1 }
 0x6c5   :  { %4752 = vmatmul.f32.gmra.mxu0 %v3365_v22 }
 0x6c6   :  { %4343 = vmatmul.f32.gmra.mxu2 %v11828_v10  ;;  %v11839_v10 = vld [vmem:[#allocation71_spill] sm:$0xff] }
 0x6c7   :  { %4552 = vmatmul.f32.gmra.mxu3 %v3494_v40 }
 0x6c8   :  { %v4296_v18 = vpop.f32.mrf.mxu2  ;;  %4134 = vmatmul.f32.gmra.mxu1 %v3366_v30 }
 0x6c9   :  { %v4297_v12 = vadd.f32 %v4296_v18, %v4087_v9  ;;  %v11840_v9 = vmax.f32 %v11839_v10, 0.0  ;;  %v3500_v18 = vld [vmem:[#allocation2 + $0x10a] sm:$0xff] }
 0x6ca   :  { %v4505_v38 = vpop.f32.mrf.mxu3 }
 0x6cb   :  { %v9440_v16 = vadd.f32 %v4505_v38, %v4297_v12 }
 0x6cc   :  { %v4090_v55 = vpop.f32.mrf.mxu1 }
 0x6cd   :  { %4755 = vmatmul.f32.gmra.mxu0 %v3366_v30  ;;  %v3372_v30 = vld [vmem:[#allocation2 + $0x108] sm:$0xff] }
 0x6ce   :  { %4346 = vmatmul.f32.gmra.mxu2 %v11830_v26 }
 0x6cf   :  { %4555 = vmatmul.f32.gmra.mxu3 %v3495_v47 }
 0x6d0   :  { %4137 = vmatmul.f32.gmra.mxu1 %v3367_v11 }
 0x6d1   :  { %v4299_v53 = vpop.f32.mrf.mxu2 }
 0x6d2   :  { %v4300_v0 = vadd.f32 %v4299_v53, %v4090_v55  ;;  %v4508_v34 = vpop.f32.mrf.mxu3  ;;  %v11841_v55 = vld [vmem:[#allocation30_spill] sm:$0xff] }
 0x6d3   :  { %v11842_v47 = vmax.f32 %v11841_v55, 0.0 }
 0x6d4   :  { %v9447_v42 = vadd.f32 %v4508_v34, %v4300_v0  ;;  %v3373_v0 = vld [vmem:[#allocation2 + $0x110] sm:$0xff] }
 0x6d5   :  { %4758 = vmatmul.f32.gmra.mxu0 %v3367_v11  ;;  %v4093_v21 = vpop.f32.mrf.mxu1  ;;  %v3501_v11 = vld [vmem:[#allocation2 + $0x112] sm:$0xff] }
 0x6d6   :  { %4349 = vmatmul.f32.gmra.mxu2 %v11832_v17 }
 0x6d7   :  { %4558 = vmatmul.f32.gmra.mxu3 %v3496_v27 }
 0x6d8   :  { %4140 = vmatmul.f32.gmra.mxu1 %v3368_v54 }
 0x6d9   :  { %v4302_v48 = vpop.f32.mrf.mxu2 }
 0x6da   :  { %v9451_v51 = vpop.f32.mrf.mxu0  ;;  %v4303_v20 = vadd.f32 %v4302_v48, %v4093_v21  ;;  %v4511_v1 = vpop.f32.mrf.mxu3 }
 0x6dc   :  { %v9453_v50 = vadd.f32 %v4511_v1, %v4303_v20  ;;  %v3502_v1 = vld [vmem:[#allocation2 + $0x122] sm:$0xff] }
 0x6dd   :  { %4761 = vmatmul.f32.gmra.mxu0 %v3368_v54  ;;  %v4096_v57 = vpop.f32.mrf.mxu1  ;;  %v11843_v54 = vld [vmem:[#allocation84_spill] sm:$0xff] }
 0x6de   :  { %4352 = vmatmul.f32.gmra.mxu2 %v11834_v6  ;;  %v11844_v48 = vmax.f32 %v11843_v54, 0.0 }
 0x6df   :  { %4561 = vmatmul.f32.gmra.mxu3 %v3497_v45 }
 0x6e0   :  { %4143 = vmatmul.f32.gmra.mxu1 %v3369_v52 }
 0x6e1   :  { %v4305_v8 = vpop.f32.mrf.mxu2 }
 0x6e2   :  { %v9457_v39 = vpop.f32.mrf.mxu0  ;;  %v4306_v61 = vadd.f32 %v4305_v8, %v4096_v57  ;;  %v4514_v35 = vpop.f32.mrf.mxu3 }
 0x6e4   :  { %v9459_v14 = vadd.f32 %v4514_v35, %v4306_v61  ;;  %v3998_v61 = vld [vmem:[%s11332_s4 + $0x240] sm:$0xff]  ;;  %v11845_v35 = vld [vmem:[#allocation73_spill] sm:$0xff] }
 0x6e5   :  { %4764 = vmatmul.f32.gmra.mxu0 %v3369_v52  ;;  %v4099_v7 = vpop.f32.mrf.mxu1  ;;  %v11846_v13 = vmax.f32 %v11845_v35, 0.0  ;;  %4913 = vmatpush.msrb.mxu1 %v3998_v61  ;;  %v3379_v61 = vld [vmem:[#allocation2 + $0x158] sm:$0xff] }
 0x6e6   :  { %4355 = vmatmul.f32.gmra.mxu2 %v11836_v19 }
 0x6e7   :  { %4564 = vmatmul.f32.gmra.mxu3 %v3498_v29  ;;  %v3375_v29 = vld [vmem:[#allocation2 + $0x128] sm:$0xff] }
 0x6e8   :  { %4146 = vmatmul.f32.gmra.mxu1 %v3370_v36 }
 0x6e9   :  { %v4308_v60 = vpop.f32.mrf.mxu2 }
 0x6ea   :  { %v9463_v2 = vpop.f32.mrf.mxu0  ;;  %v4309_v28 = vadd.f32 %v4308_v60, %v4099_v7  ;;  %v4517_v5 = vpop.f32.mrf.mxu3  ;;  %v3503_v7 = vld [vmem:[#allocation2 + $0x12a] sm:$0xff] }
 0x6ec   :  { %v9465_v46 = vadd.f32 %v4517_v5, %v4309_v28 }
 0x6ed   :  { %4767 = vmatmul.f32.gmra.mxu0 %v3370_v36  ;;  %v4102_v4 = vpop.f32.mrf.mxu1 }
 0x6ee   :  { %4358 = vmatmul.f32.gmra.mxu2 %v11838_v37  ;;  %v11848_v37 = vmax.f32 %v11847_v56, 0.0 }
 0x6ef   :  { %4567 = vmatmul.f32.gmra.mxu3 %v3499_v3  ;;  %v3504_v3 = vld [vmem:[#allocation2 + $0x13a] sm:$0xff] }
 0x6f0   :  { %4149 = vmatmul.f32.gmra.mxu1 %v3371_v49 }
 0x6f1   :  { %v4311_v41 = vpop.f32.mrf.mxu2 }
 0x6f2   :  { %v9472_v31 = vpop.f32.mrf.mxu0  ;;  %v4312_v32 = vadd.f32 %v4311_v41, %v4102_v4  ;;  %v4520_v22 = vpop.f32.mrf.mxu3 }
 0x6f4   :  { %v9474_v62 = vadd.f32 %v4520_v22, %v4312_v32 }
 0x6f5   :  { %4770 = vmatmul.f32.gmra.mxu0 %v3371_v49  ;;  %v4105_v40 = vpop.f32.mrf.mxu1  ;;  %v3376_v49 = vld [vmem:[#allocation2 + $0x138] sm:$0xff] }
 0x6f6   :  { %4361 = vmatmul.f32.gmra.mxu2 %v11840_v9 }
 0x6f7   :  { %4570 = vmatmul.f32.gmra.mxu3 %v3500_v18 }
 0x6f8   :  { %4152 = vmatmul.f32.gmra.mxu1 %v3372_v30 }
 0x6f9   :  { %v4314_v12 = vpop.f32.mrf.mxu2 }
 0x6fa   :  { %v9478_v38 = vpop.f32.mrf.mxu0  ;;  %v4315_v15 = vadd.f32 %v4314_v12, %v4105_v40  ;;  %v4523_v58 = vpop.f32.mrf.mxu3  ;;  %v11849_v40 = vld [vmem:[#allocation74_spill] sm:$0xff]  ;;  %v3505_v12 = vld [vmem:[#allocation2 + $0x142] sm:$0xff] }
 0x6fb   :  { %v11850_v18 = vmax.f32 %v11849_v40, 0.0 }
 0x6fc   :  { %v9480_v26 = vadd.f32 %v4523_v58, %v4315_v15  ;;  %v3377_v15 = vld [vmem:[#allocation2 + $0x140] sm:$0xff] }
 0x6fd   :  { %4773 = vmatmul.f32.gmra.mxu0 %v3372_v30  ;;  %v4108_v53 = vpop.f32.mrf.mxu1 }
 0x6fe   :  { %4364 = vmatmul.f32.gmra.mxu2 %v11842_v47 }
 0x6ff   :  { %4573 = vmatmul.f32.gmra.mxu3 %v3501_v11 }
 0x700   :  { %4155 = vmatmul.f32.gmra.mxu1 %v3373_v0 }
 0x701   :  { %v4317_v34 = vpop.f32.mrf.mxu2 }
 0x702   :  { %v9484_v23 = vpop.f32.mrf.mxu0  ;;  %v4318_v17 = vadd.f32 %v4317_v34, %v4108_v53  ;;  %v4526_v21 = vpop.f32.mrf.mxu3 }
 0x704   :  { %v9486_v27 = vadd.f32 %v4526_v21, %v4318_v17  ;;  %v3506_v17 = vld [vmem:[#allocation2 + $0x152] sm:$0xff] }
 0x705   :  { %4776 = vmatmul.f32.gmra.mxu0 %v3373_v0  ;;  %v4111_v20 = vpop.f32.mrf.mxu1  ;;  %v11851_v0 = vmax.f32 %v9266_v24, 0.0  ;;  %v3378_v21 = vld [vmem:[#allocation2 + $0x150] sm:$0xff]  ;;  %v11852_v24 = vmax.f32 %v9274_v59, 0.0 }
 0x706   :  { %4367 = vmatmul.f32.gmra.mxu2 %v11844_v48  ;;  %v3508_v59 = vld [vmem:[#allocation2 + $0x16a] sm:$0xff] }
 0x707   :  { %4576 = vmatmul.f32.gmra.mxu3 %v3502_v1 }
 0x708   :  { %4158 = vmatmul.f32.gmra.mxu1 %v3374_v25 }
 0x709   :  { %v4320_v6 = vpop.f32.mrf.mxu2 }
 0x70a   :  { %v9490_v57 = vpop.f32.mrf.mxu0  ;;  %v4321_v45 = vadd.f32 %v4320_v6, %v4111_v20  ;;  %v4529_v52 = vpop.f32.mrf.mxu3  ;;  %v3997_v6 = vld [vmem:[%s11332_s4 + $0x238] sm:$0xff] }
 0x70b   :  { %4914 = vmatpush.msrb.mxu1 %v3997_v6  ;;  %v3996_v6 = vld [vmem:[%s11332_s4 + $0x230] sm:$0xff] }
 0x70c   :  { %v9492_v8 = vadd.f32 %v4529_v52, %v4321_v45  ;;  %v3507_v52 = vld [vmem:[#allocation2 + $0x15a] sm:$0xff] }
 0x70d   :  { %4779 = vmatmul.f32.gmra.mxu0 %v3374_v25  ;;  %v4114_v19 = vpop.f32.mrf.mxu1  ;;  %4915 = vmatpush.msrb.mxu1 %v3996_v6 }
 0x70e   :  { %4370 = vmatmul.f32.gmra.mxu2 %v11846_v13 }
 0x70f   :  { %4579 = vmatmul.f32.gmra.mxu3 %v3503_v7 }
 0x710   :  { %4161 = vmatmul.f32.gmra.mxu1 %v3375_v29 }
 0x711   :  { %v4323_v36 = vpop.f32.mrf.mxu2 }
 0x712   :  { %v9499_v60 = vpop.f32.mrf.mxu0  ;;  %v4324_v28 = vadd.f32 %v4323_v36, %v4114_v19  ;;  %v4532_v5 = vpop.f32.mrf.mxu3  ;;  %v11853_v36 = vmax.f32 %v9285_v43, 0.0  ;;  %v3381_v43 = vld [vmem:[#allocation2 + $0x170] sm:$0xff] }
 0x714   :  { %v9501_v33 = vadd.f32 %v4532_v5, %v4324_v28  ;;  %v3380_v5 = vld [vmem:[#allocation2 + $0x168] sm:$0xff] }
 0x715   :  { %4782 = vmatmul.f32.gmra.mxu0 %v3375_v29  ;;  %v4117_v4 = vpop.f32.mrf.mxu1 }
 0x716   :  { %4373 = vmatmul.f32.gmra.mxu2 %v11848_v37 }
 0x717   :  { %4582 = vmatmul.f32.gmra.mxu3 %v3504_v3 }
 0x718   :  { %4164 = vmatmul.f32.gmra.mxu1 %v3376_v49 }
 0x719   :  { %v4326_v41 = vpop.f32.mrf.mxu2 }
 0x71a   :  { %v9505_v32 = vpop.f32.mrf.mxu0  ;;  %v4327_v22 = vadd.f32 %v4326_v41, %v4117_v4  ;;  %v4535_v10 = vpop.f32.mrf.mxu3  ;;  %v11854_v41 = vmax.f32 %v9296_v44, 0.0 }
 0x71c   :  { %v9507_v9 = vadd.f32 %v4535_v10, %v4327_v22  ;;  %v3509_v10 = vld [vmem:[#allocation2 + $0x172] sm:$0xff] }
 0x71d   :  { %4785 = vmatmul.f32.gmra.mxu0 %v3376_v49  ;;  %v4120_v30 = vpop.f32.mrf.mxu1 }
 0x71e   :  { %4376 = vmatmul.f32.gmra.mxu2 %v11850_v18 }
 0x71f   :  { %4585 = vmatmul.f32.gmra.mxu3 %v3505_v12 }
 0x720   :  { %4167 = vmatmul.f32.gmra.mxu1 %v3377_v15 }
 0x721   :  { %v4329_v58 = vpop.f32.mrf.mxu2 }
 0x722   :  { %v9511_v55 = vpop.f32.mrf.mxu0  ;;  %v4330_v47 = vadd.f32 %v4329_v58, %v4120_v30  ;;  %v4538_v53 = vpop.f32.mrf.mxu3 }
 0x724   :  { %v9513_v11 = vadd.f32 %v4538_v53, %v4330_v47  ;;  %v3510_v47 = vld [vmem:[#allocation2 + $0x1b2] sm:$0xff] }
 0x725   :  { %4788 = vmatmul.f32.gmra.mxu0 %v3377_v15  ;;  %v4123_v34 = vpop.f32.mrf.mxu1  ;;  %v3446_v15 = vld [vmem:[#allocation2 + $0x1b1] sm:$0xff] }
 0x726   :  { %4379 = vmatmul.f32.gmra.mxu2 %v11851_v0 }
 0x727   :  { %4588 = vmatmul.f32.gmra.mxu3 %v3506_v17 }
 0x728   :  { %4170 = vmatmul.f32.gmra.mxu1 %v3378_v21 }
 0x729   :  { %v4332_v54 = vpop.f32.mrf.mxu2 }
 0x72a   :  { %v9517_v48 = vpop.f32.mrf.mxu0  ;;  %v4333_v20 = vadd.f32 %v4332_v54, %v4123_v34  ;;  %v4541_v1 = vpop.f32.mrf.mxu3  ;;  %v3572_v54 = vld [vmem:[#allocation2 + $0x180] sm:$0xff] }
 0x72c   :  { %v9519_v25 = vadd.f32 %v4541_v1, %v4333_v20  ;;  %v3511_v1 = vld [vmem:[#allocation2 + $0x1ba] sm:$0xff] }
 0x72d   :  { %4791 = vmatmul.f32.gmra.mxu0 %v3378_v21  ;;  %v4126_v45 = vpop.f32.mrf.mxu1  ;;  %v3447_v21 = vld [vmem:[#allocation2 + $0x1b9] sm:$0xff] }
 0x72e   :  { %4382 = vmatmul.f32.gmra.mxu2 %v11852_v24 }
 0x72f   :  { %4591 = vmatmul.f32.gmra.mxu3 %v3507_v52 }
 0x730   :  { %4173 = vmatmul.f32.gmra.mxu1 %v3379_v61 }
 0x731   :  { %v4335_v35 = vpop.f32.mrf.mxu2 }
 0x732   :  { %v9526_v13 = vpop.f32.mrf.mxu0  ;;  %v4336_v19 = vadd.f32 %v4335_v35, %v4126_v45  ;;  %v4544_v7 = vpop.f32.mrf.mxu3 }
 0x734   :  { %v9528_v29 = vadd.f32 %v4544_v7, %v4336_v19  ;;  %v3573_v19 = vld [vmem:[#allocation2 + $0x188] sm:$0xff] }
 0x735   :  { %4794 = vmatmul.f32.gmra.mxu0 %v3379_v61  ;;  %v4129_v28 = vpop.f32.mrf.mxu1 }
 0x736   :  { %4385 = vmatmul.f32.gmra.mxu2 %v11853_v36  ;;  %v3448_v36 = vld [vmem:[#allocation2 + $0x1c9] sm:$0xff] }
 0x737   :  { %4594 = vmatmul.f32.gmra.mxu3 %v3508_v59  ;;  %v3512_v59 = vld [vmem:[#allocation2 + $0x1ca] sm:$0xff] }
 0x738   :  { %4176 = vmatmul.f32.gmra.mxu1 %v3380_v5 }
 0x739   :  { %v4338_v56 = vpop.f32.mrf.mxu2 }
 0x73a   :  { %v9532_v37 = vpop.f32.mrf.mxu0  ;;  %v4339_v4 = vadd.f32 %v4338_v56, %v4129_v28  ;;  %v4547_v3 = vpop.f32.mrf.mxu3 }
 0x73c   :  { %v9534_v49 = vadd.f32 %v4547_v3, %v4339_v4 }
 0x73d   :  { %4797 = vmatmul.f32.gmra.mxu0 %v3380_v5  ;;  %v4132_v22 = vpop.f32.mrf.mxu1  ;;  %v3384_v5 = vld [vmem:[#allocation2 + $0x1c8] sm:$0xff] }
 0x73e   :  { %4388 = vmatmul.f32.gmra.mxu2 %v11854_v41 }
 0x73f   :  { %4597 = vmatmul.f32.gmra.mxu3 %v3509_v10 }
 0x740   :  { %4179 = vmatmul.f32.gmra.mxu1 %v3381_v43 }
 0x741   :  { %v4341_v40 = vpop.f32.mrf.mxu2 }
 0x742   :  { %v9538_v18 = vpop.f32.mrf.mxu0  ;;  %v4342_v30 = vadd.f32 %v4341_v40, %v4132_v22  ;;  %v4550_v12 = vpop.f32.mrf.mxu3  ;;  %v3385_v40 = vld [vmem:[#allocation2 + $0x1d0] sm:$0xff] }
 0x744   :  { %v9540_v58 = vadd.f32 %v4550_v12, %v4342_v30 }
 0x745   :  { %4800 = vmatmul.f32.gmra.mxu0 %v3381_v43  ;;  %v4135_v53 = vpop.f32.mrf.mxu1  ;;  %v3513_v43 = vld [vmem:[#allocation2 + $0x1d2] sm:$0xff] }
 0x746   :  { %4391 = vmatmul.f32.gmra.mxu2 %v3446_v15 }
 0x747   :  { %4600 = vmatmul.f32.gmra.mxu3 %v3510_v47 }
 0x748   :  { %4182 = vmatmul.f32.gmra.mxu1 %v9310_v63 }
 0x749   :  { %v4344_v44 = vpop.f32.mrf.mxu2 }
 0x74a   :  { %v9542_v0 = vpop.f32.mrf.mxu0  ;;  %v4345_v34 = vadd.f32 %v4344_v44, %v4135_v53  ;;  %v4553_v17 = vpop.f32.mrf.mxu3  ;;  %v3450_v44 = vld [vmem:[#allocation2 + $0x1e1] sm:$0xff] }
 0x74c   :  { %v9545_v20 = vadd.f32 %v4553_v17, %v4345_v34  ;;  %v3514_v17 = vld [vmem:[#allocation2 + $0x1e2] sm:$0xff] }
 0x74d   :  { %4803 = vmatmul.f32.gmra.mxu0 %v3572_v54  ;;  %v4138_v24 = vpop.f32.mrf.mxu1 }
 0x74e   :  { %4394 = vmatmul.f32.gmra.mxu2 %v3447_v21  ;;  %v3386_v21 = vld [vmem:[#allocation2 + $0x1e0] sm:$0xff] }
 0x74f   :  { %4603 = vmatmul.f32.gmra.mxu3 %v3511_v1 }
 0x750   :  { %4185 = vmatmul.f32.gmra.mxu1 %v9310_v63  ;;  %v3449_v63 = vld [vmem:[#allocation2 + $0x1d1] sm:$0xff] }
 0x751   :  { %v4347_v45 = vpop.f32.mrf.mxu2 }
 0x752   :  { %v9550_v52 = vpop.f32.mrf.mxu0  ;;  %v4348_v61 = vadd.f32 %v4347_v45, %v4138_v24  ;;  %v4556_v35 = vpop.f32.mrf.mxu3 }
 0x754   :  { %v9553_v7 = vadd.f32 %v4556_v35, %v4348_v61  ;;  %v3451_v61 = vld [vmem:[#allocation2 + $0x1e9] sm:$0xff] }
 0x755   :  { %4806 = vmatmul.f32.gmra.mxu0 %v3573_v19  ;;  %v4141_v28 = vpop.f32.mrf.mxu1  ;;  %v3995_v35 = vld [vmem:[%s11332_s4 + $0x228] sm:$0xff] }
 0x756   :  { %4397 = vmatmul.f32.gmra.mxu2 %v3448_v36  ;;  %4916 = vmatpush.msrb.mxu1 %v3995_v35  ;;  %v3515_v36 = vld [vmem:[#allocation2 + $0x1ea] sm:$0xff] }
 0x757   :  { %4606 = vmatmul.f32.gmra.mxu3 %v3512_v59 }
 0x758   :  { %4188 = vmatmul.f32.gmra.mxu1 %v3384_v5 }
 0x759   :  { %v4350_v56 = vpop.f32.mrf.mxu2 }
 0x75a   :  { %v9555_v4 = vpop.f32.mrf.mxu0  ;;  %v4351_v3 = vadd.f32 %v4350_v56, %v4141_v28  ;;  %v4559_v41 = vpop.f32.mrf.mxu3  ;;  %v3387_v28 = vld [vmem:[#allocation2 + $0x1e8] sm:$0xff] }
 0x75c   :  { %v9557_v22 = vadd.f32 %v4559_v41, %v4351_v3 }
 0x75d   :  { %4809 = vmatmul.f32.gmra.mxu0 %v3384_v5  ;;  %v4144_v10 = vpop.f32.mrf.mxu1 }
 0x75e   :  { %4400 = vmatmul.f32.gmra.mxu2 %v3449_v63  ;;  %v3452_v63 = vld [vmem:[#allocation2 + $0x1f9] sm:$0xff] }
 0x75f   :  { %4609 = vmatmul.f32.gmra.mxu3 %v3513_v43  ;;  %v3516_v43 = vld [vmem:[#allocation2 + $0x1fa] sm:$0xff] }
 0x760   :  { %4191 = vmatmul.f32.gmra.mxu1 %v3385_v40 }
 0x761   :  { %v4353_v30 = vpop.f32.mrf.mxu2 }
 0x762   :  { %v9559_v12 = vpop.f32.mrf.mxu0  ;;  %v4354_v15 = vadd.f32 %v4353_v30, %v4144_v10  ;;  %v4562_v47 = vpop.f32.mrf.mxu3 }
 0x764   :  { %v9561_v53 = vadd.f32 %v4562_v47, %v4354_v15 }
 0x765   :  { %4812 = vmatmul.f32.gmra.mxu0 %v3385_v40  ;;  %v4147_v34 = vpop.f32.mrf.mxu1  ;;  %v3388_v40 = vld [vmem:[#allocation2 + $0x1f8] sm:$0xff] }
 0x766   :  { %4403 = vmatmul.f32.gmra.mxu2 %v3450_v44 }
 0x767   :  { %4612 = vmatmul.f32.gmra.mxu3 %v3514_v17  ;;  %v3453_v17 = vld [vmem:[#allocation2 + $0x201] sm:$0xff] }
 0x768   :  { %4194 = vmatmul.f32.gmra.mxu1 %v3386_v21 }
 0x769   :  { %v4356_v54 = vpop.f32.mrf.mxu2 }
 0x76a   :  { %v9563_v1 = vpop.f32.mrf.mxu0  ;;  %v4357_v6 = vadd.f32 %v4356_v54, %v4147_v34  ;;  %v4565_v24 = vpop.f32.mrf.mxu3  ;;  %v3517_v54 = vld [vmem:[#allocation2 + $0x202] sm:$0xff] }
 0x76c   :  { %v9565_v45 = vadd.f32 %v4565_v24, %v4357_v6  ;;  %v3389_v6 = vld [vmem:[#allocation2 + $0x200] sm:$0xff] }
 0x76d   :  { %4815 = vmatmul.f32.gmra.mxu0 %v3386_v21  ;;  %v4150_v19 = vpop.f32.mrf.mxu1 }
 0x76e   :  { %4406 = vmatmul.f32.gmra.mxu2 %v3451_v61 }
 0x76f   :  { %4615 = vmatmul.f32.gmra.mxu3 %v3515_v36 }
 0x770   :  { %4197 = vmatmul.f32.gmra.mxu1 %v3387_v28 }
 0x771   :  { %v4359_v59 = vpop.f32.mrf.mxu2 }
 0x772   :  { %v9570_v5 = vpop.f32.mrf.mxu0  ;;  %v4360_v56 = vadd.f32 %v4359_v59, %v4150_v19  ;;  %v4568_v3 = vpop.f32.mrf.mxu3 }
 0x774   :  { %v9572_v41 = vadd.f32 %v4568_v3, %v4360_v56  ;;  %v3518_v56 = vld [vmem:[#allocation2 + $0x212] sm:$0xff] }
 0x775   :  { %4818 = vmatmul.f32.gmra.mxu0 %v3387_v28  ;;  %v4153_v10 = vpop.f32.mrf.mxu1  ;;  %v3454_v28 = vld [vmem:[#allocation2 + $0x211] sm:$0xff] }
 0x776   :  { %4409 = vmatmul.f32.gmra.mxu2 %v3452_v63  ;;  %v3390_v3 = vld [vmem:[#allocation2 + $0x210] sm:$0xff] }
 0x777   :  { %4618 = vmatmul.f32.gmra.mxu3 %v3516_v43 }
 0x778   :  { %4200 = vmatmul.f32.gmra.mxu1 %v3388_v40 }
 0x779   :  { %v4362_v30 = vpop.f32.mrf.mxu2 }
 0x77a   :  { %v9574_v15 = vpop.f32.mrf.mxu0  ;;  %v4363_v47 = vadd.f32 %v4362_v30, %v4153_v10  ;;  %v4571_v44 = vpop.f32.mrf.mxu3 }
 0x77c   :  { %v9576_v34 = vadd.f32 %v4571_v44, %v4363_v47  ;;  %v3455_v47 = vld [vmem:[#allocation2 + $0x219] sm:$0xff] }
 0x77d   :  { %4821 = vmatmul.f32.gmra.mxu0 %v3388_v40  ;;  %v4156_v21 = vpop.f32.mrf.mxu1  ;;  %v3994_v44 = vld [vmem:[%s11332_s4 + $0x220] sm:$0xff] }
 0x77e   :  { %4412 = vmatmul.f32.gmra.mxu2 %v3453_v17  ;;  %4917 = vmatpush.msrb.mxu1 %v3994_v44 }
 0x77f   :  { %4621 = vmatmul.f32.gmra.mxu3 %v3517_v54  ;;  %v3391_v54 = vld [vmem:[#allocation2 + $0x218] sm:$0xff] }
 0x780   :  { %4203 = vmatmul.f32.gmra.mxu1 %v3389_v6 }
 0x781   :  { %v4365_v24 = vpop.f32.mrf.mxu2 }
 0x782   :  { %v9578_v61 = vpop.f32.mrf.mxu0  ;;  %v4366_v35 = vadd.f32 %v4365_v24, %v4156_v21  ;;  %v4574_v19 = vpop.f32.mrf.mxu3  ;;  %v3519_v21 = vld [vmem:[#allocation2 + $0x21a] sm:$0xff] }
 0x784   :  { %v9580_v36 = vadd.f32 %v4574_v19, %v4366_v35 }
 0x785   :  { %4824 = vmatmul.f32.gmra.mxu0 %v3389_v6  ;;  %v4159_v59 = vpop.f32.mrf.mxu1 }
 0x786   :  { %4415 = vmatmul.f32.gmra.mxu2 %v3454_v28 }
 0x787   :  { %4624 = vmatmul.f32.gmra.mxu3 %v3518_v56 }
 0x788   :  { %4206 = vmatmul.f32.gmra.mxu1 %v3390_v3 }
 0x789   :  { %v4368_v63 = vpop.f32.mrf.mxu2 }
 0x78a   :  { %v9582_v10 = vpop.f32.mrf.mxu0  ;;  %v4369_v43 = vadd.f32 %v4368_v63, %v4159_v59  ;;  %v4577_v40 = vpop.f32.mrf.mxu3  ;;  %v3456_v59 = vld [vmem:[#allocation2 + $0x229] sm:$0xff] }
 0x78b   :  { %v3392_v63 = vld [vmem:[#allocation2 + $0x228] sm:$0xff] }
 0x78c   :  { %v9584_v30 = vadd.f32 %v4577_v40, %v4369_v43 }
 0x78d   :  { %4827 = vmatmul.f32.gmra.mxu0 %v3390_v3  ;;  %v4162_v17 = vpop.f32.mrf.mxu1  ;;  %v3520_v3 = vld [vmem:[#allocation2 + $0x22a] sm:$0xff] }
 0x78e   :  { %11855 = vst [vmem:[#allocation69_spill] sm:$0xff] %v9584_v30  ;;  %4418 = vmatmul.f32.gmra.mxu2 %v3455_v47 }
 0x78f   :  { %4627 = vmatmul.f32.gmra.mxu3 %v3519_v21 }
 0x790   :  { %4209 = vmatmul.f32.gmra.mxu1 %v3391_v54 }
 0x791   :  { %v4371_v6 = vpop.f32.mrf.mxu2 }
 0x792   :  { %v9589_v24 = vpop.f32.mrf.mxu0  ;;  %v4372_v35 = vadd.f32 %v4371_v6, %v4162_v17  ;;  %v4580_v19 = vpop.f32.mrf.mxu3  ;;  %v3457_v17 = vld [vmem:[#allocation2 + $0x231] sm:$0xff] }
 0x794   :  { %v9591_v28 = vadd.f32 %v4580_v19, %v4372_v35  ;;  %v3521_v35 = vld [vmem:[#allocation2 + $0x232] sm:$0xff] }
 0x795   :  { %4830 = vmatmul.f32.gmra.mxu0 %v3391_v54  ;;  %v4165_v56 = vpop.f32.mrf.mxu1  ;;  %v3393_v54 = vld [vmem:[#allocation2 + $0x230] sm:$0xff] }
 0x796   :  { %11856 = vst [vmem:[#allocation87_spill] sm:$0xff] %v9591_v28  ;;  %4421 = vmatmul.f32.gmra.mxu2 %v3456_v59 }
 0x797   :  { %4630 = vmatmul.f32.gmra.mxu3 %v3520_v3 }
 0x798   :  { %4212 = vmatmul.f32.gmra.mxu1 %v3392_v63 }
 0x799   :  { %v4374_v43 = vpop.f32.mrf.mxu2 }
 0x79a   :  { %v9593_v40 = vpop.f32.mrf.mxu0  ;;  %v4375_v47 = vadd.f32 %v4374_v43, %v4165_v56  ;;  %v4583_v44 = vpop.f32.mrf.mxu3  ;;  %v3458_v56 = vld [vmem:[#allocation2 + $0x241] sm:$0xff] }
 0x79b   :  { %11857 = vst [vmem:[#allocation32_spill] sm:$0xff] %v9593_v40 }
 0x79c   :  { %v9595_v21 = vadd.f32 %v4583_v44, %v4375_v47  ;;  %v3522_v47 = vld [vmem:[#allocation2 + $0x242] sm:$0xff] }
 0x79d   :  { %4833 = vmatmul.f32.gmra.mxu0 %v3392_v63  ;;  %v4168_v6 = vpop.f32.mrf.mxu1  ;;  %v3394_v63 = vld [vmem:[#allocation2 + $0x240] sm:$0xff] }
 0x79e   :  { %11858 = vst [vmem:[#allocation79_spill] sm:$0xff] %v9595_v21  ;;  %4424 = vmatmul.f32.gmra.mxu2 %v3457_v17 }
 0x79f   :  { %4633 = vmatmul.f32.gmra.mxu3 %v3521_v35 }
 0x7a0   :  { %4215 = vmatmul.f32.gmra.mxu1 %v3393_v54 }
 0x7a1   :  { %v4377_v19 = vpop.f32.mrf.mxu2 }
 0x7a2   :  { %v9597_v59 = vpop.f32.mrf.mxu0  ;;  %v4378_v3 = vadd.f32 %v4377_v19, %v4168_v6  ;;  %v4586_v28 = vpop.f32.mrf.mxu3  ;;  %v3459_v6 = vld [vmem:[#allocation2 + $0x249] sm:$0xff] }
 0x7a3   :  { %11859 = vst [vmem:[#allocation76_spill] sm:$0xff] %v9597_v59  ;;  %v3523_v19 = vld [vmem:[#allocation2 + $0x24a] sm:$0xff] }
 0x7a4   :  { %v9599_v30 = vadd.f32 %v4586_v28, %v4378_v3  ;;  %v3993_v28 = vld [vmem:[%s11332_s4 + $0x218] sm:$0xff]  ;;  %v3395_v3 = vld [vmem:[#allocation2 + $0x248] sm:$0xff] }
 0x7a5   :  { %4836 = vmatmul.f32.gmra.mxu0 %v3393_v54  ;;  %v4171_v43 = vpop.f32.mrf.mxu1  ;;  %4918 = vmatpush.msrb.mxu1 %v3993_v28 }
 0x7a6   :  { %11860 = vst [vmem:[#allocation72_spill] sm:$0xff] %v9599_v30  ;;  %4427 = vmatmul.f32.gmra.mxu2 %v3458_v56 }
 0x7a7   :  { %4636 = vmatmul.f32.gmra.mxu3 %v3522_v47 }
 0x7a8   :  { %4218 = vmatmul.f32.gmra.mxu1 %v3394_v63 }
 0x7a9   :  { %v4380_v44 = vpop.f32.mrf.mxu2 }
 0x7aa   :  { %v9601_v17 = vpop.f32.mrf.mxu0  ;;  %v4381_v35 = vadd.f32 %v4380_v44, %v4171_v43  ;;  %v4589_v21 = vpop.f32.mrf.mxu3 }
 0x7ab   :  { %11861 = vst [vmem:[#allocation91_spill] sm:$0xff] %v9601_v17 }
 0x7ac   :  { %v9603_v40 = vadd.f32 %v4589_v21, %v4381_v35 }
 0x7ad   :  { %4839 = vmatmul.f32.gmra.mxu0 %v3394_v63  ;;  %v4174_v54 = vpop.f32.mrf.mxu1  ;;  %v3460_v63 = vld [vmem:[#allocation2 + $0x259] sm:$0xff] }
 0x7ae   :  { %11862 = vst [vmem:[#allocation45_spill] sm:$0xff] %v9603_v40  ;;  %4430 = vmatmul.f32.gmra.mxu2 %v3459_v6  ;;  %v3524_v40 = vld [vmem:[#allocation2 + $0x25a] sm:$0xff] }
 0x7af   :  { %4639 = vmatmul.f32.gmra.mxu3 %v3523_v19  ;;  %v3396_v6 = vld [vmem:[#allocation2 + $0x258] sm:$0xff] }
 0x7b0   :  { %4221 = vmatmul.f32.gmra.mxu1 %v3395_v3 }
 0x7b1   :  { %v4383_v56 = vpop.f32.mrf.mxu2 }
 0x7b2   :  { %v9608_v47 = vpop.f32.mrf.mxu0  ;;  %v4384_v43 = vadd.f32 %v4383_v56, %v4174_v54  ;;  %v4592_v44 = vpop.f32.mrf.mxu3  ;;  %v3461_v54 = vld [vmem:[#allocation2 + $0x261] sm:$0xff] }
 0x7b3   :  { %11863 = vst [vmem:[#allocation83_spill] sm:$0xff] %v9608_v47 }
 0x7b4   :  { %v9610_v21 = vadd.f32 %v4592_v44, %v4384_v43  ;;  %v3525_v43 = vld [vmem:[#allocation2 + $0x262] sm:$0xff] }
 0x7b5   :  { %4842 = vmatmul.f32.gmra.mxu0 %v3395_v3  ;;  %v4177_v35 = vpop.f32.mrf.mxu1  ;;  %v3397_v3 = vld [vmem:[#allocation2 + $0x260] sm:$0xff] }
 0x7b6   :  { %11864 = vst [vmem:[#allocation78_spill] sm:$0xff] %v9610_v21  ;;  %4433 = vmatmul.f32.gmra.mxu2 %v3460_v63 }
 0x7b7   :  { %4642 = vmatmul.f32.gmra.mxu3 %v3524_v40 }
 0x7b8   :  { %4224 = vmatmul.f32.gmra.mxu1 %v3396_v6 }
 0x7b9   :  { %v4386_v28 = vpop.f32.mrf.mxu2 }
 0x7ba   :  { %v9612_v30 = vpop.f32.mrf.mxu0  ;;  %v4387_v19 = vadd.f32 %v4386_v28, %v4177_v35  ;;  %v4595_v17 = vpop.f32.mrf.mxu3  ;;  %v3462_v35 = vld [vmem:[#allocation2 + $0x271] sm:$0xff] }
 0x7bb   :  { %11865 = vst [vmem:[#allocation75_spill] sm:$0xff] %v9612_v30  ;;  %v3526_v28 = vld [vmem:[#allocation2 + $0x272] sm:$0xff] }
 0x7bc   :  { %v9614_v59 = vadd.f32 %v4595_v17, %v4387_v19 }
 0x7bd   :  { %4845 = vmatmul.f32.gmra.mxu0 %v3396_v6  ;;  %v4180_v56 = vpop.f32.mrf.mxu1  ;;  %v3398_v6 = vld [vmem:[#allocation2 + $0x270] sm:$0xff] }
 0x7be   :  { %11866 = vst [vmem:[#allocation94_spill] sm:$0xff] %v9614_v59  ;;  %4436 = vmatmul.f32.gmra.mxu2 %v3461_v54 }
 0x7bf   :  { %4645 = vmatmul.f32.gmra.mxu3 %v3525_v43 }
 0x7c0   :  { %4227 = vmatmul.f32.gmra.mxu1 %v3397_v3 }
 0x7c1   :  { %v4389_v44 = vpop.f32.mrf.mxu2 }
 0x7c2   :  { %v9616_v63 = vpop.f32.mrf.mxu0  ;;  %v4390_v40 = vadd.f32 %v4389_v44, %v4180_v56  ;;  %v4598_v21 = vpop.f32.mrf.mxu3  ;;  %v3463_v56 = vld [vmem:[#allocation2 + $0x279] sm:$0xff] }
 0x7c3   :  { %11867 = vst [vmem:[#allocation35_spill] sm:$0xff] %v9616_v63  ;;  %v3527_v44 = vld [vmem:[#allocation2 + $0x27a] sm:$0xff] }
 0x7c4   :  { %v9618_v47 = vadd.f32 %v4598_v21, %v4390_v40  ;;  %v3992_v21 = vld [vmem:[%s11332_s4 + $0x210] sm:$0xff]  ;;  %v3399_v40 = vld [vmem:[#allocation2 + $0x278] sm:$0xff] }
 0x7c5   :  { %4848 = vmatmul.f32.gmra.mxu0 %v3397_v3  ;;  %v4183_v17 = vpop.f32.mrf.mxu1  ;;  %4919 = vmatpush.msrb.mxu1 %v3992_v21 }
 0x7c6   :  { %11868 = vst [vmem:[#allocation88_spill] sm:$0xff] %v9618_v47  ;;  %4439 = vmatmul.f32.gmra.mxu2 %v3462_v35 }
 0x7c7   :  { %4648 = vmatmul.f32.gmra.mxu3 %v3526_v28 }
 0x7c8   :  { %4230 = vmatmul.f32.gmra.mxu1 %v3398_v6 }
 0x7c9   :  { %v4392_v19 = vpop.f32.mrf.mxu2 }
 0x7ca   :  { %v9620_v54 = vpop.f32.mrf.mxu0  ;;  %v4393_v43 = vadd.f32 %v4392_v19, %v4183_v17  ;;  %v4601_v59 = vpop.f32.mrf.mxu3 }
 0x7cb   :  { %11869 = vst [vmem:[#allocation82_spill] sm:$0xff] %v9620_v54 }
 0x7cc   :  { %v9622_v30 = vadd.f32 %v4601_v59, %v4393_v43 }
 0x7cd   :  { %4851 = vmatmul.f32.gmra.mxu0 %v3398_v6  ;;  %v4186_v3 = vpop.f32.mrf.mxu1  ;;  %v3464_v6 = vld [vmem:[#allocation2 + $0x289] sm:$0xff] }
 0x7ce   :  { %11870 = vst [vmem:[#allocation77_spill] sm:$0xff] %v9622_v30  ;;  %4442 = vmatmul.f32.gmra.mxu2 %v3463_v56  ;;  %v3528_v30 = vld [vmem:[#allocation2 + $0x28a] sm:$0xff] }
 0x7cf   :  { %4651 = vmatmul.f32.gmra.mxu3 %v3527_v44  ;;  %v3400_v56 = vld [vmem:[#allocation2 + $0x288] sm:$0xff] }
 0x7d0   :  { %4233 = vmatmul.f32.gmra.mxu1 %v3399_v40 }
 0x7d1   :  { %v4395_v35 = vpop.f32.mrf.mxu2 }
 0x7d2   :  { %v9627_v28 = vpop.f32.mrf.mxu0  ;;  %v4396_v17 = vadd.f32 %v4395_v35, %v4186_v3  ;;  %v4604_v19 = vpop.f32.mrf.mxu3  ;;  %v3465_v3 = vld [vmem:[#allocation2 + $0x291] sm:$0xff] }
 0x7d3   :  { %11871 = vst [vmem:[#allocation85_spill] sm:$0xff] %v9627_v28 }
 0x7d4   :  { %v9629_v59 = vadd.f32 %v4604_v19, %v4396_v17  ;;  %v3529_v17 = vld [vmem:[#allocation2 + $0x292] sm:$0xff] }
 0x7d5   :  { %4854 = vmatmul.f32.gmra.mxu0 %v3399_v40  ;;  %v4189_v43 = vpop.f32.mrf.mxu1  ;;  %v3401_v40 = vld [vmem:[#allocation2 + $0x290] sm:$0xff] }
 0x7d6   :  { %11872 = vst [vmem:[#allocation81_spill] sm:$0xff] %v9629_v59  ;;  %4445 = vmatmul.f32.gmra.mxu2 %v3464_v6 }
 0x7d7   :  { %4654 = vmatmul.f32.gmra.mxu3 %v3528_v30 }
 0x7d8   :  { %4236 = vmatmul.f32.gmra.mxu1 %v3400_v56 }
 0x7d9   :  { %v4398_v21 = vpop.f32.mrf.mxu2 }
 0x7da   :  { %v9631_v47 = vpop.f32.mrf.mxu0  ;;  %v4399_v44 = vadd.f32 %v4398_v21, %v4189_v43  ;;  %v4607_v54 = vpop.f32.mrf.mxu3  ;;  %v3466_v43 = vld [vmem:[#allocation2 + $0x2a1] sm:$0xff] }
 0x7db   :  { %11873 = vst [vmem:[#allocation48_spill] sm:$0xff] %v9631_v47  ;;  %v3530_v21 = vld [vmem:[#allocation2 + $0x2a2] sm:$0xff] }
 0x7dc   :  { %v9633_v63 = vadd.f32 %v4607_v54, %v4399_v44 }
 0x7dd   :  { %4857 = vmatmul.f32.gmra.mxu0 %v3400_v56  ;;  %v4192_v35 = vpop.f32.mrf.mxu1  ;;  %v3402_v56 = vld [vmem:[#allocation2 + $0x2a0] sm:$0xff] }
 0x7de   :  { %11874 = vst [vmem:[#allocation92_spill] sm:$0xff] %v9633_v63  ;;  %4448 = vmatmul.f32.gmra.mxu2 %v3465_v3 }
 0x7df   :  { %4657 = vmatmul.f32.gmra.mxu3 %v3529_v17 }
 0x7e0   :  { %4239 = vmatmul.f32.gmra.mxu1 %v3401_v40 }
 0x7e1   :  { %v4401_v19 = vpop.f32.mrf.mxu2 }
 0x7e2   :  { %v9635_v6 = vpop.f32.mrf.mxu0  ;;  %v4402_v30 = vadd.f32 %v4401_v19, %v4192_v35  ;;  %v4610_v59 = vpop.f32.mrf.mxu3  ;;  %v3467_v35 = vld [vmem:[#allocation2 + $0x2a9] sm:$0xff] }
 0x7e3   :  { %11875 = vst [vmem:[#allocation89_spill] sm:$0xff] %v9635_v6  ;;  %v3531_v19 = vld [vmem:[#allocation2 + $0x2aa] sm:$0xff] }
 0x7e4   :  { %v9637_v28 = vadd.f32 %v4610_v59, %v4402_v30  ;;  %v3991_v59 = vld [vmem:[%s11332_s4 + $0x208] sm:$0xff] }
 0x7e5   :  { %4860 = vmatmul.f32.gmra.mxu0 %v3401_v40  ;;  %v4195_v54 = vpop.f32.mrf.mxu1  ;;  %4920 = vmatpush.msrb.mxu1 %v3991_v59  ;;  %v3403_v30 = vld [vmem:[#allocation2 + $0x2a8] sm:$0xff] }
 0x7e6   :  { %11876 = vst [vmem:[#allocation86_spill] sm:$0xff] %v9637_v28  ;;  %4451 = vmatmul.f32.gmra.mxu2 %v3466_v43 }
 0x7e7   :  { %4660 = vmatmul.f32.gmra.mxu3 %v3530_v21 }
 0x7e8   :  { %4242 = vmatmul.f32.gmra.mxu1 %v3402_v56 }
 0x7e9   :  { %v4404_v44 = vpop.f32.mrf.mxu2 }
 0x7ea   :  { %v9639_v3 = vpop.f32.mrf.mxu0  ;;  %v4405_v17 = vadd.f32 %v4404_v44, %v4195_v54  ;;  %v4613_v63 = vpop.f32.mrf.mxu3 }
 0x7eb   :  { %11877 = vst [vmem:[#allocation38_spill] sm:$0xff] %v9639_v3 }
 0x7ec   :  { %v9641_v47 = vadd.f32 %v4613_v63, %v4405_v17 }
 0x7ed   :  { %4863 = vmatmul.f32.gmra.mxu0 %v3402_v56  ;;  %v4198_v40 = vpop.f32.mrf.mxu1  ;;  %v3468_v56 = vld [vmem:[#allocation2 + $0x2b9] sm:$0xff] }
 0x7ee   :  { %11878 = vst [vmem:[#allocation93_spill] sm:$0xff] %v9641_v47  ;;  %4454 = vmatmul.f32.gmra.mxu2 %v3467_v35  ;;  %v3532_v47 = vld [vmem:[#allocation2 + $0x2ba] sm:$0xff] }
 0x7ef   :  { %4663 = vmatmul.f32.gmra.mxu3 %v3531_v19  ;;  %v3404_v35 = vld [vmem:[#allocation2 + $0x2b8] sm:$0xff] }
 0x7f0   :  { %4245 = vmatmul.f32.gmra.mxu1 %v3403_v30 }
 0x7f1   :  { %v4407_v43 = vpop.f32.mrf.mxu2 }
 0x7f2   :  { %v9646_v21 = vpop.f32.mrf.mxu0  ;;  %v4408_v54 = vadd.f32 %v4407_v43, %v4198_v40  ;;  %v4616_v44 = vpop.f32.mrf.mxu3  ;;  %v3469_v40 = vld [vmem:[#allocation2 + $0x2c1] sm:$0xff] }
 0x7f3   :  { %11879 = vst [vmem:[#allocation90_spill] sm:$0xff] %v9646_v21 }
 0x7f4   :  { %v9648_v63 = vadd.f32 %v4616_v44, %v4408_v54  ;;  %v3533_v54 = vld [vmem:[#allocation2 + $0x2c2] sm:$0xff] }
 0x7f5   :  { %4866 = vmatmul.f32.gmra.mxu0 %v3403_v30  ;;  %v4201_v17 = vpop.f32.mrf.mxu1  ;;  %v3405_v30 = vld [vmem:[#allocation2 + $0x2c0] sm:$0xff] }
 0x7f6   :  { %11880 = vst [vmem:[#allocation50_spill] sm:$0xff] %v9648_v63  ;;  %4457 = vmatmul.f32.gmra.mxu2 %v3468_v56 }
 0x7f7   :  { %4666 = vmatmul.f32.gmra.mxu3 %v3532_v47 }
 0x7f8   :  { %4248 = vmatmul.f32.gmra.mxu1 %v3404_v35 }
 0x7f9   :  { %v4410_v59 = vpop.f32.mrf.mxu2 }
 0x7fa   :  { %v9650_v28 = vpop.f32.mrf.mxu0  ;;  %v4411_v19 = vadd.f32 %v4410_v59, %v4201_v17  ;;  %v4619_v3 = vpop.f32.mrf.mxu3  ;;  %v3470_v17 = vld [vmem:[#allocation2 + $0x2d1] sm:$0xff] }
 0x7fb   :  { %11881 = vst [vmem:[#allocation96_spill] sm:$0xff] %v9650_v28  ;;  %v3534_v59 = vld [vmem:[#allocation2 + $0x2d2] sm:$0xff] }
 0x7fc   :  { %v9652_v6 = vadd.f32 %v4619_v3, %v4411_v19 }
 0x7fd   :  { %4869 = vmatmul.f32.gmra.mxu0 %v3404_v35  ;;  %v4204_v43 = vpop.f32.mrf.mxu1  ;;  %v3406_v35 = vld [vmem:[#allocation2 + $0x2d0] sm:$0xff] }
 0x7fe   :  { %11882 = vst [vmem:[#allocation41_spill] sm:$0xff] %v9652_v6  ;;  %4460 = vmatmul.f32.gmra.mxu2 %v3469_v40 }
 0x7ff   :  { %4669 = vmatmul.f32.gmra.mxu3 %v3533_v54 }
 0x800   :  { %4251 = vmatmul.f32.gmra.mxu1 %v3405_v30 }
 0x801   :  { %v4413_v44 = vpop.f32.mrf.mxu2 }
 0x802   :  { %v9654_v56 = vpop.f32.mrf.mxu0  ;;  %v4414_v47 = vadd.f32 %v4413_v44, %v4204_v43  ;;  %v4622_v63 = vpop.f32.mrf.mxu3  ;;  %v4021_v43 = vld [vmem:[%s11332_s4 + $0x2f8] sm:$0xff]  ;;  %v4036_v44 = vld [vmem:[%s11332_s4 + $0x370] sm:$0xff] }
 0x803   :  { %11883 = vst [vmem:[#allocation95_spill] sm:$0xff] %v9654_v56  ;;  %v3471_v56 = vld [vmem:[#allocation2 + $0x2d9] sm:$0xff]  ;;  %5115 = vmatpush.msra.mxu2 %v4021_v43 }
 0x804   :  { %v9656_v21 = vadd.f32 %v4622_v63, %v4414_v47  ;;  %v3990_v63 = vld [vmem:[%s11332_s4 + $0x200] sm:$0xff] }
 0x805   :  { %4872 = vmatmul.f32.gmra.mxu0 %v3405_v30  ;;  %v4207_v3 = vpop.f32.mrf.mxu1  ;;  %v4037_v30 = vld [vmem:[%s11332_s4 + $0x378] sm:$0xff]  ;;  %4921 = vmatpush.msrb.mxu1 %v3990_v63  ;;  %v4035_v63 = vld [vmem:[%s11332_s4 + $0x368] sm:$0xff] }
 0x806   :  { %11884 = vst [vmem:[#allocation53_spill] sm:$0xff] %v9656_v21  ;;  %4463 = vmatmul.f32.gmra.mxu2 %v3470_v17  ;;  %v3535_v17 = vld [vmem:[#allocation2 + $0x2da] sm:$0xff]  ;;  %5324 = vmatpush.msra.mxu3 %v4037_v30 }
 0x807   :  { %4672 = vmatmul.f32.gmra.mxu3 %v3534_v59  ;;  %v4018_v30 = vld [vmem:[%s11332_s4 + $0x2e0] sm:$0xff] }
 0x808   :  { %4254 = vmatmul.f32.gmra.mxu1 %v3406_v35  ;;  %5325 = vmatpush.msra.mxu3 %v4036_v44  ;;  %v3472_v44 = vld [vmem:[#allocation2 + $0x2e9] sm:$0xff] }
 0x809   :  { %v4416_v19 = vpop.f32.mrf.mxu2 }
 0x80a   :  { %v9658_v40 = vpop.f32.mrf.mxu0  ;;  %v4417_v54 = vadd.f32 %v4416_v19, %v4207_v3  ;;  %v4625_v6 = vpop.f32.mrf.mxu3  ;;  %v3407_v3 = vld [vmem:[#allocation2 + $0x2d8] sm:$0xff]  ;;  %5326 = vmatpush.msra.mxu3 %v4035_v63 }
 0x80b   :  { %11885 = vst [vmem:[#allocation44_spill] sm:$0xff] %v9658_v40  ;;  %v3604_v40 = vld [vmem:[#allocation2 + $0x330] sm:$0xff] }
 0x80c   :  { %v9660_v28 = vadd.f32 %v4625_v6, %v4417_v54  ;;  %v4020_v6 = vld [vmem:[%s11332_s4 + $0x2f0] sm:$0xff]  ;;  %v4019_v54 = vld [vmem:[%s11332_s4 + $0x2e8] sm:$0xff] }
 0x80d   :  { %4875 = vmatmul.f32.gmra.mxu0 %v3406_v35  ;;  %v4210_v47 = vpop.f32.mrf.mxu1  ;;  %5116 = vmatpush.msra.mxu2 %v4020_v6  ;;  %v4034_v6 = vld [vmem:[%s11332_s4 + $0x360] sm:$0xff] }
 0x80e   :  { %11886 = vst [vmem:[#allocation56_spill] sm:$0xff] %v9660_v28  ;;  %4466 = vmatmul.f32.gmra.mxu2 %v3471_v56  ;;  %5327 = vmatpush.msra.mxu3 %v4034_v6 }
 0x80f   :  { %4675 = vmatmul.f32.gmra.mxu3 %v3535_v17  ;;  %5117 = vmatpush.msra.mxu2 %v4019_v54  ;;  %v4033_v17 = vld [vmem:[%s11332_s4 + $0x358] sm:$0xff]  ;;  %v3408_v54 = vld [vmem:[#allocation2 + $0x2e8] sm:$0xff] }
 0x810   :  { %4257 = vmatmul.f32.gmra.mxu1 %v3407_v3  ;;  %5328 = vmatpush.msra.mxu3 %v4033_v17  ;;  %v3473_v17 = vld [vmem:[#allocation2 + $0x2f1] sm:$0xff] }
 0x811   :  { %v4419_v59 = vpop.f32.mrf.mxu2  ;;  %5118 = vmatpush.msra.mxu2 %v4018_v30  ;;  %v4015_v30 = vld [vmem:[%s11332_s4 + $0x2c8] sm:$0xff] }
 0x812   :  { %v9677_v35 = vpop.f32.mrf.mxu0  ;;  %v4420_v56 = vadd.f32 %v4419_v59, %v4210_v47  ;;  %v4628_v19 = vpop.f32.mrf.mxu3  ;;  %v4017_v47 = vld [vmem:[%s11332_s4 + $0x2d8] sm:$0xff] }
 0x813   :  { %11887 = vst [vmem:[#allocation47_spill] sm:$0xff] %v9677_v35  ;;  %5119 = vmatpush.msra.mxu2 %v4017_v47  ;;  %v4014_v47 = vld [vmem:[%s11332_s4 + $0x2c0] sm:$0xff] }
 0x814   :  { %v9685_v43 = vadd.f32 %v4628_v19, %v4420_v56  ;;  %v3536_v56 = vld [vmem:[#allocation2 + $0x2ea] sm:$0xff] }
 0x815   :  { %4878 = vmatmul.f32.gmra.mxu0 %v3407_v3  ;;  %v4213_v59 = vpop.f32.mrf.mxu1  ;;  %v4016_v19 = vld [vmem:[%s11332_s4 + $0x2d0] sm:$0xff] }
 0x816   :  { %11888 = vst [vmem:[#allocation59_spill] sm:$0xff] %v9685_v43  ;;  %4469 = vmatmul.f32.gmra.mxu2 %v3472_v44  ;;  %v4032_v3 = vld [vmem:[%s11332_s4 + $0x350] sm:$0xff] }
 0x817   :  { %4678 = vmatmul.f32.gmra.mxu3 %v3536_v56  ;;  %5120 = vmatpush.msra.mxu2 %v4016_v19  ;;  %v4031_v56 = vld [vmem:[%s11332_s4 + $0x348] sm:$0xff]  ;;  %v4030_v19 = vld [vmem:[%s11332_s4 + $0x340] sm:$0xff] }
 0x818   :  { %4260 = vmatmul.f32.gmra.mxu1 %v3408_v54  ;;  %5329 = vmatpush.msra.mxu3 %v4032_v3 }
 0x819   :  { %v4422_v63 = vpop.f32.mrf.mxu2  ;;  %5121 = vmatpush.msra.mxu2 %v4015_v30  ;;  %v4012_v30 = vld [vmem:[%s11332_s4 + $0x2b0] sm:$0xff] }
 0x81a   :  { %v9705_v6 = vpop.f32.mrf.mxu0  ;;  %v4423_v44 = vadd.f32 %v4422_v63, %v4213_v59  ;;  %v4631_v43 = vpop.f32.mrf.mxu3  ;;  %v4053_v59 = vld [vmem:[%s11332_s4 + $0x3f8] sm:$0xff]  ;;  %5330 = vmatpush.msra.mxu3 %v4031_v56  ;;  %v3409_v56 = vld [vmem:[#allocation2 + $0x2f0] sm:$0xff] }
 0x81b   :  { %11889 = vst [vmem:[#allocation51_spill] sm:$0xff] %v9705_v6  ;;  %v3537_v63 = vld [vmem:[#allocation2 + $0x2f2] sm:$0xff]  ;;  %5122 = vmatpush.msra.mxu2 %v4014_v47  ;;  %5533 = vmatpush.msra.mxu0 %v4053_v59  ;;  %v4051_v6 = vld [vmem:[%s11332_s4 + $0x3e8] sm:$0xff] }
 0x81c   :  { %v9713_v28 = vadd.f32 %v4631_v43, %v4423_v44  ;;  %v4013_v43 = vld [vmem:[%s11332_s4 + $0x2b8] sm:$0xff]  ;;  %5331 = vmatpush.msra.mxu3 %v4030_v19  ;;  %v4028_v59 = vld [vmem:[%s11332_s4 + $0x330] sm:$0xff]  ;;  %v4011_v19 = vld [vmem:[%s11332_s4 + $0x2a8] sm:$0xff] }
 0x81d   :  { %4881 = vmatmul.f32.gmra.mxu0 %v3408_v54  ;;  %v4216_v3 = vpop.f32.mrf.mxu1  ;;  %v4052_v54 = vld [vmem:[%s11332_s4 + $0x3f0] sm:$0xff]  ;;  %v4029_v44 = vld [vmem:[%s11332_s4 + $0x338] sm:$0xff]  ;;  %5123 = vmatpush.msra.mxu2 %v4013_v43  ;;  %v4027_v43 = vld [vmem:[%s11332_s4 + $0x328] sm:$0xff] }
 0x81e   :  { %11890 = vst [vmem:[#allocation61_spill] sm:$0xff] %v9713_v28  ;;  %4472 = vmatmul.f32.gmra.mxu2 %v3473_v17  ;;  %5534 = vmatpush.msra.mxu0 %v4052_v54  ;;  %v3474_v54 = vld [vmem:[#allocation2 + $0x301] sm:$0xff] }
 0x81f   :  { %4681 = vmatmul.f32.gmra.mxu3 %v3537_v63  ;;  %5124 = vmatpush.msra.mxu2 %v4012_v30  ;;  %v4010_v30 = vld [vmem:[%s11332_s4 + $0x2a0] sm:$0xff] }
 0x820   :  { %4263 = vmatmul.f32.gmra.mxu1 %v3409_v56  ;;  %5332 = vmatpush.msra.mxu3 %v4029_v44  ;;  %v4049_v44 = vld [vmem:[%s11332_s4 + $0x3d8] sm:$0xff] }
 0x821   :  { %v4425_v17 = vpop.f32.mrf.mxu2  ;;  %5535 = vmatpush.msra.mxu0 %v4051_v6  ;;  %v4026_v6 = vld [vmem:[%s11332_s4 + $0x320] sm:$0xff]  ;;  %5125 = vmatpush.msra.mxu2 %v4011_v19 }
 0x822   :  { %v9736_v28 = vpop.f32.mrf.mxu0  ;;  %v4426_v47 = vadd.f32 %v4425_v17, %v4216_v3  ;;  %v4634_v63 = vpop.f32.mrf.mxu3  ;;  %v4050_v3 = vld [vmem:[%s11332_s4 + $0x3e0] sm:$0xff]  ;;  %5333 = vmatpush.msra.mxu3 %v4028_v59  ;;  %v4009_v59 = vld [vmem:[%s11332_s4 + $0x298] sm:$0xff] }
 0x823   :  { %11891 = vst [vmem:[#allocation54_spill] sm:$0xff] %v9736_v28  ;;  %5536 = vmatpush.msra.mxu0 %v4050_v3  ;;  %5126 = vmatpush.msra.mxu2 %v4010_v30  ;;  %v4047_v30 = vld [vmem:[%s11332_s4 + $0x3c8] sm:$0xff]  ;;  %v3734_v28 = vld [vmem:[#allocation2 + $0x30] sm:$0xff] }
 0x824   :  { %v9744_v35 = vadd.f32 %v4634_v63, %v4426_v47  ;;  %v3538_v47 = vld [vmem:[#allocation2 + $0x302] sm:$0xff]  ;;  %5334 = vmatpush.msra.mxu3 %v4027_v43  ;;  %v4025_v63 = vld [vmem:[%s11332_s4 + $0x318] sm:$0xff] }
 0x825   :  { %4884 = vmatmul.f32.gmra.mxu0 %v3409_v56  ;;  %v4219_v17 = vpop.f32.mrf.mxu1  ;;  %v4048_v56 = vld [vmem:[%s11332_s4 + $0x3d0] sm:$0xff]  ;;  %5127 = vmatpush.msra.mxu2 %v4009_v59 }
 0x826   :  { %11892 = vst [vmem:[#allocation63_spill] sm:$0xff] %v9744_v35  ;;  %4475 = vmatmul.f32.gmra.mxu2 %v3474_v54  ;;  %5537 = vmatpush.msra.mxu0 %v4049_v44  ;;  %v3410_v54 = vld [vmem:[#allocation2 + $0x300] sm:$0xff]  ;;  %v4024_v44 = vld [vmem:[%s11332_s4 + $0x310] sm:$0xff] }
 0x827   :  { %4684 = vmatmul.f32.gmra.mxu3 %v3538_v47  ;;  %v4008_v47 = vld [vmem:[%s11332_s4 + $0x290] sm:$0xff] }
 0x828   :  { %5335 = vmatpush.msra.mxu3 %v4026_v6  ;;  %4266 = vmatmul.f32.gmra.mxu1 %v3410_v54  ;;  %v3475_v59 = vld [vmem:[#allocation2 + $0x309] sm:$0xff] }
 0x829   :  { %v4428_v3 = vpop.f32.mrf.mxu2  ;;  %5538 = vmatpush.msra.mxu0 %v4048_v56  ;;  %v4046_v56 = vld [vmem:[%s11332_s4 + $0x3c0] sm:$0xff]  ;;  %5128 = vmatpush.msra.mxu2 %v4008_v47 }
 0x82a   :  { %v9773_v19 = vpop.f32.mrf.mxu0  ;;  %v4429_v43 = vadd.f32 %v4428_v3, %v4219_v17  ;;  %v4637_v35 = vpop.f32.mrf.mxu3  ;;  %5336 = vmatpush.msra.mxu3 %v4025_v63  ;;  %v4007_v17 = vld [vmem:[%s11332_s4 + $0x288] sm:$0xff]  ;;  %v4069_v63 = vld [vmem:[%s11332_s4 + $0x478] sm:$0xff]  ;;  %v4006_v3 = vld [vmem:[%s11332_s4 + $0x280] sm:$0xff] }
 0x82b   :  { %11893 = vst [vmem:[#allocation57_spill] sm:$0xff] %v9773_v19  ;;  %5539 = vmatpush.msra.mxu0 %v4047_v30  ;;  %v3539_v30 = vld [vmem:[#allocation2 + $0x30a] sm:$0xff]  ;;  %5129 = vmatpush.msra.mxu2 %v4007_v17  ;;  %v4022_v47 = vld [vmem:[%s11332_s4 + $0x300] sm:$0xff] }
 0x82c   :  { %v9784_v6 = vadd.f32 %v4637_v35, %v4429_v43  ;;  %5337 = vmatpush.msra.mxu3 %v4024_v44  ;;  %v4023_v35 = vld [vmem:[%s11332_s4 + $0x308] sm:$0xff]  ;;  %5742 = vmatpush.msra.mxu1 %v4069_v63 }
 0x82d   :  { %4887 = vmatmul.f32.gmra.mxu0 %v3410_v54  ;;  %v4222_v43 = vpop.f32.mrf.mxu1  ;;  %v4045_v54 = vld [vmem:[%s11332_s4 + $0x3b8] sm:$0xff]  ;;  %v3411_v44 = vld [vmem:[#allocation2 + $0x308] sm:$0xff]  ;;  %5130 = vmatpush.msra.mxu2 %v4006_v3  ;;  %v4042_v3 = vld [vmem:[%s11332_s4 + $0x3a0] sm:$0xff] }
 0x82e   :  { %11894 = vst [vmem:[#allocation5_spill] sm:$0xff] %v9784_v6  ;;  %4478 = vmatmul.f32.gmra.mxu2 %v3475_v59  ;;  %5540 = vmatpush.msra.mxu0 %v4046_v56  ;;  %v4044_v6 = vld [vmem:[%s11332_s4 + $0x3b0] sm:$0xff] }
 0x82f   :  { %4687 = vmatmul.f32.gmra.mxu3 %v3539_v30  ;;  %v4043_v30 = vld [vmem:[%s11332_s4 + $0x3a8] sm:$0xff] }
 0x830   :  { %5338 = vmatpush.msra.mxu3 %v4023_v35  ;;  %4269 = vmatmul.f32.gmra.mxu1 %v3411_v44  ;;  %v3476_v35 = vld [vmem:[#allocation2 + $0x319] sm:$0xff] }
 0x831   :  { %v4431_v59 = vpop.f32.mrf.mxu2  ;;  %5541 = vmatpush.msra.mxu0 %v4045_v54  ;;  %v4041_v54 = vld [vmem:[%s11332_s4 + $0x398] sm:$0xff] }
 0x832   :  { %v9810_v17 = vpop.f32.mrf.mxu0  ;;  %v4432_v56 = vadd.f32 %v4431_v59, %v4222_v43  ;;  %v4640_v19 = vpop.f32.mrf.mxu3  ;;  %5339 = vmatpush.msra.mxu3 %v4022_v47  ;;  %v3540_v43 = vld [vmem:[#allocation2 + $0x31a] sm:$0xff] }
 0x833   :  { %11895 = vst [vmem:[#allocation3_spill] sm:$0xff] %v9810_v17  ;;  %5542 = vmatpush.msra.mxu0 %v4044_v6  ;;  %v3412_v47 = vld [vmem:[#allocation2 + $0x318] sm:$0xff]  ;;  %v4040_v6 = vld [vmem:[%s11332_s4 + $0x390] sm:$0xff] }
 0x834   :  { %v9815_v63 = vadd.f32 %v4640_v19, %v4432_v56 }
 0x835   :  { %4890 = vmatmul.f32.gmra.mxu0 %v3411_v44  ;;  %v4225_v17 = vpop.f32.mrf.mxu1 }
 0x836   :  { %11896 = vst [vmem:[#allocation6_spill] sm:$0xff] %v9815_v63  ;;  %4481 = vmatmul.f32.gmra.mxu2 %v3476_v35  ;;  %5543 = vmatpush.msra.mxu0 %v4043_v30  ;;  %v4039_v30 = vld [vmem:[%s11332_s4 + $0x388] sm:$0xff] }
 0x837   :  { %4690 = vmatmul.f32.gmra.mxu3 %v3540_v43  ;;  %v4038_v43 = vld [vmem:[%s11332_s4 + $0x380] sm:$0xff] }
 0x838   :  { %5544 = vmatpush.msra.mxu0 %v4042_v3  ;;  %4272 = vmatmul.f32.gmra.mxu1 %v3412_v47  ;;  %v3477_v3 = vld [vmem:[#allocation2 + $0x321] sm:$0xff] }
 0x839   :  { %v4434_v19 = vpop.f32.mrf.mxu2 }
 0x83a   :  { %v9826_v44 = vpop.f32.mrf.mxu0  ;;  %v4435_v59 = vadd.f32 %v4434_v19, %v4225_v17  ;;  %5545 = vmatpush.msra.mxu0 %v4041_v54  ;;  %v4643_v56 = vpop.f32.mrf.mxu3  ;;  %v3413_v17 = vld [vmem:[#allocation2 + $0x320] sm:$0xff] }
 0x83b   :  { %11897 = vst [vmem:[#allocation4_spill] sm:$0xff] %v9826_v44  ;;  %v3541_v44 = vld [vmem:[#allocation2 + $0x322] sm:$0xff] }
 0x83c   :  { %v9831_v35 = vadd.f32 %v4643_v56, %v4435_v59  ;;  %5546 = vmatpush.msra.mxu0 %v4040_v6 }
 0x83d   :  { %4893 = vmatmul.f32.gmra.mxu0 %v3412_v47  ;;  %v4228_v63 = vpop.f32.mrf.mxu1  ;;  %v3670_v47 = vld [vmem:[#allocation2 + $0x1a] sm:$0xff] }
 0x83e   :  { %11898 = vst [vmem:[#allocation7_spill] sm:$0xff] %v9831_v35  ;;  %4484 = vmatmul.f32.gmra.mxu2 %v3477_v3  ;;  %5547 = vmatpush.msra.mxu0 %v4039_v30  ;;  %v3606_v30 = vld [vmem:[#allocation2 + $0x19] sm:$0xff] }
 0x83f   :  { %4693 = vmatmul.f32.gmra.mxu3 %v3541_v44 }
 0x840   :  { %5548 = vmatpush.msra.mxu0 %v4038_v43  ;;  %4275 = vmatmul.f32.gmra.mxu1 %v3413_v17 }
 0x841   :  { %v4437_v54 = vpop.f32.mrf.mxu2 }
 0x842   :  { %v9836_v19 = vpop.f32.mrf.mxu0  ;;  %v4438_v59 = vadd.f32 %v4437_v54, %v4228_v63  ;;  %v4646_v56 = vpop.f32.mrf.mxu3  ;;  %v3671_v63 = vld [vmem:[#allocation2 + $0x22] sm:$0xff] }
 0x843   :  { %11899 = vst [vmem:[#allocation8_spill] sm:$0xff] %v9836_v19 }
 0x844   :  { %v9838_v6 = vadd.f32 %v4646_v56, %v4438_v59  ;;  %v3607_v59 = vld [vmem:[#allocation2 + $0x21] sm:$0xff] }
 0x845   :  { %4896 = vmatmul.f32.gmra.mxu0 %v3413_v17  ;;  %v4231_v35 = vpop.f32.mrf.mxu1  ;;  %v4068_v17 = vld [vmem:[%s11332_s4 + $0x470] sm:$0xff] }
 0x846   :  { %11900 = vst [vmem:[#allocation9_spill] sm:$0xff] %v9838_v6  ;;  %5131 = vmatmul.f32.vlgmr.msra.gmra.mxu2 %v3670_v47  ;;  %5743 = vmatpush.msra.mxu1 %v4068_v17 }
 0x847   :  { %5340 = vmatmul.f32.vlgmr.msra.gmra.mxu3 %v3734_v28  ;;  %v3735_v28 = vld [vmem:[#allocation2 + $0x38] sm:$0xff] }
 0x848   :  { %4922 = vmatmul.f32.vlgmr.msrb.gmra.mxu1 %v3606_v30 }
 0x849   :  { %v4440_v3 = vpop.f32.mrf.mxu2 }
 0x84a   :  { %v9840_v21 = vpop.f32.mrf.mxu0  ;;  %v4441_v44 = vadd.f32 %v4440_v3, %v4231_v35  ;;  %v4649_v43 = vpop.f32.mrf.mxu3  ;;  %v3605_v3 = vld [vmem:[#allocation2 + $0x338] sm:$0xff] }
 0x84b   :  { %11901 = vst [vmem:[#allocation10_spill] sm:$0xff] %v9840_v21 }
 0x84c   :  { %v9842_v19 = vadd.f32 %v4649_v43, %v4441_v44 }
 0x84d   :  { %4899 = vmatmul.f32.gmra.mxu0 %v3604_v40  ;;  %v4234_v54 = vpop.f32.mrf.mxu1  ;;  %v3672_v40 = vld [vmem:[#allocation2 + $0x32] sm:$0xff] }
 0x84e   :  { %11902 = vst [vmem:[#allocation27_spill] sm:$0xff] %v9842_v19  ;;  %5134 = vmatmul.f32.gmra.mxu2 %v3671_v63  ;;  %v3736_v19 = vld [vmem:[#allocation2 + $0x48] sm:$0xff]  ;;  %v3608_v63 = vld [vmem:[#allocation2 + $0x31] sm:$0xff] }
 0x84f   :  { %5343 = vmatmul.f32.gmra.mxu3 %v3735_v28 }
 0x850   :  { %4925 = vmatmul.f32.gmra.mxu1 %v3607_v59 }
 0x851   :  { %v4443_v56 = vpop.f32.mrf.mxu2 }
 0x852   :  { %v9847_v47 = vpop.f32.mrf.mxu0  ;;  %v4444_v35 = vadd.f32 %v4443_v56, %v4234_v54  ;;  %v4652_v30 = vpop.f32.mrf.mxu3  ;;  %v3673_v54 = vld [vmem:[#allocation2 + $0x3a] sm:$0xff]  ;;  %v3737_v56 = vld [vmem:[#allocation2 + $0x50] sm:$0xff] }
 0x853   :  { %11903 = vst [vmem:[#allocation66_spill] sm:$0xff] %v9847_v47 }
 0x854   :  { %v9849_v44 = vadd.f32 %v4652_v30, %v4444_v35  ;;  %v3609_v35 = vld [vmem:[#allocation2 + $0x39] sm:$0xff] }
 0x855   :  { %4902 = vmatmul.f32.gmra.mxu0 %v3605_v3  ;;  %v4237_v43 = vpop.f32.mrf.mxu1 }
 0x856   :  { %11904 = vst [vmem:[#allocation67_spill] sm:$0xff] %v9849_v44  ;;  %5137 = vmatmul.f32.gmra.mxu2 %v3672_v40 }
 0x857   :  { %5346 = vmatmul.f32.gmra.mxu3 %v3736_v19 }
 0x858   :  { %4928 = vmatmul.f32.gmra.mxu1 %v3608_v63 }
 0x859   :  { %v4446_v17 = vpop.f32.mrf.mxu2 }
 0x85a   :  { %v9851_v6 = vpop.f32.mrf.mxu0  ;;  %v4447_v28 = vadd.f32 %v4446_v17, %v4237_v43  ;;  %v4655_v21 = vpop.f32.mrf.mxu3  ;;  %v3674_v43 = vld [vmem:[#allocation2 + $0x4a] sm:$0xff]  ;;  %v3738_v17 = vld [vmem:[#allocation2 + $0x60] sm:$0xff] }
 0x85b   :  { %11905 = vst [vmem:[#allocation22_spill] sm:$0xff] %v9851_v6 }
 0x85c   :  { %v9853_v47 = vadd.f32 %v4655_v21, %v4447_v28 }
 0x85d   :  { %5549 = vmatmul.f32.vlgmr.msra.gmra.mxu0 %v3608_v63  ;;  %v4240_v59 = vpop.f32.mrf.mxu1  ;;  %v3610_v63 = vld [vmem:[#allocation2 + $0x49] sm:$0xff] }
 0x85e   :  { %11906 = vst [vmem:[#allocation33_spill] sm:$0xff] %v9853_v47  ;;  %5140 = vmatmul.f32.gmra.mxu2 %v3673_v54 }
 0x85f   :  { %5349 = vmatmul.f32.gmra.mxu3 %v3737_v56 }
 0x860   :  { %4931 = vmatmul.f32.gmra.mxu1 %v3609_v35 }
 0x861   :  { %v4449_v30 = vpop.f32.mrf.mxu2 }
 0x862   :  { %v9855_v3 = vpop.f32.mrf.mxu0  ;;  %v4450_v19 = vadd.f32 %v4449_v30, %v4240_v59  ;;  %v4658_v40 = vpop.f32.mrf.mxu3  ;;  %v3675_v59 = vld [vmem:[#allocation2 + $0x52] sm:$0xff] }
 0x863   :  { %11907 = vst [vmem:[#allocation24_spill] sm:$0xff] %v9855_v3 }
 0x864   :  { %v9857_v44 = vadd.f32 %v4658_v40, %v4450_v19  ;;  %v3739_v19 = vld [vmem:[#allocation2 + $0x68] sm:$0xff]  ;;  %v3611_v40 = vld [vmem:[#allocation2 + $0x51] sm:$0xff] }
 0x865   :  { %5552 = vmatmul.f32.gmra.mxu0 %v3609_v35  ;;  %v4243_v21 = vpop.f32.mrf.mxu1  ;;  %v4067_v35 = vld [vmem:[%s11332_s4 + $0x468] sm:$0xff] }
 0x866   :  { %11908 = vst [vmem:[#allocation11_spill] sm:$0xff] %v9857_v44  ;;  %5143 = vmatmul.f32.gmra.mxu2 %v3674_v43  ;;  %5744 = vmatpush.msra.mxu1 %v4067_v35 }
 0x867   :  { %5352 = vmatmul.f32.gmra.mxu3 %v3738_v17 }
 0x868   :  { %4934 = vmatmul.f32.gmra.mxu1 %v3610_v63 }
 0x869   :  { %v4452_v28 = vpop.f32.mrf.mxu2 }
 0x86a   :  { %v9859_v54 = vpop.f32.mrf.mxu0  ;;  %v4453_v56 = vadd.f32 %v4452_v28, %v4243_v21  ;;  %v4661_v47 = vpop.f32.mrf.mxu3 }
 0x86b   :  { %11909 = vst [vmem:[#allocation12_spill] sm:$0xff] %v9859_v54 }
 0x86c   :  { %v9861_v6 = vadd.f32 %v4661_v47, %v4453_v56 }
 0x86d   :  { %5555 = vmatmul.f32.gmra.mxu0 %v3610_v63  ;;  %v4246_v30 = vpop.f32.mrf.mxu1  ;;  %v3676_v63 = vld [vmem:[#allocation2 + $0x62] sm:$0xff] }
 0x86e   :  { %11910 = vst [vmem:[#allocation13_spill] sm:$0xff] %v9861_v6  ;;  %5146 = vmatmul.f32.gmra.mxu2 %v3675_v59  ;;  %v3740_v6 = vld [vmem:[#allocation2 + $0x78] sm:$0xff]  ;;  %v3612_v59 = vld [vmem:[#allocation2 + $0x61] sm:$0xff] }
 0x86f   :  { %5355 = vmatmul.f32.gmra.mxu3 %v3739_v19 }
 0x870   :  { %4937 = vmatmul.f32.gmra.mxu1 %v3611_v40 }
 0x871   :  { %v4455_v43 = vpop.f32.mrf.mxu2 }
 0x872   :  { %v9866_v17 = vpop.f32.mrf.mxu0  ;;  %v4456_v21 = vadd.f32 %v4455_v43, %v4246_v30  ;;  %v4664_v28 = vpop.f32.mrf.mxu3  ;;  %v3677_v30 = vld [vmem:[#allocation2 + $0x6a] sm:$0xff] }
 0x873   :  { %11911 = vst [vmem:[#allocation14_spill] sm:$0xff] %v9866_v17 }
 0x874   :  { %v9868_v47 = vadd.f32 %v4664_v28, %v4456_v21  ;;  %v3741_v21 = vld [vmem:[#allocation2 + $0x80] sm:$0xff] }
 0x875   :  { %5558 = vmatmul.f32.gmra.mxu0 %v3611_v40  ;;  %v4249_v56 = vpop.f32.mrf.mxu1  ;;  %v3613_v40 = vld [vmem:[#allocation2 + $0x69] sm:$0xff] }
 0x876   :  { %11912 = vst [vmem:[#allocation15_spill] sm:$0xff] %v9868_v47  ;;  %5149 = vmatmul.f32.gmra.mxu2 %v3676_v63 }
 0x877   :  { %5358 = vmatmul.f32.gmra.mxu3 %v3740_v6 }
 0x878   :  { %4940 = vmatmul.f32.gmra.mxu1 %v3612_v59 }
 0x879   :  { %v4458_v35 = vpop.f32.mrf.mxu2 }
 0x87a   :  { %v9870_v44 = vpop.f32.mrf.mxu0  ;;  %v4459_v19 = vadd.f32 %v4458_v35, %v4249_v56  ;;  %v4667_v54 = vpop.f32.mrf.mxu3  ;;  %v3678_v56 = vld [vmem:[#allocation2 + $0x7a] sm:$0xff]  ;;  %v3742_v35 = vld [vmem:[#allocation2 + $0x90] sm:$0xff] }
 0x87b   :  { %11913 = vst [vmem:[#allocation16_spill] sm:$0xff] %v9870_v44 }
 0x87c   :  { %v9872_v3 = vadd.f32 %v4667_v54, %v4459_v19 }
 0x87d   :  { %5561 = vmatmul.f32.gmra.mxu0 %v3612_v59  ;;  %v4252_v43 = vpop.f32.mrf.mxu1  ;;  %v3614_v59 = vld [vmem:[#allocation2 + $0x79] sm:$0xff] }
 0x87e   :  { %11914 = vst [vmem:[#allocation17_spill] sm:$0xff] %v9872_v3  ;;  %5152 = vmatmul.f32.gmra.mxu2 %v3677_v30 }
 0x87f   :  { %5361 = vmatmul.f32.gmra.mxu3 %v3741_v21 }
 0x880   :  { %4943 = vmatmul.f32.gmra.mxu1 %v3613_v40 }
 0x881   :  { %v4461_v28 = vpop.f32.mrf.mxu2 }
 0x882   :  { %v9874_v63 = vpop.f32.mrf.mxu0  ;;  %v4462_v6 = vadd.f32 %v4461_v28, %v4252_v43  ;;  %v4670_v47 = vpop.f32.mrf.mxu3  ;;  %v3679_v43 = vld [vmem:[#allocation2 + $0x82] sm:$0xff]  ;;  %v3743_v28 = vld [vmem:[#allocation2 + $0x98] sm:$0xff] }
 0x883   :  { %11915 = vst [vmem:[#allocation18_spill] sm:$0xff] %v9874_v63 }
 0x884   :  { %v9876_v17 = vadd.f32 %v4670_v47, %v4462_v6  ;;  %v4066_v47 = vld [vmem:[%s11332_s4 + $0x460] sm:$0xff] }
 0x885   :  { %5564 = vmatmul.f32.gmra.mxu0 %v3613_v40  ;;  %v4255_v54 = vpop.f32.mrf.mxu1  ;;  %5745 = vmatpush.msra.mxu1 %v4066_v47  ;;  %v3615_v6 = vld [vmem:[#allocation2 + $0x81] sm:$0xff] }
 0x886   :  { %11916 = vst [vmem:[#allocation19_spill] sm:$0xff] %v9876_v17  ;;  %5155 = vmatmul.f32.gmra.mxu2 %v3678_v56 }
 0x887   :  { %5364 = vmatmul.f32.gmra.mxu3 %v3742_v35 }
 0x888   :  { %4946 = vmatmul.f32.gmra.mxu1 %v3614_v59 }
 0x889   :  { %v4464_v19 = vpop.f32.mrf.mxu2 }
 0x88a   :  { %v9878_v30 = vpop.f32.mrf.mxu0  ;;  %v4465_v21 = vadd.f32 %v4464_v19, %v4255_v54  ;;  %v4673_v3 = vpop.f32.mrf.mxu3 }
 0x88b   :  { %11917 = vst [vmem:[#allocation21_spill] sm:$0xff] %v9878_v30 }
 0x88c   :  { %v9880_v44 = vadd.f32 %v4673_v3, %v4465_v21 }
 0x88d   :  { %5567 = vmatmul.f32.gmra.mxu0 %v3614_v59  ;;  %v4258_v40 = vpop.f32.mrf.mxu1  ;;  %v3680_v59 = vld [vmem:[#allocation2 + $0x92] sm:$0xff] }
 0x88e   :  { %11918 = vst [vmem:[#allocation23_spill] sm:$0xff] %v9880_v44  ;;  %5158 = vmatmul.f32.gmra.mxu2 %v3679_v43  ;;  %v3744_v44 = vld [vmem:[#allocation2 + $0xa8] sm:$0xff]  ;;  %v3616_v43 = vld [vmem:[#allocation2 + $0x91] sm:$0xff] }
 0x88f   :  { %5367 = vmatmul.f32.gmra.mxu3 %v3743_v28 }
 0x890   :  { %4949 = vmatmul.f32.gmra.mxu1 %v3615_v6 }
 0x891   :  { %v4467_v56 = vpop.f32.mrf.mxu2 }
 0x892   :  { %v9885_v35 = vpop.f32.mrf.mxu0  ;;  %v4468_v54 = vadd.f32 %v4467_v56, %v4258_v40  ;;  %v4676_v19 = vpop.f32.mrf.mxu3  ;;  %v3681_v40 = vld [vmem:[#allocation2 + $0x9a] sm:$0xff] }
 0x893   :  { %11919 = vst [vmem:[#allocation25_spill] sm:$0xff] %v9885_v35 }
 0x894   :  { %v9887_v3 = vadd.f32 %v4676_v19, %v4468_v54  ;;  %v3745_v54 = vld [vmem:[#allocation2 + $0xb0] sm:$0xff] }
 0x895   :  { %5570 = vmatmul.f32.gmra.mxu0 %v3615_v6  ;;  %v4261_v21 = vpop.f32.mrf.mxu1  ;;  %v3617_v6 = vld [vmem:[#allocation2 + $0x99] sm:$0xff] }
 0x896   :  { %11920 = vst [vmem:[#allocation28_spill] sm:$0xff] %v9887_v3  ;;  %5161 = vmatmul.f32.gmra.mxu2 %v3680_v59 }
 0x897   :  { %5370 = vmatmul.f32.gmra.mxu3 %v3744_v44 }
 0x898   :  { %4952 = vmatmul.f32.gmra.mxu1 %v3616_v43 }
 0x899   :  { %v4470_v47 = vpop.f32.mrf.mxu2 }
 0x89a   :  { %v9889_v17 = vpop.f32.mrf.mxu0  ;;  %v4471_v28 = vadd.f32 %v4470_v47, %v4261_v21  ;;  %v4679_v30 = vpop.f32.mrf.mxu3  ;;  %v3682_v21 = vld [vmem:[#allocation2 + $0xaa] sm:$0xff]  ;;  %v3746_v47 = vld [vmem:[#allocation2 + $0xc0] sm:$0xff] }
 0x89b   :  { %11921 = vst [vmem:[#allocation31_spill] sm:$0xff] %v9889_v17 }
 0x89c   :  { %v9891_v63 = vadd.f32 %v4679_v30, %v4471_v28 }
 0x89d   :  { %5573 = vmatmul.f32.gmra.mxu0 %v3616_v43  ;;  %v4264_v56 = vpop.f32.mrf.mxu1  ;;  %v3618_v43 = vld [vmem:[#allocation2 + $0xa9] sm:$0xff] }
 0x89e   :  { %11922 = vst [vmem:[#allocation34_spill] sm:$0xff] %v9891_v63  ;;  %5164 = vmatmul.f32.gmra.mxu2 %v3681_v40 }
 0x89f   :  { %5373 = vmatmul.f32.gmra.mxu3 %v3745_v54 }
 0x8a0   :  { %4955 = vmatmul.f32.gmra.mxu1 %v3617_v6 }
 0x8a1   :  { %v4473_v19 = vpop.f32.mrf.mxu2 }
 0x8a2   :  { %v9893_v59 = vpop.f32.mrf.mxu0  ;;  %v4474_v44 = vadd.f32 %v4473_v19, %v4264_v56  ;;  %v4682_v3 = vpop.f32.mrf.mxu3  ;;  %v3683_v56 = vld [vmem:[#allocation2 + $0xb2] sm:$0xff]  ;;  %v3747_v19 = vld [vmem:[#allocation2 + $0xc8] sm:$0xff] }
 0x8a3   :  { %11923 = vst [vmem:[#allocation37_spill] sm:$0xff] %v9893_v59 }
 0x8a4   :  { %v9895_v35 = vadd.f32 %v4682_v3, %v4474_v44  ;;  %v4065_v3 = vld [vmem:[%s11332_s4 + $0x458] sm:$0xff] }
 0x8a5   :  { %5576 = vmatmul.f32.gmra.mxu0 %v3617_v6  ;;  %v4267_v30 = vpop.f32.mrf.mxu1  ;;  %5746 = vmatpush.msra.mxu1 %v4065_v3  ;;  %v3619_v44 = vld [vmem:[#allocation2 + $0xb1] sm:$0xff] }
 0x8a6   :  { %11924 = vst [vmem:[#allocation40_spill] sm:$0xff] %v9895_v35  ;;  %5167 = vmatmul.f32.gmra.mxu2 %v3682_v21 }
 0x8a7   :  { %5376 = vmatmul.f32.gmra.mxu3 %v3746_v47 }
 0x8a8   :  { %4958 = vmatmul.f32.gmra.mxu1 %v3618_v43 }
 0x8a9   :  { %v4476_v28 = vpop.f32.mrf.mxu2 }
 0x8aa   :  { %v9897_v40 = vpop.f32.mrf.mxu0  ;;  %v4477_v54 = vadd.f32 %v4476_v28, %v4267_v30  ;;  %v4685_v63 = vpop.f32.mrf.mxu3 }
 0x8ab   :  { %11925 = vst [vmem:[#allocation43_spill] sm:$0xff] %v9897_v40 }
 0x8ac   :  { %v9899_v17 = vadd.f32 %v4685_v63, %v4477_v54 }
 0x8ad   :  { %5579 = vmatmul.f32.gmra.mxu0 %v3618_v43  ;;  %v4270_v6 = vpop.f32.mrf.mxu1  ;;  %v3684_v43 = vld [vmem:[#allocation2 + $0xc2] sm:$0xff] }
 0x8ae   :  { %11926 = vst [vmem:[#allocation46_spill] sm:$0xff] %v9899_v17  ;;  %5170 = vmatmul.f32.gmra.mxu2 %v3683_v56  ;;  %v3748_v17 = vld [vmem:[#allocation2 + $0xd8] sm:$0xff]  ;;  %v3620_v56 = vld [vmem:[#allocation2 + $0xc1] sm:$0xff] }
 0x8af   :  { %5379 = vmatmul.f32.gmra.mxu3 %v3747_v19 }
 0x8b0   :  { %4961 = vmatmul.f32.gmra.mxu1 %v3619_v44 }
 0x8b1   :  { %v4479_v21 = vpop.f32.mrf.mxu2 }
 0x8b2   :  { %v9904_v47 = vpop.f32.mrf.mxu0  ;;  %v4480_v30 = vadd.f32 %v4479_v21, %v4270_v6  ;;  %v4688_v28 = vpop.f32.mrf.mxu3  ;;  %v3685_v6 = vld [vmem:[#allocation2 + $0xca] sm:$0xff] }
 0x8b3   :  { %11927 = vst [vmem:[#allocation49_spill] sm:$0xff] %v9904_v47 }
 0x8b4   :  { %v9906_v63 = vadd.f32 %v4688_v28, %v4480_v30  ;;  %v3749_v30 = vld [vmem:[#allocation2 + $0xe0] sm:$0xff] }
 0x8b5   :  { %5582 = vmatmul.f32.gmra.mxu0 %v3619_v44  ;;  %v4273_v54 = vpop.f32.mrf.mxu1  ;;  %v3621_v44 = vld [vmem:[#allocation2 + $0xc9] sm:$0xff] }
 0x8b6   :  { %11928 = vst [vmem:[#allocation52_spill] sm:$0xff] %v9906_v63  ;;  %5173 = vmatmul.f32.gmra.mxu2 %v3684_v43 }
 0x8b7   :  { %5382 = vmatmul.f32.gmra.mxu3 %v3748_v17 }
 0x8b8   :  { %4964 = vmatmul.f32.gmra.mxu1 %v3620_v56 }
 0x8b9   :  { %v4482_v3 = vpop.f32.mrf.mxu2 }
 0x8ba   :  { %v9908_v35 = vpop.f32.mrf.mxu0  ;;  %v4483_v19 = vadd.f32 %v4482_v3, %v4273_v54  ;;  %v4691_v40 = vpop.f32.mrf.mxu3  ;;  %v3686_v54 = vld [vmem:[#allocation2 + $0xda] sm:$0xff]  ;;  %v3750_v3 = vld [vmem:[#allocation2 + $0xf0] sm:$0xff] }
 0x8bb   :  { %11929 = vst [vmem:[#allocation55_spill] sm:$0xff] %v9908_v35  ;;  %v3712_v35 = vld [vmem:[#allocation2 + $0x242] sm:$0xff] }
 0x8bc   :  { %v9910_v59 = vadd.f32 %v4691_v40, %v4483_v19  ;;  %v4715_v40 = vadd.f32 %v9451_v51, %v9440_v16  ;;  %v4064_v16 = vld [vmem:[%s11332_s4 + $0x450] sm:$0xff]  ;;  %v4718_v51 = vadd.f32 %v9457_v39, %v9447_v42  ;;  %v4721_v42 = vadd.f32 %v9463_v2, %v9453_v50 }
 0x8bd   :  { %5585 = vmatmul.f32.gmra.mxu0 %v3620_v56  ;;  %v4276_v21 = vpop.f32.mrf.mxu1  ;;  %5747 = vmatpush.msra.mxu1 %v4064_v16  ;;  %v3624_v16 = vld [vmem:[#allocation2 + $0xf1] sm:$0xff] }
 0x8be   :  { %11930 = vst [vmem:[#allocation58_spill] sm:$0xff] %v9910_v59  ;;  %5176 = vmatmul.f32.gmra.mxu2 %v3685_v6  ;;  %v3622_v6 = vld [vmem:[#allocation2 + $0xd9] sm:$0xff]  ;;  %v3753_v2 = vld [vmem:[#allocation2 + $0x110] sm:$0xff] }
 0x8bf   :  { %5385 = vmatmul.f32.gmra.mxu3 %v3749_v30 }
 0x8c0   :  { %4967 = vmatmul.f32.gmra.mxu1 %v3621_v44 }
 0x8c1   :  { %v4485_v28 = vpop.f32.mrf.mxu2 }
 0x8c2   :  { %v9912_v43 = vpop.f32.mrf.mxu0  ;;  %v4486_v17 = vadd.f32 %v4485_v28, %v4276_v21  ;;  %v4694_v63 = vpop.f32.mrf.mxu3 }
 0x8c3   :  { %11931 = vst [vmem:[#allocation60_spill] sm:$0xff] %v9912_v43 }
 0x8c4   :  { %v9914_v47 = vadd.f32 %v4694_v63, %v4486_v17  ;;  %v3687_v63 = vld [vmem:[#allocation2 + $0xe2] sm:$0xff]  ;;  %v3751_v17 = vld [vmem:[#allocation2 + $0xf8] sm:$0xff] }
 0x8c5   :  { %5588 = vmatmul.f32.gmra.mxu0 %v3621_v44  ;;  %v4923_v56 = vpop.f32.mrf.mxu1 }
 0x8c6   :  { %11932 = vst [vmem:[#allocation62_spill] sm:$0xff] %v9914_v47  ;;  %5179 = vmatmul.f32.gmra.mxu2 %v3686_v54  ;;  %v4924_v19 = vadd.f32 %v4923_v56, %v4715_v40  ;;  %v3623_v40 = vld [vmem:[#allocation2 + $0xe1] sm:$0xff] }
 0x8c7   :  { %5388 = vmatmul.f32.gmra.mxu3 %v3750_v3 }
 0x8c8   :  { %4970 = vmatmul.f32.gmra.mxu1 %v3622_v6 }
 0x8c9   :  { %v5132_v30 = vpop.f32.mrf.mxu2 }
 0x8ca   :  { %v9918_v59 = vpop.f32.mrf.mxu0  ;;  %v5133_v43 = vadd.f32 %v5132_v30, %v4924_v19  ;;  %v5341_v21 = vpop.f32.mrf.mxu3  ;;  %v3688_v30 = vld [vmem:[#allocation2 + $0xf2] sm:$0xff] }
 0x8cb   :  { %11933 = vst [vmem:[#allocation64_spill] sm:$0xff] %v9918_v59 }
 0x8cc   :  { %v9920_v28 = vadd.f32 %v5341_v21, %v5133_v43  ;;  %v3752_v21 = vld [vmem:[#allocation2 + $0x108] sm:$0xff] }
 0x8cd   :  { %5591 = vmatmul.f32.gmra.mxu0 %v3622_v6  ;;  %v4926_v44 = vpop.f32.mrf.mxu1 }
 0x8ce   :  { %5182 = vmatmul.f32.gmra.mxu2 %v3687_v63  ;;  %v4927_v54 = vadd.f32 %v4926_v44, %v4718_v51 }
 0x8cf   :  { %5391 = vmatmul.f32.gmra.mxu3 %v3751_v17 }
 0x8d0   :  { %4973 = vmatmul.f32.gmra.mxu1 %v3623_v40 }
 0x8d1   :  { %v5135_v56 = vpop.f32.mrf.mxu2 }
 0x8d2   :  { %v9927_v3 = vpop.f32.mrf.mxu0  ;;  %v5136_v43 = vadd.f32 %v5135_v56, %v4927_v54  ;;  %v5344_v19 = vpop.f32.mrf.mxu3 }
 0x8d3   :  { %11934 = vst [vmem:[#allocation65_spill] sm:$0xff] %v9927_v3  ;;  %v3828_v3 = vld [vmem:[#allocation2 + $0x199] sm:$0xff] }
 0x8d4   :  { %v9929_v6 = vadd.f32 %v5344_v19, %v5136_v43  ;;  %v4724_v43 = vadd.f32 %v9472_v31, %v9459_v14  ;;  %v3754_v31 = vld [vmem:[#allocation2 + $0x120] sm:$0xff] }
 0x8d5   :  { %5594 = vmatmul.f32.gmra.mxu0 %v3623_v40  ;;  %v4929_v39 = vpop.f32.mrf.mxu1  ;;  %v3689_v40 = vld [vmem:[#allocation2 + $0xfa] sm:$0xff] }
 0x8d6   :  { %5185 = vmatmul.f32.gmra.mxu2 %v3688_v30  ;;  %v4930_v63 = vadd.f32 %v4929_v39, %v4721_v42  ;;  %v3625_v30 = vld [vmem:[#allocation2 + $0xf9] sm:$0xff] }
 0x8d7   :  { %5394 = vmatmul.f32.gmra.mxu3 %v3752_v21 }
 0x8d8   :  { %4976 = vmatmul.f32.gmra.mxu1 %v3624_v16 }
 0x8d9   :  { %v5138_v51 = vpop.f32.mrf.mxu2 }
 0x8da   :  { %v9933_v44 = vpop.f32.mrf.mxu0  ;;  %v5139_v17 = vadd.f32 %v5138_v51, %v4930_v63  ;;  %v5347_v54 = vpop.f32.mrf.mxu3 }
 0x8dc   :  { %v9935_v56 = vadd.f32 %v5347_v54, %v5139_v17  ;;  %v4727_v17 = vadd.f32 %v9478_v38, %v9465_v46  ;;  %v4063_v46 = vld [vmem:[%s11332_s4 + $0x448] sm:$0xff]  ;;  %v4730_v38 = vadd.f32 %v9484_v23, %v9474_v62  ;;  %v4733_v62 = vadd.f32 %v9490_v57, %v9480_v26  ;;  %v3757_v57 = vld [vmem:[#allocation2 + $0x140] sm:$0xff] }
 0x8dd   :  { %5597 = vmatmul.f32.gmra.mxu0 %v3624_v16  ;;  %v4932_v50 = vpop.f32.mrf.mxu1  ;;  %v3690_v16 = vld [vmem:[#allocation2 + $0x10a] sm:$0xff]  ;;  %5748 = vmatpush.msra.mxu1 %v4063_v46  ;;  %v3628_v46 = vld [vmem:[#allocation2 + $0x121] sm:$0xff] }
 0x8de   :  { %5188 = vmatmul.f32.gmra.mxu2 %v3689_v40  ;;  %v4933_v19 = vadd.f32 %v4932_v50, %v4724_v43  ;;  %v3626_v40 = vld [vmem:[#allocation2 + $0x109] sm:$0xff] }
 0x8df   :  { %5397 = vmatmul.f32.gmra.mxu3 %v3753_v2 }
 0x8e0   :  { %4979 = vmatmul.f32.gmra.mxu1 %v3625_v30 }
 0x8e1   :  { %v5141_v42 = vpop.f32.mrf.mxu2 }
 0x8e2   :  { %v9939_v39 = vpop.f32.mrf.mxu0  ;;  %v5142_v21 = vadd.f32 %v5141_v42, %v4933_v19  ;;  %v5350_v63 = vpop.f32.mrf.mxu3 }
 0x8e4   :  { %v9941_v51 = vadd.f32 %v5350_v63, %v5142_v21  ;;  %v3755_v63 = vld [vmem:[#allocation2 + $0x128] sm:$0xff] }
 0x8e5   :  { %5600 = vmatmul.f32.gmra.mxu0 %v3625_v30  ;;  %v4935_v14 = vpop.f32.mrf.mxu1  ;;  %v3691_v30 = vld [vmem:[#allocation2 + $0x112] sm:$0xff] }
 0x8e6   :  { %5191 = vmatmul.f32.gmra.mxu2 %v3690_v16  ;;  %v4936_v54 = vadd.f32 %v4935_v14, %v4727_v17  ;;  %v3627_v17 = vld [vmem:[#allocation2 + $0x111] sm:$0xff] }
 0x8e7   :  { %5400 = vmatmul.f32.gmra.mxu3 %v3754_v31 }
 0x8e8   :  { %4982 = vmatmul.f32.gmra.mxu1 %v3626_v40 }
 0x8e9   :  { %v5144_v43 = vpop.f32.mrf.mxu2 }
 0x8ea   :  { %v9945_v50 = vpop.f32.mrf.mxu0  ;;  %v5145_v2 = vadd.f32 %v5144_v43, %v4936_v54  ;;  %v5353_v19 = vpop.f32.mrf.mxu3 }
 0x8ec   :  { %v9947_v42 = vadd.f32 %v5353_v19, %v5145_v2  ;;  %v3692_v2 = vld [vmem:[#allocation2 + $0x122] sm:$0xff]  ;;  %v3756_v19 = vld [vmem:[#allocation2 + $0x138] sm:$0xff] }
 0x8ed   :  { %5603 = vmatmul.f32.gmra.mxu0 %v3626_v40  ;;  %v4938_v21 = vpop.f32.mrf.mxu1 }
 0x8ee   :  { %5194 = vmatmul.f32.gmra.mxu2 %v3691_v30  ;;  %v4939_v16 = vadd.f32 %v4938_v21, %v4730_v38 }
 0x8ef   :  { %5403 = vmatmul.f32.gmra.mxu3 %v3755_v63 }
 0x8f0   :  { %4985 = vmatmul.f32.gmra.mxu1 %v3627_v17 }
 0x8f1   :  { %v5147_v14 = vpop.f32.mrf.mxu2 }
 0x8f2   :  { %v9954_v31 = vpop.f32.mrf.mxu0  ;;  %v5148_v54 = vadd.f32 %v5147_v14, %v4939_v16  ;;  %v5356_v40 = vpop.f32.mrf.mxu3 }
 0x8f4   :  { %v9956_v43 = vadd.f32 %v5356_v40, %v5148_v54  ;;  %v4736_v54 = vadd.f32 %v9499_v60, %v9486_v27  ;;  %v3758_v60 = vld [vmem:[#allocation2 + $0x150] sm:$0xff] }
 0x8f5   :  { %5606 = vmatmul.f32.gmra.mxu0 %v3627_v17  ;;  %v4941_v23 = vpop.f32.mrf.mxu1  ;;  %v3693_v17 = vld [vmem:[#allocation2 + $0x12a] sm:$0xff] }
 0x8f6   :  { %5197 = vmatmul.f32.gmra.mxu2 %v3692_v2  ;;  %v4942_v30 = vadd.f32 %v4941_v23, %v4733_v62  ;;  %v3629_v2 = vld [vmem:[#allocation2 + $0x129] sm:$0xff] }
 0x8f7   :  { %5406 = vmatmul.f32.gmra.mxu3 %v3756_v19 }
 0x8f8   :  { %4988 = vmatmul.f32.gmra.mxu1 %v3628_v46 }
 0x8f9   :  { %v5150_v38 = vpop.f32.mrf.mxu2 }
 0x8fa   :  { %v9960_v21 = vpop.f32.mrf.mxu0  ;;  %v5151_v63 = vadd.f32 %v5150_v38, %v4942_v30  ;;  %v5359_v16 = vpop.f32.mrf.mxu3 }
 0x8fc   :  { %v9962_v14 = vadd.f32 %v5359_v16, %v5151_v63  ;;  %v4739_v63 = vadd.f32 %v9505_v32, %v9492_v8  ;;  %v4062_v8 = vld [vmem:[%s11332_s4 + $0x440] sm:$0xff]  ;;  %v4742_v32 = vadd.f32 %v9511_v55, %v9501_v33  ;;  %v4745_v33 = vadd.f32 %v9517_v48, %v9507_v9  ;;  %v3761_v48 = vld [vmem:[#allocation2 + $0x170] sm:$0xff] }
 0x8fd   :  { %5609 = vmatmul.f32.gmra.mxu0 %v3628_v46  ;;  %v4944_v26 = vpop.f32.mrf.mxu1  ;;  %v3694_v46 = vld [vmem:[#allocation2 + $0x13a] sm:$0xff]  ;;  %5749 = vmatpush.msra.mxu1 %v4062_v8  ;;  %v3632_v8 = vld [vmem:[#allocation2 + $0x151] sm:$0xff] }
 0x8fe   :  { %5200 = vmatmul.f32.gmra.mxu2 %v3693_v17  ;;  %v4945_v40 = vadd.f32 %v4944_v26, %v4736_v54  ;;  %v3630_v17 = vld [vmem:[#allocation2 + $0x139] sm:$0xff] }
 0x8ff   :  { %5409 = vmatmul.f32.gmra.mxu3 %v3757_v57 }
 0x900   :  { %4991 = vmatmul.f32.gmra.mxu1 %v3629_v2 }
 0x901   :  { %v5153_v62 = vpop.f32.mrf.mxu2 }
 0x902   :  { %v9966_v23 = vpop.f32.mrf.mxu0  ;;  %v5154_v19 = vadd.f32 %v5153_v62, %v4945_v40  ;;  %v5362_v30 = vpop.f32.mrf.mxu3 }
 0x904   :  { %v9968_v38 = vadd.f32 %v5362_v30, %v5154_v19  ;;  %v3759_v30 = vld [vmem:[#allocation2 + $0x158] sm:$0xff] }
 0x905   :  { %5612 = vmatmul.f32.gmra.mxu0 %v3629_v2  ;;  %v4947_v27 = vpop.f32.mrf.mxu1  ;;  %v3695_v2 = vld [vmem:[#allocation2 + $0x142] sm:$0xff] }
 0x906   :  { %5203 = vmatmul.f32.gmra.mxu2 %v3694_v46  ;;  %v4948_v16 = vadd.f32 %v4947_v27, %v4739_v63  ;;  %v3631_v63 = vld [vmem:[#allocation2 + $0x141] sm:$0xff] }
 0x907   :  { %5412 = vmatmul.f32.gmra.mxu3 %v3758_v60 }
 0x908   :  { %4994 = vmatmul.f32.gmra.mxu1 %v3630_v17 }
 0x909   :  { %v5156_v54 = vpop.f32.mrf.mxu2 }
 0x90a   :  { %v9972_v26 = vpop.f32.mrf.mxu0  ;;  %v5157_v57 = vadd.f32 %v5156_v54, %v4948_v16  ;;  %v5365_v40 = vpop.f32.mrf.mxu3 }
 0x90c   :  { %v9974_v62 = vadd.f32 %v5365_v40, %v5157_v57  ;;  %v3696_v57 = vld [vmem:[#allocation2 + $0x152] sm:$0xff]  ;;  %v3760_v40 = vld [vmem:[#allocation2 + $0x168] sm:$0xff] }
 0x90d   :  { %5615 = vmatmul.f32.gmra.mxu0 %v3630_v17  ;;  %v4950_v19 = vpop.f32.mrf.mxu1 }
 0x90e   :  { %5206 = vmatmul.f32.gmra.mxu2 %v3695_v2  ;;  %v4951_v46 = vadd.f32 %v4950_v19, %v4742_v32 }
 0x90f   :  { %5415 = vmatmul.f32.gmra.mxu3 %v3759_v30 }
 0x910   :  { %4997 = vmatmul.f32.gmra.mxu1 %v3631_v63 }
 0x911   :  { %v5159_v27 = vpop.f32.mrf.mxu2 }
 0x912   :  { %v9981_v60 = vpop.f32.mrf.mxu0  ;;  %v5160_v16 = vadd.f32 %v5159_v27, %v4951_v46  ;;  %v5368_v17 = vpop.f32.mrf.mxu3 }
 0x914   :  { %v9983_v54 = vadd.f32 %v5368_v17, %v5160_v16  ;;  %v4748_v16 = vadd.f32 %v9526_v13, %v9513_v11  ;;  %v3762_v13 = vld [vmem:[#allocation2 + $0x180] sm:$0xff] }
 0x915   :  { %5618 = vmatmul.f32.gmra.mxu0 %v3631_v63  ;;  %v4953_v55 = vpop.f32.mrf.mxu1  ;;  %v3697_v63 = vld [vmem:[#allocation2 + $0x15a] sm:$0xff] }
 0x916   :  { %5209 = vmatmul.f32.gmra.mxu2 %v3696_v57  ;;  %v4954_v2 = vadd.f32 %v4953_v55, %v4745_v33  ;;  %v3633_v57 = vld [vmem:[#allocation2 + $0x159] sm:$0xff] }
 0x917   :  { %5418 = vmatmul.f32.gmra.mxu3 %v3760_v40 }
 0x918   :  { %5000 = vmatmul.f32.gmra.mxu1 %v3632_v8 }
 0x919   :  { %v5162_v32 = vpop.f32.mrf.mxu2 }
 0x91a   :  { %v9987_v19 = vpop.f32.mrf.mxu0  ;;  %v5163_v30 = vadd.f32 %v5162_v32, %v4954_v2  ;;  %v5371_v46 = vpop.f32.mrf.mxu3 }
 0x91c   :  { %v9989_v27 = vadd.f32 %v5371_v46, %v5163_v30  ;;  %v4751_v30 = vadd.f32 %v9532_v37, %v9519_v25  ;;  %v4061_v25 = vld [vmem:[%s11332_s4 + $0x438] sm:$0xff]  ;;  %v4754_v37 = vadd.f32 %v9538_v18, %v9528_v29  ;;  %v4757_v29 = vadd.f32 %v9542_v0, %v9534_v49 }
 0x91d   :  { %5621 = vmatmul.f32.gmra.mxu0 %v3632_v8  ;;  %v4956_v9 = vpop.f32.mrf.mxu1  ;;  %v3698_v8 = vld [vmem:[#allocation2 + $0x16a] sm:$0xff]  ;;  %5750 = vmatpush.msra.mxu1 %v4061_v25  ;;  %v3636_v25 = vld [vmem:[#allocation2 + $0x181] sm:$0xff]  ;;  %v4760_v49 = vadd.f32 %v9550_v52, %v9540_v58 }
 0x91e   :  { %5212 = vmatmul.f32.gmra.mxu2 %v3697_v63  ;;  %v4957_v17 = vadd.f32 %v4956_v9, %v4748_v16  ;;  %v3634_v63 = vld [vmem:[#allocation2 + $0x169] sm:$0xff]  ;;  %v3766_v52 = vld [vmem:[#allocation2 + $0x1e0] sm:$0xff] }
 0x91f   :  { %5421 = vmatmul.f32.gmra.mxu3 %v3761_v48 }
 0x920   :  { %5003 = vmatmul.f32.gmra.mxu1 %v3633_v57 }
 0x921   :  { %v5165_v33 = vpop.f32.mrf.mxu2 }
 0x922   :  { %v9993_v55 = vpop.f32.mrf.mxu0  ;;  %v5166_v40 = vadd.f32 %v5165_v33, %v4957_v17  ;;  %v5374_v2 = vpop.f32.mrf.mxu3 }
 0x924   :  { %v9995_v32 = vadd.f32 %v5374_v2, %v5166_v40  ;;  %v3763_v2 = vld [vmem:[#allocation2 + $0x188] sm:$0xff] }
 0x925   :  { %5624 = vmatmul.f32.gmra.mxu0 %v3633_v57  ;;  %v4959_v11 = vpop.f32.mrf.mxu1  ;;  %v3699_v57 = vld [vmem:[#allocation2 + $0x172] sm:$0xff] }
 0x926   :  { %5215 = vmatmul.f32.gmra.mxu2 %v3698_v8  ;;  %v4960_v46 = vadd.f32 %v4959_v11, %v4751_v30  ;;  %v3635_v30 = vld [vmem:[#allocation2 + $0x171] sm:$0xff] }
 0x927   :  { %5424 = vmatmul.f32.gmra.mxu3 %v3762_v13 }
 0x928   :  { %5006 = vmatmul.f32.gmra.mxu1 %v3634_v63 }
 0x929   :  { %v5168_v16 = vpop.f32.mrf.mxu2 }
 0x92a   :  { %v9999_v9 = vpop.f32.mrf.mxu0  ;;  %v5169_v48 = vadd.f32 %v5168_v16, %v4960_v46  ;;  %v5377_v17 = vpop.f32.mrf.mxu3 }
 0x92c   :  { %v10001_v33 = vadd.f32 %v5377_v17, %v5169_v48  ;;  %v3700_v48 = vld [vmem:[#allocation2 + $0x182] sm:$0xff] }
 0x92d   :  { %5627 = vmatmul.f32.gmra.mxu0 %v3634_v63  ;;  %v4962_v40 = vpop.f32.mrf.mxu1 }
 0x92e   :  { %5218 = vmatmul.f32.gmra.mxu2 %v3699_v57  ;;  %v4963_v8 = vadd.f32 %v4962_v40, %v4754_v37  ;;  %v10014_v57 = vld [vmem:[#allocation2 + $0x1b0] sm:$0xff] }
 0x92f   :  { %5427 = vmatmul.f32.gmra.mxu3 %v3763_v2 }
 0x930   :  { %5009 = vmatmul.f32.gmra.mxu1 %v3635_v30 }
 0x931   :  { %v5171_v11 = vpop.f32.mrf.mxu2 }
 0x932   :  { %v10008_v13 = vpop.f32.mrf.mxu0  ;;  %v5172_v46 = vadd.f32 %v5171_v11, %v4963_v8  ;;  %v5380_v63 = vpop.f32.mrf.mxu3 }
 0x934   :  { %v10010_v16 = vadd.f32 %v5380_v63, %v5172_v46  ;;  %v3637_v63 = vld [vmem:[#allocation2 + $0x189] sm:$0xff] }
 0x935   :  { %5630 = vmatmul.f32.gmra.mxu0 %v3635_v30  ;;  %v4965_v18 = vpop.f32.mrf.mxu1  ;;  %v3701_v30 = vld [vmem:[#allocation2 + $0x18a] sm:$0xff] }
 0x936   :  { %5221 = vmatmul.f32.gmra.mxu2 %v3700_v48  ;;  %v4966_v17 = vadd.f32 %v4965_v18, %v4757_v29 }
 0x937   :  { %5430 = vmatmul.f32.gmra.mxu3 %v10014_v57 }
 0x938   :  { %5012 = vmatmul.f32.gmra.mxu1 %v3636_v25 }
 0x939   :  { %v5174_v37 = vpop.f32.mrf.mxu2 }
 0x93a   :  { %v10017_v40 = vpop.f32.mrf.mxu0  ;;  %v5175_v2 = vadd.f32 %v5174_v37, %v4966_v17  ;;  %v5383_v8 = vpop.f32.mrf.mxu3 }
 0x93c   :  { %v10019_v11 = vadd.f32 %v5383_v8, %v5175_v2  ;;  %v4763_v2 = vadd.f32 %v9555_v4, %v9545_v20  ;;  %v4060_v20 = vld [vmem:[%s11332_s4 + $0x430] sm:$0xff]  ;;  %v4766_v4 = vadd.f32 %v9559_v12, %v9553_v7  ;;  %v4769_v7 = vadd.f32 %v9563_v1, %v9557_v22  ;;  %v3769_v1 = vld [vmem:[#allocation2 + $0x200] sm:$0xff] }
 0x93d   :  { %5633 = vmatmul.f32.gmra.mxu0 %v3636_v25  ;;  %v4968_v0 = vpop.f32.mrf.mxu1  ;;  %v3702_v25 = vld [vmem:[#allocation2 + $0x1ca] sm:$0xff]  ;;  %5751 = vmatpush.msra.mxu1 %v4060_v20 }
 0x93e   :  { %11935 = vst [vmem:[#allocation36_spill] sm:$0xff] %v10019_v11  ;;  %5224 = vmatmul.f32.gmra.mxu2 %v3701_v30  ;;  %v4969_v46 = vadd.f32 %v4968_v0, %v4760_v49  ;;  %v3638_v30 = vld [vmem:[#allocation2 + $0x1c9] sm:$0xff] }
 0x93f   :  { %5433 = vmatmul.f32.gmra.mxu3 %v10014_v57  ;;  %v3895_v11 = vld [vmem:[#allocation2 + $0x1ea] sm:$0xff] }
 0x940   :  { %5015 = vmatmul.f32.gmra.mxu1 %v3637_v63 }
 0x941   :  { %v5177_v48 = vpop.f32.mrf.mxu2 }
 0x942   :  { %v10024_v29 = vpop.f32.mrf.mxu0  ;;  %v5178_v18 = vadd.f32 %v5177_v48, %v4969_v46  ;;  %v5386_v17 = vpop.f32.mrf.mxu3 }
 0x944   :  { %v10026_v37 = vadd.f32 %v5386_v17, %v5178_v18 }
 0x945   :  { %5636 = vmatmul.f32.gmra.mxu0 %v3637_v63  ;;  %v4971_v58 = vpop.f32.mrf.mxu1  ;;  %v3703_v63 = vld [vmem:[#allocation2 + $0x1d2] sm:$0xff] }
 0x946   :  { %11936 = vst [vmem:[#allocation26_spill] sm:$0xff] %v10026_v37  ;;  %5227 = vmatmul.f32.gmra.mxu2 %v3702_v25  ;;  %v4972_v8 = vadd.f32 %v4971_v58, %v4763_v2  ;;  %v3767_v25 = vld [vmem:[#allocation2 + $0x1e8] sm:$0xff]  ;;  %v3639_v58 = vld [vmem:[#allocation2 + $0x1d1] sm:$0xff]  ;;  %v3892_v37 = vld [vmem:[#allocation2 + $0x19a] sm:$0xff] }
 0x947   :  { %5436 = vmatmul.f32.gmra.mxu3 %v3766_v52 }
 0x948   :  { %5018 = vmatmul.f32.gmra.mxu1 %v3638_v30 }
 0x949   :  { %v5180_v49 = vpop.f32.mrf.mxu2 }
 0x94a   :  { %v10030_v0 = vpop.f32.mrf.mxu0  ;;  %v5181_v46 = vadd.f32 %v5180_v49, %v4972_v8  ;;  %v5389_v48 = vpop.f32.mrf.mxu3 }
 0x94b   :  { %11937 = vst [vmem:[#allocation20_spill] sm:$0xff] %v10030_v0  ;;  %v3894_v0 = vld [vmem:[#allocation2 + $0x1e2] sm:$0xff] }
 0x94c   :  { %v10032_v18 = vadd.f32 %v5389_v48, %v5181_v46  ;;  %v3704_v48 = vld [vmem:[#allocation2 + $0x1e2] sm:$0xff] }
 0x94d   :  { %5639 = vmatmul.f32.gmra.mxu0 %v3828_v3  ;;  %v4974_v17 = vpop.f32.mrf.mxu1  ;;  %v3829_v3 = vld [vmem:[#allocation2 + $0x1a1] sm:$0xff] }
 0x94e   :  { %11938 = vst [vmem:[#allocation39_spill] sm:$0xff] %v10032_v18  ;;  %5230 = vmatmul.f32.gmra.mxu2 %v3703_v63  ;;  %v4975_v2 = vadd.f32 %v4974_v17, %v4766_v4  ;;  %v3768_v63 = vld [vmem:[#allocation2 + $0x1f8] sm:$0xff]  ;;  %v3640_v4 = vld [vmem:[#allocation2 + $0x1e1] sm:$0xff] }
 0x94f   :  { %5439 = vmatmul.f32.gmra.mxu3 %v3767_v25 }
 0x950   :  { %5021 = vmatmul.f32.gmra.mxu1 %v3639_v58 }
 0x951   :  { %v5183_v52 = vpop.f32.mrf.mxu2 }
 0x952   :  { %v10039_v8 = vpop.f32.mrf.mxu0  ;;  %v5184_v30 = vadd.f32 %v5183_v52, %v4975_v2  ;;  %v5392_v49 = vpop.f32.mrf.mxu3 }
 0x953   :  { %11939 = vst [vmem:[#allocation68_spill] sm:$0xff] %v10039_v8 }
 0x954   :  { %v10041_v46 = vadd.f32 %v5392_v49, %v5184_v30  ;;  %v4772_v30 = vadd.f32 %v9570_v5, %v9561_v53  ;;  %v3770_v5 = vld [vmem:[#allocation2 + $0x210] sm:$0xff] }
 0x955   :  { %5642 = vmatmul.f32.gmra.mxu0 %v3829_v3  ;;  %v4977_v12 = vpop.f32.mrf.mxu1  ;;  %v3705_v3 = vld [vmem:[#allocation2 + $0x1ea] sm:$0xff] }
 0x956   :  { %11940 = vst [vmem:[#allocation80_spill] sm:$0xff] %v10041_v46  ;;  %5233 = vmatmul.f32.gmra.mxu2 %v3704_v48  ;;  %v4978_v20 = vadd.f32 %v4977_v12, %v4769_v7  ;;  %v3641_v48 = vld [vmem:[#allocation2 + $0x1e9] sm:$0xff] }
 0x957   :  { %5442 = vmatmul.f32.gmra.mxu3 %v3768_v63 }
 0x958   :  { %5024 = vmatmul.f32.gmra.mxu1 %v3640_v4 }
 0x959   :  { %v5186_v17 = vpop.f32.mrf.mxu2 }
 0x95a   :  { %v10045_v25 = vpop.f32.mrf.mxu0  ;;  %v5187_v58 = vadd.f32 %v5186_v17, %v4978_v20  ;;  %v5395_v2 = vpop.f32.mrf.mxu3 }
 0x95b   :  { %11941 = vst [vmem:[#allocation70_spill] sm:$0xff] %v10045_v25 }
 0x95c   :  { %v10047_v52 = vadd.f32 %v5395_v2, %v5187_v58  ;;  %v4775_v58 = vadd.f32 %v9574_v15, %v9565_v45  ;;  %v4059_v45 = vld [vmem:[%s11332_s4 + $0x428] sm:$0xff]  ;;  %v4778_v15 = vadd.f32 %v9578_v61, %v9572_v41  ;;  %v4781_v41 = vadd.f32 %v9582_v10, %v9576_v34  ;;  %v3773_v10 = vld [vmem:[#allocation2 + $0x230] sm:$0xff] }
 0x95d   :  { %5645 = vmatmul.f32.gmra.mxu0 %v3640_v4  ;;  %v4980_v22 = vpop.f32.mrf.mxu1  ;;  %v3706_v4 = vld [vmem:[#allocation2 + $0x1fa] sm:$0xff]  ;;  %5752 = vmatpush.msra.mxu1 %v4059_v45  ;;  %v3644_v45 = vld [vmem:[#allocation2 + $0x211] sm:$0xff] }
 0x95e   :  { %11942 = vst [vmem:[#allocation29_spill] sm:$0xff] %v10047_v52  ;;  %5236 = vmatmul.f32.gmra.mxu2 %v3705_v3  ;;  %v4981_v49 = vadd.f32 %v4980_v22, %v4772_v30  ;;  %v3642_v3 = vld [vmem:[#allocation2 + $0x1f9] sm:$0xff] }
 0x95f   :  { %5445 = vmatmul.f32.gmra.mxu3 %v3769_v1 }
 0x960   :  { %5027 = vmatmul.f32.gmra.mxu1 %v3641_v48 }
 0x961   :  { %v5189_v7 = vpop.f32.mrf.mxu2 }
 0x962   :  { %v10051_v12 = vpop.f32.mrf.mxu0  ;;  %v5190_v63 = vadd.f32 %v5189_v7, %v4981_v49  ;;  %v5398_v20 = vpop.f32.mrf.mxu3 }
 0x963   :  { %11943 = vst [vmem:[#allocation71_spill] sm:$0xff] %v10051_v12 }
 0x964   :  { %v10053_v17 = vadd.f32 %v5398_v20, %v5190_v63  ;;  %v3771_v20 = vld [vmem:[#allocation2 + $0x218] sm:$0xff] }
 0x965   :  { %5648 = vmatmul.f32.gmra.mxu0 %v3641_v48  ;;  %v4983_v53 = vpop.f32.mrf.mxu1  ;;  %v3707_v48 = vld [vmem:[#allocation2 + $0x202] sm:$0xff] }
 0x966   :  { %11944 = vst [vmem:[#allocation30_spill] sm:$0xff] %v10053_v17  ;;  %5239 = vmatmul.f32.gmra.mxu2 %v3706_v4  ;;  %v4984_v2 = vadd.f32 %v4983_v53, %v4775_v58  ;;  %v3643_v58 = vld [vmem:[#allocation2 + $0x201] sm:$0xff]  ;;  %v3862_v17 = vld [vmem:[#allocation2 + $0x32] sm:$0xff] }
 0x967   :  { %5448 = vmatmul.f32.gmra.mxu3 %v3770_v5 }
 0x968   :  { %5030 = vmatmul.f32.gmra.mxu1 %v3642_v3 }
 0x969   :  { %v5192_v30 = vpop.f32.mrf.mxu2 }
 0x96a   :  { %v10057_v22 = vpop.f32.mrf.mxu0  ;;  %v5193_v1 = vadd.f32 %v5192_v30, %v4984_v2  ;;  %v5401_v49 = vpop.f32.mrf.mxu3 }
 0x96b   :  { %11945 = vst [vmem:[#allocation84_spill] sm:$0xff] %v10057_v22 }
 0x96c   :  { %v10059_v7 = vadd.f32 %v5401_v49, %v5193_v1  ;;  %v3708_v1 = vld [vmem:[#allocation2 + $0x212] sm:$0xff]  ;;  %v3772_v49 = vld [vmem:[#allocation2 + $0x228] sm:$0xff] }
 0x96d   :  { %5651 = vmatmul.f32.gmra.mxu0 %v3642_v3  ;;  %v4986_v63 = vpop.f32.mrf.mxu1 }
 0x96e   :  { %11946 = vst [vmem:[#allocation73_spill] sm:$0xff] %v10059_v7  ;;  %5242 = vmatmul.f32.gmra.mxu2 %v3707_v48  ;;  %v4987_v4 = vadd.f32 %v4986_v63, %v4778_v15 }
 0x96f   :  { %5451 = vmatmul.f32.gmra.mxu3 %v3771_v20 }
 0x970   :  { %5033 = vmatmul.f32.gmra.mxu1 %v3643_v58 }
 0x971   :  { %v5195_v53 = vpop.f32.mrf.mxu2 }
 0x972   :  { %v10066_v5 = vpop.f32.mrf.mxu0  ;;  %v5196_v2 = vadd.f32 %v5195_v53, %v4987_v4  ;;  %v5404_v3 = vpop.f32.mrf.mxu3 }
 0x973   :  { %11947 = vst [vmem:[#allocation42_spill] sm:$0xff] %v10066_v5 }
 0x974   :  { %v10068_v30 = vadd.f32 %v5404_v3, %v5196_v2  ;;  %v4784_v2 = vadd.f32 %v9589_v24, %v9580_v36  ;;  %v3774_v24 = vld [vmem:[#allocation2 + $0x240] sm:$0xff] }
 0x975   :  { %5654 = vmatmul.f32.gmra.mxu0 %v3643_v58  ;;  %v4989_v61 = vpop.f32.mrf.mxu1  ;;  %v3709_v58 = vld [vmem:[#allocation2 + $0x21a] sm:$0xff] }
 0x976   :  { %11948 = vst [vmem:[#allocation74_spill] sm:$0xff] %v10068_v30  ;;  %5245 = vmatmul.f32.gmra.mxu2 %v3708_v1  ;;  %v4990_v48 = vadd.f32 %v4989_v61, %v4781_v41  ;;  %v3645_v1 = vld [vmem:[#allocation2 + $0x219] sm:$0xff] }
 0x977   :  { %5454 = vmatmul.f32.gmra.mxu3 %v3772_v49 }
 0x978   :  { %5036 = vmatmul.f32.gmra.mxu1 %v3644_v45 }
 0x979   :  { %v5198_v15 = vpop.f32.mrf.mxu2 }
 0x97a   :  { %v10072_v63 = vpop.f32.mrf.mxu0  ;;  %v5199_v20 = vadd.f32 %v5198_v15, %v4990_v48  ;;  %v5407_v4 = vpop.f32.mrf.mxu3 }
 0x97b   :  { %11949 = vst [vmem:[#allocation97_spill] sm:$0xff] %v10072_v63 }
 0x97c   :  { %v10074_v53 = vadd.f32 %v5407_v4, %v5199_v20  ;;  %v11953_v20 = vld [vmem:[#allocation69_spill] sm:$0xff]  ;;  %v11954_v4 = vld [vmem:[#allocation32_spill] sm:$0xff] }
 0x97d   :  { %5657 = vmatmul.f32.gmra.mxu0 %v3644_v45  ;;  %v4992_v34 = vpop.f32.mrf.mxu1  ;;  %v3710_v45 = vld [vmem:[#allocation2 + $0x22a] sm:$0xff]  ;;  %v4787_v47 = vadd.f32 %v11954_v4, %v11953_v20 }
 0x97e   :  { %11950 = vst [vmem:[#allocation98_spill] sm:$0xff] %v10074_v53  ;;  %5248 = vmatmul.f32.gmra.mxu2 %v3709_v58  ;;  %v4993_v3 = vadd.f32 %v4992_v34, %v4784_v2  ;;  %v3646_v2 = vld [vmem:[#allocation2 + $0x229] sm:$0xff] }
 0x97f   :  { %5457 = vmatmul.f32.gmra.mxu3 %v3773_v10  ;;  %v3775_v4 = vld [vmem:[#allocation2 + $0x248] sm:$0xff] }
 0x980   :  { %5039 = vmatmul.f32.gmra.mxu1 %v3645_v1 }
 0x981   :  { %v5201_v41 = vpop.f32.mrf.mxu2 }
 0x982   :  { %v10078_v61 = vpop.f32.mrf.mxu0  ;;  %v5202_v49 = vadd.f32 %v5201_v41, %v4993_v3  ;;  %v5410_v48 = vpop.f32.mrf.mxu3 }
 0x983   :  { %11951 = vst [vmem:[#allocation99_spill] sm:$0xff] %v10078_v61 }
 0x984   :  { %v10080_v15 = vadd.f32 %v5410_v48, %v5202_v49  ;;  %v4058_v49 = vld [vmem:[%s11332_s4 + $0x420] sm:$0xff] }
 0x985   :  { %5660 = vmatmul.f32.gmra.mxu0 %v3645_v1  ;;  %v4995_v36 = vpop.f32.mrf.mxu1  ;;  %v3711_v1 = vld [vmem:[#allocation2 + $0x232] sm:$0xff]  ;;  %v11957_v48 = vld [vmem:[#allocation87_spill] sm:$0xff]  ;;  %5753 = vmatpush.msra.mxu1 %v4058_v49 }
 0x986   :  { %11952 = vst [vmem:[#allocation100_spill] sm:$0xff] %v10080_v15  ;;  %5251 = vmatmul.f32.gmra.mxu2 %v3710_v45  ;;  %v4996_v58 = vadd.f32 %v4995_v36, %v4787_v47  ;;  %v11958_v45 = vld [vmem:[#allocation76_spill] sm:$0xff]  ;;  %v11962_v15 = vld [vmem:[#allocation91_spill] sm:$0xff]  ;;  %v3776_v49 = vld [vmem:[#allocation2 + $0x258] sm:$0xff] }
 0x987   :  { %5460 = vmatmul.f32.gmra.mxu3 %v3774_v24  ;;  %v4790_v20 = vadd.f32 %v11958_v45, %v11957_v48  ;;  %v3647_v24 = vld [vmem:[#allocation2 + $0x231] sm:$0xff] }
 0x988   :  { %5042 = vmatmul.f32.gmra.mxu1 %v3646_v2 }
 0x989   :  { %v5204_v34 = vpop.f32.mrf.mxu2 }
 0x98a   :  { %v10084_v10 = vpop.f32.mrf.mxu0  ;;  %v5205_v59 = vadd.f32 %v5204_v34, %v4996_v58  ;;  %v5413_v3 = vpop.f32.mrf.mxu3 }
 0x98b   :  { %11955 = vst [vmem:[#allocation69_spill] sm:$0xff] %v10084_v10  ;;  %v12024_v10 = vld [vmem:[#allocation57_spill] sm:$0xff] }
 0x98c   :  { %v10086_v41 = vadd.f32 %v5413_v3, %v5205_v59 }
 0x98d   :  { %5663 = vmatmul.f32.gmra.mxu0 %v3646_v2  ;;  %v4998_v47 = vpop.f32.mrf.mxu1 }
 0x98e   :  { %11956 = vst [vmem:[#allocation32_spill] sm:$0xff] %v10086_v41  ;;  %5254 = vmatmul.f32.gmra.mxu2 %v3711_v1  ;;  %v4999_v36 = vadd.f32 %v4998_v47, %v4790_v20  ;;  %v11961_v41 = vld [vmem:[#allocation79_spill] sm:$0xff] }
 0x98f   :  { %5463 = vmatmul.f32.gmra.mxu3 %v3775_v4  ;;  %v4793_v48 = vadd.f32 %v11962_v15, %v11961_v41  ;;  %v3648_v20 = vld [vmem:[#allocation2 + $0x241] sm:$0xff] }
 0x990   :  { %5045 = vmatmul.f32.gmra.mxu1 %v3647_v24  ;;  %v3777_v15 = vld [vmem:[#allocation2 + $0x260] sm:$0xff] }
 0x991   :  { %v5207_v58 = vpop.f32.mrf.mxu2 }
 0x992   :  { %v10093_v34 = vpop.f32.mrf.mxu0  ;;  %v5208_v59 = vadd.f32 %v5207_v58, %v4999_v36  ;;  %v5416_v2 = vpop.f32.mrf.mxu3 }
 0x993   :  { %11959 = vst [vmem:[#allocation87_spill] sm:$0xff] %v10093_v34 }
 0x994   :  { %v10095_v3 = vadd.f32 %v5416_v2, %v5208_v59  ;;  %v11965_v59 = vld [vmem:[#allocation72_spill] sm:$0xff]  ;;  %v11966_v2 = vld [vmem:[#allocation83_spill] sm:$0xff] }
 0x995   :  { %5666 = vmatmul.f32.gmra.mxu0 %v3647_v24  ;;  %v5001_v1 = vpop.f32.mrf.mxu1  ;;  %v3713_v24 = vld [vmem:[#allocation2 + $0x24a] sm:$0xff] }
 0x996   :  { %11960 = vst [vmem:[#allocation76_spill] sm:$0xff] %v10095_v3  ;;  %5257 = vmatmul.f32.gmra.mxu2 %v3712_v35  ;;  %v5002_v45 = vadd.f32 %v5001_v1, %v4793_v48  ;;  %v4796_v3 = vadd.f32 %v11966_v2, %v11965_v59  ;;  %v3649_v48 = vld [vmem:[#allocation2 + $0x249] sm:$0xff] }
 0x997   :  { %5466 = vmatmul.f32.gmra.mxu3 %v3776_v49  ;;  %v3778_v59 = vld [vmem:[#allocation2 + $0x270] sm:$0xff] }
 0x998   :  { %5048 = vmatmul.f32.gmra.mxu1 %v3648_v20 }
 0x999   :  { %v5210_v47 = vpop.f32.mrf.mxu2 }
 0x99a   :  { %v10099_v4 = vpop.f32.mrf.mxu0  ;;  %v5211_v34 = vadd.f32 %v5210_v47, %v5002_v45  ;;  %v5419_v36 = vpop.f32.mrf.mxu3 }
 0x99b   :  { %11963 = vst [vmem:[#allocation79_spill] sm:$0xff] %v10099_v4 }
 0x99c   :  { %v10101_v58 = vadd.f32 %v5419_v36, %v5211_v34  ;;  %v3714_v34 = vld [vmem:[#allocation2 + $0x25a] sm:$0xff] }
 0x99d   :  { %5669 = vmatmul.f32.gmra.mxu0 %v3648_v20  ;;  %v5004_v35 = vpop.f32.mrf.mxu1  ;;  %v11969_v20 = vld [vmem:[#allocation45_spill] sm:$0xff]  ;;  %v11970_v36 = vld [vmem:[#allocation75_spill] sm:$0xff] }
 0x99e   :  { %11964 = vst [vmem:[#allocation91_spill] sm:$0xff] %v10101_v58  ;;  %5260 = vmatmul.f32.gmra.mxu2 %v3713_v24  ;;  %v5005_v41 = vadd.f32 %v5004_v35, %v4796_v3  ;;  %v4799_v58 = vadd.f32 %v11970_v36, %v11969_v20  ;;  %v3650_v3 = vld [vmem:[#allocation2 + $0x259] sm:$0xff] }
 0x99f   :  { %5469 = vmatmul.f32.gmra.mxu3 %v3777_v15  ;;  %v3779_v36 = vld [vmem:[#allocation2 + $0x278] sm:$0xff] }
 0x9a0   :  { %5051 = vmatmul.f32.gmra.mxu1 %v3649_v48 }
 0x9a1   :  { %v5213_v1 = vpop.f32.mrf.mxu2 }
 0x9a2   :  { %v10105_v49 = vpop.f32.mrf.mxu0  ;;  %v5214_v4 = vadd.f32 %v5213_v1, %v5005_v41  ;;  %v5422_v45 = vpop.f32.mrf.mxu3 }
 0x9a3   :  { %11967 = vst [vmem:[#allocation72_spill] sm:$0xff] %v10105_v49 }
 0x9a4   :  { %v10107_v47 = vadd.f32 %v5422_v45, %v5214_v4  ;;  %v3715_v4 = vld [vmem:[#allocation2 + $0x262] sm:$0xff]  ;;  %v11973_v45 = vld [vmem:[#allocation78_spill] sm:$0xff] }
 0x9a5   :  { %5672 = vmatmul.f32.gmra.mxu0 %v3649_v48  ;;  %v5007_v24 = vpop.f32.mrf.mxu1  ;;  %v4057_v48 = vld [vmem:[%s11332_s4 + $0x418] sm:$0xff] }
 0x9a6   :  { %11968 = vst [vmem:[#allocation83_spill] sm:$0xff] %v10107_v47  ;;  %5263 = vmatmul.f32.gmra.mxu2 %v3714_v34  ;;  %v5008_v2 = vadd.f32 %v5007_v24, %v4799_v58  ;;  %v11974_v34 = vld [vmem:[#allocation35_spill] sm:$0xff]  ;;  %5754 = vmatpush.msra.mxu1 %v4057_v48  ;;  %v11977_v47 = vld [vmem:[#allocation94_spill] sm:$0xff]  ;;  %v3780_v48 = vld [vmem:[#allocation2 + $0x288] sm:$0xff] }
 0x9a7   :  { %5472 = vmatmul.f32.gmra.mxu3 %v3778_v59  ;;  %v4802_v20 = vadd.f32 %v11974_v34, %v11973_v45  ;;  %v3651_v59 = vld [vmem:[#allocation2 + $0x261] sm:$0xff] }
 0x9a8   :  { %5054 = vmatmul.f32.gmra.mxu1 %v3650_v3 }
 0x9a9   :  { %v5216_v35 = vpop.f32.mrf.mxu2 }
 0x9aa   :  { %v10111_v15 = vpop.f32.mrf.mxu0  ;;  %v5217_v49 = vadd.f32 %v5216_v35, %v5008_v2  ;;  %v5425_v41 = vpop.f32.mrf.mxu3 }
 0x9ab   :  { %11971 = vst [vmem:[#allocation45_spill] sm:$0xff] %v10111_v15  ;;  %v11978_v15 = vld [vmem:[#allocation82_spill] sm:$0xff] }
 0x9ac   :  { %v10113_v1 = vadd.f32 %v5425_v41, %v5217_v49  ;;  %v4805_v45 = vadd.f32 %v11978_v15, %v11977_v47  ;;  %v3781_v15 = vld [vmem:[#allocation2 + $0x290] sm:$0xff] }
 0x9ad   :  { %5675 = vmatmul.f32.gmra.mxu0 %v3650_v3  ;;  %v5010_v58 = vpop.f32.mrf.mxu1 }
 0x9ae   :  { %11972 = vst [vmem:[#allocation75_spill] sm:$0xff] %v10113_v1  ;;  %5266 = vmatmul.f32.gmra.mxu2 %v3715_v4  ;;  %v5011_v24 = vadd.f32 %v5010_v58, %v4802_v20  ;;  %v3716_v1 = vld [vmem:[#allocation2 + $0x272] sm:$0xff] }
 0x9af   :  { %5475 = vmatmul.f32.gmra.mxu3 %v3779_v36  ;;  %v3652_v20 = vld [vmem:[#allocation2 + $0x271] sm:$0xff] }
 0x9b0   :  { %5057 = vmatmul.f32.gmra.mxu1 %v3651_v59 }
 0x9b1   :  { %v5219_v2 = vpop.f32.mrf.mxu2 }
 0x9b2   :  { %v10120_v35 = vpop.f32.mrf.mxu0  ;;  %v5220_v49 = vadd.f32 %v5219_v2, %v5011_v24  ;;  %v5428_v3 = vpop.f32.mrf.mxu3 }
 0x9b3   :  { %11975 = vst [vmem:[#allocation78_spill] sm:$0xff] %v10120_v35 }
 0x9b4   :  { %v10122_v41 = vadd.f32 %v5428_v3, %v5220_v49  ;;  %v11981_v49 = vld [vmem:[#allocation88_spill] sm:$0xff]  ;;  %v11982_v3 = vld [vmem:[#allocation85_spill] sm:$0xff] }
 0x9b5   :  { %5678 = vmatmul.f32.gmra.mxu0 %v3651_v59  ;;  %v5013_v4 = vpop.f32.mrf.mxu1  ;;  %v3717_v59 = vld [vmem:[#allocation2 + $0x27a] sm:$0xff] }
 0x9b6   :  { %11976 = vst [vmem:[#allocation35_spill] sm:$0xff] %v10122_v41  ;;  %5269 = vmatmul.f32.gmra.mxu2 %v3716_v1  ;;  %v5014_v34 = vadd.f32 %v5013_v4, %v4805_v45  ;;  %v4808_v41 = vadd.f32 %v11982_v3, %v11981_v49  ;;  %v3653_v45 = vld [vmem:[#allocation2 + $0x279] sm:$0xff] }
 0x9b7   :  { %5478 = vmatmul.f32.gmra.mxu3 %v3780_v48  ;;  %v3782_v49 = vld [vmem:[#allocation2 + $0x2a0] sm:$0xff] }
 0x9b8   :  { %5060 = vmatmul.f32.gmra.mxu1 %v3652_v20 }
 0x9b9   :  { %v5222_v58 = vpop.f32.mrf.mxu2 }
 0x9ba   :  { %v10126_v36 = vpop.f32.mrf.mxu0  ;;  %v5223_v35 = vadd.f32 %v5222_v58, %v5014_v34  ;;  %v5431_v24 = vpop.f32.mrf.mxu3 }
 0x9bb   :  { %11979 = vst [vmem:[#allocation94_spill] sm:$0xff] %v10126_v36 }
 0x9bc   :  { %v10128_v2 = vadd.f32 %v5431_v24, %v5223_v35  ;;  %v3718_v35 = vld [vmem:[#allocation2 + $0x28a] sm:$0xff] }
 0x9bd   :  { %5681 = vmatmul.f32.gmra.mxu0 %v3652_v20  ;;  %v5016_v47 = vpop.f32.mrf.mxu1  ;;  %v11985_v20 = vld [vmem:[#allocation77_spill] sm:$0xff]  ;;  %v11986_v24 = vld [vmem:[#allocation48_spill] sm:$0xff] }
 0x9be   :  { %11980 = vst [vmem:[#allocation82_spill] sm:$0xff] %v10128_v2  ;;  %5272 = vmatmul.f32.gmra.mxu2 %v3717_v59  ;;  %v5017_v1 = vadd.f32 %v5016_v47, %v4808_v41  ;;  %v4811_v2 = vadd.f32 %v11986_v24, %v11985_v20  ;;  %v3654_v41 = vld [vmem:[#allocation2 + $0x289] sm:$0xff] }
 0x9bf   :  { %5481 = vmatmul.f32.gmra.mxu3 %v3781_v15  ;;  %v3783_v24 = vld [vmem:[#allocation2 + $0x2a8] sm:$0xff] }
 0x9c0   :  { %5063 = vmatmul.f32.gmra.mxu1 %v3653_v45 }
 0x9c1   :  { %v5225_v4 = vpop.f32.mrf.mxu2 }
 0x9c2   :  { %v10132_v48 = vpop.f32.mrf.mxu0  ;;  %v5226_v36 = vadd.f32 %v5225_v4, %v5017_v1  ;;  %v5434_v34 = vpop.f32.mrf.mxu3 }
 0x9c3   :  { %11983 = vst [vmem:[#allocation88_spill] sm:$0xff] %v10132_v48 }
 0x9c4   :  { %v10134_v58 = vadd.f32 %v5434_v34, %v5226_v36  ;;  %v3719_v36 = vld [vmem:[#allocation2 + $0x292] sm:$0xff] }
 0x9c5   :  { %5684 = vmatmul.f32.gmra.mxu0 %v3653_v45  ;;  %v5019_v59 = vpop.f32.mrf.mxu1  ;;  %v4056_v45 = vld [vmem:[%s11332_s4 + $0x410] sm:$0xff] }
 0x9c6   :  { %11984 = vst [vmem:[#allocation85_spill] sm:$0xff] %v10134_v58  ;;  %5275 = vmatmul.f32.gmra.mxu2 %v3718_v35  ;;  %v5020_v3 = vadd.f32 %v5019_v59, %v4811_v2  ;;  %v11989_v34 = vld [vmem:[#allocation81_spill] sm:$0xff]  ;;  %5755 = vmatpush.msra.mxu1 %v4056_v45  ;;  %v11993_v58 = vld [vmem:[#allocation92_spill] sm:$0xff]  ;;  %v3784_v45 = vld [vmem:[#allocation2 + $0x2b8] sm:$0xff] }
 0x9c7   :  { %5484 = vmatmul.f32.gmra.mxu3 %v3782_v49  ;;  %v11990_v35 = vld [vmem:[#allocation89_spill] sm:$0xff] }
 0x9c8   :  { %5066 = vmatmul.f32.gmra.mxu1 %v3654_v41  ;;  %v4814_v20 = vadd.f32 %v11990_v35, %v11989_v34  ;;  %v3655_v49 = vld [vmem:[#allocation2 + $0x291] sm:$0xff] }
 0x9c9   :  { %v5228_v47 = vpop.f32.mrf.mxu2 }
 0x9ca   :  { %v10138_v15 = vpop.f32.mrf.mxu0  ;;  %v5229_v48 = vadd.f32 %v5228_v47, %v5020_v3  ;;  %v5437_v1 = vpop.f32.mrf.mxu3 }
 0x9cb   :  { %11987 = vst [vmem:[#allocation77_spill] sm:$0xff] %v10138_v15  ;;  %v11994_v15 = vld [vmem:[#allocation38_spill] sm:$0xff] }
 0x9cc   :  { %v10140_v4 = vadd.f32 %v5437_v1, %v5229_v48  ;;  %v4817_v34 = vadd.f32 %v11994_v15, %v11993_v58  ;;  %v3785_v15 = vld [vmem:[#allocation2 + $0x2c0] sm:$0xff] }
 0x9cd   :  { %5687 = vmatmul.f32.gmra.mxu0 %v3654_v41  ;;  %v5022_v2 = vpop.f32.mrf.mxu1 }
 0x9ce   :  { %11988 = vst [vmem:[#allocation48_spill] sm:$0xff] %v10140_v4  ;;  %5278 = vmatmul.f32.gmra.mxu2 %v3719_v36  ;;  %v5023_v59 = vadd.f32 %v5022_v2, %v4814_v20  ;;  %v3720_v4 = vld [vmem:[#allocation2 + $0x2a2] sm:$0xff] }
 0x9cf   :  { %5487 = vmatmul.f32.gmra.mxu3 %v3783_v24  ;;  %v3656_v20 = vld [vmem:[#allocation2 + $0x2a1] sm:$0xff] }
 0x9d0   :  { %5069 = vmatmul.f32.gmra.mxu1 %v3655_v49 }
 0x9d1   :  { %v5231_v3 = vpop.f32.mrf.mxu2 }
 0x9d2   :  { %v10147_v47 = vpop.f32.mrf.mxu0  ;;  %v5232_v48 = vadd.f32 %v5231_v3, %v5023_v59  ;;  %v5440_v41 = vpop.f32.mrf.mxu3 }
 0x9d3   :  { %11991 = vst [vmem:[#allocation81_spill] sm:$0xff] %v10147_v47 }
 0x9d4   :  { %v10149_v1 = vadd.f32 %v5440_v41, %v5232_v48  ;;  %v11997_v48 = vld [vmem:[#allocation86_spill] sm:$0xff] }
 0x9d5   :  { %5690 = vmatmul.f32.gmra.mxu0 %v3655_v49  ;;  %v5025_v36 = vpop.f32.mrf.mxu1  ;;  %v3721_v49 = vld [vmem:[#allocation2 + $0x2aa] sm:$0xff]  ;;  %v11998_v41 = vld [vmem:[#allocation90_spill] sm:$0xff] }
 0x9d6   :  { %11992 = vst [vmem:[#allocation89_spill] sm:$0xff] %v10149_v1  ;;  %5281 = vmatmul.f32.gmra.mxu2 %v3720_v4  ;;  %v5026_v35 = vadd.f32 %v5025_v36, %v4817_v34  ;;  %v4820_v1 = vadd.f32 %v11998_v41, %v11997_v48  ;;  %v3657_v34 = vld [vmem:[#allocation2 + $0x2a9] sm:$0xff] }
 0x9d7   :  { %5490 = vmatmul.f32.gmra.mxu3 %v3784_v45  ;;  %v3786_v48 = vld [vmem:[#allocation2 + $0x2d0] sm:$0xff] }
 0x9d8   :  { %5072 = vmatmul.f32.gmra.mxu1 %v3656_v20 }
 0x9d9   :  { %v5234_v2 = vpop.f32.mrf.mxu2 }
 0x9da   :  { %v10153_v24 = vpop.f32.mrf.mxu0  ;;  %v5235_v47 = vadd.f32 %v5234_v2, %v5026_v35  ;;  %v5443_v59 = vpop.f32.mrf.mxu3 }
 0x9db   :  { %11995 = vst [vmem:[#allocation92_spill] sm:$0xff] %v10153_v24 }
 0x9dc   :  { %v10155_v3 = vadd.f32 %v5443_v59, %v5235_v47  ;;  %v3722_v47 = vld [vmem:[#allocation2 + $0x2ba] sm:$0xff]  ;;  %v12002_v59 = vld [vmem:[#allocation96_spill] sm:$0xff] }
 0x9dd   :  { %5693 = vmatmul.f32.gmra.mxu0 %v3656_v20  ;;  %v5028_v58 = vpop.f32.mrf.mxu1  ;;  %v12001_v20 = vld [vmem:[#allocation93_spill] sm:$0xff] }
 0x9de   :  { %11996 = vst [vmem:[#allocation38_spill] sm:$0xff] %v10155_v3  ;;  %5284 = vmatmul.f32.gmra.mxu2 %v3721_v49  ;;  %v5029_v4 = vadd.f32 %v5028_v58, %v4820_v1  ;;  %v4823_v3 = vadd.f32 %v12002_v59, %v12001_v20  ;;  %v3658_v1 = vld [vmem:[#allocation2 + $0x2b9] sm:$0xff] }
 0x9df   :  { %5493 = vmatmul.f32.gmra.mxu3 %v3785_v15  ;;  %v3787_v59 = vld [vmem:[#allocation2 + $0x2d8] sm:$0xff] }
 0x9e0   :  { %5075 = vmatmul.f32.gmra.mxu1 %v3657_v34 }
 0x9e1   :  { %v5237_v36 = vpop.f32.mrf.mxu2 }
 0x9e2   :  { %v10159_v45 = vpop.f32.mrf.mxu0  ;;  %v5238_v24 = vadd.f32 %v5237_v36, %v5029_v4  ;;  %v5446_v35 = vpop.f32.mrf.mxu3 }
 0x9e3   :  { %11999 = vst [vmem:[#allocation86_spill] sm:$0xff] %v10159_v45 }
 0x9e4   :  { %v10161_v2 = vadd.f32 %v5446_v35, %v5238_v24  ;;  %v3723_v24 = vld [vmem:[#allocation2 + $0x2c2] sm:$0xff]  ;;  %v12005_v35 = vld [vmem:[#allocation50_spill] sm:$0xff] }
 0x9e5   :  { %5696 = vmatmul.f32.gmra.mxu0 %v3657_v34  ;;  %v5031_v49 = vpop.f32.mrf.mxu1  ;;  %v4055_v34 = vld [vmem:[%s11332_s4 + $0x408] sm:$0xff] }
 0x9e6   :  { %12000 = vst [vmem:[#allocation90_spill] sm:$0xff] %v10161_v2  ;;  %5287 = vmatmul.f32.gmra.mxu2 %v3722_v47  ;;  %v5032_v41 = vadd.f32 %v5031_v49, %v4823_v3  ;;  %v12006_v47 = vld [vmem:[#allocation95_spill] sm:$0xff]  ;;  %5756 = vmatpush.msra.mxu1 %v4055_v34  ;;  %v12009_v2 = vld [vmem:[#allocation41_spill] sm:$0xff]  ;;  %v3788_v34 = vld [vmem:[#allocation2 + $0x2e8] sm:$0xff] }
 0x9e7   :  { %5496 = vmatmul.f32.gmra.mxu3 %v3786_v48  ;;  %v4826_v20 = vadd.f32 %v12006_v47, %v12005_v35  ;;  %v3659_v48 = vld [vmem:[#allocation2 + $0x2c1] sm:$0xff] }
 0x9e8   :  { %5078 = vmatmul.f32.gmra.mxu1 %v3658_v1 }
 0x9e9   :  { %v5240_v58 = vpop.f32.mrf.mxu2 }
 0x9ea   :  { %v10165_v15 = vpop.f32.mrf.mxu0  ;;  %v5241_v45 = vadd.f32 %v5240_v58, %v5032_v41  ;;  %v5449_v4 = vpop.f32.mrf.mxu3 }
 0x9eb   :  { %12003 = vst [vmem:[#allocation93_spill] sm:$0xff] %v10165_v15  ;;  %v12010_v15 = vld [vmem:[#allocation44_spill] sm:$0xff] }
 0x9ec   :  { %v10167_v36 = vadd.f32 %v5449_v4, %v5241_v45  ;;  %v4829_v35 = vadd.f32 %v12010_v15, %v12009_v2  ;;  %v3789_v15 = vld [vmem:[#allocation2 + $0x2f0] sm:$0xff] }
 0x9ed   :  { %5699 = vmatmul.f32.gmra.mxu0 %v3658_v1  ;;  %v5034_v3 = vpop.f32.mrf.mxu1 }
 0x9ee   :  { %12004 = vst [vmem:[#allocation96_spill] sm:$0xff] %v10167_v36  ;;  %5290 = vmatmul.f32.gmra.mxu2 %v3723_v24  ;;  %v5035_v49 = vadd.f32 %v5034_v3, %v4826_v20  ;;  %v3724_v36 = vld [vmem:[#allocation2 + $0x2d2] sm:$0xff] }
 0x9ef   :  { %5499 = vmatmul.f32.gmra.mxu3 %v3787_v59  ;;  %v3660_v20 = vld [vmem:[#allocation2 + $0x2d1] sm:$0xff] }
 0x9f0   :  { %5081 = vmatmul.f32.gmra.mxu1 %v3659_v48 }
 0x9f1   :  { %v5243_v41 = vpop.f32.mrf.mxu2 }
 0x9f2   :  { %v10174_v58 = vpop.f32.mrf.mxu0  ;;  %v5244_v45 = vadd.f32 %v5243_v41, %v5035_v49  ;;  %v5452_v1 = vpop.f32.mrf.mxu3 }
 0x9f3   :  { %12007 = vst [vmem:[#allocation50_spill] sm:$0xff] %v10174_v58 }
 0x9f4   :  { %v10176_v4 = vadd.f32 %v5452_v1, %v5244_v45  ;;  %v12013_v45 = vld [vmem:[#allocation53_spill] sm:$0xff]  ;;  %v12014_v1 = vld [vmem:[#allocation47_spill] sm:$0xff] }
 0x9f5   :  { %5702 = vmatmul.f32.gmra.mxu0 %v3659_v48  ;;  %v5037_v24 = vpop.f32.mrf.mxu1  ;;  %v3725_v48 = vld [vmem:[#allocation2 + $0x2da] sm:$0xff] }
 0x9f6   :  { %12008 = vst [vmem:[#allocation95_spill] sm:$0xff] %v10176_v4  ;;  %5293 = vmatmul.f32.gmra.mxu2 %v3724_v36  ;;  %v5038_v47 = vadd.f32 %v5037_v24, %v4829_v35  ;;  %v4832_v4 = vadd.f32 %v12014_v1, %v12013_v45  ;;  %v3661_v35 = vld [vmem:[#allocation2 + $0x2d9] sm:$0xff] }
 0x9f7   :  { %5502 = vmatmul.f32.gmra.mxu3 %v3788_v34  ;;  %v3790_v45 = vld [vmem:[#allocation2 + $0x300] sm:$0xff] }
 0x9f8   :  { %5084 = vmatmul.f32.gmra.mxu1 %v3660_v20 }
 0x9f9   :  { %v5246_v3 = vpop.f32.mrf.mxu2 }
 0x9fa   :  { %v10180_v59 = vpop.f32.mrf.mxu0  ;;  %v5247_v58 = vadd.f32 %v5246_v3, %v5038_v47  ;;  %v5455_v49 = vpop.f32.mrf.mxu3 }
 0x9fb   :  { %12011 = vst [vmem:[#allocation41_spill] sm:$0xff] %v10180_v59 }
 0x9fc   :  { %v10182_v41 = vadd.f32 %v5455_v49, %v5247_v58  ;;  %v3726_v58 = vld [vmem:[#allocation2 + $0x2ea] sm:$0xff]  ;;  %v12018_v49 = vld [vmem:[#allocation51_spill] sm:$0xff] }
 0x9fd   :  { %5705 = vmatmul.f32.gmra.mxu0 %v3660_v20  ;;  %v5040_v2 = vpop.f32.mrf.mxu1  ;;  %v12017_v20 = vld [vmem:[#allocation56_spill] sm:$0xff] }
 0x9fe   :  { %12012 = vst [vmem:[#allocation44_spill] sm:$0xff] %v10182_v41  ;;  %5296 = vmatmul.f32.gmra.mxu2 %v3725_v48  ;;  %v5041_v36 = vadd.f32 %v5040_v2, %v4832_v4  ;;  %v4835_v41 = vadd.f32 %v12018_v49, %v12017_v20  ;;  %v3662_v4 = vld [vmem:[#allocation2 + $0x2e9] sm:$0xff] }
 0x9ff   :  { %5505 = vmatmul.f32.gmra.mxu3 %v3789_v15  ;;  %v3791_v49 = vld [vmem:[#allocation2 + $0x308] sm:$0xff] }
 0xa00   :  { %5087 = vmatmul.f32.gmra.mxu1 %v3661_v35 }
 0xa01   :  { %v5249_v24 = vpop.f32.mrf.mxu2 }
 0xa02   :  { %v10186_v34 = vpop.f32.mrf.mxu0  ;;  %v5250_v59 = vadd.f32 %v5249_v24, %v5041_v36  ;;  %v5458_v47 = vpop.f32.mrf.mxu3 }
 0xa03   :  { %12015 = vst [vmem:[#allocation53_spill] sm:$0xff] %v10186_v34 }
 0xa04   :  { %v10188_v3 = vadd.f32 %v5458_v47, %v5250_v59  ;;  %v3727_v59 = vld [vmem:[#allocation2 + $0x2f2] sm:$0xff]  ;;  %v12020_v47 = vld [vmem:[#allocation59_spill] sm:$0xff] }
 0xa05   :  { %5708 = vmatmul.f32.gmra.mxu0 %v3661_v35  ;;  %v5043_v48 = vpop.f32.mrf.mxu1  ;;  %v4054_v35 = vld [vmem:[%s11332_s4 + $0x400] sm:$0xff] }
 0xa06   :  { %12016 = vst [vmem:[#allocation47_spill] sm:$0xff] %v10188_v3  ;;  %5299 = vmatmul.f32.gmra.mxu2 %v3726_v58  ;;  %v5044_v1 = vadd.f32 %v5043_v48, %v4835_v41  ;;  %v12021_v58 = vld [vmem:[#allocation54_spill] sm:$0xff]  ;;  %5757 = vmatpush.msra.mxu1 %v4054_v35 }
 0xa07   :  { %5508 = vmatmul.f32.gmra.mxu3 %v3790_v45  ;;  %v4838_v20 = vadd.f32 %v12021_v58, %v12020_v47  ;;  %v3663_v45 = vld [vmem:[#allocation2 + $0x2f1] sm:$0xff]  ;;  %v3664_v58 = vld [vmem:[#allocation2 + $0x301] sm:$0xff] }
 0xa08   :  { %5090 = vmatmul.f32.gmra.mxu1 %v3662_v4  ;;  %v3792_v35 = vld [vmem:[#allocation2 + $0x318] sm:$0xff] }
 0xa09   :  { %v5252_v2 = vpop.f32.mrf.mxu2 }
 0xa0a   :  { %v10192_v15 = vpop.f32.mrf.mxu0  ;;  %v5253_v34 = vadd.f32 %v5252_v2, %v5044_v1  ;;  %v5461_v36 = vpop.f32.mrf.mxu3 }
 0xa0b   :  { %12019 = vst [vmem:[#allocation56_spill] sm:$0xff] %v10192_v15  ;;  %v12023_v15 = vld [vmem:[#allocation61_spill] sm:$0xff] }
 0xa0c   :  { %v5462_v24 = vadd.f32 %v5461_v36, %v5253_v34  ;;  %v3728_v36 = vld [vmem:[#allocation2 + $0x302] sm:$0xff]  ;;  %v4841_v53 = vadd.f32 %v12024_v10, %v12023_v15 }
 0xa0d   :  { %5711 = vmatmul.f32.gmra.mxu0 %v3662_v4  ;;  %v5046_v41 = vpop.f32.mrf.mxu1  ;;  %v3793_v15 = vld [vmem:[#allocation2 + $0x320] sm:$0xff] }
 0xa0e   :  { %5302 = vmatmul.f32.gmra.mxu2 %v3727_v59  ;;  %v5047_v48 = vadd.f32 %v5046_v41, %v4838_v20 }
 0xa0f   :  { %5511 = vmatmul.f32.gmra.mxu3 %v3791_v49 }
 0xa10   :  { %5093 = vmatmul.f32.gmra.mxu1 %v3663_v45 }
 0xa11   :  { %v5255_v3 = vpop.f32.mrf.mxu2 }
 0xa12   :  { %v10199_v1 = vpop.f32.mrf.mxu0  ;;  %v5256_v34 = vadd.f32 %v5255_v3, %v5047_v48  ;;  %v5464_v4 = vpop.f32.mrf.mxu3 }
 0xa13   :  { %12022 = vst [vmem:[#allocation51_spill] sm:$0xff] %v10199_v1 }
 0xa14   :  { %v5465_v2 = vadd.f32 %v5464_v4, %v5256_v34  ;;  %v12025_v34 = vld [vmem:[#allocation63_spill] sm:$0xff] }
 0xa15   :  { %5714 = vmatmul.f32.gmra.mxu0 %v3663_v45  ;;  %v5049_v59 = vpop.f32.mrf.mxu1  ;;  %v3729_v45 = vld [vmem:[#allocation2 + $0x30a] sm:$0xff]  ;;  %v12026_v4 = vld [vmem:[#allocation3_spill] sm:$0xff] }
 0xa16   :  { %5305 = vmatmul.f32.gmra.mxu2 %v3728_v36  ;;  %v5050_v47 = vadd.f32 %v5049_v59, %v4841_v53  ;;  %v4844_v61 = vadd.f32 %v12026_v4, %v12025_v34  ;;  %v3665_v53 = vld [vmem:[#allocation2 + $0x309] sm:$0xff] }
 0xa17   :  { %5514 = vmatmul.f32.gmra.mxu3 %v3792_v35  ;;  %v3794_v34 = vld [vmem:[#allocation2 + $0x330] sm:$0xff] }
 0xa18   :  { %5096 = vmatmul.f32.gmra.mxu1 %v3664_v58 }
 0xa19   :  { %v5258_v20 = vpop.f32.mrf.mxu2 }
 0xa1a   :  { %v5670_v41 = vpop.f32.mrf.mxu0  ;;  %v5259_v49 = vadd.f32 %v5258_v20, %v5050_v47  ;;  %v5467_v3 = vpop.f32.mrf.mxu3 }
 0xa1b   :  { %v10203_v1 = vadd.f32 %v5670_v41, %v5462_v24  ;;  %v12027_v41 = vld [vmem:[#allocation5_spill] sm:$0xff] }
 0xa1c   :  { %v5468_v48 = vadd.f32 %v5467_v3, %v5259_v49  ;;  %v12028_v49 = vld [vmem:[#allocation4_spill] sm:$0xff] }
 0xa1d   :  { %5717 = vmatmul.f32.gmra.mxu0 %v3664_v58  ;;  %v5052_v10 = vpop.f32.mrf.mxu1  ;;  %v3730_v58 = vld [vmem:[#allocation2 + $0x31a] sm:$0xff]  ;;  %v4847_v3 = vadd.f32 %v12028_v49, %v12027_v41 }
 0xa1e   :  { %5308 = vmatmul.f32.gmra.mxu2 %v3729_v45  ;;  %v5053_v36 = vadd.f32 %v5052_v10, %v4844_v61  ;;  %v3666_v61 = vld [vmem:[#allocation2 + $0x319] sm:$0xff] }
 0xa1f   :  { %5517 = vmatmul.f32.gmra.mxu3 %v3793_v15  ;;  %v3795_v41 = vld [vmem:[#allocation2 + $0x338] sm:$0xff] }
 0xa20   :  { %5099 = vmatmul.f32.gmra.mxu1 %v3665_v53 }
 0xa21   :  { %v5261_v59 = vpop.f32.mrf.mxu2 }
 0xa22   :  { %v5673_v35 = vpop.f32.mrf.mxu0  ;;  %v5262_v30 = vadd.f32 %v5261_v59, %v5053_v36  ;;  %v5470_v24 = vpop.f32.mrf.mxu3 }
 0xa23   :  { %v10207_v47 = vadd.f32 %v5673_v35, %v5465_v2  ;;  %v12030_v35 = vld [vmem:[#allocation8_spill] sm:$0xff] }
 0xa24   :  { %v5471_v20 = vadd.f32 %v5470_v24, %v5262_v30  ;;  %v3731_v30 = vld [vmem:[#allocation2 + $0x322] sm:$0xff] }
 0xa25   :  { %5720 = vmatmul.f32.gmra.mxu0 %v3665_v53  ;;  %v5055_v45 = vpop.f32.mrf.mxu1  ;;  %v12029_v53 = vld [vmem:[#allocation6_spill] sm:$0xff] }
 0xa26   :  { %5311 = vmatmul.f32.gmra.mxu2 %v3730_v58  ;;  %v5056_v4 = vadd.f32 %v5055_v45, %v4847_v3  ;;  %v4850_v24 = vadd.f32 %v12030_v35, %v12029_v53  ;;  %v3667_v3 = vld [vmem:[#allocation2 + $0x321] sm:$0xff]  ;;  %v3668_v35 = vld [vmem:[#allocation2 + $0x331] sm:$0xff] }
 0xa27   :  { %5520 = vmatmul.f32.gmra.mxu3 %v3794_v34 }
 0xa28   :  { %5102 = vmatmul.f32.gmra.mxu1 %v3666_v61 }
 0xa29   :  { %v5264_v10 = vpop.f32.mrf.mxu2 }
 0xa2a   :  { %v5676_v15 = vpop.f32.mrf.mxu0  ;;  %v5265_v63 = vadd.f32 %v5264_v10, %v5056_v4  ;;  %v5473_v2 = vpop.f32.mrf.mxu3 }
 0xa2b   :  { %v10211_v36 = vadd.f32 %v5676_v15, %v5468_v48  ;;  %v12032_v15 = vld [vmem:[#allocation10_spill] sm:$0xff] }
 0xa2c   :  { %v5474_v59 = vadd.f32 %v5473_v2, %v5265_v63  ;;  %v10217_v63 = vld [vmem:[#allocation2 + $0x332] sm:$0xff] }
 0xa2d   :  { %5723 = vmatmul.f32.gmra.mxu0 %v3666_v61  ;;  %v5058_v58 = vpop.f32.mrf.mxu1  ;;  %v12031_v61 = vld [vmem:[#allocation7_spill] sm:$0xff] }
 0xa2e   :  { %5314 = vmatmul.f32.gmra.mxu2 %v3731_v30  ;;  %v5059_v49 = vadd.f32 %v5058_v58, %v4850_v24  ;;  %v4853_v2 = vadd.f32 %v12032_v15, %v12031_v61 }
 0xa2f   :  { %5523 = vmatmul.f32.gmra.mxu3 %v3795_v41 }
 0xa30   :  { %5105 = vmatmul.f32.gmra.mxu1 %v3667_v3 }
 0xa31   :  { %v5267_v45 = vpop.f32.mrf.mxu2 }
 0xa32   :  { %v5679_v34 = vpop.f32.mrf.mxu0  ;;  %v5268_v7 = vadd.f32 %v5267_v45, %v5059_v49  ;;  %v5476_v48 = vpop.f32.mrf.mxu3  ;;  %v12033_v45 = vld [vmem:[#allocation9_spill] sm:$0xff] }
 0xa33   :  { %v10215_v4 = vadd.f32 %v5679_v34, %v5471_v20  ;;  %v12034_v34 = vld [vmem:[#allocation66_spill] sm:$0xff] }
 0xa34   :  { %v5477_v10 = vadd.f32 %v5476_v48, %v5268_v7  ;;  %v4856_v48 = vadd.f32 %v12034_v34, %v12033_v45 }
 0xa35   :  { %5726 = vmatmul.f32.gmra.mxu0 %v3667_v3  ;;  %v5061_v30 = vpop.f32.mrf.mxu1  ;;  %v10225_v3 = vld [vmem:[#allocation2 + $0x33a] sm:$0xff] }
 0xa36   :  { %5317 = vmatmul.f32.gmra.mxu2 %v10217_v63  ;;  %v5062_v53 = vadd.f32 %v5061_v30, %v4853_v2  ;;  %v3669_v2 = vld [vmem:[#allocation2 + $0x339] sm:$0xff] }
 0xa37   :  { %5526 = vmatmul.f32.gmra.mxu3 %v10014_v57  ;;  %v6481_v57 = vld [vmem:[#allocation2 + $0x1b0] sm:$0xff] }
 0xa38   :  { %5108 = vmatmul.f32.gmra.mxu1 %v3668_v35 }
 0xa39   :  { %v5270_v24 = vpop.f32.mrf.mxu2 }
 0xa3a   :  { %v5682_v58 = vpop.f32.mrf.mxu0  ;;  %v5271_v20 = vadd.f32 %v5270_v24, %v5062_v53  ;;  %v5479_v7 = vpop.f32.mrf.mxu3 }
 0xa3b   :  { %v10223_v41 = vadd.f32 %v5682_v58, %v5474_v59  ;;  %v12035_v58 = vld [vmem:[#allocation27_spill] sm:$0xff] }
 0xa3c   :  { %v5480_v49 = vadd.f32 %v5479_v7, %v5271_v20  ;;  %v12036_v20 = vld [vmem:[#allocation22_spill] sm:$0xff] }
 0xa3d   :  { %5729 = vmatmul.f32.gmra.mxu0 %v3668_v35  ;;  %v5064_v61 = vpop.f32.mrf.mxu1  ;;  %v4859_v7 = vadd.f32 %v12036_v20, %v12035_v58 }
 0xa3e   :  { %5320 = vmatmul.f32.gmra.mxu2 %v10225_v3  ;;  %v5065_v15 = vadd.f32 %v5064_v61, %v4856_v48  ;;  %v3860_v61 = vld [vmem:[#allocation2 + $0x349] sm:$0xff] }
 0xa3f   :  { %5529 = vmatmul.f32.gmra.mxu3 %v6481_v57 }
 0xa40   :  { %5111 = vmatmul.f32.gmra.mxu1 %v3669_v2 }
 0xa41   :  { %v5273_v30 = vpop.f32.mrf.mxu2 }
 0xa42   :  { %v5685_v5 = vpop.f32.mrf.mxu0  ;;  %v5274_v59 = vadd.f32 %v5273_v30, %v5065_v15  ;;  %v5482_v24 = vpop.f32.mrf.mxu3 }
 0xa43   :  { %v10230_v53 = vadd.f32 %v5685_v5, %v5477_v10  ;;  %v12037_v5 = vld [vmem:[#allocation67_spill] sm:$0xff]  ;;  %v12038_v10 = vld [vmem:[#allocation24_spill] sm:$0xff] }
 0xa44   :  { %v5483_v35 = vadd.f32 %v5482_v24, %v5274_v59  ;;  %v4862_v30 = vadd.f32 %v12038_v10, %v12037_v5  ;;  %v3863_v24 = vld [vmem:[#allocation2 + $0x3a] sm:$0xff] }
 0xa45   :  { %5732 = vmatmul.f32.gmra.mxu0 %v3669_v2  ;;  %v5067_v45 = vpop.f32.mrf.mxu1 }
 0xa46   :  { %v5068_v34 = vadd.f32 %v5067_v45, %v4859_v7  ;;  %v3861_v7 = vld [vmem:[#allocation2 + $0x351] sm:$0xff] }
 0xa48   :  { %5758 = vmatmul.f32.vlgmr.msra.gmra.mxu1 %v3862_v17 }
 0xa49   :  { %v5276_v22 = vpop.f32.mrf.mxu2 }
 0xa4a   :  { %v5688_v48 = vpop.f32.mrf.mxu0  ;;  %v5277_v57 = vadd.f32 %v5276_v22, %v5068_v34  ;;  %v5485_v12 = vpop.f32.mrf.mxu3  ;;  %v12040_v34 = vld [vmem:[#allocation12_spill] sm:$0xff] }
 0xa4b   :  { %v10234_v52 = vadd.f32 %v5688_v48, %v5480_v49  ;;  %v12039_v49 = vld [vmem:[#allocation33_spill] sm:$0xff] }
 0xa4c   :  { %v5486_v15 = vadd.f32 %v5485_v12, %v5277_v57  ;;  %v4865_v12 = vadd.f32 %v12040_v34, %v12039_v49  ;;  %v3864_v57 = vld [vmem:[#allocation2 + $0x4a] sm:$0xff] }
 0xa4d   :  { %5735 = vmatmul.f32.gmra.mxu0 %v3860_v61  ;;  %v5070_v2 = vpop.f32.mrf.mxu1 }
 0xa4e   :  { %v5071_v59 = vadd.f32 %v5070_v2, %v4862_v30 }
 0xa50   :  { %5761 = vmatmul.f32.gmra.mxu1 %v3863_v24 }
 0xa51   :  { %v5279_v58 = vpop.f32.mrf.mxu2 }
 0xa52   :  { %v5691_v20 = vpop.f32.mrf.mxu0  ;;  %v5280_v45 = vadd.f32 %v5279_v58, %v5071_v59  ;;  %v5488_v17 = vpop.f32.mrf.mxu3  ;;  %v12041_v59 = vld [vmem:[#allocation11_spill] sm:$0xff] }
 0xa53   :  { %v10238_v46 = vadd.f32 %v5691_v20, %v5483_v35  ;;  %v12042_v35 = vld [vmem:[#allocation14_spill] sm:$0xff] }
 0xa54   :  { %v5489_v22 = vadd.f32 %v5488_v17, %v5280_v45  ;;  %v4868_v58 = vadd.f32 %v12042_v35, %v12041_v59 }
 0xa55   :  { %5738 = vmatmul.f32.gmra.mxu0 %v3861_v7  ;;  %v5073_v48 = vpop.f32.mrf.mxu1  ;;  %v3865_v7 = vld [vmem:[#allocation2 + $0x52] sm:$0xff] }
 0xa56   :  { %v5074_v61 = vadd.f32 %v5073_v48, %v4865_v12 }
 0xa58   :  { %5764 = vmatmul.f32.gmra.mxu1 %v3864_v57  ;;  %v12043_v57 = vld [vmem:[#allocation13_spill] sm:$0xff] }
 0xa59   :  { %v5282_v5 = vpop.f32.mrf.mxu2 }
 0xa5a   :  { %v5694_v10 = vpop.f32.mrf.mxu0  ;;  %v5283_v30 = vadd.f32 %v5282_v5, %v5074_v61  ;;  %v5491_v25 = vpop.f32.mrf.mxu3  ;;  %v12044_v61 = vld [vmem:[#allocation16_spill] sm:$0xff] }
 0xa5b   :  { %v10242_v2 = vadd.f32 %v5694_v10, %v5486_v15  ;;  %v4871_v15 = vadd.f32 %v12044_v61, %v12043_v57 }
 0xa5c   :  { %v5492_v24 = vadd.f32 %v5491_v25, %v5283_v30  ;;  %v3866_v25 = vld [vmem:[#allocation2 + $0x62] sm:$0xff] }
 0xa5d   :  { %v5076_v20 = vpop.f32.mrf.mxu1 }
 0xa5e   :  { %v5077_v45 = vadd.f32 %v5076_v20, %v4868_v58 }
 0xa60   :  { %5767 = vmatmul.f32.gmra.mxu1 %v3865_v7 }
 0xa61   :  { %v5285_v17 = vpop.f32.mrf.mxu2 }
 0xa62   :  { %v5697_v18 = vpop.f32.mrf.mxu0  ;;  %v5286_v49 = vadd.f32 %v5285_v17, %v5077_v45  ;;  %v5494_v12 = vpop.f32.mrf.mxu3 }
 0xa63   :  { %v10246_v34 = vadd.f32 %v5697_v18, %v5489_v22  ;;  %v3867_v18 = vld [vmem:[#allocation2 + $0x6a] sm:$0xff] }
 0xa64   :  { %v5495_v48 = vadd.f32 %v5494_v12, %v5286_v49  ;;  %v3868_v49 = vld [vmem:[#allocation2 + $0x7a] sm:$0xff] }
 0xa65   :  { %v5079_v5 = vpop.f32.mrf.mxu1 }
 0xa66   :  { %v5080_v10 = vadd.f32 %v5079_v5, %v4871_v15  ;;  %v3870_v15 = vld [vmem:[#allocation2 + $0x92] sm:$0xff] }
 0xa68   :  { %5770 = vmatmul.f32.gmra.mxu1 %v3866_v25  ;;  %v3872_v25 = vld [vmem:[#allocation2 + $0xaa] sm:$0xff] }
 0xa69   :  { %v5288_v30 = vpop.f32.mrf.mxu2 }
 0xa6a   :  { %v5700_v8 = vpop.f32.mrf.mxu0  ;;  %v5289_v59 = vadd.f32 %v5288_v30, %v5080_v10  ;;  %v5497_v58 = vpop.f32.mrf.mxu3  ;;  %v3871_v10 = vld [vmem:[#allocation2 + $0x9a] sm:$0xff] }
 0xa6b   :  { %v10250_v35 = vadd.f32 %v5700_v8, %v5492_v24  ;;  %v3869_v8 = vld [vmem:[#allocation2 + $0x82] sm:$0xff] }
 0xa6c   :  { %v5498_v20 = vadd.f32 %v5497_v58, %v5289_v59  ;;  %v3873_v59 = vld [vmem:[#allocation2 + $0xb2] sm:$0xff] }
 0xa6d   :  { %12045 = vst [vmem:[#allocation59_spill] sm:$0xff] %v10250_v35  ;;  %v10252_v7 = vpop.f32.mrf.mxu1  ;;  %v3893_v35 = vld [vmem:[#allocation2 + $0x1a2] sm:$0xff] }
 0xa6e   :  { %12046 = vst [vmem:[#allocation54_spill] sm:$0xff] %v10252_v7  ;;  %v3889_v7 = vld [vmem:[#allocation2 + $0x172] sm:$0xff] }
 0xa70   :  { %5773 = vmatmul.f32.gmra.mxu1 %v3867_v18 }
 0xa72   :  { %v5703_v22 = vpop.f32.mrf.mxu0 }
 0xa73   :  { %v10254_v45 = vadd.f32 %v5703_v22, %v5495_v48  ;;  %v3875_v22 = vld [vmem:[#allocation2 + $0xca] sm:$0xff] }
 0xa75   :  { %12047 = vst [vmem:[#allocation61_spill] sm:$0xff] %v10254_v45  ;;  %v10256_v17 = vpop.f32.mrf.mxu1  ;;  %v3891_v45 = vld [vmem:[#allocation2 + $0x18a] sm:$0xff] }
 0xa76   :  { %12048 = vst [vmem:[#allocation57_spill] sm:$0xff] %v10256_v17  ;;  %v3888_v17 = vld [vmem:[#allocation2 + $0x16a] sm:$0xff] }
 0xa78   :  { %5776 = vmatmul.f32.gmra.mxu1 %v3868_v49 }
 0xa7a   :  { %v5706_v12 = vpop.f32.mrf.mxu0 }
 0xa7b   :  { %v10258_v57 = vadd.f32 %v5706_v12, %v5498_v20  ;;  %v3874_v20 = vld [vmem:[#allocation2 + $0xc2] sm:$0xff]  ;;  %v3876_v12 = vld [vmem:[#allocation2 + $0xda] sm:$0xff] }
 0xa7d   :  { %12049 = vst [vmem:[#allocation63_spill] sm:$0xff] %v10258_v57  ;;  %v10260_v61 = vpop.f32.mrf.mxu1  ;;  %v3890_v57 = vld [vmem:[#allocation2 + $0x182] sm:$0xff] }
 0xa7e   :  { %12050 = vst [vmem:[#allocation3_spill] sm:$0xff] %v10260_v61  ;;  %v3887_v61 = vld [vmem:[#allocation2 + $0x15a] sm:$0xff] }
 0xa80   :  { %5779 = vmatmul.f32.gmra.mxu1 %v3869_v8 }
 0xa85   :  { %v10262_v24 = vpop.f32.mrf.mxu1 }
 0xa86   :  { %12051 = vst [vmem:[#allocation5_spill] sm:$0xff] %v10262_v24  ;;  %v3886_v24 = vld [vmem:[#allocation2 + $0x152] sm:$0xff] }
 0xa88   :  { %5782 = vmatmul.f32.gmra.mxu1 %v3870_v15  ;;  %v3877_v15 = vld [vmem:[#allocation2 + $0xe2] sm:$0xff] }
 0xa8d   :  { %v10264_v5 = vpop.f32.mrf.mxu1 }
 0xa8e   :  { %12052 = vst [vmem:[#allocation4_spill] sm:$0xff] %v10264_v5  ;;  %v3885_v5 = vld [vmem:[#allocation2 + $0x142] sm:$0xff] }
 0xa90   :  { %5785 = vmatmul.f32.gmra.mxu1 %v3871_v10 }
 0xa95   :  { %v10266_v48 = vpop.f32.mrf.mxu1 }
 0xa96   :  { %12053 = vst [vmem:[#allocation6_spill] sm:$0xff] %v10266_v48  ;;  %v3884_v48 = vld [vmem:[#allocation2 + $0x13a] sm:$0xff] }
 0xa98   :  { %5788 = vmatmul.f32.gmra.mxu1 %v3872_v25  ;;  %v3878_v25 = vld [vmem:[#allocation2 + $0xf2] sm:$0xff] }
 0xa9d   :  { %v10268_v30 = vpop.f32.mrf.mxu1 }
 0xa9e   :  { %12054 = vst [vmem:[#allocation8_spill] sm:$0xff] %v10268_v30  ;;  %v3883_v30 = vld [vmem:[#allocation2 + $0x12a] sm:$0xff] }
 0xaa0   :  { %5791 = vmatmul.f32.gmra.mxu1 %v3873_v59 }
 0xaa5   :  { %v10270_v58 = vpop.f32.mrf.mxu1 }
 0xaa6   :  { %12055 = vst [vmem:[#allocation7_spill] sm:$0xff] %v10270_v58  ;;  %v3879_v58 = vld [vmem:[#allocation2 + $0xfa] sm:$0xff] }
 0xaa8   :  { %5794 = vmatmul.f32.gmra.mxu1 %v3874_v20 }
 0xaad   :  { %v10272_v18 = vpop.f32.mrf.mxu1 }
 0xaae   :  { %12056 = vst [vmem:[#allocation10_spill] sm:$0xff] %v10272_v18  ;;  %v3880_v18 = vld [vmem:[#allocation2 + $0x10a] sm:$0xff] }
 0xab0   :  { %5797 = vmatmul.f32.gmra.mxu1 %v3875_v22 }
 0xab5   :  { %v10274_v49 = vpop.f32.mrf.mxu1 }
 0xab6   :  { %12057 = vst [vmem:[#allocation9_spill] sm:$0xff] %v10274_v49  ;;  %v3881_v49 = vld [vmem:[#allocation2 + $0x112] sm:$0xff] }
 0xab8   :  { %5800 = vmatmul.f32.gmra.mxu1 %v3876_v12 }
 0xabd   :  { %v10276_v8 = vpop.f32.mrf.mxu1 }
 0xabe   :  { %12058 = vst [vmem:[#allocation66_spill] sm:$0xff] %v10276_v8  ;;  %v3882_v8 = vld [vmem:[#allocation2 + $0x122] sm:$0xff] }
 0xac0   :  { %5803 = vmatmul.f32.gmra.mxu1 %v3877_v15 }
 0xac5   :  { %v10278_v10 = vpop.f32.mrf.mxu1 }
 0xac8   :  { %5806 = vmatmul.f32.gmra.mxu1 %v3878_v25 }
 0xacd   :  { %v10280_v59 = vpop.f32.mrf.mxu1 }
 0xad0   :  { %5809 = vmatmul.f32.gmra.mxu1 %v3879_v58 }
 0xad5   :  { %v10282_v20 = vpop.f32.mrf.mxu1 }
 0xad8   :  { %5812 = vmatmul.f32.gmra.mxu1 %v3880_v18 }
 0xadd   :  { %v10284_v22 = vpop.f32.mrf.mxu1 }
 0xae0   :  { %5815 = vmatmul.f32.gmra.mxu1 %v3881_v49 }
 0xae5   :  { %v10286_v12 = vpop.f32.mrf.mxu1 }
 0xae8   :  { %5818 = vmatmul.f32.gmra.mxu1 %v3882_v8 }
 0xaed   :  { %v10288_v15 = vpop.f32.mrf.mxu1 }
 0xaf0   :  { %5821 = vmatmul.f32.gmra.mxu1 %v3883_v30 }
 0xaf5   :  { %v10290_v25 = vpop.f32.mrf.mxu1 }
 0xaf8   :  { %5824 = vmatmul.f32.gmra.mxu1 %v3884_v48 }
 0xafd   :  { %v10292_v58 = vpop.f32.mrf.mxu1 }
 0xb00   :  { %5827 = vmatmul.f32.gmra.mxu1 %v3885_v5 }
 0xb05   :  { %v10294_v18 = vpop.f32.mrf.mxu1 }
 0xb08   :  { %5830 = vmatmul.f32.gmra.mxu1 %v3886_v24 }
 0xb0d   :  { %v10296_v49 = vpop.f32.mrf.mxu1 }
 0xb10   :  { %5833 = vmatmul.f32.gmra.mxu1 %v3887_v61 }
 0xb15   :  { %v10298_v8 = vpop.f32.mrf.mxu1 }
 0xb18   :  { %5836 = vmatmul.f32.gmra.mxu1 %v3888_v17 }
 0xb1d   :  { %v10300_v30 = vpop.f32.mrf.mxu1 }
 0xb20   :  { %5839 = vmatmul.f32.gmra.mxu1 %v3889_v7 }
 0xb25   :  { %v10302_v48 = vpop.f32.mrf.mxu1 }
 0xb28   :  { %5842 = vmatmul.f32.gmra.mxu1 %v3890_v57 }
 0xb2d   :  { %v10304_v5 = vpop.f32.mrf.mxu1 }
 0xb2e   :  { %12059 = vst [vmem:[#allocation27_spill] sm:$0xff] %v10304_v5  ;;  %v3896_v5 = vld [vmem:[#allocation2 + $0x1fa] sm:$0xff] }
 0xb30   :  { %5845 = vmatmul.f32.gmra.mxu1 %v3891_v45 }
 0xb35   :  { %v10306_v24 = vpop.f32.mrf.mxu1 }
 0xb36   :  { %12060 = vst [vmem:[#allocation22_spill] sm:$0xff] %v10306_v24  ;;  %v3897_v24 = vld [vmem:[#allocation2 + $0x202] sm:$0xff] }
 0xb38   :  { %5848 = vmatmul.f32.gmra.mxu1 %v3892_v37 }
 0xb3d   :  { %v10308_v61 = vpop.f32.mrf.mxu1 }
 0xb3e   :  { %12061 = vst [vmem:[#allocation67_spill] sm:$0xff] %v10308_v61  ;;  %v3898_v61 = vld [vmem:[#allocation2 + $0x212] sm:$0xff] }
 0xb40   :  { %5851 = vmatmul.f32.gmra.mxu1 %v3893_v35 }
 0xb45   :  { %v10310_v17 = vpop.f32.mrf.mxu1 }
 0xb46   :  { %12062 = vst [vmem:[#allocation24_spill] sm:$0xff] %v10310_v17  ;;  %v3899_v17 = vld [vmem:[#allocation2 + $0x21a] sm:$0xff] }
 0xb48   :  { %5854 = vmatmul.f32.gmra.mxu1 %v3894_v0 }
 0xb4d   :  { %v10312_v7 = vpop.f32.mrf.mxu1 }
 0xb4e   :  { %12063 = vst [vmem:[#allocation33_spill] sm:$0xff] %v10312_v7  ;;  %v3900_v7 = vld [vmem:[#allocation2 + $0x22a] sm:$0xff] }
 0xb50   :  { %5857 = vmatmul.f32.gmra.mxu1 %v3895_v11 }
 0xb55   :  { %v10314_v57 = vpop.f32.mrf.mxu1 }
 0xb56   :  { %12064 = vst [vmem:[#allocation12_spill] sm:$0xff] %v10314_v57  ;;  %v3901_v57 = vld [vmem:[#allocation2 + $0x232] sm:$0xff] }
 0xb58   :  { %5860 = vmatmul.f32.gmra.mxu1 %v3896_v5 }
 0xb5d   :  { %v10316_v45 = vpop.f32.mrf.mxu1 }
 0xb5e   :  { %12065 = vst [vmem:[#allocation11_spill] sm:$0xff] %v10316_v45  ;;  %v3902_v45 = vld [vmem:[#allocation2 + $0x242] sm:$0xff] }
 0xb60   :  { %5863 = vmatmul.f32.gmra.mxu1 %v3897_v24 }
 0xb65   :  { %v10318_v37 = vpop.f32.mrf.mxu1 }
 0xb66   :  { %12066 = vst [vmem:[#allocation14_spill] sm:$0xff] %v10318_v37  ;;  %v3903_v37 = vld [vmem:[#allocation2 + $0x24a] sm:$0xff] }
 0xb68   :  { %5866 = vmatmul.f32.gmra.mxu1 %v3898_v61 }
 0xb6d   :  { %v10320_v35 = vpop.f32.mrf.mxu1 }
 0xb6e   :  { %12067 = vst [vmem:[#allocation13_spill] sm:$0xff] %v10320_v35  ;;  %v3904_v35 = vld [vmem:[#allocation2 + $0x25a] sm:$0xff] }
 0xb70   :  { %5869 = vmatmul.f32.gmra.mxu1 %v3899_v17 }
 0xb75   :  { %v10322_v0 = vpop.f32.mrf.mxu1 }
 0xb76   :  { %12068 = vst [vmem:[#allocation16_spill] sm:$0xff] %v10322_v0  ;;  %v3905_v0 = vld [vmem:[#allocation2 + $0x262] sm:$0xff] }
 0xb78   :  { %5872 = vmatmul.f32.gmra.mxu1 %v3900_v7 }
 0xb7d   :  { %v10324_v11 = vpop.f32.mrf.mxu1 }
 0xb7e   :  { %12069 = vst [vmem:[#allocation101_spill] sm:$0xff] %v10324_v11  ;;  %v3906_v11 = vld [vmem:[#allocation2 + $0x272] sm:$0xff] }
 0xb80   :  { %5875 = vmatmul.f32.gmra.mxu1 %v3901_v57 }
 0xb85   :  { %v10326_v5 = vpop.f32.mrf.mxu1 }
 0xb86   :  { %12070 = vst [vmem:[#allocation102_spill] sm:$0xff] %v10326_v5  ;;  %v3907_v5 = vld [vmem:[#allocation2 + $0x27a] sm:$0xff] }
 0xb88   :  { %5878 = vmatmul.f32.gmra.mxu1 %v3902_v45 }
 0xb8d   :  { %v10328_v24 = vpop.f32.mrf.mxu1 }
 0xb8e   :  { %12071 = vst [vmem:[#allocation103_spill] sm:$0xff] %v10328_v24  ;;  %v3908_v24 = vld [vmem:[#allocation2 + $0x28a] sm:$0xff] }
 0xb90   :  { %5881 = vmatmul.f32.gmra.mxu1 %v3903_v37 }
 0xb95   :  { %v10330_v61 = vpop.f32.mrf.mxu1 }
 0xb96   :  { %12072 = vst [vmem:[#allocation104_spill] sm:$0xff] %v10330_v61  ;;  %v3909_v61 = vld [vmem:[#allocation2 + $0x292] sm:$0xff] }
 0xb98   :  { %5884 = vmatmul.f32.gmra.mxu1 %v3904_v35 }
 0xb9d   :  { %v10332_v17 = vpop.f32.mrf.mxu1 }
 0xb9e   :  { %12073 = vst [vmem:[#allocation105_spill] sm:$0xff] %v10332_v17  ;;  %v3910_v17 = vld [vmem:[#allocation2 + $0x2a2] sm:$0xff] }
 0xba0   :  { %5887 = vmatmul.f32.gmra.mxu1 %v3905_v0 }
 0xba5   :  { %v10334_v7 = vpop.f32.mrf.mxu1 }
 0xba6   :  { %12074 = vst [vmem:[#allocation106_spill] sm:$0xff] %v10334_v7  ;;  %v3911_v7 = vld [vmem:[#allocation2 + $0x2aa] sm:$0xff] }
 0xba8   :  { %5890 = vmatmul.f32.gmra.mxu1 %v3906_v11 }
 0xbad   :  { %v10336_v57 = vpop.f32.mrf.mxu1 }
 0xbae   :  { %12075 = vst [vmem:[#allocation107_spill] sm:$0xff] %v10336_v57  ;;  %v3912_v57 = vld [vmem:[#allocation2 + $0x2ba] sm:$0xff] }
 0xbb0   :  { %5893 = vmatmul.f32.gmra.mxu1 %v3907_v5 }
 0xbb5   :  { %v10338_v45 = vpop.f32.mrf.mxu1 }
 0xbb6   :  { %12076 = vst [vmem:[#allocation108_spill] sm:$0xff] %v10338_v45  ;;  %v3913_v45 = vld [vmem:[#allocation2 + $0x2c2] sm:$0xff] }
 0xbb8   :  { %5896 = vmatmul.f32.gmra.mxu1 %v3908_v24 }
 0xbbd   :  { %v10340_v37 = vpop.f32.mrf.mxu1 }
 0xbbe   :  { %12077 = vst [vmem:[#allocation109_spill] sm:$0xff] %v10340_v37  ;;  %v3914_v37 = vld [vmem:[#allocation2 + $0x2d2] sm:$0xff] }
 0xbc0   :  { %5899 = vmatmul.f32.gmra.mxu1 %v3909_v61 }
 0xbc5   :  { %v10342_v35 = vpop.f32.mrf.mxu1 }
 0xbc6   :  { %12078 = vst [vmem:[#allocation110_spill] sm:$0xff] %v10342_v35  ;;  %v3915_v35 = vld [vmem:[#allocation2 + $0x2da] sm:$0xff] }
 0xbc8   :  { %5902 = vmatmul.f32.gmra.mxu1 %v3910_v17 }
 0xbcd   :  { %v10344_v0 = vpop.f32.mrf.mxu1 }
 0xbce   :  { %12079 = vst [vmem:[#allocation111_spill] sm:$0xff] %v10344_v0  ;;  %v3916_v0 = vld [vmem:[#allocation2 + $0x2ea] sm:$0xff] }
 0xbd0   :  { %5905 = vmatmul.f32.gmra.mxu1 %v3911_v7 }
 0xbd5   :  { %v10346_v11 = vpop.f32.mrf.mxu1 }
 0xbd6   :  { %12080 = vst [vmem:[#allocation112_spill] sm:$0xff] %v10346_v11  ;;  %v3917_v11 = vld [vmem:[#allocation2 + $0x2f2] sm:$0xff] }
 0xbd8   :  { %5908 = vmatmul.f32.gmra.mxu1 %v3912_v57 }
 0xbdd   :  { %v10348_v5 = vpop.f32.mrf.mxu1 }
 0xbde   :  { %12081 = vst [vmem:[#allocation113_spill] sm:$0xff] %v10348_v5 }
 0xbe0   :  { %5911 = vmatmul.f32.gmra.mxu1 %v3913_v45  ;;  %v3918_v45 = vld [vmem:[#allocation2 + $0x302] sm:$0xff] }
 0xbe5   :  { %v10350_v24 = vpop.f32.mrf.mxu1 }
 0xbe6   :  { %12082 = vst [vmem:[#allocation114_spill] sm:$0xff] %v10350_v24 }
 0xbe8   :  { %5914 = vmatmul.f32.gmra.mxu1 %v3914_v37 }
 0xbed   :  { %v10352_v61 = vpop.f32.mrf.mxu1 }
 0xbee   :  { %12083 = vst [vmem:[#allocation115_spill] sm:$0xff] %v10352_v61  ;;  %v3919_v61 = vld [vmem:[#allocation2 + $0x30a] sm:$0xff] }
 0xbf0   :  { %5917 = vmatmul.f32.gmra.mxu1 %v3915_v35 }
 0xbf5   :  { %v10354_v17 = vpop.f32.mrf.mxu1 }
 0xbf6   :  { %12084 = vst [vmem:[#allocation116_spill] sm:$0xff] %v10354_v17 }
 0xbf8   :  { %5920 = vmatmul.f32.gmra.mxu1 %v3916_v0  ;;  %v3920_v0 = vld [vmem:[#allocation2 + $0x31a] sm:$0xff] }
 0xbfd   :  { %v10356_v7 = vpop.f32.mrf.mxu1 }
 0xbfe   :  { %12085 = vst [vmem:[#allocation117_spill] sm:$0xff] %v10356_v7 }
 0xc00   :  { %5923 = vmatmul.f32.gmra.mxu1 %v3917_v11 }
 0xc05   :  { %v5879_v57 = vpop.f32.mrf.mxu1 }
 0xc06   :  { %v10359_v5 = vadd.f32 %v5879_v57, %v10203_v1  ;;  %v3921_v1 = vld [vmem:[#allocation2 + $0x322] sm:$0xff] }
 0xc08   :  { %12086 = vst [vmem:[#allocation118_spill] sm:$0xff] %v10359_v5  ;;  %5926 = vmatmul.f32.gmra.mxu1 %v3918_v45 }
 0xc0d   :  { %v5882_v24 = vpop.f32.mrf.mxu1 }
 0xc0e   :  { %v10362_v37 = vadd.f32 %v5882_v24, %v10207_v47 }
 0xc10   :  { %12087 = vst [vmem:[#allocation119_spill] sm:$0xff] %v10362_v37  ;;  %5929 = vmatmul.f32.gmra.mxu1 %v3919_v61  ;;  %v3924_v61 = vld [vmem:[#allocation2 + $0x34a] sm:$0xff] }
 0xc15   :  { %v5885_v35 = vpop.f32.mrf.mxu1 }
 0xc16   :  { %v10365_v17 = vadd.f32 %v5885_v35, %v10211_v36 }
 0xc18   :  { %12088 = vst [vmem:[#allocation120_spill] sm:$0xff] %v10365_v17  ;;  %5932 = vmatmul.f32.gmra.mxu1 %v3920_v0 }
 0xc1d   :  { %v5888_v7 = vpop.f32.mrf.mxu1 }
 0xc1e   :  { %v10368_v11 = vadd.f32 %v5888_v7, %v10215_v4  ;;  %v5554_v4 = vadd.f32 %v9939_v39, %v9929_v6  ;;  %v5566_v39 = vadd.f32 %v9966_v23, %v9956_v43 }
 0xc20   :  { %12089 = vst [vmem:[#allocation121_spill] sm:$0xff] %v10368_v11  ;;  %5935 = vmatmul.f32.gmra.mxu1 %v3921_v1  ;;  %v10424_v43 = vadd.f32 %v10288_v15, %v5566_v39  ;;  %v5575_v15 = vadd.f32 %v9987_v19, %v9974_v62  ;;  %v5581_v19 = vadd.f32 %v9999_v9, %v9989_v27  ;;  %v10485_v39 = vpop.f32.mrf.mxu3 }
 0xc22   :  { %12098 = vst [vmem:[#allocation130_spill] sm:$0xff] %v10424_v43  ;;  %v10470_v9 = vadd.f32 %v10298_v8, %v5581_v19  ;;  %v5590_v8 = vadd.f32 %v10024_v29, %v10010_v16  ;;  %v12108_v29 = vld [vmem:[#allocation27_spill] sm:$0xff] }
 0xc24   :  { %12103 = vst [vmem:[#allocation135_spill] sm:$0xff] %v10470_v9 }
 0xc25   :  { %v5891_v57 = vpop.f32.mrf.mxu1 }
 0xc26   :  { %v10371_v45 = vadd.f32 %v5891_v57, %v10223_v41  ;;  %v5551_v41 = vadd.f32 %v9933_v44, %v9920_v28  ;;  %v5563_v28 = vadd.f32 %v9960_v21, %v9947_v42  ;;  %v5569_v21 = vadd.f32 %v9972_v26, %v9962_v14 }
 0xc28   :  { %12090 = vst [vmem:[#allocation122_spill] sm:$0xff] %v10371_v45  ;;  %5938 = vmatmul.f32.gmra.mxu1 %v10217_v63  ;;  %v5557_v63 = vadd.f32 %v9945_v50, %v9935_v56  ;;  %v10396_v1 = vadd.f32 %v10278_v10, %v5551_v41  ;;  %v10435_v26 = vadd.f32 %v10290_v25, %v5569_v21 }
 0xc2a   :  { %12094 = vst [vmem:[#allocation126_spill] sm:$0xff] %v10396_v1  ;;  %v10399_v6 = vadd.f32 %v10282_v20, %v5557_v63  ;;  %v6026_v25 = vmul.f32 %v10435_v26, %v10435_v26 }
 0xc2b   :  { %12099 = vst [vmem:[#allocation131_spill] sm:$0xff] %v10435_v26 }
 0xc2c   :  { %12095 = vst [vmem:[#allocation127_spill] sm:$0xff] %v10399_v6  ;;  %v6022_v50 = vmul.f32 %v10399_v6, %v10399_v6 }
 0xc2d   :  { %v5894_v47 = vpop.f32.mrf.mxu1 }
 0xc2e   :  { %v10375_v24 = vadd.f32 %v5894_v47, %v10230_v53  ;;  %v10388_v53 = vadd.f32 %v10280_v59, %v5554_v4  ;;  %v10451_v4 = vadd.f32 %v10294_v18, %v5575_v15  ;;  %v5584_v18 = vadd.f32 %v10008_v13, %v9995_v32  ;;  %v10480_v32 = vpop.f32.mrf.mxu2 }
 0xc30   :  { %12091 = vst [vmem:[#allocation123_spill] sm:$0xff] %v10375_v24  ;;  %5941 = vmatmul.f32.gmra.mxu1 %v10225_v3  ;;  %v3925_v3 = vld [vmem:[#allocation2 + $0x352] sm:$0xff]  ;;  %v6021_v44 = vmul.f32 %v10388_v53, %v10388_v53  ;;  %v5951_v42 = vadd.f32 %v10388_v53, %v10396_v1  ;;  %v6028_v27 = vmul.f32 %v10451_v4, %v10451_v4 }
 0xc31   :  { %12093 = vst [vmem:[#allocation125_spill] sm:$0xff] %v10388_v53 }
 0xc32   :  { %v5952_v59 = vadd.f32 %v5951_v42, %v10399_v6  ;;  %12101 = vst [vmem:[#allocation133_spill] sm:$0xff] %v10451_v4  ;;  %v12107_v42 = vld [vmem:[#allocation20_spill] sm:$0xff] }
 0xc35   :  { %v5897_v36 = vpop.f32.mrf.mxu1 }
 0xc36   :  { %v10379_v35 = vadd.f32 %v5897_v36, %v10234_v52  ;;  %v5560_v52 = vadd.f32 %v9954_v31, %v9941_v51  ;;  %v6020_v51 = vmul.f32 %v10396_v1, %v10396_v1  ;;  %v10415_v31 = vadd.f32 %v10286_v12, %v5563_v28 }
 0xc38   :  { %12092 = vst [vmem:[#allocation124_spill] sm:$0xff] %v10379_v35  ;;  %5944 = vmatmul.f32.gmra.mxu1 %v3924_v61  ;;  %v10406_v56 = vadd.f32 %v10284_v22, %v5560_v52  ;;  %v5572_v22 = vadd.f32 %v9981_v60, %v9968_v38  ;;  %v6024_v14 = vmul.f32 %v10415_v31, %v10415_v31 }
 0xc39   :  { %12097 = vst [vmem:[#allocation129_spill] sm:$0xff] %v10415_v31  ;;  %v5578_v60 = vadd.f32 %v9993_v55, %v9983_v54 }
 0xc3a   :  { %12096 = vst [vmem:[#allocation128_spill] sm:$0xff] %v10406_v56  ;;  %v6023_v10 = vmul.f32 %v10406_v56, %v10406_v56  ;;  %v5953_v57 = vadd.f32 %v5952_v59, %v10406_v56  ;;  %v10443_v36 = vadd.f32 %v10292_v58, %v5572_v22 }
 0xc3b   :  { %v10459_v63 = vadd.f32 %v10296_v49, %v5578_v60  ;;  %v5587_v49 = vadd.f32 %v10017_v40, %v10001_v33  ;;  %v6030_v33 = vmul.f32 %v10470_v9, %v10470_v9 }
 0xc3c   :  { %12100 = vst [vmem:[#allocation132_spill] sm:$0xff] %v10443_v36  ;;  %v5954_v38 = vadd.f32 %v5953_v57, %v10415_v31  ;;  %v6027_v58 = vmul.f32 %v10443_v36, %v10443_v36  ;;  %v12112_v57 = vld [vmem:[#allocation68_spill] sm:$0xff] }
 0xc3d   :  { %v5900_v7 = vpop.f32.mrf.mxu1  ;;  %12102 = vst [vmem:[#allocation134_spill] sm:$0xff] %v10459_v63  ;;  %v10490_v40 = vadd.f32 %v10302_v48, %v5587_v49 }
 0xc3e   :  { %v10391_v0 = vadd.f32 %v5900_v7, %v10238_v46  ;;  %v6084_v46 = vadd.f32 %v6021_v44, %v6020_v51  ;;  %v5955_v62 = vadd.f32 %v5954_v38, %v10424_v43  ;;  %v10478_v44 = vadd.f32 %v10300_v30, %v5584_v18  ;;  %v12106_v30 = vld [vmem:[#allocation36_spill] sm:$0xff]  ;;  %v12113_v38 = vld [vmem:[#allocation22_spill] sm:$0xff] }
 0xc3f   :  { %12105 = vst [vmem:[#allocation137_spill] sm:$0xff] %v10490_v40  ;;  %v5593_v21 = vadd.f32 %v12107_v42, %v12106_v30  ;;  %v12123_v42 = vld [vmem:[#allocation33_spill] sm:$0xff] }
 0xc40   :  { %5947 = vmatmul.f32.gmra.mxu1 %v3925_v3  ;;  %v6085_v12 = vadd.f32 %v6084_v46, %v6022_v50  ;;  %v5956_v55 = vadd.f32 %v5955_v62, %v10435_v26  ;;  %12104 = vst [vmem:[#allocation136_spill] sm:$0xff] %v10478_v44  ;;  %v10495_v46 = vpop.f32.mrf.mxu0  ;;  %v6031_v16 = vmul.f32 %v10478_v44, %v10478_v44  ;;  %v12116_v62 = vld [vmem:[#allocation70_spill] sm:$0xff]  ;;  %v12223_v26 = vld [vmem:[#allocation23_spill] sm:$0xff] }
 0xc41   :  { %v10511_v60 = vadd.f32 %v12113_v38, %v5593_v21  ;;  %v12129_v38 = vld [vmem:[#allocation42_spill] sm:$0xff] }
 0xc42   :  { %v6086_v47 = vadd.f32 %v6085_v12, %v6023_v10  ;;  %v5957_v52 = vadd.f32 %v5956_v55, %v10443_v36  ;;  %v12110_v12 = vld [vmem:[#allocation59_spill] sm:$0xff]  ;;  %v6066_v36 = vmul.f32 %v10379_v35, %v10379_v35 }
 0xc43   :  { %12114 = vst [vmem:[#allocation20_spill] sm:$0xff] %v10511_v60 }
 0xc44   :  { %v6087_v61 = vadd.f32 %v6086_v47, %v6024_v14  ;;  %v5958_v13 = vadd.f32 %v5957_v52, %v10451_v4  ;;  %v12111_v14 = vld [vmem:[#allocation26_spill] sm:$0xff] }
 0xc45   :  { %v5903_v23 = vpop.f32.mrf.mxu1  ;;  %v5596_v15 = vadd.f32 %v12112_v57, %v12111_v14 }
 0xc46   :  { %v10428_v20 = vadd.f32 %v5903_v23, %v10242_v2  ;;  %v6025_v2 = vmul.f32 %v10424_v43, %v10424_v43  ;;  %v5959_v50 = vadd.f32 %v5958_v13, %v10459_v63  ;;  %v10500_v23 = vadd.f32 %v12108_v29, %v5590_v8  ;;  %v10529_v8 = vpop.f32.mrf.mxu2  ;;  %v12126_v29 = vld [vmem:[#allocation84_spill] sm:$0xff]  ;;  %v12224_v43 = vld [vmem:[#allocation31_spill] sm:$0xff] }
 0xc48   :  { %v6088_v41 = vadd.f32 %v6087_v61, %v6025_v2  ;;  %12109 = vst [vmem:[#allocation36_spill] sm:$0xff] %v10500_v23  ;;  %v5960_v22 = vadd.f32 %v5959_v50, %v10470_v9  ;;  %v6032_v2 = vmul.f32 %v10490_v40, %v10490_v40  ;;  %v10545_v57 = vpop.f32.mrf.mxu0 }
 0xc4a   :  { %v6089_v3 = vadd.f32 %v6088_v41, %v6026_v25  ;;  %v5961_v61 = vadd.f32 %v5960_v22, %v10478_v44  ;;  %v12115_v25 = vld [vmem:[#allocation39_spill] sm:$0xff] }
 0xc4b   :  { %v5599_v19 = vadd.f32 %v12116_v62, %v12115_v25  ;;  %v12130_v62 = vld [vmem:[#allocation12_spill] sm:$0xff] }
 0xc4c   :  { %v6090_v28 = vadd.f32 %v6089_v3, %v6027_v58  ;;  %v6033_v58 = vmul.f32 %v10500_v23, %v10500_v23  ;;  %v5962_v18 = vadd.f32 %v5961_v61, %v10490_v40  ;;  %v12119_v3 = vld [vmem:[#allocation80_spill] sm:$0xff] }
 0xc4d   :  { %v5906_v54 = vpop.f32.mrf.mxu1 }
 0xc4e   :  { %v10463_v7 = vadd.f32 %v5906_v54, %v10246_v34  ;;  %v6029_v34 = vmul.f32 %v10459_v63, %v10459_v63  ;;  %v6091_v51 = vadd.f32 %v6090_v28, %v6028_v27  ;;  %v12117_v54 = vld [vmem:[#allocation67_spill] sm:$0xff]  ;;  %v6034_v28 = vmul.f32 %v10511_v60, %v10511_v60 }
 0xc4f   :  { %v10519_v55 = vadd.f32 %v12117_v54, %v5596_v15  ;;  %v12120_v27 = vld [vmem:[#allocation71_spill] sm:$0xff]  ;;  %v12132_v54 = vld [vmem:[#allocation73_spill] sm:$0xff] }
 0xc50   :  { %v6092_v10 = vadd.f32 %v6091_v51, %v6029_v34  ;;  %v5602_v52 = vadd.f32 %v12120_v27, %v12119_v3  ;;  %v12121_v34 = vld [vmem:[#allocation24_spill] sm:$0xff]  ;;  %v5963_v51 = vadd.f32 %v5962_v18, %v10500_v23  ;;  %v12133_v18 = vld [vmem:[#allocation97_spill] sm:$0xff] }
 0xc51   :  { %12118 = vst [vmem:[#allocation27_spill] sm:$0xff] %v10519_v55  ;;  %v10527_v13 = vadd.f32 %v12121_v34, %v5599_v19  ;;  %v6035_v30 = vmul.f32 %v10519_v55, %v10519_v55  ;;  %v5611_v3 = vadd.f32 %v12133_v18, %v12132_v54  ;;  %v12136_v34 = vld [vmem:[#allocation74_spill] sm:$0xff]  ;;  %v12145_v54 = vld [vmem:[#allocation100_spill] sm:$0xff]  ;;  %v12146_v18 = vld [vmem:[#allocation87_spill] sm:$0xff] }
 0xc52   :  { %v6093_v47 = vadd.f32 %v6092_v10, %v6030_v33  ;;  %v10532_v33 = vpop.f32.mrf.mxu3  ;;  %v10537_v21 = vadd.f32 %v12123_v42, %v5602_v52  ;;  %v5964_v22 = vadd.f32 %v5963_v51, %v10511_v60  ;;  %v12134_v52 = vld [vmem:[#allocation11_spill] sm:$0xff] }
 0xc53   :  { %12122 = vst [vmem:[#allocation59_spill] sm:$0xff] %v10527_v13  ;;  %v12137_v51 = vld [vmem:[#allocation99_spill] sm:$0xff] }
 0xc54   :  { %v6094_v41 = vadd.f32 %v6093_v47, %v6031_v16  ;;  %12124 = vst [vmem:[#allocation26_spill] sm:$0xff] %v10537_v21  ;;  %v12125_v16 = vld [vmem:[#allocation29_spill] sm:$0xff]  ;;  %v6036_v47 = vmul.f32 %v10527_v13, %v10527_v13  ;;  %v5965_v25 = vadd.f32 %v5964_v22, %v10519_v55 }
 0xc55   :  { %v5909_v59 = vpop.f32.mrf.mxu1 }
 0xc56   :  { %v10504_v48 = vadd.f32 %v5909_v59, %v12110_v12  ;;  %v6095_v49 = vadd.f32 %v6094_v41, %v6032_v2  ;;  %v5605_v59 = vadd.f32 %v12126_v29, %v12125_v16  ;;  %v12127_v12 = vld [vmem:[#allocation61_spill] sm:$0xff]  ;;  %v12128_v2 = vld [vmem:[#allocation30_spill] sm:$0xff]  ;;  %v5966_v27 = vadd.f32 %v5965_v25, %v10527_v13 }
 0xc57   :  { %v5608_v61 = vadd.f32 %v12129_v38, %v12128_v2  ;;  %v12140_v29 = vld [vmem:[#allocation98_spill] sm:$0xff]  ;;  %v10573_v2 = vpop.f32.mrf.mxu2 }
 0xc58   :  { %v6096_v50 = vadd.f32 %v6095_v49, %v6033_v58  ;;  %v10553_v19 = vadd.f32 %v12130_v62, %v5605_v59  ;;  %v6037_v58 = vmul.f32 %v10537_v21, %v10537_v21  ;;  %v5967_v42 = vadd.f32 %v5966_v27, %v10537_v21  ;;  %v12141_v59 = vld [vmem:[#allocation69_spill] sm:$0xff]  ;;  %v12144_v62 = vld [vmem:[#allocation63_spill] sm:$0xff] }
 0xc59   :  { %v10561_v49 = vadd.f32 %v12134_v52, %v5608_v61  ;;  %v5617_v22 = vadd.f32 %v12141_v59, %v12140_v29  ;;  %v12142_v61 = vld [vmem:[#allocation13_spill] sm:$0xff]  ;;  %v10596_v29 = vpop.f32.mrf.mxu0 }
 0xc5a   :  { %v6097_v15 = vadd.f32 %v6096_v50, %v6034_v28  ;;  %12131 = vst [vmem:[#allocation68_spill] sm:$0xff] %v10553_v19  ;;  %v5614_v50 = vadd.f32 %v12137_v51, %v12136_v34  ;;  %v10586_v27 = vpop.f32.mrf.mxu3  ;;  %v12147_v34 = vld [vmem:[#allocation16_spill] sm:$0xff] }
 0xc5b   :  { %12135 = vst [vmem:[#allocation22_spill] sm:$0xff] %v10561_v49  ;;  %v6039_v38 = vmul.f32 %v10561_v49, %v10561_v49  ;;  %v10592_v51 = vadd.f32 %v12147_v34, %v5617_v22 }
 0xc5c   :  { %v6098_v41 = vadd.f32 %v6097_v15, %v6035_v30  ;;  %v6038_v30 = vmul.f32 %v10553_v19, %v10553_v19  ;;  %v10579_v25 = vadd.f32 %v12142_v61, %v5614_v50  ;;  %v12150_v50 = vld [vmem:[#allocation79_spill] sm:$0xff] }
 0xc5d   :  { %v5912_v10 = vpop.f32.mrf.mxu1  ;;  %12148 = vst [vmem:[#allocation67_spill] sm:$0xff] %v10592_v51  ;;  %v6042_v34 = vmul.f32 %v10592_v51, %v10592_v51 }
 0xc5e   :  { %v10543_v14 = vadd.f32 %v5912_v10, %v12127_v12  ;;  %v6099_v28 = vadd.f32 %v6098_v41, %v6036_v47  ;;  %v12138_v10 = vld [vmem:[#allocation14_spill] sm:$0xff]  ;;  %v5968_v47 = vadd.f32 %v5967_v42, %v10553_v19  ;;  %12143 = vst [vmem:[#allocation70_spill] sm:$0xff] %v10579_v25  ;;  %v12149_v42 = vld [vmem:[#allocation32_spill] sm:$0xff]  ;;  %v6041_v61 = vmul.f32 %v10579_v25, %v10579_v25 }
 0xc5f   :  { %v10569_v16 = vadd.f32 %v12138_v10, %v5611_v3  ;;  %v5620_v3 = vadd.f32 %v12146_v18, %v12145_v54  ;;  %v5623_v10 = vadd.f32 %v12150_v50, %v12149_v42  ;;  %v12155_v42 = vld [vmem:[#allocation102_spill] sm:$0xff] }
 0xc60   :  { %v6100_v12 = vadd.f32 %v6099_v28, %v6037_v58  ;;  %v5969_v52 = vadd.f32 %v5968_v47, %v10561_v49  ;;  %v12153_v47 = vld [vmem:[#allocation76_spill] sm:$0xff] }
 0xc61   :  { %12139 = vst [vmem:[#allocation39_spill] sm:$0xff] %v10569_v16  ;;  %v6040_v28 = vmul.f32 %v10569_v16, %v10569_v16  ;;  %v10610_v50 = vadd.f32 %v12155_v42, %v5623_v10  ;;  %v10644_v21 = vpop.f32.mrf.mxu0 }
 0xc62   :  { %v6101_v58 = vadd.f32 %v6100_v12, %v6038_v30  ;;  %v12151_v30 = vld [vmem:[#allocation101_spill] sm:$0xff]  ;;  %v10634_v19 = vpop.f32.mrf.mxu3 }
 0xc63   :  { %v10602_v12 = vadd.f32 %v12151_v30, %v5620_v3  ;;  %12156 = vst [vmem:[#allocation71_spill] sm:$0xff] %v10610_v50 }
 0xc64   :  { %v6102_v59 = vadd.f32 %v6101_v58, %v6039_v38  ;;  %v12157_v38 = vld [vmem:[#allocation91_spill] sm:$0xff]  ;;  %v12158_v58 = vld [vmem:[#allocation45_spill] sm:$0xff] }
 0xc65   :  { %v5915_v15 = vpop.f32.mrf.mxu1  ;;  %12152 = vst [vmem:[#allocation80_spill] sm:$0xff] %v10602_v12  ;;  %v6043_v30 = vmul.f32 %v10602_v12, %v10602_v12 }
 0xc66   :  { %v10582_v41 = vadd.f32 %v5915_v15, %v12144_v62  ;;  %v5970_v15 = vadd.f32 %v5969_v52, %v10569_v16  ;;  %v12154_v62 = vld [vmem:[#allocation72_spill] sm:$0xff]  ;;  %v6103_v18 = vadd.f32 %v6102_v59, %v6040_v28  ;;  %v5629_v52 = vadd.f32 %v12158_v58, %v12157_v38  ;;  %v12159_v28 = vld [vmem:[#allocation103_spill] sm:$0xff]  ;;  %v12166_v58 = vld [vmem:[#allocation94_spill] sm:$0xff] }
 0xc67   :  { %v5626_v54 = vadd.f32 %v12154_v62, %v12153_v47  ;;  %v12162_v47 = vld [vmem:[#allocation78_spill] sm:$0xff]  ;;  %v6044_v38 = vmul.f32 %v10610_v50, %v10610_v50 }
 0xc68   :  { %v5971_v22 = vadd.f32 %v5970_v15, %v10579_v25  ;;  %v6104_v49 = vadd.f32 %v6103_v18, %v6041_v61  ;;  %v12161_v15 = vld [vmem:[#allocation83_spill] sm:$0xff]  ;;  %v10624_v25 = vpop.f32.mrf.mxu2  ;;  %v12163_v61 = vld [vmem:[#allocation104_spill] sm:$0xff] }
 0xc69   :  { %v10620_v59 = vadd.f32 %v12159_v28, %v5626_v54  ;;  %v5632_v62 = vadd.f32 %v12162_v47, %v12161_v15  ;;  %v10630_v18 = vadd.f32 %v12163_v61, %v5629_v52  ;;  %v12170_v47 = vld [vmem:[#allocation88_spill] sm:$0xff]  ;;  %v10692_v23 = vpop.f32.mrf.mxu0 }
 0xc6a   :  { %v5972_v3 = vadd.f32 %v5971_v22, %v10592_v51  ;;  %v6105_v10 = vadd.f32 %v6104_v49, %v6042_v34  ;;  %v12165_v22 = vld [vmem:[#allocation75_spill] sm:$0xff]  ;;  %v12167_v49 = vld [vmem:[#allocation105_spill] sm:$0xff] }
 0xc6b   :  { %12160 = vst [vmem:[#allocation24_spill] sm:$0xff] %v10620_v59  ;;  %v5635_v51 = vadd.f32 %v12166_v58, %v12165_v22  ;;  %v6045_v15 = vmul.f32 %v10620_v59, %v10620_v59  ;;  %v10640_v34 = vadd.f32 %v12167_v49, %v5632_v62  ;;  %v6046_v22 = vmul.f32 %v10630_v18, %v10630_v18  ;;  %v12174_v58 = vld [vmem:[#allocation77_spill] sm:$0xff] }
 0xc6c   :  { %v5973_v42 = vadd.f32 %v5972_v3, %v10602_v12  ;;  %12164 = vst [vmem:[#allocation33_spill] sm:$0xff] %v10630_v18  ;;  %v6106_v54 = vadd.f32 %v6105_v10, %v6043_v30  ;;  %v12169_v3 = vld [vmem:[#allocation35_spill] sm:$0xff]  ;;  %v12171_v30 = vld [vmem:[#allocation106_spill] sm:$0xff] }
 0xc6d   :  { %v10614_v16 = vpop.f32.mrf.mxu1  ;;  %12168 = vst [vmem:[#allocation29_spill] sm:$0xff] %v10640_v34  ;;  %v5638_v12 = vadd.f32 %v12170_v47, %v12169_v3  ;;  %v10650_v10 = vadd.f32 %v12171_v30, %v5635_v51  ;;  %v6047_v3 = vmul.f32 %v10640_v34, %v10640_v34  ;;  %v12178_v47 = vld [vmem:[#allocation81_spill] sm:$0xff] }
 0xc6e   :  { %v5974_v28 = vadd.f32 %v5973_v42, %v10610_v50  ;;  %v6107_v52 = vadd.f32 %v6106_v54, %v6044_v38  ;;  %v12173_v42 = vld [vmem:[#allocation82_spill] sm:$0xff]  ;;  %v12175_v38 = vld [vmem:[#allocation107_spill] sm:$0xff] }
 0xc6f   :  { %12172 = vst [vmem:[#allocation84_spill] sm:$0xff] %v10650_v10  ;;  %v5641_v50 = vadd.f32 %v12174_v58, %v12173_v42  ;;  %v10660_v54 = vadd.f32 %v12175_v38, %v5638_v12  ;;  %v6048_v30 = vmul.f32 %v10650_v10, %v10650_v10  ;;  %v12179_v42 = vld [vmem:[#allocation108_spill] sm:$0xff] }
 0xc70   :  { %v5975_v61 = vadd.f32 %v5974_v28, %v10620_v59  ;;  %v6108_v62 = vadd.f32 %v6107_v52, %v6045_v15  ;;  %v12177_v28 = vld [vmem:[#allocation85_spill] sm:$0xff]  ;;  %v12181_v15 = vld [vmem:[#allocation48_spill] sm:$0xff] }
 0xc71   :  { %12176 = vst [vmem:[#allocation61_spill] sm:$0xff] %v10660_v54  ;;  %v5644_v59 = vadd.f32 %v12178_v47, %v12177_v28  ;;  %v10668_v58 = vadd.f32 %v12179_v42, %v5641_v50  ;;  %v12182_v52 = vld [vmem:[#allocation92_spill] sm:$0xff]  ;;  %v6049_v38 = vmul.f32 %v10660_v54, %v10660_v54  ;;  %v12186_v28 = vld [vmem:[#allocation86_spill] sm:$0xff] }
 0xc72   :  { %v5976_v49 = vadd.f32 %v5975_v61, %v10630_v18  ;;  %v6109_v55 = vadd.f32 %v6108_v62, %v6046_v22  ;;  %v5647_v61 = vadd.f32 %v12182_v52, %v12181_v15  ;;  %v10672_v18 = vpop.f32.mrf.mxu2  ;;  %v12183_v22 = vld [vmem:[#allocation109_spill] sm:$0xff] }
 0xc73   :  { %12180 = vst [vmem:[#allocation30_spill] sm:$0xff] %v10668_v58  ;;  %v10678_v62 = vadd.f32 %v12183_v22, %v5644_v59  ;;  %v6050_v15 = vmul.f32 %v10668_v58, %v10668_v58  ;;  %v12190_v52 = vld [vmem:[#allocation93_spill] sm:$0xff] }
 0xc74   :  { %v5977_v51 = vadd.f32 %v5976_v49, %v10640_v34  ;;  %v6110_v60 = vadd.f32 %v6109_v55, %v6047_v3  ;;  %v12185_v49 = vld [vmem:[#allocation89_spill] sm:$0xff]  ;;  %v10682_v34 = vpop.f32.mrf.mxu3  ;;  %v12187_v55 = vld [vmem:[#allocation110_spill] sm:$0xff] }
 0xc75   :  { %v10654_v13 = vpop.f32.mrf.mxu1  ;;  %12184 = vst [vmem:[#allocation42_spill] sm:$0xff] %v10678_v62  ;;  %v5650_v47 = vadd.f32 %v12186_v28, %v12185_v49  ;;  %v10688_v3 = vadd.f32 %v12187_v55, %v5647_v61  ;;  %v12193_v28 = vld [vmem:[#allocation90_spill] sm:$0xff] }
 0xc76   :  { %v5978_v12 = vadd.f32 %v5977_v51, %v10650_v10  ;;  %v6111_v50 = vadd.f32 %v6110_v60, %v6048_v30  ;;  %v12189_v51 = vld [vmem:[#allocation38_spill] sm:$0xff]  ;;  %v6051_v60 = vmul.f32 %v10678_v62, %v10678_v62  ;;  %v12191_v30 = vld [vmem:[#allocation111_spill] sm:$0xff] }
 0xc77   :  { %12188 = vst [vmem:[#allocation12_spill] sm:$0xff] %v10688_v3  ;;  %v5653_v10 = vadd.f32 %v12190_v52, %v12189_v51  ;;  %v6052_v51 = vmul.f32 %v10688_v3, %v10688_v3  ;;  %v12195_v52 = vld [vmem:[#allocation112_spill] sm:$0xff] }
 0xc78   :  { %v5979_v42 = vadd.f32 %v5978_v12, %v10660_v54  ;;  %v6112_v22 = vadd.f32 %v6111_v50, %v6049_v38  ;;  %v10700_v12 = vadd.f32 %v12191_v30, %v5650_v47  ;;  %v12194_v54 = vld [vmem:[#allocation50_spill] sm:$0xff]  ;;  %v12197_v38 = vld [vmem:[#allocation96_spill] sm:$0xff]  ;;  %v12198_v50 = vld [vmem:[#allocation41_spill] sm:$0xff] }
 0xc79   :  { %v5656_v61 = vadd.f32 %v12194_v54, %v12193_v28  ;;  %v10708_v44 = vadd.f32 %v12195_v52, %v5653_v10  ;;  %v12199_v30 = vld [vmem:[#allocation113_spill] sm:$0xff] }
 0xc7a   :  { %v5980_v49 = vadd.f32 %v5979_v42, %v10668_v58  ;;  %12192 = vst [vmem:[#allocation73_spill] sm:$0xff] %v10700_v12  ;;  %v6113_v55 = vadd.f32 %v6112_v22, %v6050_v15  ;;  %v5659_v42 = vadd.f32 %v12198_v50, %v12197_v38  ;;  %v6053_v47 = vmul.f32 %v10700_v12, %v10700_v12  ;;  %v12201_v15 = vld [vmem:[#allocation95_spill] sm:$0xff]  ;;  %v12202_v22 = vld [vmem:[#allocation53_spill] sm:$0xff]  ;;  %v10720_v28 = vpop.f32.mrf.mxu2  ;;  %v12206_v38 = vld [vmem:[#allocation56_spill] sm:$0xff] }
 0xc7b   :  { %12196 = vst [vmem:[#allocation97_spill] sm:$0xff] %v10708_v44  ;;  %v10716_v54 = vadd.f32 %v12199_v30, %v5656_v61  ;;  %v6054_v52 = vmul.f32 %v10708_v44, %v10708_v44 }
 0xc7c   :  { %v5981_v40 = vadd.f32 %v5980_v49, %v10678_v62  ;;  %v6114_v58 = vadd.f32 %v6113_v55, %v6051_v60  ;;  %v5662_v49 = vadd.f32 %v12202_v22, %v12201_v15  ;;  %v12203_v60 = vld [vmem:[#allocation114_spill] sm:$0xff]  ;;  %v12209_v22 = vld [vmem:[#allocation47_spill] sm:$0xff] }
 0xc7d   :  { %v10694_v59 = vpop.f32.mrf.mxu1  ;;  %12200 = vst [vmem:[#allocation11_spill] sm:$0xff] %v10716_v54  ;;  %v10726_v55 = vadd.f32 %v12203_v60, %v5659_v42  ;;  %v10742_v60 = vpop.f32.mrf.mxu0 }
 0xc7e   :  { %v5982_v9 = vadd.f32 %v5981_v40, %v10688_v3  ;;  %v6115_v62 = vadd.f32 %v6114_v58, %v6052_v51  ;;  %v12205_v40 = vld [vmem:[#allocation44_spill] sm:$0xff]  ;;  %v10730_v3 = vpop.f32.mrf.mxu3  ;;  %v6055_v58 = vmul.f32 %v10716_v54, %v10716_v54 }
 0xc7f   :  { %12204 = vst [vmem:[#allocation74_spill] sm:$0xff] %v10726_v55  ;;  %v5665_v50 = vadd.f32 %v12206_v38, %v12205_v40  ;;  %v6056_v38 = vmul.f32 %v10726_v55, %v10726_v55 }
 0xc80   :  { %v5983_v10 = vadd.f32 %v5982_v9, %v10700_v12  ;;  %v6116_v30 = vadd.f32 %v6115_v62, %v6053_v47  ;;  %v12207_v9 = vld [vmem:[#allocation115_spill] sm:$0xff]  ;;  %v12211_v62 = vld [vmem:[#allocation116_spill] sm:$0xff] }
 0xc81   :  { %v10738_v51 = vadd.f32 %v12207_v9, %v5662_v49  ;;  %v12210_v12 = vld [vmem:[#allocation51_spill] sm:$0xff]  ;;  %v10748_v47 = vadd.f32 %v12211_v62, %v5665_v50  ;;  %v12213_v9 = vld [vmem:[#allocation117_spill] sm:$0xff] }
 0xc82   :  { %v5984_v15 = vadd.f32 %v5983_v10, %v10708_v44  ;;  %v5668_v42 = vadd.f32 %v12210_v12, %v12209_v22  ;;  %v6117_v63 = vadd.f32 %v6116_v30, %v6054_v52  ;;  %v10761_v22 = vpop.f32.mrf.mxu2 }
 0xc83   :  { %12208 = vst [vmem:[#allocation99_spill] sm:$0xff] %v10738_v51  ;;  %v6057_v49 = vmul.f32 %v10738_v51, %v10738_v51  ;;  %v6058_v30 = vmul.f32 %v10748_v47, %v10748_v47 }
 0xc84   :  { %v5985_v40 = vadd.f32 %v5984_v15, %v10716_v54  ;;  %12212 = vst [vmem:[#allocation14_spill] sm:$0xff] %v10748_v47  ;;  %v6118_v10 = vadd.f32 %v6117_v63, %v6055_v58  ;;  %v10754_v4 = vadd.f32 %v12213_v9, %v5668_v42 }
 0xc85   :  { %v10732_v61 = vpop.f32.mrf.mxu1  ;;  %v10771_v62 = vpop.f32.mrf.mxu0 }
 0xc86   :  { %v5986_v44 = vadd.f32 %v5985_v40, %v10726_v55  ;;  %12214 = vst [vmem:[#allocation98_spill] sm:$0xff] %v10754_v4  ;;  %v6119_v12 = vadd.f32 %v6118_v10, %v6056_v38  ;;  %v6059_v58 = vmul.f32 %v10754_v4, %v10754_v4  ;;  %v10766_v40 = vpop.f32.mrf.mxu3 }
 0xc88   :  { %v5987_v52 = vadd.f32 %v5986_v44, %v10738_v51  ;;  %v6120_v50 = vadd.f32 %v6119_v12, %v6057_v49  ;;  %v6060_v44 = vmul.f32 %v10359_v5, %v10359_v5  ;;  %v6061_v49 = vmul.f32 %v10362_v37, %v10362_v37 }
 0xc8a   :  { %v5988_v63 = vadd.f32 %v5987_v52, %v10748_v47  ;;  %v6121_v42 = vadd.f32 %v6120_v50, %v6058_v30  ;;  %v6062_v47 = vmul.f32 %v10365_v17, %v10365_v17 }
 0xc8c   :  { %v5989_v38 = vadd.f32 %v5988_v63, %v10754_v4  ;;  %v6122_v10 = vadd.f32 %v6121_v42, %v6059_v58  ;;  %v6063_v4 = vmul.f32 %v10368_v11, %v10368_v11  ;;  %v10784_v58 = vpop.f32.mrf.mxu2 }
 0xc8d   :  { %v10759_v15 = vpop.f32.mrf.mxu1 }
 0xc8e   :  { %v5990_v9 = vadd.f32 %v5989_v38, %v10359_v5  ;;  %v6123_v12 = vadd.f32 %v6122_v10, %v6060_v44  ;;  %v6064_v44 = vmul.f32 %v10371_v45, %v10371_v45  ;;  %v10789_v10 = vpop.f32.mrf.mxu3 }
 0xc90   :  { %v5991_v52 = vadd.f32 %v5990_v9, %v10362_v37  ;;  %v6124_v50 = vadd.f32 %v6123_v12, %v6061_v49  ;;  %v12215_v9 = vld [vmem:[#allocation15_spill] sm:$0xff]  ;;  %v12216_v37 = vld [vmem:[#allocation18_spill] sm:$0xff]  ;;  %v6065_v12 = vmul.f32 %v10375_v24, %v10375_v24 }
 0xc91   :  { %v4874_v5 = vadd.f32 %v12216_v37, %v12215_v9  ;;  %v12220_v37 = vld [vmem:[#allocation19_spill] sm:$0xff] }
 0xc92   :  { %v5992_v63 = vadd.f32 %v5991_v52, %v10365_v17  ;;  %v6125_v42 = vadd.f32 %v6124_v50, %v6062_v47  ;;  %v12217_v52 = vld [vmem:[#allocation17_spill] sm:$0xff]  ;;  %v10798_v47 = vpop.f32.mrf.mxu0  ;;  %v12219_v50 = vld [vmem:[#allocation54_spill] sm:$0xff] }
 0xc93   :  { %v12218_v17 = vld [vmem:[#allocation21_spill] sm:$0xff] }
 0xc94   :  { %v5993_v38 = vadd.f32 %v5992_v63, %v10368_v11  ;;  %v6126_v51 = vadd.f32 %v6125_v42, %v6063_v4  ;;  %v4877_v55 = vadd.f32 %v12218_v17, %v12217_v52  ;;  %v5083_v63 = vadd.f32 %v12219_v50, %v4874_v5  ;;  %v12221_v4 = vld [vmem:[#allocation25_spill] sm:$0xff]  ;;  %v12227_v50 = vld [vmem:[#allocation34_spill] sm:$0xff] }
 0xc95   :  { %v10779_v30 = vpop.f32.mrf.mxu1  ;;  %v4880_v42 = vadd.f32 %v12221_v4, %v12220_v37  ;;  %v4883_v17 = vadd.f32 %v12224_v43, %v12223_v26  ;;  %v6067_v5 = vmul.f32 %v10391_v0, %v10391_v0  ;;  %v12229_v37 = vld [vmem:[#allocation40_spill] sm:$0xff]  ;;  %v12230_v4 = vld [vmem:[#allocation49_spill] sm:$0xff]  ;;  %v6068_v26 = vmul.f32 %v10428_v20, %v10428_v20 }
 0xc96   :  { %v5994_v49 = vadd.f32 %v5993_v38, %v10371_v45  ;;  %v6127_v11 = vadd.f32 %v6126_v51, %v6064_v44  ;;  %v12222_v38 = vld [vmem:[#allocation57_spill] sm:$0xff]  ;;  %v12225_v51 = vld [vmem:[#allocation28_spill] sm:$0xff]  ;;  %v5292_v53 = vadd.f32 %v10480_v32, %v5083_v63  ;;  %v12237_v63 = vld [vmem:[#allocation58_spill] sm:$0xff] }
 0xc97   :  { %v5086_v9 = vadd.f32 %v12222_v38, %v4877_v55  ;;  %v12226_v44 = vld [vmem:[#allocation37_spill] sm:$0xff]  ;;  %v4892_v55 = vadd.f32 %v12230_v4, %v12229_v37  ;;  %v12231_v38 = vld [vmem:[#allocation3_spill] sm:$0xff]  ;;  %v5315_v4 = vpop.f32.mrf.mxu2 }
 0xc98   :  { %v5995_v54 = vadd.f32 %v5994_v49, %v10375_v24  ;;  %v6128_v52 = vadd.f32 %v6127_v11, %v6065_v12  ;;  %v4886_v49 = vadd.f32 %v12226_v44, %v12225_v51  ;;  %v12228_v24 = vld [vmem:[#allocation43_spill] sm:$0xff]  ;;  %v5089_v6 = vadd.f32 %v12231_v38, %v4880_v42  ;;  %v12234_v51 = vld [vmem:[#allocation52_spill] sm:$0xff] }
 0xc99   :  { %v4889_v56 = vadd.f32 %v12228_v24, %v12227_v50  ;;  %v12233_v12 = vld [vmem:[#allocation55_spill] sm:$0xff]  ;;  %v12235_v44 = vld [vmem:[#allocation60_spill] sm:$0xff]  ;;  %v5295_v24 = vadd.f32 %v10529_v8, %v5086_v9  ;;  %v12236_v50 = vld [vmem:[#allocation5_spill] sm:$0xff]  ;;  %v5501_v42 = vadd.f32 %v10485_v39, %v5292_v53  ;;  %v5524_v9 = vpop.f32.mrf.mxu3 }
 0xc9a   :  { %v5996_v31 = vadd.f32 %v5995_v54, %v10379_v35  ;;  %v6129_v43 = vadd.f32 %v6128_v52, %v6066_v36  ;;  %v12232_v54 = vld [vmem:[#allocation46_spill] sm:$0xff]  ;;  %v4898_v1 = vadd.f32 %v12235_v44, %v12234_v51  ;;  %v5092_v37 = vadd.f32 %v12236_v50, %v4883_v17  ;;  %v12238_v52 = vld [vmem:[#allocation64_spill] sm:$0xff] }
 0xc9b   :  { %v4895_v35 = vadd.f32 %v12233_v12, %v12232_v54  ;;  %v4901_v38 = vadd.f32 %v12238_v52, %v12237_v63  ;;  %v5504_v54 = vadd.f32 %v10532_v33, %v5295_v24  ;;  %v5298_v12 = vadd.f32 %v10573_v2, %v5089_v6  ;;  %v12239_v51 = vld [vmem:[#allocation4_spill] sm:$0xff]  ;;  %v12240_v33 = vld [vmem:[#allocation6_spill] sm:$0xff]  ;;  %v5733_v6 = vpop.f32.mrf.mxu0 }
 0xc9c   :  { %v5997_v11 = vadd.f32 %v5996_v31, %v10391_v0  ;;  %v6130_v32 = vadd.f32 %v6129_v43, %v6067_v5  ;;  %v6069_v31 = vmul.f32 %v10463_v7, %v10463_v7  ;;  %v5095_v8 = vadd.f32 %v12239_v51, %v4886_v49 }
 0xc9d   :  { %v10807_v45 = vpop.f32.mrf.mxu1  ;;  %v5710_v17 = vadd.f32 %v10495_v46, %v5501_v42  ;;  %v6070_v5 = vmul.f32 %v10504_v48, %v10504_v48  ;;  %v5507_v43 = vadd.f32 %v10586_v27, %v5298_v12  ;;  %v5301_v44 = vadd.f32 %v10624_v25, %v5092_v37  ;;  %v12241_v25 = vld [vmem:[#allocation8_spill] sm:$0xff] }
 0xc9e   :  { %v5998_v36 = vadd.f32 %v5997_v11, %v10428_v20  ;;  %v6131_v53 = vadd.f32 %v6130_v32, %v6068_v26  ;;  %v5713_v11 = vadd.f32 %v10545_v57, %v5504_v54  ;;  %v5098_v24 = vadd.f32 %v12240_v33, %v4889_v56 }
 0xc9f   :  { %v6071_v46 = vmul.f32 %v10543_v14, %v10543_v14  ;;  %v10852_v26 = vadd.f32 %v10614_v16, %v5710_v17  ;;  %v5510_v42 = vadd.f32 %v10634_v19, %v5301_v44  ;;  %v5716_v27 = vadd.f32 %v10596_v29, %v5507_v43  ;;  %v12242_v29 = vld [vmem:[#allocation7_spill] sm:$0xff] }
 0xca0   :  { %v5999_v39 = vadd.f32 %v5998_v36, %v10463_v7  ;;  %v6132_v49 = vadd.f32 %v6131_v53, %v6069_v31  ;;  %v5304_v57 = vadd.f32 %v10672_v18, %v5095_v8  ;;  %v5101_v37 = vadd.f32 %v12241_v25, %v4892_v55 }
 0xca1   :  { %v6072_v36 = vmul.f32 %v10582_v41, %v10582_v41  ;;  %v10862_v31 = vadd.f32 %v10654_v13, %v5713_v11  ;;  %v5719_v63 = vadd.f32 %v10644_v21, %v5510_v42  ;;  %v5307_v19 = vadd.f32 %v10720_v28, %v5098_v24  ;;  %v12243_v21 = vld [vmem:[#allocation10_spill] sm:$0xff]  ;;  %v5318_v28 = vpop.f32.mrf.mxu2  ;;  %v5527_v43 = vpop.f32.mrf.mxu3 }
 0xca2   :  { %v6000_v50 = vadd.f32 %v5999_v39, %v10504_v48  ;;  %v6133_v56 = vadd.f32 %v6132_v49, %v6070_v5  ;;  %v5513_v16 = vadd.f32 %v10682_v34, %v5304_v57  ;;  %v5104_v52 = vadd.f32 %v12242_v29, %v4895_v35  ;;  %v12244_v5 = vld [vmem:[#allocation9_spill] sm:$0xff]  ;;  %v12245_v42 = vld [vmem:[#allocation62_spill] sm:$0xff] }
 0xca3   :  { %v6073_v54 = vmul.f32 %v10852_v26, %v10852_v26  ;;  %v10872_v12 = vadd.f32 %v10694_v59, %v5716_v27  ;;  %v5516_v13 = vadd.f32 %v10730_v3, %v5307_v19  ;;  %v5310_v34 = vadd.f32 %v10761_v22, %v5101_v37  ;;  %v5736_v49 = vpop.f32.mrf.mxu0  ;;  %v12246_v27 = vld [vmem:[#allocation65_spill] sm:$0xff] }
 0xca4   :  { %v6001_v32 = vadd.f32 %v6000_v50, %v10543_v14  ;;  %v6134_v18 = vadd.f32 %v6133_v56, %v6071_v46  ;;  %v5722_v51 = vadd.f32 %v10692_v23, %v5513_v16  ;;  %v5107_v8 = vadd.f32 %v12243_v21, %v4898_v1 }
 0xca5   :  { %v5939_v2 = vpop.f32.mrf.mxu1  ;;  %v6074_v53 = vmul.f32 %v10862_v31, %v10862_v31  ;;  %v10882_v39 = vadd.f32 %v10732_v61, %v5719_v63  ;;  %v5519_v59 = vadd.f32 %v10766_v40, %v5310_v34  ;;  %v5725_v3 = vadd.f32 %v10742_v60, %v5516_v13 }
 0xca6   :  { %v6002_v55 = vadd.f32 %v6001_v32, %v10582_v41  ;;  %v6135_v17 = vadd.f32 %v6134_v18, %v6072_v36  ;;  %v5313_v23 = vadd.f32 %v10784_v58, %v5104_v52  ;;  %v5110_v22 = vadd.f32 %v12244_v5, %v4901_v38  ;;  %v12247_v32 = vld [vmem:[#allocation66_spill] sm:$0xff] }
 0xca7   :  { %v6075_v33 = vmul.f32 %v10872_v12, %v10872_v12  ;;  %v10892_v24 = vadd.f32 %v10759_v15, %v5722_v51  ;;  %v5728_v40 = vadd.f32 %v10771_v62, %v5519_v59  ;;  %v5316_v60 = vadd.f32 %v5315_v4, %v5107_v8 }
 0xca8   :  { %v6003_v35 = vadd.f32 %v6002_v55, %v10852_v26  ;;  %v6136_v11 = vadd.f32 %v6135_v17, %v6073_v54  ;;  %v5522_v61 = vadd.f32 %v10789_v10, %v5313_v23  ;;  %v6076_v50 = vmul.f32 %v10882_v39, %v10882_v39 }
 0xca9   :  { %v10900_v46 = vadd.f32 %v10779_v30, %v5725_v3  ;;  %v4904_v57 = vadd.f32 %v12246_v27, %v12245_v42  ;;  %v5525_v15 = vadd.f32 %v5524_v9, %v5316_v60  ;;  %v5319_v10 = vadd.f32 %v5318_v28, %v5110_v22  ;;  %v5321_v18 = vpop.f32.mrf.mxu2  ;;  %v5530_v51 = vpop.f32.mrf.mxu3 }
 0xcaa   :  { %v6004_v44 = vadd.f32 %v6003_v35, %v10862_v31  ;;  %v6137_v58 = vadd.f32 %v6136_v11, %v6074_v53  ;;  %v5731_v25 = vadd.f32 %v10798_v47, %v5522_v61  ;;  %v6077_v4 = vmul.f32 %v10892_v24, %v10892_v24 }
 0xcab   :  { %v10909_v56 = vadd.f32 %v10807_v45, %v5728_v40  ;;  %v5113_v36 = vadd.f32 %v12247_v32, %v4904_v57  ;;  %v5528_v30 = vadd.f32 %v5527_v43, %v5319_v10  ;;  %v5734_v16 = vadd.f32 %v5733_v6, %v5525_v15  ;;  %v5739_v28 = vpop.f32.mrf.mxu0 }
 0xcac   :  { %v6005_v38 = vadd.f32 %v6004_v44, %v10872_v12  ;;  %v6138_v37 = vadd.f32 %v6137_v58, %v6075_v33  ;;  %v6078_v47 = vmul.f32 %v10900_v46, %v10900_v46  ;;  %v10915_v9 = vadd.f32 %v5939_v2, %v5731_v25 }
 0xcad   :  { %v5942_v1 = vpop.f32.mrf.mxu1  ;;  %v5737_v29 = vadd.f32 %v5736_v49, %v5528_v30  ;;  %v6079_v45 = vmul.f32 %v10909_v56, %v10909_v56  ;;  %v5322_v6 = vadd.f32 %v5321_v18, %v5113_v36 }
 0xcae   :  { %v6006_v62 = vadd.f32 %v6005_v38, %v10882_v39  ;;  %v6139_v63 = vadd.f32 %v6138_v37, %v6076_v50  ;;  %v10920_v13 = vadd.f32 %v5942_v1, %v5734_v16  ;;  %v6080_v2 = vmul.f32 %v10915_v9, %v10915_v9 }
 0xcaf   :  { %v5531_v17 = vadd.f32 %v5530_v51, %v5322_v6 }
 0xcb0   :  { %v6007_v19 = vadd.f32 %v6006_v62, %v10892_v24  ;;  %v6140_v55 = vadd.f32 %v6139_v63, %v6077_v4  ;;  %v6081_v59 = vmul.f32 %v10920_v13, %v10920_v13 }
 0xcb1   :  { %v5740_v3 = vadd.f32 %v5739_v28, %v5531_v17 }
 0xcb2   :  { %v6008_v54 = vadd.f32 %v6007_v19, %v10900_v46  ;;  %v6141_v34 = vadd.f32 %v6140_v55, %v6078_v47 }
 0xcb4   :  { %v6009_v21 = vadd.f32 %v6008_v54, %v10909_v56  ;;  %v6142_v35 = vadd.f32 %v6141_v34, %v6079_v45  ;;  %v6158_v54 = vld [vmem:[%s11335_s5] sm:$0x1] }
 0xcb5   :  { %v5945_v52 = vpop.f32.mrf.mxu1 }
 0xcb6   :  { %v10925_v8 = vadd.f32 %v5945_v52, %v5737_v29  ;;  %v6010_v53 = vadd.f32 %v6009_v21, %v10915_v9  ;;  %v6143_v23 = vadd.f32 %v6142_v35, %v6080_v2  ;;  %v6171_v2 = vld [vmem:[%s11336_s6] sm:$0x1]  ;;  %v12248_v35 = vld [vmem:[#allocation126_spill] sm:$0xff] }
 0xcb8   :  { %v6011_v5 = vadd.f32 %v6010_v53, %v10920_v13  ;;  %v6082_v22 = vmul.f32 %v10925_v8, %v10925_v8  ;;  %v6144_v1 = vadd.f32 %v6143_v23, %v6081_v59  ;;  %v12249_v59 = vld [vmem:[#allocation125_spill] sm:$0xff]  ;;  %v12250_v23 = vld [vmem:[#allocation127_spill] sm:$0xff] }
 0xcba   :  { %v6012_v11 = vadd.f32 %v6011_v5, %v10925_v8  ;;  %v6145_v33 = vadd.f32 %v6144_v1, %v6082_v22  ;;  %v12251_v22 = vld [vmem:[#allocation128_spill] sm:$0xff]  ;;  %v12252_v1 = vld [vmem:[#allocation129_spill] sm:$0xff] }
 0xcbd   :  { %v5948_v43 = vpop.f32.mrf.mxu1 }
 0xcbe   :  { %v5949_v44 = vadd.f32 %v5948_v43, %v5740_v3 }
 0xcc0   :  { %v6013_v61 = vadd.f32 %v6012_v11, %v5949_v44  ;;  %v6083_v40 = vmul.f32 %v5949_v44, %v5949_v44 }
 0xcc2   :  { %v6014_v60 = vrot.slane %v6013_v61, 4  ;;  %v6146_v49 = vadd.f32 %v6145_v33, %v6083_v40  ;;  %v12253_v40 = vld [vmem:[#allocation130_spill] sm:$0xff] }
 0xcc4   :  { %v6015_v58 = vadd.f32 %v6014_v60, %v6013_v61  ;;  %v6147_v38 = vrot.slane %v6146_v49, 4 }
 0xcc6   :  { %v6016_v50 = vrot.slane %v6015_v58, 2  ;;  %v6148_v42 = vadd.f32 %v6147_v38, %v6146_v49 }
 0xcc8   :  { %v6017_v27 = vadd.f32 %v6016_v50, %v6015_v58  ;;  %v6149_v57 = vrot.slane %v6148_v42, 2  ;;  %v12254_v58 = vld [vmem:[#allocation131_spill] sm:$0xff] }
 0xcca   :  { %v6018_v15 = vrot.slane %v6017_v27, 1  ;;  %v6150_v25 = vadd.f32 %v6149_v57, %v6148_v42  ;;  %v12255_v42 = vld [vmem:[#allocation132_spill] sm:$0xff]  ;;  %v12256_v57 = vld [vmem:[#allocation133_spill] sm:$0xff] }
 0xccc   :  { %v6019_v10 = vadd.f32 %v6018_v15, %v6017_v27  ;;  %v6151_v37 = vrot.slane %v6150_v25, 1 }
 0xcce   :  { %v6152_v62 = vadd.f32 %v6151_v37, %v6150_v25  ;;  %v6153_v4 = vmul.f32 0.001953125, %v6019_v10 }
 0xcd0   :  { %v6154_v32 = vmul.f32 0.001953125, %v6152_v62  ;;  %v6155_v36 = vmul.f32 %v6153_v4, %v6153_v4 }
 0xcd2   :  { %v6156_v30 = vsub.f32 %v6154_v32, %v6155_v36  ;;  %v12257_v36 = vld [vmem:[#allocation134_spill] sm:$0xff] }
 0xcd4   :  { %v6157_v16 = vmax.f32 %v6156_v30, 0.0 }
 0xcd6   :  { %v6159_v63 = vadd.f32 1e-05, %v6157_v16 }
 0xcd8   :  { %6475 = vrsqrt.f32 %v6159_v63  ;;  %vm6166_vm4 = vweird.f32 %v6159_v63 }
 0xcde   :  { %v6476_v19 = vpop.eup %6475 }
 0xcdf   :  { %v6161_v47 = vmul.f32 %v6476_v19, %v6159_v63  ;;  %vm6167_vm3 = vweird.f32 %v6476_v19 }
 0xce0   :  { %vm6168_vm5 = vmor %vm6166_vm4, %vm6167_vm3 }
 0xce1   :  { %v6162_v29 = vmul.f32 %v6476_v19, %v6161_v47 }
 0xce3   :  { %v6163_v52 = vmul.f32 0.5, %v6162_v29 }
 0xce5   :  { %v6164_v18 = vsub.f32 1.5, %v6163_v52 }
 0xce7   :  { %v6165_v55 = vmul.f32 %v6476_v19, %v6164_v18  ;;  %v12259_v18 = vld [vmem:[#allocation136_spill] sm:$0xff] }
 0xce9   :  { %v6169_v45 = vsel %vm6168_vm5, %v6476_v19, %v6165_v55  ;;  %v12258_v19 = vld [vmem:[#allocation135_spill] sm:$0xff] }
 0xcea   :  { %v6170_v6 = vmul.f32 %v6169_v45, %v6158_v54 }
 0xcec   :  { %v10937_v51 = vperm.slane %v6170_v6, 0  ;;  %v6172_v21 = vmul.f32 %v6170_v6, %v6153_v4  ;;  %v12260_v6 = vld [vmem:[#allocation137_spill] sm:$0xff] }
 0xcee   :  { %v6240_v34 = vmul.f32 %v10937_v51, %v5949_v44  ;;  %v6173_v28 = vsub.f32 %v6171_v2, %v6172_v21  ;;  %v6177_v53 = vmul.f32 %v10937_v51, %v12248_v35  ;;  %v6178_v3 = vmul.f32 %v10937_v51, %v12249_v59 }
 0xcef   :  { %v6179_v5 = vmul.f32 %v10937_v51, %v12250_v23  ;;  %v6180_v43 = vmul.f32 %v10937_v51, %v12251_v22  ;;  %v6181_v11 = vmul.f32 %v10937_v51, %v12252_v1  ;;  %v6182_v60 = vmul.f32 %v10937_v51, %v12253_v40 }
 0xcf0   :  { %v10943_v17 = vperm.slane %v6173_v28, 0  ;;  %v6183_v38 = vmul.f32 %v10937_v51, %v12254_v58  ;;  %v6184_v27 = vmul.f32 %v10937_v51, %v12255_v42  ;;  %v6185_v15 = vmul.f32 %v10937_v51, %v12256_v57  ;;  %v12261_v28 = vld [vmem:[#allocation36_spill] sm:$0xff] }
 0xcf1   :  { %v6186_v30 = vmul.f32 %v10937_v51, %v12257_v36  ;;  %v6187_v47 = vmul.f32 %v10937_v51, %v12258_v19  ;;  %v6188_v55 = vmul.f32 %v10937_v51, %v12259_v18  ;;  %v6190_v35 = vmul.f32 %v10937_v51, %v12261_v28  ;;  %v12266_v42 = vld [vmem:[#allocation68_spill] sm:$0xff] }
 0xcf2   :  { %v6244_v44 = vadd.f32 %v10943_v17, %v6177_v53  ;;  %v6245_v33 = vadd.f32 %v10943_v17, %v6178_v3  ;;  %v6246_v61 = vadd.f32 %v10943_v17, %v6179_v5  ;;  %v6247_v49 = vadd.f32 %v10943_v17, %v6180_v43  ;;  %v12262_v3 = vld [vmem:[#allocation20_spill] sm:$0xff]  ;;  %v12263_v43 = vld [vmem:[#allocation27_spill] sm:$0xff] }
 0xcf3   :  { %v6248_v50 = vadd.f32 %v10943_v17, %v6181_v11  ;;  %v6249_v25 = vadd.f32 %v10943_v17, %v6182_v60  ;;  %v10970_v10 = vadd.f32 %v10943_v17, %v6240_v34  ;;  %v6250_v37 = vadd.f32 %v10943_v17, %v6183_v38 }
 0xcf4   :  { %v6308_v62 = vmax.f32 %v6244_v44, 0.0  ;;  %v6309_v4 = vmax.f32 %v6245_v33, 0.0  ;;  %v6310_v32 = vmax.f32 %v6246_v61, 0.0  ;;  %v6251_v16 = vadd.f32 %v10943_v17, %v6184_v27  ;;  %v12264_v33 = vld [vmem:[#allocation59_spill] sm:$0xff] }
 0xcf5   :  { %v6311_v63 = vmax.f32 %v6247_v49, 0.0  ;;  %v6252_v29 = vadd.f32 %v10943_v17, %v6185_v15  ;;  %v6312_v52 = vmax.f32 %v6248_v50, 0.0  ;;  %v6253_v54 = vadd.f32 %v10943_v17, %v6186_v30  ;;  %v12265_v49 = vld [vmem:[#allocation26_spill] sm:$0xff] }
 0xcf6   :  { %6372 = vst [vmem:[%s11337_s7] sm:$0xff] %v6308_v62  ;;  %v6313_v45 = vmax.f32 %v6249_v25, 0.0  ;;  %v6189_v34 = vmul.f32 %v10937_v51, %v12260_v6  ;;  %v6254_v21 = vadd.f32 %v10943_v17, %v6187_v47  ;;  %v6314_v2 = vmax.f32 %v6250_v37, 0.0  ;;  %v12267_v25 = vld [vmem:[#allocation22_spill] sm:$0xff] }
 0xcf7   :  { %6373 = vst [vmem:[%s11337_s7 + $0x8] sm:$0xff] %v6309_v4  ;;  %v6255_v53 = vadd.f32 %v10943_v17, %v6188_v55  ;;  %v6315_v59 = vmax.f32 %v6251_v16, 0.0  ;;  %v6191_v23 = vmul.f32 %v10937_v51, %v12262_v3  ;;  %v6316_v22 = vmax.f32 %v6252_v29, 0.0 }
 0xcf8   :  { %6374 = vst [vmem:[%s11337_s7 + $0x10] sm:$0xff] %v6310_v32  ;;  %v6256_v5 = vadd.f32 %v10943_v17, %v6189_v34  ;;  %v6192_v1 = vmul.f32 %v10937_v51, %v12263_v43  ;;  %v6257_v11 = vadd.f32 %v10943_v17, %v6190_v35  ;;  %v6317_v44 = vmax.f32 %v6253_v54, 0.0  ;;  %v12268_v32 = vld [vmem:[#allocation39_spill] sm:$0xff] }
 0xcf9   :  { %6375 = vst [vmem:[%s11337_s7 + $0x18] sm:$0xff] %v6311_v63  ;;  %v6193_v61 = vmul.f32 %v10937_v51, %v12264_v33  ;;  %v6258_v40 = vadd.f32 %v10943_v17, %v6191_v23  ;;  %v6318_v60 = vmax.f32 %v6254_v21, 0.0  ;;  %v6194_v58 = vmul.f32 %v10937_v51, %v12265_v49  ;;  %v12269_v63 = vld [vmem:[#allocation70_spill] sm:$0xff] }
 0xcfa   :  { %6376 = vst [vmem:[%s11337_s7 + $0x20] sm:$0xff] %v6312_v52  ;;  %v6259_v38 = vadd.f32 %v10943_v17, %v6192_v1  ;;  %v6319_v50 = vmax.f32 %v6255_v53, 0.0  ;;  %v6195_v27 = vmul.f32 %v10937_v51, %v12266_v42  ;;  %v6320_v15 = vmax.f32 %v6256_v5, 0.0  ;;  %v12270_v52 = vld [vmem:[#allocation67_spill] sm:$0xff] }
 0xcfb   :  { %6377 = vst [vmem:[%s11337_s7 + $0x28] sm:$0xff] %v6313_v45  ;;  %v6260_v57 = vadd.f32 %v10943_v17, %v6193_v61  ;;  %v6196_v37 = vmul.f32 %v10937_v51, %v12267_v25  ;;  %v6261_v62 = vadd.f32 %v10943_v17, %v6194_v58  ;;  %v6321_v4 = vmax.f32 %v6257_v11, 0.0  ;;  %v12271_v45 = vld [vmem:[#allocation80_spill] sm:$0xff] }
 0xcfc   :  { %6378 = vst [vmem:[%s11337_s7 + $0x30] sm:$0xff] %v6314_v2  ;;  %v6197_v36 = vmul.f32 %v10937_v51, %v12268_v32  ;;  %v6262_v30 = vadd.f32 %v10943_v17, %v6195_v27  ;;  %v6322_v16 = vmax.f32 %v6258_v40, 0.0  ;;  %v6198_v19 = vmul.f32 %v10937_v51, %v12269_v63  ;;  %v12272_v2 = vld [vmem:[#allocation71_spill] sm:$0xff] }
 0xcfd   :  { %6379 = vst [vmem:[%s11337_s7 + $0x38] sm:$0xff] %v6315_v59  ;;  %v6263_v47 = vadd.f32 %v10943_v17, %v6196_v37  ;;  %v6323_v29 = vmax.f32 %v6259_v38, 0.0  ;;  %v6199_v18 = vmul.f32 %v10937_v51, %v12270_v52  ;;  %v6324_v54 = vmax.f32 %v6260_v57, 0.0  ;;  %v12273_v59 = vld [vmem:[#allocation24_spill] sm:$0xff] }
 0xcfe   :  { %6380 = vst [vmem:[%s11337_s7 + $0x40] sm:$0xff] %v6316_v22  ;;  %v6264_v55 = vadd.f32 %v10943_v17, %v6197_v36  ;;  %v6200_v6 = vmul.f32 %v10937_v51, %v12271_v45  ;;  %v6265_v34 = vadd.f32 %v10943_v17, %v6198_v19  ;;  %v6325_v21 = vmax.f32 %v6261_v62, 0.0  ;;  %v12274_v22 = vld [vmem:[#allocation33_spill] sm:$0xff] }
 0xcff   :  { %6381 = vst [vmem:[%s11337_s7 + $0x48] sm:$0xff] %v6317_v44  ;;  %v6201_v28 = vmul.f32 %v10937_v51, %v12272_v2  ;;  %v6266_v35 = vadd.f32 %v10943_v17, %v6199_v18  ;;  %v6326_v53 = vmax.f32 %v6262_v30, 0.0  ;;  %v6202_v3 = vmul.f32 %v10937_v51, %v12273_v59  ;;  %v12275_v44 = vld [vmem:[#allocation29_spill] sm:$0xff] }
 0xd00   :  { %6382 = vst [vmem:[%s11337_s7 + $0x50] sm:$0xff] %v6318_v60  ;;  %v6267_v23 = vadd.f32 %v10943_v17, %v6200_v6  ;;  %v6327_v5 = vmax.f32 %v6263_v47, 0.0  ;;  %v6203_v43 = vmul.f32 %v10937_v51, %v12274_v22  ;;  %v6328_v11 = vmax.f32 %v6264_v55, 0.0  ;;  %v12276_v60 = vld [vmem:[#allocation84_spill] sm:$0xff] }
 0xd01   :  { %6383 = vst [vmem:[%s11337_s7 + $0x58] sm:$0xff] %v6319_v50  ;;  %v6268_v1 = vadd.f32 %v10943_v17, %v6201_v28  ;;  %v6204_v33 = vmul.f32 %v10937_v51, %v12275_v44  ;;  %v6269_v61 = vadd.f32 %v10943_v17, %v6202_v3  ;;  %v6329_v40 = vmax.f32 %v6265_v34, 0.0  ;;  %v12277_v50 = vld [vmem:[#allocation61_spill] sm:$0xff] }
 0xd02   :  { %6384 = vst [vmem:[%s11337_s7 + $0x60] sm:$0xff] %v6320_v15  ;;  %v6205_v49 = vmul.f32 %v10937_v51, %v12276_v60  ;;  %v6270_v58 = vadd.f32 %v10943_v17, %v6203_v43  ;;  %v6330_v38 = vmax.f32 %v6266_v35, 0.0  ;;  %v6206_v42 = vmul.f32 %v10937_v51, %v12277_v50  ;;  %v12278_v15 = vld [vmem:[#allocation30_spill] sm:$0xff] }
 0xd03   :  { %6385 = vst [vmem:[%s11337_s7 + $0x68] sm:$0xff] %v6321_v4  ;;  %v6271_v27 = vadd.f32 %v10943_v17, %v6204_v33  ;;  %v6331_v57 = vmax.f32 %v6267_v23, 0.0  ;;  %v6207_v25 = vmul.f32 %v10937_v51, %v12278_v15  ;;  %v6332_v62 = vmax.f32 %v6268_v1, 0.0  ;;  %v12279_v4 = vld [vmem:[#allocation42_spill] sm:$0xff] }
 0xd04   :  { %6386 = vst [vmem:[%s11337_s7 + $0x70] sm:$0xff] %v6322_v16  ;;  %v6272_v37 = vadd.f32 %v10943_v17, %v6205_v49  ;;  %v6208_v32 = vmul.f32 %v10937_v51, %v12279_v4  ;;  %v6273_v36 = vadd.f32 %v10943_v17, %v6206_v42  ;;  %v6333_v30 = vmax.f32 %v6269_v61, 0.0  ;;  %v12280_v16 = vld [vmem:[#allocation12_spill] sm:$0xff] }
 0xd05   :  { %6387 = vst [vmem:[%s11337_s7 + $0x78] sm:$0xff] %v6323_v29  ;;  %v6209_v63 = vmul.f32 %v10937_v51, %v12280_v16  ;;  %v6274_v19 = vadd.f32 %v10943_v17, %v6207_v25  ;;  %v6334_v47 = vmax.f32 %v6270_v58, 0.0  ;;  %v12281_v29 = vld [vmem:[#allocation73_spill] sm:$0xff]  ;;  %v6335_v55 = vmax.f32 %v6271_v27, 0.0 }
 0xd06   :  { %6388 = vst [vmem:[%s11337_s7 + $0x80] sm:$0xff] %v6324_v54  ;;  %v6210_v52 = vmul.f32 %v10937_v51, %v12281_v29  ;;  %v6275_v18 = vadd.f32 %v10943_v17, %v6208_v32  ;;  %v12282_v54 = vld [vmem:[#allocation97_spill] sm:$0xff]  ;;  %v6336_v34 = vmax.f32 %v6272_v37, 0.0  ;;  %v6337_v35 = vmax.f32 %v6273_v36, 0.0 }
 0xd07   :  { %6389 = vst [vmem:[%s11337_s7 + $0x88] sm:$0xff] %v6325_v21  ;;  %v6211_v45 = vmul.f32 %v10937_v51, %v12282_v54  ;;  %v6276_v6 = vadd.f32 %v10943_v17, %v6209_v63  ;;  %v12283_v21 = vld [vmem:[#allocation11_spill] sm:$0xff]  ;;  %v6338_v23 = vmax.f32 %v6274_v19, 0.0 }
 0xd08   :  { %6390 = vst [vmem:[%s11337_s7 + $0x90] sm:$0xff] %v6326_v53  ;;  %v6212_v2 = vmul.f32 %v10937_v51, %v12283_v21  ;;  %v6277_v28 = vadd.f32 %v10943_v17, %v6210_v52  ;;  %v12284_v53 = vld [vmem:[#allocation74_spill] sm:$0xff]  ;;  %v6339_v1 = vmax.f32 %v6275_v18, 0.0 }
 0xd09   :  { %6391 = vst [vmem:[%s11337_s7 + $0x98] sm:$0xff] %v6327_v5  ;;  %v6213_v59 = vmul.f32 %v10937_v51, %v12284_v53  ;;  %v6278_v3 = vadd.f32 %v10943_v17, %v6211_v45  ;;  %v12285_v5 = vld [vmem:[#allocation99_spill] sm:$0xff]  ;;  %v6340_v61 = vmax.f32 %v6276_v6, 0.0 }
 0xd0a   :  { %6392 = vst [vmem:[%s11337_s7 + $0xa0] sm:$0xff] %v6328_v11  ;;  %v6214_v22 = vmul.f32 %v10937_v51, %v12285_v5  ;;  %v6279_v43 = vadd.f32 %v10943_v17, %v6212_v2  ;;  %v12286_v11 = vld [vmem:[#allocation14_spill] sm:$0xff]  ;;  %v6341_v58 = vmax.f32 %v6277_v28, 0.0 }
 0xd0b   :  { %6393 = vst [vmem:[%s11337_s7 + $0xa8] sm:$0xff] %v6329_v40  ;;  %v6215_v44 = vmul.f32 %v10937_v51, %v12286_v11  ;;  %v6280_v33 = vadd.f32 %v10943_v17, %v6213_v59  ;;  %v12287_v40 = vld [vmem:[#allocation98_spill] sm:$0xff]  ;;  %v6342_v27 = vmax.f32 %v6278_v3, 0.0  ;;  %v6225_v3 = vmul.f32 %v10937_v51, %v10428_v20 }
 0xd0c   :  { %6394 = vst [vmem:[%s11337_s7 + $0xb0] sm:$0xff] %v6330_v38  ;;  %v6216_v60 = vmul.f32 %v10937_v51, %v12287_v40  ;;  %v6281_v49 = vadd.f32 %v10943_v17, %v6214_v22  ;;  %v12288_v38 = vld [vmem:[#allocation118_spill] sm:$0xff]  ;;  %v6343_v37 = vmax.f32 %v6279_v43, 0.0  ;;  %v6227_v20 = vmul.f32 %v10937_v51, %v10504_v48 }
 0xd0d   :  { %6395 = vst [vmem:[%s11337_s7 + $0xb8] sm:$0xff] %v6331_v57  ;;  %v6217_v50 = vmul.f32 %v10937_v51, %v12288_v38  ;;  %v6282_v42 = vadd.f32 %v10943_v17, %v6215_v44  ;;  %v12289_v57 = vld [vmem:[#allocation119_spill] sm:$0xff]  ;;  %v6344_v36 = vmax.f32 %v6280_v33, 0.0  ;;  %v6229_v48 = vmul.f32 %v10937_v51, %v10582_v41 }
 0xd0e   :  { %6396 = vst [vmem:[%s11337_s7 + $0xc0] sm:$0xff] %v6332_v62  ;;  %v6218_v15 = vmul.f32 %v10937_v51, %v12289_v57  ;;  %v6283_v25 = vadd.f32 %v10943_v17, %v6216_v60  ;;  %v12290_v62 = vld [vmem:[#allocation120_spill] sm:$0xff]  ;;  %v6345_v19 = vmax.f32 %v6281_v49, 0.0  ;;  %v6231_v41 = vmul.f32 %v10937_v51, %v10862_v31 }
 0xd0f   :  { %6397 = vst [vmem:[%s11337_s7 + $0xc8] sm:$0xff] %v6333_v30  ;;  %v6219_v4 = vmul.f32 %v10937_v51, %v12290_v62  ;;  %v6284_v32 = vadd.f32 %v10943_v17, %v6217_v50  ;;  %v12291_v30 = vld [vmem:[#allocation121_spill] sm:$0xff]  ;;  %v6346_v18 = vmax.f32 %v6282_v42, 0.0  ;;  %v6233_v31 = vmul.f32 %v10937_v51, %v10882_v39 }
 0xd10   :  { %6398 = vst [vmem:[%s11337_s7 + $0xd0] sm:$0xff] %v6334_v47  ;;  %v6220_v16 = vmul.f32 %v10937_v51, %v12291_v30  ;;  %v6285_v63 = vadd.f32 %v10943_v17, %v6218_v15  ;;  %v12292_v47 = vld [vmem:[#allocation122_spill] sm:$0xff]  ;;  %v6347_v6 = vmax.f32 %v6283_v25, 0.0  ;;  %v6235_v39 = vmul.f32 %v10937_v51, %v10900_v46 }
 0xd11   :  { %6399 = vst [vmem:[%s11337_s7 + $0xd8] sm:$0xff] %v6335_v55  ;;  %v6221_v29 = vmul.f32 %v10937_v51, %v12292_v47  ;;  %v6286_v52 = vadd.f32 %v10943_v17, %v6219_v4  ;;  %v12293_v55 = vld [vmem:[#allocation123_spill] sm:$0xff]  ;;  %v6348_v28 = vmax.f32 %v6284_v32, 0.0  ;;  %v6237_v46 = vmul.f32 %v10937_v51, %v10915_v9 }
 0xd12   :  { %6400 = vst [vmem:[%s11337_s7 + $0xe0] sm:$0xff] %v6336_v34  ;;  %v6222_v54 = vmul.f32 %v10937_v51, %v12293_v55  ;;  %v6287_v45 = vadd.f32 %v10943_v17, %v6220_v16  ;;  %v12294_v34 = vld [vmem:[#allocation124_spill] sm:$0xff]  ;;  %v6349_v59 = vmax.f32 %v6285_v63, 0.0  ;;  %v6239_v9 = vmul.f32 %v10937_v51, %v10925_v8 }
 0xd13   :  { %6401 = vst [vmem:[%s11337_s7 + $0xe8] sm:$0xff] %v6337_v35  ;;  %v6223_v21 = vmul.f32 %v10937_v51, %v12294_v34  ;;  %v6288_v2 = vadd.f32 %v10943_v17, %v6221_v29  ;;  %v6224_v35 = vmul.f32 %v10937_v51, %v10391_v0  ;;  %v6350_v5 = vmax.f32 %v6286_v52, 0.0 }
 0xd14   :  { %6402 = vst [vmem:[%s11337_s7 + $0xf0] sm:$0xff] %v6338_v23  ;;  %v6289_v53 = vadd.f32 %v10943_v17, %v6222_v54  ;;  %v6226_v0 = vmul.f32 %v10937_v51, %v10463_v7  ;;  %v6351_v43 = vmax.f32 %v6287_v45, 0.0  ;;  %v6228_v7 = vmul.f32 %v10937_v51, %v10543_v14 }
 0xd15   :  { %6403 = vst [vmem:[%s11337_s7 + $0xf8] sm:$0xff] %v6339_v1  ;;  %v6290_v23 = vadd.f32 %v10943_v17, %v6223_v21  ;;  %v6291_v22 = vadd.f32 %v10943_v17, %v6224_v35  ;;  %v6292_v1 = vadd.f32 %v10943_v17, %v6225_v3  ;;  %v6352_v11 = vmax.f32 %v6288_v2, 0.0 }
 0xd16   :  { %6404 = vst [vmem:[%s11337_s7 + $0x100] sm:$0xff] %v6340_v61  ;;  %v6293_v44 = vadd.f32 %v10943_v17, %v6226_v0  ;;  %v6353_v33 = vmax.f32 %v6289_v53, 0.0  ;;  %v6294_v61 = vadd.f32 %v10943_v17, %v6227_v20  ;;  %v6230_v14 = vmul.f32 %v10937_v51, %v10852_v26 }
 0xd17   :  { %6405 = vst [vmem:[%s11337_s7 + $0x108] sm:$0xff] %v6341_v58  ;;  %v6354_v40 = vmax.f32 %v6290_v23, 0.0  ;;  %v6295_v60 = vadd.f32 %v10943_v17, %v6228_v7  ;;  %v6355_v49 = vmax.f32 %v6291_v22, 0.0  ;;  %v6296_v58 = vadd.f32 %v10943_v17, %v6229_v48 }
 0xd18   :  { %6406 = vst [vmem:[%s11337_s7 + $0x110] sm:$0xff] %v6342_v27  ;;  %v6356_v38 = vmax.f32 %v6292_v1, 0.0  ;;  %v6232_v26 = vmul.f32 %v10937_v51, %v10872_v12  ;;  %v6297_v50 = vadd.f32 %v10943_v17, %v6230_v14  ;;  %v6357_v42 = vmax.f32 %v6293_v44, 0.0 }
 0xd19   :  { %6407 = vst [vmem:[%s11337_s7 + $0x118] sm:$0xff] %v6343_v37  ;;  %v6298_v27 = vadd.f32 %v10943_v17, %v6231_v41  ;;  %v6358_v57 = vmax.f32 %v6294_v61, 0.0  ;;  %v6234_v12 = vmul.f32 %v10937_v51, %v10892_v24  ;;  %v6359_v25 = vmax.f32 %v6295_v60, 0.0 }
 0xd1a   :  { %6408 = vst [vmem:[%s11337_s7 + $0x120] sm:$0xff] %v6344_v36  ;;  %v6299_v15 = vadd.f32 %v10943_v17, %v6232_v26  ;;  %v6300_v37 = vadd.f32 %v10943_v17, %v6233_v31  ;;  %v6360_v62 = vmax.f32 %v6296_v58, 0.0  ;;  %v6236_v24 = vmul.f32 %v10937_v51, %v10909_v56 }
 0xd1b   :  { %6409 = vst [vmem:[%s11337_s7 + $0x128] sm:$0xff] %v6345_v19  ;;  %v6301_v4 = vadd.f32 %v10943_v17, %v6234_v12  ;;  %v6361_v32 = vmax.f32 %v6297_v50, 0.0  ;;  %v6302_v36 = vadd.f32 %v10943_v17, %v6235_v39  ;;  %v6362_v30 = vmax.f32 %v6298_v27, 0.0 }
 0xd1c   :  { %6410 = vst [vmem:[%s11337_s7 + $0x130] sm:$0xff] %v6346_v18  ;;  %v6238_v56 = vmul.f32 %v10937_v51, %v10920_v13  ;;  %v6303_v16 = vadd.f32 %v10943_v17, %v6236_v24  ;;  %v6363_v63 = vmax.f32 %v6299_v15, 0.0  ;;  %v6304_v19 = vadd.f32 %v10943_v17, %v6237_v46 }
 0xd1d   :  { %6411 = vst [vmem:[%s11337_s7 + $0x138] sm:$0xff] %v6347_v6  ;;  %v6364_v47 = vmax.f32 %v6300_v37, 0.0  ;;  %v6365_v13 = vmax.f32 %v6301_v4, 0.0  ;;  %v6306_v52 = vadd.f32 %v10943_v17, %v6239_v9  ;;  %v6366_v18 = vmax.f32 %v6302_v36, 0.0 }
 0xd1e   :  { %6412 = vst [vmem:[%s11337_s7 + $0x140] sm:$0xff] %v6348_v28  ;;  %v6305_v29 = vadd.f32 %v10943_v17, %v6238_v56  ;;  %v6367_v8 = vmax.f32 %v6303_v16, 0.0  ;;  %v6368_v51 = vmax.f32 %v6304_v19, 0.0  ;;  %v6371_v54 = vmax.f32 %v10970_v10, 0.0 }
 0xd1f   :  { %6413 = vst [vmem:[%s11337_s7 + $0x148] sm:$0xff] %v6349_v59  ;;  %v6370_v17 = vmax.f32 %v6306_v52, 0.0 }
 0xd20   :  { %6414 = vst [vmem:[%s11337_s7 + $0x150] sm:$0xff] %v6350_v5  ;;  %v6369_v55 = vmax.f32 %v6305_v29, 0.0 }
 0xd21   :  { %6415 = vst [vmem:[%s11337_s7 + $0x158] sm:$0xff] %v6351_v43 }
 0xd22   :  { %6416 = vst [vmem:[%s11337_s7 + $0x160] sm:$0xff] %v6352_v11 }
 0xd23   :  { %6417 = vst [vmem:[%s11337_s7 + $0x168] sm:$0xff] %v6353_v33 }
 0xd24   :  { %6418 = vst [vmem:[%s11337_s7 + $0x170] sm:$0xff] %v6354_v40 }
 0xd25   :  { %6419 = vst [vmem:[%s11337_s7 + $0x178] sm:$0xff] %v6355_v49 }
 0xd26   :  { %6420 = vst [vmem:[%s11337_s7 + $0x180] sm:$0xff] %v6356_v38 }
 0xd27   :  { %6421 = vst [vmem:[%s11337_s7 + $0x188] sm:$0xff] %v6357_v42 }
 0xd28   :  { %6422 = vst [vmem:[%s11337_s7 + $0x190] sm:$0xff] %v6358_v57 }
 0xd29   :  { %6423 = vst [vmem:[%s11337_s7 + $0x198] sm:$0xff] %v6359_v25 }
 0xd2a   :  { %6424 = vst [vmem:[%s11337_s7 + $0x1a0] sm:$0xff] %v6360_v62 }
 0xd2b   :  { %6425 = vst [vmem:[%s11337_s7 + $0x1a8] sm:$0xff] %v6361_v32 }
 0xd2c   :  { %6426 = vst [vmem:[%s11337_s7 + $0x1b0] sm:$0xff] %v6362_v30 }
 0xd2d   :  { %6427 = vst [vmem:[%s11337_s7 + $0x1b8] sm:$0xff] %v6363_v63 }
 0xd2e   :  { %6428 = vst [vmem:[%s11337_s7 + $0x1c0] sm:$0xff] %v6364_v47 }
 0xd2f   :  { %6429 = vst [vmem:[%s11337_s7 + $0x1c8] sm:$0xff] %v6365_v13 }
 0xd30   :  { %6430 = vst [vmem:[%s11337_s7 + $0x1d0] sm:$0xff] %v6366_v18 }
 0xd31   :  { %6431 = vst [vmem:[%s11337_s7 + $0x1d8] sm:$0xff] %v6367_v8 }
 0xd32   :  { %6432 = vst [vmem:[%s11337_s7 + $0x1e0] sm:$0xff] %v6368_v51 }
 0xd33   :  { %6433 = vst [vmem:[%s11337_s7 + $0x1e8] sm:$0xff] %v6369_v55 }
 0xd34   :  { %6434 = vst [vmem:[%s11337_s7 + $0x1f0] sm:$0xff] %v6370_v17 }
 0xd35   :  { %6435 = vst [vmem:[%s11337_s7 + $0x1f8] sm:$0xff] %v6371_v54 }

</bundles_post_ra>
